<compile_context>
chip_gen: v7x
topology: tpu7x:2x2x1
jax: 0.10.0
libtpu: 0.0.40
codegen_flags: <defaults>
</compile_context>

<pallas_src>
import functools

import jax
import jax.numpy as jnp
from jax.experimental import pallas as pl
from jax.experimental.pallas import tpu as pltpu


def _round_up(x, m):
    return -(-x // m) * m


def _vmem_limit_bytes(need):
    """Scoped-VMEM request: 2x working set + margin, capped for v7x headroom."""
    limit = min(2 * need + (4 << 20), 48 << 20)
    return int(max(limit, need + (2 << 20), 16 << 20))


# ---------------------------------------------------------------------------
# Fused Conv3x3("same") + BN(folded) + ReLU + MaxPool2x2 kernel (per image)
# ---------------------------------------------------------------------------
def _conv_pool_kernel(x_ref, w_ref, b_ref, o_ref, *, Wq, Mo):
    """One image: 3x3 conv (+effective bias, ReLU) fused with 2x2/2 max-pool.

    x_ref: (Mq, 4*Cin_p) bf16 -- the four (row,col)-parity planes of the
           zero-padded input stacked along channels, rows flattened (qy*Wq+qx).
    w_ref: (16, 4*Cin_p, Cout) bf16 fused weights, index ((rp*2+cp)*2+qy)*2+qx;
           each block scatters the relevant conv taps into their parity-plane
           channel group (BN scale folded in), zeros elsewhere.
    b_ref: (1, Cout) f32 effective bias (conv bias + BN shift).
    o_ref: (Mo, Cout) bf16 pooled output; flat row = r*Wq + c, columns
           c >= W/2 are don't-care and sliced off by the caller.
    """
    # Hoist the 4 distinct row slices (reused by all 16 dots / 4 parities).
    rows = {}
    for qy in (0, 1):
        for qx in (0, 1):
            off = qy * Wq + qx
            rows[(qy, qx)] = x_ref[off:off + Mo, :]

    def conv_parity(rp, cp):
        # Conv output restricted to rows 2r+rp, cols 2c+cp (flat over (r, c)):
        # 4 MXU dots with contraction width 4*Cin_p (taps fused via the
        # zero-scattered weight blocks).
        acc = None
        for qy in (0, 1):
            for qx in (0, 1):
                widx = ((rp * 2 + cp) * 2 + qy) * 2 + qx
                t = jnp.dot(rows[(qy, qx)], w_ref[widx],
                            preferred_element_type=jnp.float32)
                acc = t if acc is None else acc + t
        return acc

    m = conv_parity(0, 0)
    m = jnp.maximum(m, conv_parity(0, 1))
    m = jnp.maximum(m, conv_parity(1, 0))
    m = jnp.maximum(m, conv_parity(1, 1))
    # BN scale folded into the weights -> epilogue is bias + ReLU (both commute
    # with the max-pool).
    o_ref[...] = jnp.maximum(m + b_ref[...], 0.0).astype(o_ref.dtype)


def _make_planes(x_nhwc, Wq):
    """Zero-pad and stack the four (row,col)-parity planes along channels."""
    N, H, W, C = x_nhwc.shape
    Hq = H // 2 + 2
    xp = jnp.pad(x_nhwc,
                 ((0, 0), (1, 2 * Hq - H - 1), (1, 2 * Wq - W - 1), (0, 0)))
    planes = [xp[:, a::2, b::2, :] for a in (0, 1) for b in (0, 1)]
    stacked = jnp.concatenate(planes, axis=-1)          # (N, Hq, Wq, 4*C)
    return stacked.reshape(N, Hq * Wq, 4 * C).astype(jnp.bfloat16)


def conv3x3_bn_relu_pool(x_nhwc, w_fused, bias):
    """(N,H,W,Cin) -> (N,H/2,W/2,Cout): conv3x3 + BN + ReLU + maxpool2x2."""
    N, H, W, Cin = x_nhwc.shape
    Cin_p = w_fused.shape[1] // 4
    Cout = w_fused.shape[2]
    Hh, Wh = H // 2, W // 2
    Wq = _round_up(Wh + 2, 8)        # sublane-aligned parity-plane width
    Hq = Hh + 2
    Mq, Mo = Hq * Wq, Hh * Wq

    if Cin_p != Cin:                  # pad channels to the padded contraction
        x_nhwc = jnp.pad(x_nhwc, ((0, 0), (0, 0), (0, 0), (0, Cin_p - Cin)))

    planes = _make_planes(x_nhwc, Wq)                   # (N, Mq, 4*Cin_p) bf16
    # TODO(synk): emit the next layer's padded parity planes directly from the
    # kernel (and lane-pack the Cout<128 store) to remove this host-side glue.

    in_blk = Mq * max(4 * Cin_p, 128) * 2
    out_blk = Mo * max(Cout, 128) * 2
    w_bytes = 16 * 4 * Cin_p * Cout * 2
    need = 2 * in_blk + 2 * out_blk + w_bytes + 4 * Mo * Cout * 4 + (1 << 20)

    cost = pl.CostEstimate(
        flops=int(2 * N * 16 * Mo * 4 * Cin_p * Cout),
        transcendentals=0,
        bytes_accessed=int(N * (Mq * 4 * Cin_p * 2 + Mo * Cout * 2)
                           + w_bytes + Cout * 4))

    kernel = functools.partial(_conv_pool_kernel, Wq=Wq, Mo=Mo)
    out = pl.pallas_call(
        kernel,
        out_shape=jax.ShapeDtypeStruct((N, Mo, Cout), jnp.bfloat16),
        grid_spec=pltpu.PrefetchScalarGridSpec(
            num_scalar_prefetch=0,
            grid=(N,),
            in_specs=[
                pl.BlockSpec((None, Mq, 4 * Cin_p), lambda n: (n, 0, 0)),
                pl.BlockSpec((16, 4 * Cin_p, Cout), lambda n: (0, 0, 0)),
                pl.BlockSpec((1, Cout), lambda n: (0, 0)),
            ],
            out_specs=pl.BlockSpec((None, Mo, Cout), lambda n: (n, 0, 0)),
        ),
        compiler_params=pltpu.CompilerParams(
            dimension_semantics=("parallel",),
            vmem_limit_bytes=_vmem_limit_bytes(need)),
        cost_estimate=cost,
    )(planes, w_fused, bias)

    # Drop the don't-care columns -> NHWC (N, H/2, W/2, Cout) in bf16.
    return out.reshape(N, Hh, Wq, Cout)[:, :, :Wh, :]


# ---------------------------------------------------------------------------
# Classifier: Linear(feat_dim, 256) -> ReLU -> Linear(256, num_classes)
# K-tiled over feat_dim with an f32 accumulator; leading parallel batch axis.
# ---------------------------------------------------------------------------
def _mlp_kernel(x_ref, w1_ref, b1_ref, w2_ref, b2_ref, o_ref, acc_ref):
    k = pl.program_id(1)

    @pl.when(k == 0)
    def _init():
        acc_ref[...] = jnp.zeros_like(acc_ref)

    acc_ref[...] += jnp.dot(x_ref[...], w1_ref[...],
                            preferred_element_type=jnp.float32)

    @pl.when(k == pl.num_programs(1) - 1)
    def _finalize():
        h = jnp.maximum(acc_ref[...] + b1_ref[...], 0.0)
        o_ref[...] = (jnp.dot(h.astype(w2_ref.dtype), w2_ref[...],
                              preferred_element_type=jnp.float32)
                      + b2_ref[...])


def classifier(x_flat, w1, b1, w2, b2):
    N, K = x_flat.shape
    Hdim = w1.shape[1]
    C = w2.shape[1]

    # K tile: up to 2048, K zero-padded to a multiple (never a single huge block).
    tk = min(2048, _round_up(K, 512))
    Kp = _round_up(K, tk)
    if Kp != K:
        x_flat = jnp.pad(x_flat, ((0, 0), (0, Kp - K)))
        w1 = jnp.pad(w1, ((0, Kp - K), (0, 0)))

    bn = 128 if (N > 128 and N % 128 == 0) else N
    nb, nk = N // bn, Kp // tk

    need = (2 * bn * tk * 2 + 2 * tk * Hdim * 2 + Hdim * C * 2
            + bn * Hdim * 4 + 2 * bn * max(C, 128) * 4 + (1 << 20))
    cost = pl.CostEstimate(
        flops=int(2 * N * Kp * Hdim + 2 * N * Hdim * C),
        transcendentals=0,
        bytes_accessed=int(N * Kp * 2 + Kp * Hdim * 2 + Hdim * 4
                           + Hdim * C * 2 + C * 4 + N * C * 4))

    return pl.pallas_call(
        _mlp_kernel,
        out_shape=jax.ShapeDtypeStruct((N, C), jnp.float32),
        grid_spec=pltpu.PrefetchScalarGridSpec(
            num_scalar_prefetch=0,
            grid=(nb, nk),
            in_specs=[
                pl.BlockSpec((bn, tk), lambda b, k: (b, k)),
                pl.BlockSpec((tk, Hdim), lambda b, k: (k, 0)),
                pl.BlockSpec((1, Hdim), lambda b, k: (0, 0)),
                pl.BlockSpec((Hdim, C), lambda b, k: (0, 0)),
                pl.BlockSpec((1, C), lambda b, k: (0, 0)),
            ],
            out_specs=pl.BlockSpec((bn, C), lambda b, k: (b, 0)),
            scratch_shapes=[pltpu.VMEM((bn, Hdim), jnp.float32)],
        ),
        compiler_params=pltpu.CompilerParams(
            dimension_semantics=("parallel", "arbitrary"),
            vmem_limit_bytes=_vmem_limit_bytes(need)),
        cost_estimate=cost,
    )(x_flat.astype(jnp.bfloat16), w1.astype(jnp.bfloat16), b1,
      w2.astype(jnp.bfloat16), b2)


# ---------------------------------------------------------------------------
# Parameters (deterministic, synthetic — matches nn.Module shapes)
# ---------------------------------------------------------------------------
def make_conv_block_params(key, cin, cout):
    k1, k2, k3, k4, k5, k6 = jax.random.split(key, 6)
    # PyTorch Conv2d weight layout: (Cout, Cin, kH, kW)
    w = jax.random.normal(k1, (cout, cin, 3, 3), jnp.float32) * 0.05
    b = jax.random.normal(k2, (cout,), jnp.float32) * 0.05
    # BatchNorm2d (eval mode) folded into per-channel scale / shift.
    gamma = 1.0 + 0.1 * jax.random.normal(k3, (cout,), jnp.float32)
    beta = 0.1 * jax.random.normal(k4, (cout,), jnp.float32)
    mean = 0.1 * jax.random.normal(k5, (cout,), jnp.float32)
    var = jnp.abs(jax.random.normal(k6, (cout,), jnp.float32)) + 0.5
    eps = 1e-5
    scale = gamma / jnp.sqrt(var + eps)
    bias_eff = (b - mean) * scale + beta

    cin_p = _round_up(cin, 8)
    # (kH, kW, Cin_p, Cout) tap weights with the BN scale folded in.
    w_taps = jnp.transpose(w, (2, 3, 1, 0)) * scale
    w_taps = jnp.pad(w_taps, ((0, 0), (0, 0), (0, cin_p - cin), (0, 0)))

    # Fused weight: [rp, cp, qy, qx, ay, ax, cin, cout] -> (16, 4*cin_p, cout).
    # For output parity (rp,cp), tap (dy,dx) lands in plane-parity (ay,ax) at
    # row/col quotient offset (qy,qx): dy+rp = 2*qy+ay, dx+cp = 2*qx+ax.
    wf = jnp.zeros((2, 2, 2, 2, 2, 2, cin_p, cout), jnp.float32)
    for rp in (0, 1):
        for cp in (0, 1):
            for dy in range(3):
                for dx in range(3):
                    sy, sx = dy + rp, dx + cp
                    wf = wf.at[rp, cp, sy // 2, sx // 2,
                               sy % 2, sx % 2].set(w_taps[dy, dx])
    wf = wf.reshape(2, 2, 2, 2, 4 * cin_p, cout).reshape(16, 4 * cin_p, cout)
    return wf.astype(jnp.bfloat16), bias_eff.reshape(1, cout)


def make_params(key, num_classes, hf, wf, hidden=256):
    k1, k2, k3, k4, k5 = jax.random.split(key, 5)
    p = {}
    p["c1"] = make_conv_block_params(k1, 3, 32)
    p["c2"] = make_conv_block_params(k2, 32, 64)
    p["c3"] = make_conv_block_params(k3, 64, 128)

    cf = 128
    feat_dim = cf * hf * wf
    # PyTorch Linear weight layout (out, in) with the "in" axis in NCHW
    # (c, h, w) flatten order.
    ka, kb = jax.random.split(k4)
    w1_torch = jax.random.normal(ka, (hidden, feat_dim), jnp.float32) * 0.02
    # Fold the NCHW flatten order into fc1: permute its rows once so the
    # forward can flatten the NHWC activations directly (no transpose).
    chw_index = jnp.transpose(jnp.arange(feat_dim).reshape(cf, hf, wf),
                              (1, 2, 0)).reshape(-1)
    p["fc1_w"] = w1_torch.T[chw_index]                       # (feat_dim, hidden)
    p["fc1_b"] = (jax.random.normal(kb, (hidden,), jnp.float32)
                  * 0.02).reshape(1, hidden)
    ka, kb = jax.random.split(k5)
    p["fc2_w"] = (jax.random.normal(ka, (num_classes, hidden), jnp.float32)
                  * 0.02).T
    p["fc2_b"] = (jax.random.normal(kb, (num_classes,), jnp.float32)
                  * 0.02).reshape(1, num_classes)
    return p


# ---------------------------------------------------------------------------
# Forward pass (matches CustomGestureCNN.forward, eval mode)
# ---------------------------------------------------------------------------
def custom_gesture_cnn_forward(x_nchw, p):
    x = jnp.transpose(x_nchw, (0, 2, 3, 1))            # NCHW -> NHWC (input only)
    x = conv3x3_bn_relu_pool(x, *p["c1"])               # Conv+BN+ReLU+Pool (32)
    x = conv3x3_bn_relu_pool(x, *p["c2"])               # (64)
    x = conv3x3_bn_relu_pool(x, *p["c3"])               # (128)
    x = x.reshape(x.shape[0], -1)                        # HWC flatten; fc1 rows
    #                                                      are pre-permuted to
    #                                                      match PyTorch CHW.
    # TODO(synk): Dropout(0.5)/Dropout(0.3) and training-mode BatchNorm batch
    # statistics are not implemented; forward uses eval-mode semantics.
    return classifier(x, p["fc1_w"], p["fc1_b"], p["fc2_w"], p["fc2_b"])


if __name__ == "__main__":
    key = jax.random.PRNGKey(0)
    kp, kx = jax.random.split(key)

    num_classes = 10
    N, C, H, W = 2, 3, 32, 32        # small demo input (PyTorch spec: 224x224)

    params = make_params(kp, num_classes, H // 8, W // 8)
    x = jax.random.normal(kx, (N, C, H, W), jnp.float32)   # NCHW like PyTorch

    fwd = jax.jit(custom_gesture_cnn_forward)
    logits = fwd(x, params)
    jax.block_until_ready(logits)
    assert logits.shape == (N, num_classes)
    print("KERNEL_OK")
</pallas_src>

<mosaic_0001>
module attributes {stable_mosaic.version = 11 : i64} {
  func.func @_conv_pool_kernel(%arg0: i32, %arg1: memref<1x432x32xbf16, #tpu.memory_space<vmem>>, %arg2: memref<16x32x32xbf16, #tpu.memory_space<vmem>>, %arg3: memref<1x32xf32, #tpu.memory_space<vmem>>, %arg4: memref<1x384x32xbf16, #tpu.memory_space<vmem>>) attributes {dimension_semantics = [#tpu.dimension_semantics<parallel>], iteration_bounds = array<i64: 2>, scalar_prefetch = 0 : i64, scratch_operands = 0 : i64, tpu.core_type = #tpu.core_type<tc>, window_params = [{transform_indices = @transform_0, window_bounds = array<i64: 1, 432, 32>}, {pipeline_mode = #tpu.pipeline_mode<synchronous>, transform_indices = @transform_1, window_bounds = array<i64: 16, 32, 32>}, {pipeline_mode = #tpu.pipeline_mode<synchronous>, transform_indices = @transform_2, window_bounds = array<i64: 1, 32>}, {transform_indices = @transform_3, window_bounds = array<i64: 1, 384, 32>}]} {
    %c0 = arith.constant 0 : index
    %c0_0 = arith.constant 0 : index
    %c0_1 = arith.constant 0 : index
    %0 = vector.load %arg1[%c0, %c0_0, %c0_1] : memref<1x432x32xbf16, #tpu.memory_space<vmem>>, vector<1x384x32xbf16>
    %1 = vector.shape_cast %0 : vector<1x384x32xbf16> to vector<384x32xbf16>
    %c0_2 = arith.constant 0 : index
    %c1 = arith.constant 1 : index
    %c0_3 = arith.constant 0 : index
    %2 = vector.load %arg1[%c0_2, %c1, %c0_3] : memref<1x432x32xbf16, #tpu.memory_space<vmem>>, vector<1x384x32xbf16>
    %3 = vector.shape_cast %2 : vector<1x384x32xbf16> to vector<384x32xbf16>
    %c0_4 = arith.constant 0 : index
    %c24 = arith.constant 24 : index
    %c0_5 = arith.constant 0 : index
    %4 = vector.load %arg1[%c0_4, %c24, %c0_5] : memref<1x432x32xbf16, #tpu.memory_space<vmem>>, vector<1x384x32xbf16>
    %5 = vector.shape_cast %4 : vector<1x384x32xbf16> to vector<384x32xbf16>
    %c0_6 = arith.constant 0 : index
    %c25 = arith.constant 25 : index
    %c0_7 = arith.constant 0 : index
    %6 = vector.load %arg1[%c0_6, %c25, %c0_7] : memref<1x432x32xbf16, #tpu.memory_space<vmem>>, vector<1x384x32xbf16>
    %7 = vector.shape_cast %6 : vector<1x384x32xbf16> to vector<384x32xbf16>
    %c0_8 = arith.constant 0 : index
    %c0_9 = arith.constant 0 : index
    %c0_10 = arith.constant 0 : index
    %8 = vector.load %arg2[%c0_8, %c0_9, %c0_10] : memref<16x32x32xbf16, #tpu.memory_space<vmem>>, vector<1x32x32xbf16>
    %9 = vector.shape_cast %8 : vector<1x32x32xbf16> to vector<32x32xbf16>
    %cst = arith.constant dense<0.000000e+00> : vector<384x32xf32>
    %10 = tpu.matmul %1, %9, %cst {dimension_numbers = #tpu.dot_dimension_numbers<[1], [0], [0], [1], [0, 0, 1, 1], [], []>} : vector<384x32xbf16>, vector<32x32xbf16>, vector<384x32xf32> -> vector<384x32xf32>
    %c1_11 = arith.constant 1 : index
    %c0_12 = arith.constant 0 : index
    %c0_13 = arith.constant 0 : index
    %11 = vector.load %arg2[%c1_11, %c0_12, %c0_13] : memref<16x32x32xbf16, #tpu.memory_space<vmem>>, vector<1x32x32xbf16>
    %12 = vector.shape_cast %11 : vector<1x32x32xbf16> to vector<32x32xbf16>
    %cst_14 = arith.constant dense<0.000000e+00> : vector<384x32xf32>
    %13 = tpu.matmul %3, %12, %cst_14 {dimension_numbers = #tpu.dot_dimension_numbers<[1], [0], [0], [1], [0, 0, 1, 1], [], []>} : vector<384x32xbf16>, vector<32x32xbf16>, vector<384x32xf32> -> vector<384x32xf32>
    %14 = arith.addf %10, %13 : vector<384x32xf32>
    %c2 = arith.constant 2 : index
    %c0_15 = arith.constant 0 : index
    %c0_16 = arith.constant 0 : index
    %15 = vector.load %arg2[%c2, %c0_15, %c0_16] : memref<16x32x32xbf16, #tpu.memory_space<vmem>>, vector<1x32x32xbf16>
    %16 = vector.shape_cast %15 : vector<1x32x32xbf16> to vector<32x32xbf16>
    %cst_17 = arith.constant dense<0.000000e+00> : vector<384x32xf32>
    %17 = tpu.matmul %5, %16, %cst_17 {dimension_numbers = #tpu.dot_dimension_numbers<[1], [0], [0], [1], [0, 0, 1, 1], [], []>} : vector<384x32xbf16>, vector<32x32xbf16>, vector<384x32xf32> -> vector<384x32xf32>
    %18 = arith.addf %14, %17 : vector<384x32xf32>
    %c3 = arith.constant 3 : index
    %c0_18 = arith.constant 0 : index
    %c0_19 = arith.constant 0 : index
    %19 = vector.load %arg2[%c3, %c0_18, %c0_19] : memref<16x32x32xbf16, #tpu.memory_space<vmem>>, vector<1x32x32xbf16>
    %20 = vector.shape_cast %19 : vector<1x32x32xbf16> to vector<32x32xbf16>
    %cst_20 = arith.constant dense<0.000000e+00> : vector<384x32xf32>
    %21 = tpu.matmul %7, %20, %cst_20 {dimension_numbers = #tpu.dot_dimension_numbers<[1], [0], [0], [1], [0, 0, 1, 1], [], []>} : vector<384x32xbf16>, vector<32x32xbf16>, vector<384x32xf32> -> vector<384x32xf32>
    %22 = arith.addf %18, %21 : vector<384x32xf32>
    %c4 = arith.constant 4 : index
    %c0_21 = arith.constant 0 : index
    %c0_22 = arith.constant 0 : index
    %23 = vector.load %arg2[%c4, %c0_21, %c0_22] : memref<16x32x32xbf16, #tpu.memory_space<vmem>>, vector<1x32x32xbf16>
    %24 = vector.shape_cast %23 : vector<1x32x32xbf16> to vector<32x32xbf16>
    %cst_23 = arith.constant dense<0.000000e+00> : vector<384x32xf32>
    %25 = tpu.matmul %1, %24, %cst_23 {dimension_numbers = #tpu.dot_dimension_numbers<[1], [0], [0], [1], [0, 0, 1, 1], [], []>} : vector<384x32xbf16>, vector<32x32xbf16>, vector<384x32xf32> -> vector<384x32xf32>
    %c5 = arith.constant 5 : index
    %c0_24 = arith.constant 0 : index
    %c0_25 = arith.constant 0 : index
    %26 = vector.load %arg2[%c5, %c0_24, %c0_25] : memref<16x32x32xbf16, #tpu.memory_space<vmem>>, vector<1x32x32xbf16>
    %27 = vector.shape_cast %26 : vector<1x32x32xbf16> to vector<32x32xbf16>
    %cst_26 = arith.constant dense<0.000000e+00> : vector<384x32xf32>
    %28 = tpu.matmul %3, %27, %cst_26 {dimension_numbers = #tpu.dot_dimension_numbers<[1], [0], [0], [1], [0, 0, 1, 1], [], []>} : vector<384x32xbf16>, vector<32x32xbf16>, vector<384x32xf32> -> vector<384x32xf32>
    %29 = arith.addf %25, %28 : vector<384x32xf32>
    %c6 = arith.constant 6 : index
    %c0_27 = arith.constant 0 : index
    %c0_28 = arith.constant 0 : index
    %30 = vector.load %arg2[%c6, %c0_27, %c0_28] : memref<16x32x32xbf16, #tpu.memory_space<vmem>>, vector<1x32x32xbf16>
    %31 = vector.shape_cast %30 : vector<1x32x32xbf16> to vector<32x32xbf16>
    %cst_29 = arith.constant dense<0.000000e+00> : vector<384x32xf32>
    %32 = tpu.matmul %5, %31, %cst_29 {dimension_numbers = #tpu.dot_dimension_numbers<[1], [0], [0], [1], [0, 0, 1, 1], [], []>} : vector<384x32xbf16>, vector<32x32xbf16>, vector<384x32xf32> -> vector<384x32xf32>
    %33 = arith.addf %29, %32 : vector<384x32xf32>
    %c7 = arith.constant 7 : index
    %c0_30 = arith.constant 0 : index
    %c0_31 = arith.constant 0 : index
    %34 = vector.load %arg2[%c7, %c0_30, %c0_31] : memref<16x32x32xbf16, #tpu.memory_space<vmem>>, vector<1x32x32xbf16>
    %35 = vector.shape_cast %34 : vector<1x32x32xbf16> to vector<32x32xbf16>
    %cst_32 = arith.constant dense<0.000000e+00> : vector<384x32xf32>
    %36 = tpu.matmul %7, %35, %cst_32 {dimension_numbers = #tpu.dot_dimension_numbers<[1], [0], [0], [1], [0, 0, 1, 1], [], []>} : vector<384x32xbf16>, vector<32x32xbf16>, vector<384x32xf32> -> vector<384x32xf32>
    %37 = arith.addf %33, %36 : vector<384x32xf32>
    %38 = arith.maximumf %22, %37 : vector<384x32xf32>
    %c8 = arith.constant 8 : index
    %c0_33 = arith.constant 0 : index
    %c0_34 = arith.constant 0 : index
    %39 = vector.load %arg2[%c8, %c0_33, %c0_34] : memref<16x32x32xbf16, #tpu.memory_space<vmem>>, vector<1x32x32xbf16>
    %40 = vector.shape_cast %39 : vector<1x32x32xbf16> to vector<32x32xbf16>
    %cst_35 = arith.constant dense<0.000000e+00> : vector<384x32xf32>
    %41 = tpu.matmul %1, %40, %cst_35 {dimension_numbers = #tpu.dot_dimension_numbers<[1], [0], [0], [1], [0, 0, 1, 1], [], []>} : vector<384x32xbf16>, vector<32x32xbf16>, vector<384x32xf32> -> vector<384x32xf32>
    %c9 = arith.constant 9 : index
    %c0_36 = arith.constant 0 : index
    %c0_37 = arith.constant 0 : index
    %42 = vector.load %arg2[%c9, %c0_36, %c0_37] : memref<16x32x32xbf16, #tpu.memory_space<vmem>>, vector<1x32x32xbf16>
    %43 = vector.shape_cast %42 : vector<1x32x32xbf16> to vector<32x32xbf16>
    %cst_38 = arith.constant dense<0.000000e+00> : vector<384x32xf32>
    %44 = tpu.matmul %3, %43, %cst_38 {dimension_numbers = #tpu.dot_dimension_numbers<[1], [0], [0], [1], [0, 0, 1, 1], [], []>} : vector<384x32xbf16>, vector<32x32xbf16>, vector<384x32xf32> -> vector<384x32xf32>
    %45 = arith.addf %41, %44 : vector<384x32xf32>
    %c10 = arith.constant 10 : index
    %c0_39 = arith.constant 0 : index
    %c0_40 = arith.constant 0 : index
    %46 = vector.load %arg2[%c10, %c0_39, %c0_40] : memref<16x32x32xbf16, #tpu.memory_space<vmem>>, vector<1x32x32xbf16>
    %47 = vector.shape_cast %46 : vector<1x32x32xbf16> to vector<32x32xbf16>
    %cst_41 = arith.constant dense<0.000000e+00> : vector<384x32xf32>
    %48 = tpu.matmul %5, %47, %cst_41 {dimension_numbers = #tpu.dot_dimension_numbers<[1], [0], [0], [1], [0, 0, 1, 1], [], []>} : vector<384x32xbf16>, vector<32x32xbf16>, vector<384x32xf32> -> vector<384x32xf32>
    %49 = arith.addf %45, %48 : vector<384x32xf32>
    %c11 = arith.constant 11 : index
    %c0_42 = arith.constant 0 : index
    %c0_43 = arith.constant 0 : index
    %50 = vector.load %arg2[%c11, %c0_42, %c0_43] : memref<16x32x32xbf16, #tpu.memory_space<vmem>>, vector<1x32x32xbf16>
    %51 = vector.shape_cast %50 : vector<1x32x32xbf16> to vector<32x32xbf16>
    %cst_44 = arith.constant dense<0.000000e+00> : vector<384x32xf32>
    %52 = tpu.matmul %7, %51, %cst_44 {dimension_numbers = #tpu.dot_dimension_numbers<[1], [0], [0], [1], [0, 0, 1, 1], [], []>} : vector<384x32xbf16>, vector<32x32xbf16>, vector<384x32xf32> -> vector<384x32xf32>
    %53 = arith.addf %49, %52 : vector<384x32xf32>
    %54 = arith.maximumf %38, %53 : vector<384x32xf32>
    %c12 = arith.constant 12 : index
    %c0_45 = arith.constant 0 : index
    %c0_46 = arith.constant 0 : index
    %55 = vector.load %arg2[%c12, %c0_45, %c0_46] : memref<16x32x32xbf16, #tpu.memory_space<vmem>>, vector<1x32x32xbf16>
    %56 = vector.shape_cast %55 : vector<1x32x32xbf16> to vector<32x32xbf16>
    %cst_47 = arith.constant dense<0.000000e+00> : vector<384x32xf32>
    %57 = tpu.matmul %1, %56, %cst_47 {dimension_numbers = #tpu.dot_dimension_numbers<[1], [0], [0], [1], [0, 0, 1, 1], [], []>} : vector<384x32xbf16>, vector<32x32xbf16>, vector<384x32xf32> -> vector<384x32xf32>
    %c13 = arith.constant 13 : index
    %c0_48 = arith.constant 0 : index
    %c0_49 = arith.constant 0 : index
    %58 = vector.load %arg2[%c13, %c0_48, %c0_49] : memref<16x32x32xbf16, #tpu.memory_space<vmem>>, vector<1x32x32xbf16>
    %59 = vector.shape_cast %58 : vector<1x32x32xbf16> to vector<32x32xbf16>
    %cst_50 = arith.constant dense<0.000000e+00> : vector<384x32xf32>
    %60 = tpu.matmul %3, %59, %cst_50 {dimension_numbers = #tpu.dot_dimension_numbers<[1], [0], [0], [1], [0, 0, 1, 1], [], []>} : vector<384x32xbf16>, vector<32x32xbf16>, vector<384x32xf32> -> vector<384x32xf32>
    %61 = arith.addf %57, %60 : vector<384x32xf32>
    %c14 = arith.constant 14 : index
    %c0_51 = arith.constant 0 : index
    %c0_52 = arith.constant 0 : index
    %62 = vector.load %arg2[%c14, %c0_51, %c0_52] : memref<16x32x32xbf16, #tpu.memory_space<vmem>>, vector<1x32x32xbf16>
    %63 = vector.shape_cast %62 : vector<1x32x32xbf16> to vector<32x32xbf16>
    %cst_53 = arith.constant dense<0.000000e+00> : vector<384x32xf32>
    %64 = tpu.matmul %5, %63, %cst_53 {dimension_numbers = #tpu.dot_dimension_numbers<[1], [0], [0], [1], [0, 0, 1, 1], [], []>} : vector<384x32xbf16>, vector<32x32xbf16>, vector<384x32xf32> -> vector<384x32xf32>
    %65 = arith.addf %61, %64 : vector<384x32xf32>
    %c15 = arith.constant 15 : index
    %c0_54 = arith.constant 0 : index
    %c0_55 = arith.constant 0 : index
    %66 = vector.load %arg2[%c15, %c0_54, %c0_55] : memref<16x32x32xbf16, #tpu.memory_space<vmem>>, vector<1x32x32xbf16>
    %67 = vector.shape_cast %66 : vector<1x32x32xbf16> to vector<32x32xbf16>
    %cst_56 = arith.constant dense<0.000000e+00> : vector<384x32xf32>
    %68 = tpu.matmul %7, %67, %cst_56 {dimension_numbers = #tpu.dot_dimension_numbers<[1], [0], [0], [1], [0, 0, 1, 1], [], []>} : vector<384x32xbf16>, vector<32x32xbf16>, vector<384x32xf32> -> vector<384x32xf32>
    %69 = arith.addf %65, %68 : vector<384x32xf32>
    %70 = arith.maximumf %54, %69 : vector<384x32xf32>
    %c0_57 = arith.constant 0 : index
    %c0_58 = arith.constant 0 : index
    %71 = vector.load %arg3[%c0_57, %c0_58] : memref<1x32xf32, #tpu.memory_space<vmem>>, vector<1x32xf32>
    %72 = vector.broadcast %71 : vector<1x32xf32> to vector<384x32xf32>
    %73 = arith.addf %70, %72 : vector<384x32xf32>
    %cst_59 = arith.constant 0.000000e+00 : f32
    %74 = vector.broadcast %cst_59 : f32 to vector<384x32xf32>
    %75 = arith.maximumf %73, %74 : vector<384x32xf32>
    %76 = arith.truncf %75 : vector<384x32xf32> to vector<384x32xbf16>
    %c0_60 = arith.constant 0 : index
    %c0_61 = arith.constant 0 : index
    %c0_62 = arith.constant 0 : index
    %77 = vector.load %arg4[%c0_60, %c0_61, %c0_62] : memref<1x384x32xbf16, #tpu.memory_space<vmem>>, vector<1x384x32xbf16>
    %78 = vector.shape_cast %77 : vector<1x384x32xbf16> to vector<384x32xbf16>
    %79 = vector.shape_cast %76 : vector<384x32xbf16> to vector<1x384x32xbf16>
    tpu.vector_store %arg4[%c0_60, %c0_61, %c0_62], %79 {strides = array<i32>} : memref<1x384x32xbf16, #tpu.memory_space<vmem>>, vector<1x384x32xbf16>,
    return
  }
  func.func @transform_0(%arg0: i32) -> (i32, i32, i32) {
    %c0_i32 = arith.constant 0 : i32
    %c0_i32_0 = arith.constant 0 : i32
    %c0_i32_1 = arith.constant 0 : i32
    return %arg0, %c0_i32, %c0_i32_0 : i32, i32, i32
  }
  func.func @transform_1(%arg0: i32) -> (i32, i32, i32) {
    %c0_i32 = arith.constant 0 : i32
    %c0_i32_0 = arith.constant 0 : i32
    %c0_i32_1 = arith.constant 0 : i32
    %c0_i32_2 = arith.constant 0 : i32
    return %c0_i32, %c0_i32_0, %c0_i32_1 : i32, i32, i32
  }
  func.func @transform_2(%arg0: i32) -> (i32, i32) {
    %c0_i32 = arith.constant 0 : i32
    %c0_i32_0 = arith.constant 0 : i32
    %c0_i32_1 = arith.constant 0 : i32
    return %c0_i32, %c0_i32_0 : i32, i32
  }
  func.func @transform_3(%arg0: i32) -> (i32, i32, i32) {
    %c0_i32 = arith.constant 0 : i32
    %c0_i32_0 = arith.constant 0 : i32
    %c0_i32_1 = arith.constant 0 : i32
    return %arg0, %c0_i32, %c0_i32_0 : i32, i32, i32
  }
}

module attributes {stable_mosaic.version = 11 : i64} {
  func.func @_conv_pool_kernel(%arg0: i32, %arg1: memref<1x160x128xbf16, #tpu.memory_space<vmem>>, %arg2: memref<16x128x64xbf16, #tpu.memory_space<vmem>>, %arg3: memref<1x64xf32, #tpu.memory_space<vmem>>, %arg4: memref<1x128x64xbf16, #tpu.memory_space<vmem>>) attributes {dimension_semantics = [#tpu.dimension_semantics<parallel>], iteration_bounds = array<i64: 2>, scalar_prefetch = 0 : i64, scratch_operands = 0 : i64, tpu.core_type = #tpu.core_type<tc>, window_params = [{transform_indices = @transform_0, window_bounds = array<i64: 1, 160, 128>}, {pipeline_mode = #tpu.pipeline_mode<synchronous>, transform_indices = @transform_1, window_bounds = array<i64: 16, 128, 64>}, {pipeline_mode = #tpu.pipeline_mode<synchronous>, transform_indices = @transform_2, window_bounds = array<i64: 1, 64>}, {transform_indices = @transform_3, window_bounds = array<i64: 1, 128, 64>}]} {
    %c0 = arith.constant 0 : index
    %c0_0 = arith.constant 0 : index
    %c0_1 = arith.constant 0 : index
    %0 = vector.load %arg1[%c0, %c0_0, %c0_1] : memref<1x160x128xbf16, #tpu.memory_space<vmem>>, vector<1x128x128xbf16>
    %1 = vector.shape_cast %0 : vector<1x128x128xbf16> to vector<128x128xbf16>
    %c0_2 = arith.constant 0 : index
    %c1 = arith.constant 1 : index
    %c0_3 = arith.constant 0 : index
    %2 = vector.load %arg1[%c0_2, %c1, %c0_3] : memref<1x160x128xbf16, #tpu.memory_space<vmem>>, vector<1x128x128xbf16>
    %3 = vector.shape_cast %2 : vector<1x128x128xbf16> to vector<128x128xbf16>
    %c0_4 = arith.constant 0 : index
    %c16 = arith.constant 16 : index
    %c0_5 = arith.constant 0 : index
    %4 = vector.load %arg1[%c0_4, %c16, %c0_5] : memref<1x160x128xbf16, #tpu.memory_space<vmem>>, vector<1x128x128xbf16>
    %5 = vector.shape_cast %4 : vector<1x128x128xbf16> to vector<128x128xbf16>
    %c0_6 = arith.constant 0 : index
    %c17 = arith.constant 17 : index
    %c0_7 = arith.constant 0 : index
    %6 = vector.load %arg1[%c0_6, %c17, %c0_7] : memref<1x160x128xbf16, #tpu.memory_space<vmem>>, vector<1x128x128xbf16>
    %7 = vector.shape_cast %6 : vector<1x128x128xbf16> to vector<128x128xbf16>
    %c0_8 = arith.constant 0 : index
    %c0_9 = arith.constant 0 : index
    %c0_10 = arith.constant 0 : index
    %8 = vector.load %arg2[%c0_8, %c0_9, %c0_10] : memref<16x128x64xbf16, #tpu.memory_space<vmem>>, vector<1x128x64xbf16>
    %9 = vector.shape_cast %8 : vector<1x128x64xbf16> to vector<128x64xbf16>
    %cst = arith.constant dense<0.000000e+00> : vector<128x64xf32>
    %10 = tpu.matmul %1, %9, %cst {dimension_numbers = #tpu.dot_dimension_numbers<[1], [0], [0], [1], [0, 0, 1, 1], [], []>} : vector<128x128xbf16>, vector<128x64xbf16>, vector<128x64xf32> -> vector<128x64xf32>
    %c1_11 = arith.constant 1 : index
    %c0_12 = arith.constant 0 : index
    %c0_13 = arith.constant 0 : index
    %11 = vector.load %arg2[%c1_11, %c0_12, %c0_13] : memref<16x128x64xbf16, #tpu.memory_space<vmem>>, vector<1x128x64xbf16>
    %12 = vector.shape_cast %11 : vector<1x128x64xbf16> to vector<128x64xbf16>
    %cst_14 = arith.constant dense<0.000000e+00> : vector<128x64xf32>
    %13 = tpu.matmul %3, %12, %cst_14 {dimension_numbers = #tpu.dot_dimension_numbers<[1], [0], [0], [1], [0, 0, 1, 1], [], []>} : vector<128x128xbf16>, vector<128x64xbf16>, vector<128x64xf32> -> vector<128x64xf32>
    %14 = arith.addf %10, %13 : vector<128x64xf32>
    %c2 = arith.constant 2 : index
    %c0_15 = arith.constant 0 : index
    %c0_16 = arith.constant 0 : index
    %15 = vector.load %arg2[%c2, %c0_15, %c0_16] : memref<16x128x64xbf16, #tpu.memory_space<vmem>>, vector<1x128x64xbf16>
    %16 = vector.shape_cast %15 : vector<1x128x64xbf16> to vector<128x64xbf16>
    %cst_17 = arith.constant dense<0.000000e+00> : vector<128x64xf32>
    %17 = tpu.matmul %5, %16, %cst_17 {dimension_numbers = #tpu.dot_dimension_numbers<[1], [0], [0], [1], [0, 0, 1, 1], [], []>} : vector<128x128xbf16>, vector<128x64xbf16>, vector<128x64xf32> -> vector<128x64xf32>
    %18 = arith.addf %14, %17 : vector<128x64xf32>
    %c3 = arith.constant 3 : index
    %c0_18 = arith.constant 0 : index
    %c0_19 = arith.constant 0 : index
    %19 = vector.load %arg2[%c3, %c0_18, %c0_19] : memref<16x128x64xbf16, #tpu.memory_space<vmem>>, vector<1x128x64xbf16>
    %20 = vector.shape_cast %19 : vector<1x128x64xbf16> to vector<128x64xbf16>
    %cst_20 = arith.constant dense<0.000000e+00> : vector<128x64xf32>
    %21 = tpu.matmul %7, %20, %cst_20 {dimension_numbers = #tpu.dot_dimension_numbers<[1], [0], [0], [1], [0, 0, 1, 1], [], []>} : vector<128x128xbf16>, vector<128x64xbf16>, vector<128x64xf32> -> vector<128x64xf32>
    %22 = arith.addf %18, %21 : vector<128x64xf32>
    %c4 = arith.constant 4 : index
    %c0_21 = arith.constant 0 : index
    %c0_22 = arith.constant 0 : index
    %23 = vector.load %arg2[%c4, %c0_21, %c0_22] : memref<16x128x64xbf16, #tpu.memory_space<vmem>>, vector<1x128x64xbf16>
    %24 = vector.shape_cast %23 : vector<1x128x64xbf16> to vector<128x64xbf16>
    %cst_23 = arith.constant dense<0.000000e+00> : vector<128x64xf32>
    %25 = tpu.matmul %1, %24, %cst_23 {dimension_numbers = #tpu.dot_dimension_numbers<[1], [0], [0], [1], [0, 0, 1, 1], [], []>} : vector<128x128xbf16>, vector<128x64xbf16>, vector<128x64xf32> -> vector<128x64xf32>
    %c5 = arith.constant 5 : index
    %c0_24 = arith.constant 0 : index
    %c0_25 = arith.constant 0 : index
    %26 = vector.load %arg2[%c5, %c0_24, %c0_25] : memref<16x128x64xbf16, #tpu.memory_space<vmem>>, vector<1x128x64xbf16>
    %27 = vector.shape_cast %26 : vector<1x128x64xbf16> to vector<128x64xbf16>
    %cst_26 = arith.constant dense<0.000000e+00> : vector<128x64xf32>
    %28 = tpu.matmul %3, %27, %cst_26 {dimension_numbers = #tpu.dot_dimension_numbers<[1], [0], [0], [1], [0, 0, 1, 1], [], []>} : vector<128x128xbf16>, vector<128x64xbf16>, vector<128x64xf32> -> vector<128x64xf32>
    %29 = arith.addf %25, %28 : vector<128x64xf32>
    %c6 = arith.constant 6 : index
    %c0_27 = arith.constant 0 : index
    %c0_28 = arith.constant 0 : index
    %30 = vector.load %arg2[%c6, %c0_27, %c0_28] : memref<16x128x64xbf16, #tpu.memory_space<vmem>>, vector<1x128x64xbf16>
    %31 = vector.shape_cast %30 : vector<1x128x64xbf16> to vector<128x64xbf16>
    %cst_29 = arith.constant dense<0.000000e+00> : vector<128x64xf32>
    %32 = tpu.matmul %5, %31, %cst_29 {dimension_numbers = #tpu.dot_dimension_numbers<[1], [0], [0], [1], [0, 0, 1, 1], [], []>} : vector<128x128xbf16>, vector<128x64xbf16>, vector<128x64xf32> -> vector<128x64xf32>
    %33 = arith.addf %29, %32 : vector<128x64xf32>
    %c7 = arith.constant 7 : index
    %c0_30 = arith.constant 0 : index
    %c0_31 = arith.constant 0 : index
    %34 = vector.load %arg2[%c7, %c0_30, %c0_31] : memref<16x128x64xbf16, #tpu.memory_space<vmem>>, vector<1x128x64xbf16>
    %35 = vector.shape_cast %34 : vector<1x128x64xbf16> to vector<128x64xbf16>
    %cst_32 = arith.constant dense<0.000000e+00> : vector<128x64xf32>
    %36 = tpu.matmul %7, %35, %cst_32 {dimension_numbers = #tpu.dot_dimension_numbers<[1], [0], [0], [1], [0, 0, 1, 1], [], []>} : vector<128x128xbf16>, vector<128x64xbf16>, vector<128x64xf32> -> vector<128x64xf32>
    %37 = arith.addf %33, %36 : vector<128x64xf32>
    %38 = arith.maximumf %22, %37 : vector<128x64xf32>
    %c8 = arith.constant 8 : index
    %c0_33 = arith.constant 0 : index
    %c0_34 = arith.constant 0 : index
    %39 = vector.load %arg2[%c8, %c0_33, %c0_34] : memref<16x128x64xbf16, #tpu.memory_space<vmem>>, vector<1x128x64xbf16>
    %40 = vector.shape_cast %39 : vector<1x128x64xbf16> to vector<128x64xbf16>
    %cst_35 = arith.constant dense<0.000000e+00> : vector<128x64xf32>
    %41 = tpu.matmul %1, %40, %cst_35 {dimension_numbers = #tpu.dot_dimension_numbers<[1], [0], [0], [1], [0, 0, 1, 1], [], []>} : vector<128x128xbf16>, vector<128x64xbf16>, vector<128x64xf32> -> vector<128x64xf32>
    %c9 = arith.constant 9 : index
    %c0_36 = arith.constant 0 : index
    %c0_37 = arith.constant 0 : index
    %42 = vector.load %arg2[%c9, %c0_36, %c0_37] : memref<16x128x64xbf16, #tpu.memory_space<vmem>>, vector<1x128x64xbf16>
    %43 = vector.shape_cast %42 : vector<1x128x64xbf16> to vector<128x64xbf16>
    %cst_38 = arith.constant dense<0.000000e+00> : vector<128x64xf32>
    %44 = tpu.matmul %3, %43, %cst_38 {dimension_numbers = #tpu.dot_dimension_numbers<[1], [0], [0], [1], [0, 0, 1, 1], [], []>} : vector<128x128xbf16>, vector<128x64xbf16>, vector<128x64xf32> -> vector<128x64xf32>
    %45 = arith.addf %41, %44 : vector<128x64xf32>
    %c10 = arith.constant 10 : index
    %c0_39 = arith.constant 0 : index
    %c0_40 = arith.constant 0 : index
    %46 = vector.load %arg2[%c10, %c0_39, %c0_40] : memref<16x128x64xbf16, #tpu.memory_space<vmem>>, vector<1x128x64xbf16>
    %47 = vector.shape_cast %46 : vector<1x128x64xbf16> to vector<128x64xbf16>
    %cst_41 = arith.constant dense<0.000000e+00> : vector<128x64xf32>
    %48 = tpu.matmul %5, %47, %cst_41 {dimension_numbers = #tpu.dot_dimension_numbers<[1], [0], [0], [1], [0, 0, 1, 1], [], []>} : vector<128x128xbf16>, vector<128x64xbf16>, vector<128x64xf32> -> vector<128x64xf32>
    %49 = arith.addf %45, %48 : vector<128x64xf32>
    %c11 = arith.constant 11 : index
    %c0_42 = arith.constant 0 : index
    %c0_43 = arith.constant 0 : index
    %50 = vector.load %arg2[%c11, %c0_42, %c0_43] : memref<16x128x64xbf16, #tpu.memory_space<vmem>>, vector<1x128x64xbf16>
    %51 = vector.shape_cast %50 : vector<1x128x64xbf16> to vector<128x64xbf16>
    %cst_44 = arith.constant dense<0.000000e+00> : vector<128x64xf32>
    %52 = tpu.matmul %7, %51, %cst_44 {dimension_numbers = #tpu.dot_dimension_numbers<[1], [0], [0], [1], [0, 0, 1, 1], [], []>} : vector<128x128xbf16>, vector<128x64xbf16>, vector<128x64xf32> -> vector<128x64xf32>
    %53 = arith.addf %49, %52 : vector<128x64xf32>
    %54 = arith.maximumf %38, %53 : vector<128x64xf32>
    %c12 = arith.constant 12 : index
    %c0_45 = arith.constant 0 : index
    %c0_46 = arith.constant 0 : index
    %55 = vector.load %arg2[%c12, %c0_45, %c0_46] : memref<16x128x64xbf16, #tpu.memory_space<vmem>>, vector<1x128x64xbf16>
    %56 = vector.shape_cast %55 : vector<1x128x64xbf16> to vector<128x64xbf16>
    %cst_47 = arith.constant dense<0.000000e+00> : vector<128x64xf32>
    %57 = tpu.matmul %1, %56, %cst_47 {dimension_numbers = #tpu.dot_dimension_numbers<[1], [0], [0], [1], [0, 0, 1, 1], [], []>} : vector<128x128xbf16>, vector<128x64xbf16>, vector<128x64xf32> -> vector<128x64xf32>
    %c13 = arith.constant 13 : index
    %c0_48 = arith.constant 0 : index
    %c0_49 = arith.constant 0 : index
    %58 = vector.load %arg2[%c13, %c0_48, %c0_49] : memref<16x128x64xbf16, #tpu.memory_space<vmem>>, vector<1x128x64xbf16>
    %59 = vector.shape_cast %58 : vector<1x128x64xbf16> to vector<128x64xbf16>
    %cst_50 = arith.constant dense<0.000000e+00> : vector<128x64xf32>
    %60 = tpu.matmul %3, %59, %cst_50 {dimension_numbers = #tpu.dot_dimension_numbers<[1], [0], [0], [1], [0, 0, 1, 1], [], []>} : vector<128x128xbf16>, vector<128x64xbf16>, vector<128x64xf32> -> vector<128x64xf32>
    %61 = arith.addf %57, %60 : vector<128x64xf32>
    %c14 = arith.constant 14 : index
    %c0_51 = arith.constant 0 : index
    %c0_52 = arith.constant 0 : index
    %62 = vector.load %arg2[%c14, %c0_51, %c0_52] : memref<16x128x64xbf16, #tpu.memory_space<vmem>>, vector<1x128x64xbf16>
    %63 = vector.shape_cast %62 : vector<1x128x64xbf16> to vector<128x64xbf16>
    %cst_53 = arith.constant dense<0.000000e+00> : vector<128x64xf32>
    %64 = tpu.matmul %5, %63, %cst_53 {dimension_numbers = #tpu.dot_dimension_numbers<[1], [0], [0], [1], [0, 0, 1, 1], [], []>} : vector<128x128xbf16>, vector<128x64xbf16>, vector<128x64xf32> -> vector<128x64xf32>
    %65 = arith.addf %61, %64 : vector<128x64xf32>
    %c15 = arith.constant 15 : index
    %c0_54 = arith.constant 0 : index
    %c0_55 = arith.constant 0 : index
    %66 = vector.load %arg2[%c15, %c0_54, %c0_55] : memref<16x128x64xbf16, #tpu.memory_space<vmem>>, vector<1x128x64xbf16>
    %67 = vector.shape_cast %66 : vector<1x128x64xbf16> to vector<128x64xbf16>
    %cst_56 = arith.constant dense<0.000000e+00> : vector<128x64xf32>
    %68 = tpu.matmul %7, %67, %cst_56 {dimension_numbers = #tpu.dot_dimension_numbers<[1], [0], [0], [1], [0, 0, 1, 1], [], []>} : vector<128x128xbf16>, vector<128x64xbf16>, vector<128x64xf32> -> vector<128x64xf32>
    %69 = arith.addf %65, %68 : vector<128x64xf32>
    %70 = arith.maximumf %54, %69 : vector<128x64xf32>
    %c0_57 = arith.constant 0 : index
    %c0_58 = arith.constant 0 : index
    %71 = vector.load %arg3[%c0_57, %c0_58] : memref<1x64xf32, #tpu.memory_space<vmem>>, vector<1x64xf32>
    %72 = vector.broadcast %71 : vector<1x64xf32> to vector<128x64xf32>
    %73 = arith.addf %70, %72 : vector<128x64xf32>
    %cst_59 = arith.constant 0.000000e+00 : f32
    %74 = vector.broadcast %cst_59 : f32 to vector<128x64xf32>
    %75 = arith.maximumf %73, %74 : vector<128x64xf32>
    %76 = arith.truncf %75 : vector<128x64xf32> to vector<128x64xbf16>
    %c0_60 = arith.constant 0 : index
    %c0_61 = arith.constant 0 : index
    %c0_62 = arith.constant 0 : index
    %77 = vector.load %arg4[%c0_60, %c0_61, %c0_62] : memref<1x128x64xbf16, #tpu.memory_space<vmem>>, vector<1x128x64xbf16>
    %78 = vector.shape_cast %77 : vector<1x128x64xbf16> to vector<128x64xbf16>
    %79 = vector.shape_cast %76 : vector<128x64xbf16> to vector<1x128x64xbf16>
    tpu.vector_store %arg4[%c0_60, %c0_61, %c0_62], %79 {strides = array<i32>} : memref<1x128x64xbf16, #tpu.memory_space<vmem>>, vector<1x128x64xbf16>,
    return
  }
  func.func @transform_0(%arg0: i32) -> (i32, i32, i32) {
    %c0_i32 = arith.constant 0 : i32
    %c0_i32_0 = arith.constant 0 : i32
    %c0_i32_1 = arith.constant 0 : i32
    return %arg0, %c0_i32, %c0_i32_0 : i32, i32, i32
  }
  func.func @transform_1(%arg0: i32) -> (i32, i32, i32) {
    %c0_i32 = arith.constant 0 : i32
    %c0_i32_0 = arith.constant 0 : i32
    %c0_i32_1 = arith.constant 0 : i32
    %c0_i32_2 = arith.constant 0 : i32
    return %c0_i32, %c0_i32_0, %c0_i32_1 : i32, i32, i32
  }
  func.func @transform_2(%arg0: i32) -> (i32, i32) {
    %c0_i32 = arith.constant 0 : i32
    %c0_i32_0 = arith.constant 0 : i32
    %c0_i32_1 = arith.constant 0 : i32
    return %c0_i32, %c0_i32_0 : i32, i32
  }
  func.func @transform_3(%arg0: i32) -> (i32, i32, i32) {
    %c0_i32 = arith.constant 0 : i32
    %c0_i32_0 = arith.constant 0 : i32
    %c0_i32_1 = arith.constant 0 : i32
    return %arg0, %c0_i32, %c0_i32_0 : i32, i32, i32
  }
}

module attributes {stable_mosaic.version = 11 : i64} {
  func.func @_conv_pool_kernel(%arg0: i32, %arg1: memref<1x48x256xbf16, #tpu.memory_space<vmem>>, %arg2: memref<16x256x128xbf16, #tpu.memory_space<vmem>>, %arg3: memref<1x128xf32, #tpu.memory_space<vmem>>, %arg4: memref<1x32x128xbf16, #tpu.memory_space<vmem>>) attributes {dimension_semantics = [#tpu.dimension_semantics<parallel>], iteration_bounds = array<i64: 2>, scalar_prefetch = 0 : i64, scratch_operands = 0 : i64, tpu.core_type = #tpu.core_type<tc>, window_params = [{transform_indices = @transform_0, window_bounds = array<i64: 1, 48, 256>}, {pipeline_mode = #tpu.pipeline_mode<synchronous>, transform_indices = @transform_1, window_bounds = array<i64: 16, 256, 128>}, {pipeline_mode = #tpu.pipeline_mode<synchronous>, transform_indices = @transform_2, window_bounds = array<i64: 1, 128>}, {transform_indices = @transform_3, window_bounds = array<i64: 1, 32, 128>}]} {
    %c0 = arith.constant 0 : index
    %c0_0 = arith.constant 0 : index
    %c0_1 = arith.constant 0 : index
    %0 = vector.load %arg1[%c0, %c0_0, %c0_1] : memref<1x48x256xbf16, #tpu.memory_space<vmem>>, vector<1x32x256xbf16>
    %1 = vector.shape_cast %0 : vector<1x32x256xbf16> to vector<32x256xbf16>
    %c0_2 = arith.constant 0 : index
    %c1 = arith.constant 1 : index
    %c0_3 = arith.constant 0 : index
    %2 = vector.load %arg1[%c0_2, %c1, %c0_3] : memref<1x48x256xbf16, #tpu.memory_space<vmem>>, vector<1x32x256xbf16>
    %3 = vector.shape_cast %2 : vector<1x32x256xbf16> to vector<32x256xbf16>
    %c0_4 = arith.constant 0 : index
    %c8 = arith.constant 8 : index
    %c0_5 = arith.constant 0 : index
    %4 = vector.load %arg1[%c0_4, %c8, %c0_5] : memref<1x48x256xbf16, #tpu.memory_space<vmem>>, vector<1x32x256xbf16>
    %5 = vector.shape_cast %4 : vector<1x32x256xbf16> to vector<32x256xbf16>
    %c0_6 = arith.constant 0 : index
    %c9 = arith.constant 9 : index
    %c0_7 = arith.constant 0 : index
    %6 = vector.load %arg1[%c0_6, %c9, %c0_7] : memref<1x48x256xbf16, #tpu.memory_space<vmem>>, vector<1x32x256xbf16>
    %7 = vector.shape_cast %6 : vector<1x32x256xbf16> to vector<32x256xbf16>
    %c0_8 = arith.constant 0 : index
    %c0_9 = arith.constant 0 : index
    %c0_10 = arith.constant 0 : index
    %8 = vector.load %arg2[%c0_8, %c0_9, %c0_10] : memref<16x256x128xbf16, #tpu.memory_space<vmem>>, vector<1x256x128xbf16>
    %9 = vector.shape_cast %8 : vector<1x256x128xbf16> to vector<256x128xbf16>
    %cst = arith.constant dense<0.000000e+00> : vector<32x128xf32>
    %10 = tpu.matmul %1, %9, %cst {dimension_numbers = #tpu.dot_dimension_numbers<[1], [0], [0], [1], [0, 0, 1, 1], [], []>} : vector<32x256xbf16>, vector<256x128xbf16>, vector<32x128xf32> -> vector<32x128xf32>
    %c1_11 = arith.constant 1 : index
    %c0_12 = arith.constant 0 : index
    %c0_13 = arith.constant 0 : index
    %11 = vector.load %arg2[%c1_11, %c0_12, %c0_13] : memref<16x256x128xbf16, #tpu.memory_space<vmem>>, vector<1x256x128xbf16>
    %12 = vector.shape_cast %11 : vector<1x256x128xbf16> to vector<256x128xbf16>
    %cst_14 = arith.constant dense<0.000000e+00> : vector<32x128xf32>
    %13 = tpu.matmul %3, %12, %cst_14 {dimension_numbers = #tpu.dot_dimension_numbers<[1], [0], [0], [1], [0, 0, 1, 1], [], []>} : vector<32x256xbf16>, vector<256x128xbf16>, vector<32x128xf32> -> vector<32x128xf32>
    %14 = arith.addf %10, %13 : vector<32x128xf32>
    %c2 = arith.constant 2 : index
    %c0_15 = arith.constant 0 : index
    %c0_16 = arith.constant 0 : index
    %15 = vector.load %arg2[%c2, %c0_15, %c0_16] : memref<16x256x128xbf16, #tpu.memory_space<vmem>>, vector<1x256x128xbf16>
    %16 = vector.shape_cast %15 : vector<1x256x128xbf16> to vector<256x128xbf16>
    %cst_17 = arith.constant dense<0.000000e+00> : vector<32x128xf32>
    %17 = tpu.matmul %5, %16, %cst_17 {dimension_numbers = #tpu.dot_dimension_numbers<[1], [0], [0], [1], [0, 0, 1, 1], [], []>} : vector<32x256xbf16>, vector<256x128xbf16>, vector<32x128xf32> -> vector<32x128xf32>
    %18 = arith.addf %14, %17 : vector<32x128xf32>
    %c3 = arith.constant 3 : index
    %c0_18 = arith.constant 0 : index
    %c0_19 = arith.constant 0 : index
    %19 = vector.load %arg2[%c3, %c0_18, %c0_19] : memref<16x256x128xbf16, #tpu.memory_space<vmem>>, vector<1x256x128xbf16>
    %20 = vector.shape_cast %19 : vector<1x256x128xbf16> to vector<256x128xbf16>
    %cst_20 = arith.constant dense<0.000000e+00> : vector<32x128xf32>
    %21 = tpu.matmul %7, %20, %cst_20 {dimension_numbers = #tpu.dot_dimension_numbers<[1], [0], [0], [1], [0, 0, 1, 1], [], []>} : vector<32x256xbf16>, vector<256x128xbf16>, vector<32x128xf32> -> vector<32x128xf32>
    %22 = arith.addf %18, %21 : vector<32x128xf32>
    %c4 = arith.constant 4 : index
    %c0_21 = arith.constant 0 : index
    %c0_22 = arith.constant 0 : index
    %23 = vector.load %arg2[%c4, %c0_21, %c0_22] : memref<16x256x128xbf16, #tpu.memory_space<vmem>>, vector<1x256x128xbf16>
    %24 = vector.shape_cast %23 : vector<1x256x128xbf16> to vector<256x128xbf16>
    %cst_23 = arith.constant dense<0.000000e+00> : vector<32x128xf32>
    %25 = tpu.matmul %1, %24, %cst_23 {dimension_numbers = #tpu.dot_dimension_numbers<[1], [0], [0], [1], [0, 0, 1, 1], [], []>} : vector<32x256xbf16>, vector<256x128xbf16>, vector<32x128xf32> -> vector<32x128xf32>
    %c5 = arith.constant 5 : index
    %c0_24 = arith.constant 0 : index
    %c0_25 = arith.constant 0 : index
    %26 = vector.load %arg2[%c5, %c0_24, %c0_25] : memref<16x256x128xbf16, #tpu.memory_space<vmem>>, vector<1x256x128xbf16>
    %27 = vector.shape_cast %26 : vector<1x256x128xbf16> to vector<256x128xbf16>
    %cst_26 = arith.constant dense<0.000000e+00> : vector<32x128xf32>
    %28 = tpu.matmul %3, %27, %cst_26 {dimension_numbers = #tpu.dot_dimension_numbers<[1], [0], [0], [1], [0, 0, 1, 1], [], []>} : vector<32x256xbf16>, vector<256x128xbf16>, vector<32x128xf32> -> vector<32x128xf32>
    %29 = arith.addf %25, %28 : vector<32x128xf32>
    %c6 = arith.constant 6 : index
    %c0_27 = arith.constant 0 : index
    %c0_28 = arith.constant 0 : index
    %30 = vector.load %arg2[%c6, %c0_27, %c0_28] : memref<16x256x128xbf16, #tpu.memory_space<vmem>>, vector<1x256x128xbf16>
    %31 = vector.shape_cast %30 : vector<1x256x128xbf16> to vector<256x128xbf16>
    %cst_29 = arith.constant dense<0.000000e+00> : vector<32x128xf32>
    %32 = tpu.matmul %5, %31, %cst_29 {dimension_numbers = #tpu.dot_dimension_numbers<[1], [0], [0], [1], [0, 0, 1, 1], [], []>} : vector<32x256xbf16>, vector<256x128xbf16>, vector<32x128xf32> -> vector<32x128xf32>
    %33 = arith.addf %29, %32 : vector<32x128xf32>
    %c7 = arith.constant 7 : index
    %c0_30 = arith.constant 0 : index
    %c0_31 = arith.constant 0 : index
    %34 = vector.load %arg2[%c7, %c0_30, %c0_31] : memref<16x256x128xbf16, #tpu.memory_space<vmem>>, vector<1x256x128xbf16>
    %35 = vector.shape_cast %34 : vector<1x256x128xbf16> to vector<256x128xbf16>
    %cst_32 = arith.constant dense<0.000000e+00> : vector<32x128xf32>
    %36 = tpu.matmul %7, %35, %cst_32 {dimension_numbers = #tpu.dot_dimension_numbers<[1], [0], [0], [1], [0, 0, 1, 1], [], []>} : vector<32x256xbf16>, vector<256x128xbf16>, vector<32x128xf32> -> vector<32x128xf32>
    %37 = arith.addf %33, %36 : vector<32x128xf32>
    %38 = arith.maximumf %22, %37 : vector<32x128xf32>
    %c8_33 = arith.constant 8 : index
    %c0_34 = arith.constant 0 : index
    %c0_35 = arith.constant 0 : index
    %39 = vector.load %arg2[%c8_33, %c0_34, %c0_35] : memref<16x256x128xbf16, #tpu.memory_space<vmem>>, vector<1x256x128xbf16>
    %40 = vector.shape_cast %39 : vector<1x256x128xbf16> to vector<256x128xbf16>
    %cst_36 = arith.constant dense<0.000000e+00> : vector<32x128xf32>
    %41 = tpu.matmul %1, %40, %cst_36 {dimension_numbers = #tpu.dot_dimension_numbers<[1], [0], [0], [1], [0, 0, 1, 1], [], []>} : vector<32x256xbf16>, vector<256x128xbf16>, vector<32x128xf32> -> vector<32x128xf32>
    %c9_37 = arith.constant 9 : index
    %c0_38 = arith.constant 0 : index
    %c0_39 = arith.constant 0 : index
    %42 = vector.load %arg2[%c9_37, %c0_38, %c0_39] : memref<16x256x128xbf16, #tpu.memory_space<vmem>>, vector<1x256x128xbf16>
    %43 = vector.shape_cast %42 : vector<1x256x128xbf16> to vector<256x128xbf16>
    %cst_40 = arith.constant dense<0.000000e+00> : vector<32x128xf32>
    %44 = tpu.matmul %3, %43, %cst_40 {dimension_numbers = #tpu.dot_dimension_numbers<[1], [0], [0], [1], [0, 0, 1, 1], [], []>} : vector<32x256xbf16>, vector<256x128xbf16>, vector<32x128xf32> -> vector<32x128xf32>
    %45 = arith.addf %41, %44 : vector<32x128xf32>
    %c10 = arith.constant 10 : index
    %c0_41 = arith.constant 0 : index
    %c0_42 = arith.constant 0 : index
    %46 = vector.load %arg2[%c10, %c0_41, %c0_42] : memref<16x256x128xbf16, #tpu.memory_space<vmem>>, vector<1x256x128xbf16>
    %47 = vector.shape_cast %46 : vector<1x256x128xbf16> to vector<256x128xbf16>
    %cst_43 = arith.constant dense<0.000000e+00> : vector<32x128xf32>
    %48 = tpu.matmul %5, %47, %cst_43 {dimension_numbers = #tpu.dot_dimension_numbers<[1], [0], [0], [1], [0, 0, 1, 1], [], []>} : vector<32x256xbf16>, vector<256x128xbf16>, vector<32x128xf32> -> vector<32x128xf32>
    %49 = arith.addf %45, %48 : vector<32x128xf32>
    %c11 = arith.constant 11 : index
    %c0_44 = arith.constant 0 : index
    %c0_45 = arith.constant 0 : index
    %50 = vector.load %arg2[%c11, %c0_44, %c0_45] : memref<16x256x128xbf16, #tpu.memory_space<vmem>>, vector<1x256x128xbf16>
    %51 = vector.shape_cast %50 : vector<1x256x128xbf16> to vector<256x128xbf16>
    %cst_46 = arith.constant dense<0.000000e+00> : vector<32x128xf32>
    %52 = tpu.matmul %7, %51, %cst_46 {dimension_numbers = #tpu.dot_dimension_numbers<[1], [0], [0], [1], [0, 0, 1, 1], [], []>} : vector<32x256xbf16>, vector<256x128xbf16>, vector<32x128xf32> -> vector<32x128xf32>
    %53 = arith.addf %49, %52 : vector<32x128xf32>
    %54 = arith.maximumf %38, %53 : vector<32x128xf32>
    %c12 = arith.constant 12 : index
    %c0_47 = arith.constant 0 : index
    %c0_48 = arith.constant 0 : index
    %55 = vector.load %arg2[%c12, %c0_47, %c0_48] : memref<16x256x128xbf16, #tpu.memory_space<vmem>>, vector<1x256x128xbf16>
    %56 = vector.shape_cast %55 : vector<1x256x128xbf16> to vector<256x128xbf16>
    %cst_49 = arith.constant dense<0.000000e+00> : vector<32x128xf32>
    %57 = tpu.matmul %1, %56, %cst_49 {dimension_numbers = #tpu.dot_dimension_numbers<[1], [0], [0], [1], [0, 0, 1, 1], [], []>} : vector<32x256xbf16>, vector<256x128xbf16>, vector<32x128xf32> -> vector<32x128xf32>
    %c13 = arith.constant 13 : index
    %c0_50 = arith.constant 0 : index
    %c0_51 = arith.constant 0 : index
    %58 = vector.load %arg2[%c13, %c0_50, %c0_51] : memref<16x256x128xbf16, #tpu.memory_space<vmem>>, vector<1x256x128xbf16>
    %59 = vector.shape_cast %58 : vector<1x256x128xbf16> to vector<256x128xbf16>
    %cst_52 = arith.constant dense<0.000000e+00> : vector<32x128xf32>
    %60 = tpu.matmul %3, %59, %cst_52 {dimension_numbers = #tpu.dot_dimension_numbers<[1], [0], [0], [1], [0, 0, 1, 1], [], []>} : vector<32x256xbf16>, vector<256x128xbf16>, vector<32x128xf32> -> vector<32x128xf32>
    %61 = arith.addf %57, %60 : vector<32x128xf32>
    %c14 = arith.constant 14 : index
    %c0_53 = arith.constant 0 : index
    %c0_54 = arith.constant 0 : index
    %62 = vector.load %arg2[%c14, %c0_53, %c0_54] : memref<16x256x128xbf16, #tpu.memory_space<vmem>>, vector<1x256x128xbf16>
    %63 = vector.shape_cast %62 : vector<1x256x128xbf16> to vector<256x128xbf16>
    %cst_55 = arith.constant dense<0.000000e+00> : vector<32x128xf32>
    %64 = tpu.matmul %5, %63, %cst_55 {dimension_numbers = #tpu.dot_dimension_numbers<[1], [0], [0], [1], [0, 0, 1, 1], [], []>} : vector<32x256xbf16>, vector<256x128xbf16>, vector<32x128xf32> -> vector<32x128xf32>
    %65 = arith.addf %61, %64 : vector<32x128xf32>
    %c15 = arith.constant 15 : index
    %c0_56 = arith.constant 0 : index
    %c0_57 = arith.constant 0 : index
    %66 = vector.load %arg2[%c15, %c0_56, %c0_57] : memref<16x256x128xbf16, #tpu.memory_space<vmem>>, vector<1x256x128xbf16>
    %67 = vector.shape_cast %66 : vector<1x256x128xbf16> to vector<256x128xbf16>
    %cst_58 = arith.constant dense<0.000000e+00> : vector<32x128xf32>
    %68 = tpu.matmul %7, %67, %cst_58 {dimension_numbers = #tpu.dot_dimension_numbers<[1], [0], [0], [1], [0, 0, 1, 1], [], []>} : vector<32x256xbf16>, vector<256x128xbf16>, vector<32x128xf32> -> vector<32x128xf32>
    %69 = arith.addf %65, %68 : vector<32x128xf32>
    %70 = arith.maximumf %54, %69 : vector<32x128xf32>
    %c0_59 = arith.constant 0 : index
    %c0_60 = arith.constant 0 : index
    %71 = vector.load %arg3[%c0_59, %c0_60] : memref<1x128xf32, #tpu.memory_space<vmem>>, vector<1x128xf32>
    %72 = vector.broadcast %71 : vector<1x128xf32> to vector<32x128xf32>
    %73 = arith.addf %70, %72 : vector<32x128xf32>
    %cst_61 = arith.constant 0.000000e+00 : f32
    %74 = vector.broadcast %cst_61 : f32 to vector<32x128xf32>
    %75 = arith.maximumf %73, %74 : vector<32x128xf32>
    %76 = arith.truncf %75 : vector<32x128xf32> to vector<32x128xbf16>
    %c0_62 = arith.constant 0 : index
    %c0_63 = arith.constant 0 : index
    %c0_64 = arith.constant 0 : index
    %77 = vector.load %arg4[%c0_62, %c0_63, %c0_64] : memref<1x32x128xbf16, #tpu.memory_space<vmem>>, vector<1x32x128xbf16>
    %78 = vector.shape_cast %77 : vector<1x32x128xbf16> to vector<32x128xbf16>
    %79 = vector.shape_cast %76 : vector<32x128xbf16> to vector<1x32x128xbf16>
    tpu.vector_store %arg4[%c0_62, %c0_63, %c0_64], %79 {strides = array<i32>} : memref<1x32x128xbf16, #tpu.memory_space<vmem>>, vector<1x32x128xbf16>,
    return
  }
  func.func @transform_0(%arg0: i32) -> (i32, i32, i32) {
    %c0_i32 = arith.constant 0 : i32
    %c0_i32_0 = arith.constant 0 : i32
    %c0_i32_1 = arith.constant 0 : i32
    return %arg0, %c0_i32, %c0_i32_0 : i32, i32, i32
  }
  func.func @transform_1(%arg0: i32) -> (i32, i32, i32) {
    %c0_i32 = arith.constant 0 : i32
    %c0_i32_0 = arith.constant 0 : i32
    %c0_i32_1 = arith.constant 0 : i32
    %c0_i32_2 = arith.constant 0 : i32
    return %c0_i32, %c0_i32_0, %c0_i32_1 : i32, i32, i32
  }
  func.func @transform_2(%arg0: i32) -> (i32, i32) {
    %c0_i32 = arith.constant 0 : i32
    %c0_i32_0 = arith.constant 0 : i32
    %c0_i32_1 = arith.constant 0 : i32
    return %c0_i32, %c0_i32_0 : i32, i32
  }
  func.func @transform_3(%arg0: i32) -> (i32, i32, i32) {
    %c0_i32 = arith.constant 0 : i32
    %c0_i32_0 = arith.constant 0 : i32
    %c0_i32_1 = arith.constant 0 : i32
    return %arg0, %c0_i32, %c0_i32_0 : i32, i32, i32
  }
}

module attributes {stable_mosaic.version = 11 : i64} {
  func.func @_mlp_kernel(%arg0: i32, %arg1: i32, %arg2: memref<2x2048xbf16, #tpu.memory_space<vmem>>, %arg3: memref<2048x256xbf16, #tpu.memory_space<vmem>>, %arg4: memref<1x256xf32, #tpu.memory_space<vmem>>, %arg5: memref<256x10xbf16, #tpu.memory_space<vmem>>, %arg6: memref<1x10xf32, #tpu.memory_space<vmem>>, %arg7: memref<2x10xf32, #tpu.memory_space<vmem>>, %arg8: memref<2x256xf32, #tpu.memory_space<vmem>>) attributes {dimension_semantics = [#tpu.dimension_semantics<parallel>, #tpu.dimension_semantics<arbitrary>], iteration_bounds = array<i64: 1, 1>, scalar_prefetch = 0 : i64, scratch_operands = 1 : i64, tpu.core_type = #tpu.core_type<tc>, window_params = [{transform_indices = @transform_0, window_bounds = array<i64: 2, 2048>}, {transform_indices = @transform_1, window_bounds = array<i64: 2048, 256>}, {pipeline_mode = #tpu.pipeline_mode<synchronous>, transform_indices = @transform_2, window_bounds = array<i64: 1, 256>}, {pipeline_mode = #tpu.pipeline_mode<synchronous>, transform_indices = @transform_3, window_bounds = array<i64: 256, 10>}, {pipeline_mode = #tpu.pipeline_mode<synchronous>, transform_indices = @transform_4, window_bounds = array<i64: 1, 10>}, {transform_indices = @transform_5, window_bounds = array<i64: 2, 10>}]} {
    %c0_i32 = arith.constant 0 : i32
    %0 = arith.cmpi eq, %arg1, %c0_i32 : i32
    %1 = arith.extui %0 : i1 to i32
    %c0_i32_0 = arith.constant 0 : i32
    %2 = arith.cmpi ne, %1, %c0_i32_0 : i32
    scf.if %2 {
      %cst_10 = arith.constant 0.000000e+00 : f32
      %12 = vector.broadcast %cst_10 : f32 to vector<2x256xf32>
      %c0_11 = arith.constant 0 : index
      %c0_12 = arith.constant 0 : index
      %13 = vector.load %arg8[%c0_11, %c0_12] : memref<2x256xf32, #tpu.memory_space<vmem>>, vector<2x256xf32>
      tpu.vector_store %arg8[%c0_11, %c0_12], %12 {strides = array<i32>} : memref<2x256xf32, #tpu.memory_space<vmem>>, vector<2x256xf32>,
    } else {
    }
    %c0 = arith.constant 0 : index
    %c0_1 = arith.constant 0 : index
    %3 = vector.load %arg8[%c0, %c0_1] : memref<2x256xf32, #tpu.memory_space<vmem>>, vector<2x256xf32>
    %c0_2 = arith.constant 0 : index
    %c0_3 = arith.constant 0 : index
    %4 = vector.load %arg2[%c0_2, %c0_3] : memref<2x2048xbf16, #tpu.memory_space<vmem>>, vector<2x2048xbf16>
    %c0_4 = arith.constant 0 : index
    %c0_5 = arith.constant 0 : index
    %5 = vector.load %arg3[%c0_4, %c0_5] : memref<2048x256xbf16, #tpu.memory_space<vmem>>, vector<2048x256xbf16>
    %cst = arith.constant dense<0.000000e+00> : vector<2x256xf32>
    %6 = tpu.matmul %4, %5, %cst {dimension_numbers = #tpu.dot_dimension_numbers<[1], [0], [0], [1], [0, 0, 1, 1], [], []>} : vector<2x2048xbf16>, vector<2048x256xbf16>, vector<2x256xf32> -> vector<2x256xf32>
    %7 = arith.addf %3, %6 : vector<2x256xf32>
    %c0_6 = arith.constant 0 : index
    %c0_7 = arith.constant 0 : index
    %8 = vector.load %arg8[%c0_6, %c0_7] : memref<2x256xf32, #tpu.memory_space<vmem>>, vector<2x256xf32>
    tpu.vector_store %arg8[%c0_6, %c0_7], %7 {strides = array<i32>} : memref<2x256xf32, #tpu.memory_space<vmem>>, vector<2x256xf32>,
    %c0_i32_8 = arith.constant 0 : i32
    %9 = arith.cmpi eq, %arg1, %c0_i32_8 : i32
    %10 = arith.extui %9 : i1 to i32
    %c0_i32_9 = arith.constant 0 : i32
    %11 = arith.cmpi ne, %10, %c0_i32_9 : i32
    scf.if %11 {
      %c0_10 = arith.constant 0 : index
      %c0_11 = arith.constant 0 : index
      %12 = vector.load %arg8[%c0_10, %c0_11] : memref<2x256xf32, #tpu.memory_space<vmem>>, vector<2x256xf32>
      %c0_12 = arith.constant 0 : index
      %c0_13 = arith.constant 0 : index
      %13 = vector.load %arg4[%c0_12, %c0_13] : memref<1x256xf32, #tpu.memory_space<vmem>>, vector<1x256xf32>
      %14 = vector.broadcast %13 : vector<1x256xf32> to vector<2x256xf32>
      %15 = arith.addf %12, %14 : vector<2x256xf32>
      %cst_14 = arith.constant 0.000000e+00 : f32
      %16 = vector.broadcast %cst_14 : f32 to vector<2x256xf32>
      %17 = arith.maximumf %15, %16 : vector<2x256xf32>
      %18 = arith.truncf %17 : vector<2x256xf32> to vector<2x256xbf16>
      %c0_15 = arith.constant 0 : index
      %c0_16 = arith.constant 0 : index
      %19 = vector.load %arg5[%c0_15, %c0_16] : memref<256x10xbf16, #tpu.memory_space<vmem>>, vector<256x10xbf16>
      %cst_17 = arith.constant dense<0.000000e+00> : vector<2x10xf32>
      %20 = tpu.matmul %18, %19, %cst_17 {dimension_numbers = #tpu.dot_dimension_numbers<[1], [0], [0], [1], [0, 0, 1, 1], [], []>} : vector<2x256xbf16>, vector<256x10xbf16>, vector<2x10xf32> -> vector<2x10xf32>
      %c0_18 = arith.constant 0 : index
      %c0_19 = arith.constant 0 : index
      %21 = vector.load %arg6[%c0_18, %c0_19] : memref<1x10xf32, #tpu.memory_space<vmem>>, vector<1x10xf32>
      %22 = vector.broadcast %21 : vector<1x10xf32> to vector<2x10xf32>
      %23 = arith.addf %20, %22 : vector<2x10xf32>
      %c0_20 = arith.constant 0 : index
      %c0_21 = arith.constant 0 : index
      %24 = vector.load %arg7[%c0_20, %c0_21] : memref<2x10xf32, #tpu.memory_space<vmem>>, vector<2x10xf32>
      tpu.vector_store %arg7[%c0_20, %c0_21], %23 {strides = array<i32>} : memref<2x10xf32, #tpu.memory_space<vmem>>, vector<2x10xf32>,
    } else {
    }
    return
  }
  func.func @transform_0(%arg0: i32, %arg1: i32) -> (i32, i32) {
    %c0_i32 = arith.constant 0 : i32
    return %arg0, %arg1 : i32, i32
  }
  func.func @transform_1(%arg0: i32, %arg1: i32) -> (i32, i32) {
    %c0_i32 = arith.constant 0 : i32
    %c0_i32_0 = arith.constant 0 : i32
    return %arg1, %c0_i32 : i32, i32
  }
  func.func @transform_2(%arg0: i32, %arg1: i32) -> (i32, i32) {
    %c0_i32 = arith.constant 0 : i32
    %c0_i32_0 = arith.constant 0 : i32
    %c0_i32_1 = arith.constant 0 : i32
    return %c0_i32, %c0_i32_0 : i32, i32
  }
  func.func @transform_3(%arg0: i32, %arg1: i32) -> (i32, i32) {
    %c0_i32 = arith.constant 0 : i32
    %c0_i32_0 = arith.constant 0 : i32
    %c0_i32_1 = arith.constant 0 : i32
    return %c0_i32, %c0_i32_0 : i32, i32
  }
  func.func @transform_4(%arg0: i32, %arg1: i32) -> (i32, i32) {
    %c0_i32 = arith.constant 0 : i32
    %c0_i32_0 = arith.constant 0 : i32
    %c0_i32_1 = arith.constant 0 : i32
    return %c0_i32, %c0_i32_0 : i32, i32
  }
  func.func @transform_5(%arg0: i32, %arg1: i32) -> (i32, i32) {
    %c0_i32 = arith.constant 0 : i32
    %c0_i32_0 = arith.constant 0 : i32
    return %arg0, %c0_i32 : i32, i32
  }
}

</mosaic_0001>

<bundles_post_ra>
// kernel: custom_gesture_cnn_forward.4
= control target key start
LH: loop header
LB: loop body
LE: loop exit
PB: predicated region body
PF: predicated region fallthrough
CT: control target
= control target key end

     0   :  { %s8390_s12 = smov 0   ;;  %s10458_s0 = inlined_call_operand.vmem [shape: bf16[2,432,32], index: 0, kind: input, shape index: {}]   ;;  %s10459_s1 = inlined_call_operand.vmem [shape: bf16[16,32,32], index: 1, kind: input, shape index: {}]   ;;  %s10460_s2 = inlined_call_operand.vmem [shape: f32[1,32], index: 2, kind: input, shape index: {}]   ;;  %s10461_s3 = inlined_call_operand.vmem [shape: bf16[2,384,32], index: 3, kind: output, shape index: {}]  }
   0x1 LB: > { %s5813_s13 = sadd.s32 4294967295, %s8368_s12   ;;  %p5817_p0 = scmp.ge.s32.totalorder %s8368_s12, 1  ;;  %s8368_s12 = sphi %s8390_s12, %s13_s12  }
   0x2   : > { %p137_p1 = scmp.lt.s32.totalorder %s8368_s12, 3 }
   0x4   : > { %p138_p2 = pnand %p5817_p0, %p137_p1 }
   0x6   : > { %141 = sbr.rel (%p138_p2) target bundleno = 1015 (0x3f7), region = 32 }
   0xd   : > { %v8279_v0 = vld [vmem:[%s10459_s1 + $0x10] sm:$0xff]   ;;  %p161_p3 = scmp.lt.s32.totalorder %s5813_s13, 1  ;;  %v8281_v2 = vld [vmem:[%s10459_s1 + $0x18] sm:$0xff]   ;;  %v8285_v4 = vld [vmem:[%s10459_s1] sm:$0xff]   ;;  %vm357_vm0 = vsmask.f32 7424 }
   0xe   : > { %v8280_v1 = vld [vmem:[%s10459_s1 + $0x50] sm:$0xff]   ;;  %6861 = vmatprep.subr.bf16.mxu0 %v8279_v0  ;;  %v8282_v3 = vld [vmem:[%s10459_s1 + $0x58] sm:$0xff]   ;;  %v8287_v5 = vld [vmem:[%s10459_s1 + $0x40] sm:$0xff]   ;;  %vm566_vm1 = vcmask 261120   ;;  %vm5709_vm2 = vcmask 257024  }
   0xf   : > { %s10925_s13 = smov (!%p161_p3, %s5813_s13), 1  ;;  %6862 = vmatpush3.bf16.msra.mxu0 %v8279_v0  ;;  %7069 = vmatprep.subr.bf16.mxu1 %v8280_v1  ;;  %v8299_v43 = vld [vmem:[%s10459_s1 + $0x8] sm:$0xff]   ;;  %v8535_v55 = vld [vmem:[%s10459_s1 + $0x20] sm:$0xff]  }
  0x10   : > { %7070 = vmatpush3.bf16.msra.mxu1 %v8280_v1  ;;  %6863 = vmatprep.subr.bf16.mxu0 %v8281_v2  ;;  %s8269_s22 = smul.u32 216, %s10925_s13  ;;  %v8301_v47 = vld [vmem:[%s10459_s1 + $0x48] sm:$0xff]   ;;  %v8540_v56 = vld [vmem:[%s10459_s1 + $0x60] sm:$0xff]  }
  0x11   : > { %7071 = vmatprep.subr.bf16.mxu1 %v8282_v3  ;;  %s8270_s8 = smul.u32 192, %s10925_s13 }
  0x12   : > { %s8419_s27 = scalar_lea.vmem %s10458_s0, %s8269_s22 }
  0x13   : > { %6864 = vmatpush3.bf16.msra.mxu0 %v8281_v2  ;;  %v174_v6 = vld [vmem:[%s8419_s27 + $0x8] sm:$0xf]  ;;  %v8426_v7 = vld [vmem:[%s8419_s27 + $0xc] sm:$0xf]  ;;  %v8429_v8 = vld [vmem:[%s8419_s27] sm:$0xff]   ;;  %s10180_s11 = scalar_lea.vmem %s10461_s3, %s8270_s8 }
  0x14   : > { %7072 = vmatpush3.bf16.msra.mxu1 %v8282_v3  ;;  %6913 = vmatprep.subr.bf16.mxu0 %v8285_v4  ;;  %v8432_v9 = vld [vmem:[%s8419_s27 + $0x10] sm:$0xf]  ;;  %v8435_v10 = vcombine.low %v174_v6, %v8426_v7  ;;  %v8438_v11 = vld [vmem:[%s8419_s27 + $0x14] sm:$0xf]  ;;  %v8441_v12 = vld [vmem:[%s8419_s27 + $0x18] sm:$0xf] }
  0x15   : > { %7121 = vmatprep.subr.bf16.mxu1 %v8287_v5  ;;  %v8444_v13 = vld [vmem:[%s8419_s27 + $0x1c] sm:$0xf]  ;;  %v359_v14 = vshrl.u32 %v8429_v8, 16  ;;  %v361_v15 = vshll.u32 %v8429_v8, 16  ;;  %v8450_v16 = vcombine.low %v8432_v9, %v8438_v11  ;;  %v8457_v18 = vld [vmem:[%s8419_s27 + $0x20] sm:$0xf] }
  0x16   : > { %v8454_v17 = vcombine.low %v8441_v12, %v8444_v13  ;;  %v8460_v19 = vld [vmem:[%s8419_s27 + $0x24] sm:$0xf]  ;;  %v366_v20 = vshll.u32 %v8435_v10, 16  ;;  %v370_v21 = vshrl.u32 %v8435_v10, 16  ;;  %v8469_v23 = vld [vmem:[%s8419_s27 + $0x28] sm:$0xf] }
  0x17   : > { %v8466_v22 = vcombine.low %v8457_v18, %v8460_v19  ;;  %v8472_v24 = vld [vmem:[%s8419_s27 + $0x2c] sm:$0xf]  ;;  %v363_v25 = vrot.slane %v361_v15, 1  ;;  %v374_v26 = vshll.u32 %v8450_v16, 16  ;;  %v378_v27 = vshrl.u32 %v8450_v16, 16 }
  0x18   : > { %v382_v28 = vshll.u32 %v8454_v17, 16  ;;  %v368_v29 = vrot.slane %v366_v20, 1  ;;  %v8479_v30 = vcombine.low %v8469_v23, %v8472_v24  ;;  %v386_v36 = vshrl.u32 %v8454_v17, 16  ;;  %v8484_v37 = vld [vmem:[%s8419_s27 + $0x30] sm:$0xf] }
  0x19   : > { %v364_v31 = vor.u32 %v363_v25, %v359_v14  ;;  %v376_v32 = vrot.slane %v374_v26, 1  ;;  %v390_v34 = vshll.u32 %v8466_v22, 16  ;;  %v8487_v38 = vld [vmem:[%s8419_s27 + $0x34] sm:$0xf]  ;;  %v394_v41 = vshrl.u32 %v8466_v22, 16 }
  0x1a   : > { %v384_v33 = vrot.slane %v382_v28, 1  ;;  %v372_v35 = vor.u32 %v370_v21, %v368_v29  ;;  %v398_v42 = vshll.u32 %v8479_v30, 16  ;;  %v8505_v45 = vld [vmem:[%s8419_s27 + $0x38] sm:$0xf]  ;;  %v8508_v46 = vld [vmem:[%s8419_s27 + $0x3c] sm:$0xf]  ;;  %v8522_v50 = vcombine.low %v8484_v37, %v8487_v38 }
  0x1b   : > { %v8490_v39 = vsel %vm357_vm0, %v364_v31, %v368_v29  ;;  %v380_v40 = vor.u32 %v378_v27, %v376_v32  ;;  %v392_v49 = vrot.slane %v390_v34, 1  ;;  %v8530_v54 = vcombine.low %v8505_v45, %v8508_v46  ;;  %v8545_v59 = vld [vmem:[%s8419_s27 + $0x40] sm:$0xf]  ;;  %v8551_v61 = vld [vmem:[%s8419_s27 + $0x44] sm:$0xf] }
  0x1c   : > { %10630 = vst [vmem:[#allocation2_spill] sm:$0xff] %v8490_v39  ;;  %6865 = vmatprep.mubr.msk.bf16.mxu0 %vm566_vm1, %v8490_v39  ;;  %7073 = vmatprep.mubr.msk.bf16.mxu1 %vm566_vm1, %v8490_v39  ;;  %v8502_v44 = vsel %vm357_vm0, %v372_v35, %v376_v32  ;;  %v388_v51 = vor.u32 %v386_v36, %v384_v33  ;;  %v400_v53 = vrot.slane %v398_v42, 1  ;;  %v402_v57 = vshrl.u32 %v8479_v30, 16  ;;  %v8559_v1 = vld [vmem:[%s8419_s27 + $0x48] sm:$0xf] }
  0x1d   : > { %10631 = vst [vmem:[#allocation3_spill] sm:$0xff] %v8502_v44  ;;  %6866 = vmatmul.mubr.msk.bf16.vlgmr.msra.gmra.mrb[0].mxu0 %vm566_vm1, %v8502_v44  ;;  %7074 = vmatmul.mubr.msk.bf16.vlgmr.msra.gmra.mrb[0].mxu1 %vm566_vm1, %v8502_v44  ;;  %v8518_v48 = vsel %vm357_vm0, %v380_v40, %v384_v33  ;;  %v396_v52 = vor.u32 %v394_v41, %v392_v49  ;;  %v406_v58 = vshll.u32 %v8522_v50, 16  ;;  %v410_v63 = vshrl.u32 %v8522_v50, 16  ;;  %v8562_v2 = vld [vmem:[%s8419_s27 + $0x4c] sm:$0xf] }
  0x1e   : > { %10632 = vst [vmem:[#allocation4_spill] sm:$0xff] %v8518_v48  ;;  %6914 = vmatpush3.bf16.msra.mxu0 %v8285_v4  ;;  %7122 = vmatpush3.bf16.msra.mxu1 %v8287_v5  ;;  %v8548_v60 = vsel %vm357_vm0, %v388_v51, %v392_v49  ;;  %v414_v0 = vshll.u32 %v8530_v54, 16  ;;  %v8572_v4 = vcombine.low %v8545_v59, %v8551_v61  ;;  %v8583_v20 = vld [vmem:[%s8419_s27 + $0x50] sm:$0xf]  ;;  %v8586_v21 = vld [vmem:[%s8419_s27 + $0x54] sm:$0xf] }
  0x1f   : > { %6869 = vmatprep.mubr.msk.bf16.mxu0 %vm566_vm1, %v8518_v48  ;;  %7077 = vmatprep.mubr.msk.bf16.mxu1 %vm566_vm1, %v8518_v48  ;;  %10633 = vst [vmem:[#allocation5_spill] sm:$0xff] %v8548_v60  ;;  %v8554_v62 = vsel %vm357_vm0, %v396_v52, %v400_v53  ;;  %v408_v3 = vrot.slane %v406_v58, 1  ;;  %v404_v5 = vor.u32 %v402_v57, %v400_v53  ;;  %v8590_v26 = vld [vmem:[%s8419_s27 + $0x58] sm:$0xf]  ;;  %v8593_v27 = vld [vmem:[%s8419_s27 + $0x5c] sm:$0xf] }
  0x20   : > { %6915 = vmatprep.subr.bf16.mxu0 %v8299_v43  ;;  %7123 = vmatprep.subr.bf16.mxu1 %v8301_v47  ;;  %10634 = vst [vmem:[#allocation6_spill] sm:$0xff] %v8554_v62  ;;  %v8580_v6 = vcombine.low %v8559_v1, %v8562_v2  ;;  %v416_v15 = vrot.slane %v414_v0, 1  ;;  %v422_v25 = vshll.u32 %v8572_v4, 16  ;;  %v418_v29 = vshrl.u32 %v8530_v54, 16  ;;  %v8605_v34 = vld [vmem:[%s8419_s27 + $0x60] sm:$0xf] }
  0x21   : > { %v412_v14 = vor.u32 %v410_v63, %v408_v3  ;;  %v8596_v28 = vsel %vm357_vm0, %v404_v5, %v408_v3  ;;  %v426_v33 = vshrl.u32 %v8572_v4, 16  ;;  %v8608_v35 = vld [vmem:[%s8419_s27 + $0x64] sm:$0xf]  ;;  %v8612_v36 = vcombine.low %v8583_v20, %v8586_v21  ;;  %v8619_v41 = vld [vmem:[%s8419_s27 + $0x68] sm:$0xf] }
  0x22   : > { %6916 = vmatpush3.bf16.msra.mxu0 %v8299_v43  ;;  %7124 = vmatpush3.bf16.msra.mxu1 %v8301_v47  ;;  %10635 = vst [vmem:[#allocation7_spill] sm:$0xff] %v8596_v28  ;;  %v430_v31 = vshll.u32 %v8580_v6, 16  ;;  %10637 = vst [vmem:[#allocation9_spill] sm:$0xff] %v8608_v35  ;;  %v8616_v40 = vcombine.low %v8590_v26, %v8593_v27  ;;  %v424_v42 = vrot.slane %v422_v25, 1  ;;  %v8626_v43 = vld [vmem:[%s8419_s27 + $0x6c] sm:$0xf] }
  0x23   : > { %6965 = vmatprep.subr.bf16.mxu0 %v8535_v55  ;;  %7173 = vmatprep.subr.bf16.mxu1 %v8540_v56  ;;  %v8601_v32 = vsel %vm357_vm0, %v412_v14, %v416_v15  ;;  %10638 = vst [vmem:[#allocation10_spill] sm:$0xff] %v8619_v41  ;;  %10639 = vst [vmem:[#allocation11_spill] sm:$0xff] %v8626_v43  ;;  %v420_v47 = vor.u32 %v418_v29, %v416_v15  ;;  %v8637_v52 = vld [vmem:[%s8419_s27 + $0x70] sm:$0xf]  ;;  %v8640_v53 = vld [vmem:[%s8419_s27 + $0x74] sm:$0xf] }
  0x24   : > { %10636 = vst [vmem:[#allocation8_spill] sm:$0xff] %v8601_v32  ;;  %v432_v49 = vrot.slane %v430_v31, 1  ;;  %v8634_v51 = vcombine.low %v8605_v34, %v8608_v35  ;;  %10640 = vst [vmem:[#allocation12_spill] sm:$0xff] %v8637_v52  ;;  %v428_v57 = vor.u32 %v426_v33, %v424_v42  ;;  %v8643_v58 = vld [vmem:[%s8419_s27 + $0x78] sm:$0xf]  ;;  %v438_v63 = vshll.u32 %v8612_v36, 16 }
  0x25   : > { %6870 = vmatmul.mubr.msk.bf16.gmra.mrb[4].mxu0 %vm566_vm1, %v8548_v60  ;;  %7078 = vmatmul.mubr.msk.bf16.gmra.mrb[4].mxu1 %vm566_vm1, %v8548_v60  ;;  %10641 = vst [vmem:[#allocation13_spill] sm:$0xff] %v8640_v53  ;;  %10642 = vst [vmem:[#allocation14_spill] sm:$0xff] %v8643_v58  ;;  %v446_v0 = vshll.u32 %v8616_v40, 16  ;;  %v8649_v3 = vcombine.low %v8619_v41, %v8626_v43  ;;  %v8652_v5 = vld [vmem:[%s8419_s27 + $0x7c] sm:$0xf]  ;;  %v8655_v14 = vsel %vm357_vm0, %v420_v47, %v424_v42 }
  0x26   : > { %6873 = vmatprep.mubr.msk.bf16.mxu0 %vm566_vm1, %v8554_v62  ;;  %7081 = vmatprep.mubr.msk.bf16.mxu1 %vm566_vm1, %v8554_v62  ;;  %10643 = vst [vmem:[#allocation15_spill] sm:$0xff] %v8652_v5  ;;  %10644 = vst [vmem:[#allocation16_spill] sm:$0xff] %v8655_v14  ;;  %v434_v15 = vshrl.u32 %v8580_v6, 16  ;;  %v454_v25 = vshll.u32 %v8634_v51, 16  ;;  %v8660_v29 = vsel %vm357_vm0, %v428_v57, %v432_v49  ;;  %v442_v31 = vshrl.u32 %v8612_v36, 16 }
  0x27   : > { %10645 = vst [vmem:[#allocation17_spill] sm:$0xff] %v8660_v29  ;;  %v8665_v33 = vcombine.low %v8637_v52, %v8640_v53  ;;  %v440_v42 = vrot.slane %v438_v63, 1  ;;  %v448_v47 = vrot.slane %v446_v0, 1  ;;  %v450_v57 = vshrl.u32 %v8616_v40, 16  ;;  %v8819_v52 = vld [vmem:[%s8419_s27 + $0xb4] sm:$0xf] }
  0x28   : > { %v458_v62 = vshrl.u32 %v8634_v51, 16  ;;  %v436_v60 = vor.u32 %v434_v15, %v432_v49  ;;  %v456_v48 = vrot.slane %v454_v25, 1  ;;  %v466_v44 = vshrl.u32 %v8649_v3, 16  ;;  %v8701_v25 = vld [vmem:[%s8419_s27 + $0x80] sm:$0xf]  ;;  %10668 = vst [vmem:[#allocation40_spill] sm:$0xff] %v8819_v52 }
  0x29   : > { %v444_v39 = vor.u32 %v442_v31, %v440_v42  ;;  %v470_v63 = vshll.u32 %v8665_v33, 16  ;;  %v474_v0 = vshrl.u32 %v8665_v33, 16  ;;  %10648 = vst [vmem:[#allocation20_spill] sm:$0xff] %v8701_v25 }
  0x2a   : > { %v8687_v53 = vsel %vm357_vm0, %v436_v60, %v440_v42  ;;  %v460_v15 = vor.u32 %v458_v62, %v456_v48  ;;  %v8704_v60 = vld [vmem:[%s8419_s27 + $0x84] sm:$0xf]  ;;  %v8713_v42 = vld [vmem:[%s8419_s27 + $0x88] sm:$0xf] }
  0x2b   : > { %10646 = vst [vmem:[#allocation18_spill] sm:$0xff] %v8687_v53  ;;  %v8690_v49 = vsel %vm357_vm0, %v444_v39, %v448_v47  ;;  %10649 = vst [vmem:[#allocation21_spill] sm:$0xff] %v8704_v60  ;;  %v472_v62 = vrot.slane %v470_v63, 1 }
  0x2c   : > { %10647 = vst [vmem:[#allocation19_spill] sm:$0xff] %v8690_v49  ;;  %10652 = vst [vmem:[#allocation24_spill] sm:$0xff] %v8713_v42 }
  0x2d   : > { %6874 = vmatmul.mubr.msk.bf16.gmra.mrb[8].mxu0 %vm566_vm1, %v8596_v28  ;;  %7082 = vmatmul.mubr.msk.bf16.gmra.mrb[8].mxu1 %vm566_vm1, %v8596_v28  ;;  %v8670_v28 = vcombine.low %v8643_v58, %v8652_v5  ;;  %v8781_v58 = vld [vmem:[%s8419_s27 + $0xa4] sm:$0xf] }
  0x2e   : > { %6877 = vmatprep.mubr.msk.bf16.mxu0 %vm566_vm1, %v8601_v32  ;;  %7085 = vmatprep.mubr.msk.bf16.mxu1 %vm566_vm1, %v8601_v32  ;;  %v462_v32 = vshll.u32 %v8649_v3, 16  ;;  %10662 = vst [vmem:[#allocation34_spill] sm:$0xff] %v8781_v58 }
  0x2f   : > { %v478_v5 = vshll.u32 %v8670_v28, 16 }
  0x35   : > { %6878 = vmatmul.mubr.msk.bf16.gmra.mrb[12].mxu0 %vm566_vm1, %v8655_v14  ;;  %7086 = vmatmul.mubr.msk.bf16.gmra.mrb[12].mxu1 %vm566_vm1, %v8655_v14  ;;  %v464_v14 = vrot.slane %v462_v32, 1  ;;  %v452_v32 = vor.u32 %v450_v57, %v448_v47  ;;  %v476_v57 = vor.u32 %v474_v0, %v472_v62  ;;  %v8754_v0 = vld [vmem:[%s8419_s27 + $0x9c] sm:$0xf] }
  0x36   : > { %6881 = vmatprep.mubr.msk.bf16.mxu0 %vm566_vm1, %v8660_v29  ;;  %7089 = vmatprep.mubr.msk.bf16.mxu1 %vm566_vm1, %v8660_v29  ;;  %v8740_v29 = vld [vmem:[%s8419_s27 + $0x90] sm:$0xf]  ;;  %10659 = vst [vmem:[#allocation31_spill] sm:$0xff] %v8754_v0 }
  0x37   : > { %v8707_v39 = vsel %vm357_vm0, %v452_v32, %v456_v48  ;;  %v8710_v31 = vsel %vm357_vm0, %v460_v15, %v464_v14  ;;  %v8724_v48 = vcombine.low %v8701_v25, %v8704_v60  ;;  %v468_v47 = vor.u32 %v466_v44, %v464_v14  ;;  %10655 = vst [vmem:[#allocation27_spill] sm:$0xff] %v8740_v29  ;;  %v8743_v60 = vld [vmem:[%s8419_s27 + $0x94] sm:$0xf]  ;;  %v8751_v14 = vld [vmem:[%s8419_s27 + $0x98] sm:$0xf] }
  0x38   : > { %10650 = vst [vmem:[#allocation22_spill] sm:$0xff] %v8707_v39  ;;  %10651 = vst [vmem:[#allocation23_spill] sm:$0xff] %v8710_v31  ;;  %v480_v32 = vrot.slane %v478_v5, 1  ;;  %v8770_v25 = vcombine.low %v8751_v14, %v8754_v0 }
  0x39   : > { %v486_v63 = vshll.u32 %v8724_v48, 16  ;;  %10656 = vst [vmem:[#allocation28_spill] sm:$0xff] %v8743_v60  ;;  %v490_v44 = vshrl.u32 %v8724_v48, 16  ;;  %10658 = vst [vmem:[#allocation30_spill] sm:$0xff] %v8751_v14 }
  0x3d   : > { %6882 = vmatmul.mubr.msk.bf16.gmra.mrb[16].mxu0 %vm566_vm1, %v8687_v53  ;;  %7090 = vmatmul.mubr.msk.bf16.gmra.mrb[16].mxu1 %vm566_vm1, %v8687_v53  ;;  %v8716_v53 = vld [vmem:[%s8419_s27 + $0x8c] sm:$0xf] }
  0x3e   : > { %6885 = vmatprep.mubr.msk.bf16.mxu0 %vm566_vm1, %v8690_v49  ;;  %7093 = vmatprep.mubr.msk.bf16.mxu1 %vm566_vm1, %v8690_v49  ;;  %10653 = vst [vmem:[#allocation25_spill] sm:$0xff] %v8716_v53  ;;  %v8732_v15 = vcombine.low %v8713_v42, %v8716_v53  ;;  %v482_v49 = vshrl.u32 %v8670_v28, 16 }
  0x40   : > { %v494_v5 = vshll.u32 %v8732_v15, 16 }
  0x42   : > { %v496_v42 = vrot.slane %v494_v5, 1  ;;  %v8792_v5 = vld [vmem:[%s8419_s27 + $0xac] sm:$0xf] }
  0x43   : > { %10665 = vst [vmem:[#allocation37_spill] sm:$0xff] %v8792_v5 }
  0x45   : > { %6886 = vmatmul.mubr.msk.bf16.gmra.mrb[20].mxu0 %vm566_vm1, %v8707_v39  ;;  %7094 = vmatmul.mubr.msk.bf16.gmra.mrb[20].mxu1 %vm566_vm1, %v8707_v39  ;;  %v8736_v39 = vsel %vm357_vm0, %v468_v47, %v472_v62  ;;  %v488_v62 = vrot.slane %v486_v63, 1  ;;  %v8762_v47 = vcombine.low %v8740_v29, %v8743_v60  ;;  %v498_v60 = vshrl.u32 %v8732_v15, 16  ;;  %v8778_v29 = vld [vmem:[%s8419_s27 + $0xa0] sm:$0xf] }
  0x46   : > { %6889 = vmatprep.mubr.msk.bf16.mxu0 %vm566_vm1, %v8710_v31  ;;  %7097 = vmatprep.mubr.msk.bf16.mxu1 %vm566_vm1, %v8710_v31  ;;  %10654 = vst [vmem:[#allocation26_spill] sm:$0xff] %v8736_v39  ;;  %v8746_v31 = vsel %vm357_vm0, %v476_v57, %v480_v32  ;;  %v484_v57 = vor.u32 %v482_v49, %v480_v32  ;;  %10661 = vst [vmem:[#allocation33_spill] sm:$0xff] %v8778_v29  ;;  %v510_v32 = vshll.u32 %v8770_v25, 16 }
  0x47   : > { %10657 = vst [vmem:[#allocation29_spill] sm:$0xff] %v8746_v31  ;;  %v492_v53 = vor.u32 %v490_v44, %v488_v62  ;;  %v502_v63 = vshll.u32 %v8762_v47, 16  ;;  %v506_v49 = vshrl.u32 %v8762_v47, 16  ;;  %v8789_v44 = vld [vmem:[%s8419_s27 + $0xa8] sm:$0xf] }
  0x48   : > { %10664 = vst [vmem:[#allocation36_spill] sm:$0xff] %v8789_v44  ;;  %v512_v14 = vrot.slane %v510_v32, 1  ;;  %v8808_v43 = vcombine.low %v8789_v44, %v8792_v5  ;;  %v8830_v32 = vld [vmem:[%s8419_s27 + $0xbc] sm:$0xf] }
  0x49   : > { %10671 = vst [vmem:[#allocation43_spill] sm:$0xff] %v8830_v32 }
  0x4d   : > { %6890 = vmatmul.mubr.msk.bf16.gmra.mrb[24].mxu0 %vm566_vm1, %v8736_v39  ;;  %7098 = vmatmul.mubr.msk.bf16.gmra.mrb[24].mxu1 %vm566_vm1, %v8736_v39  ;;  %v8774_v39 = vsel %vm357_vm0, %v484_v57, %v488_v62  ;;  %v504_v62 = vrot.slane %v502_v63, 1  ;;  %v500_v57 = vor.u32 %v498_v60, %v496_v42 }
  0x4e   : > { %6893 = vmatprep.mubr.msk.bf16.mxu0 %vm566_vm1, %v8746_v31  ;;  %7101 = vmatprep.mubr.msk.bf16.mxu1 %vm566_vm1, %v8746_v31  ;;  %10660 = vst [vmem:[#allocation32_spill] sm:$0xff] %v8774_v39  ;;  %v8784_v31 = vsel %vm357_vm0, %v492_v53, %v496_v42  ;;  %v8800_v53 = vcombine.low %v8778_v29, %v8781_v58  ;;  %v514_v58 = vshrl.u32 %v8770_v25, 16  ;;  %v8816_v29 = vld [vmem:[%s8419_s27 + $0xb0] sm:$0xf]  ;;  %v526_v42 = vshll.u32 %v8808_v43, 16 }
  0x4f   : > { %10663 = vst [vmem:[#allocation35_spill] sm:$0xff] %v8784_v31  ;;  %v508_v0 = vor.u32 %v506_v49, %v504_v62  ;;  %10667 = vst [vmem:[#allocation39_spill] sm:$0xff] %v8816_v29  ;;  %v8827_v49 = vld [vmem:[%s8419_s27 + $0xb8] sm:$0xf] }
  0x50   : > { %v518_v63 = vshll.u32 %v8800_v53, 16  ;;  %v522_v60 = vshrl.u32 %v8800_v53, 16  ;;  %10670 = vst [vmem:[#allocation42_spill] sm:$0xff] %v8827_v49  ;;  %v528_v44 = vrot.slane %v526_v42, 1  ;;  %v8846_v35 = vcombine.low %v8827_v49, %v8830_v32 }
  0x52   : > { %10672 = vst [vmem:[#allocation44_spill] sm:$0xff] %v8846_v35  ;;  %v546_v32 = vshrl.u32 %v8846_v35, 16 }
  0x55   : > { %6894 = vmatmul.mubr.msk.bf16.gmra.mrb[28].mxu0 %vm566_vm1, %v8774_v39  ;;  %7102 = vmatmul.mubr.msk.bf16.gmra.mrb[28].mxu1 %vm566_vm1, %v8774_v39  ;;  %v8812_v39 = vsel %vm357_vm0, %v500_v57, %v504_v62  ;;  %v520_v62 = vrot.slane %v518_v63, 1  ;;  %v8838_v57 = vcombine.low %v8816_v29, %v8819_v52  ;;  %v530_v52 = vshrl.u32 %v8808_v43, 16 }
  0x56   : > { %6897 = vmatprep.mubr.msk.bf16.mxu0 %vm566_vm1, %v8784_v31  ;;  %7105 = vmatprep.mubr.msk.bf16.mxu1 %vm566_vm1, %v8784_v31  ;;  %10666 = vst [vmem:[#allocation38_spill] sm:$0xff] %v8812_v39  ;;  %v8822_v31 = vsel %vm357_vm0, %v508_v0, %v512_v14  ;;  %v516_v0 = vor.u32 %v514_v58, %v512_v14  ;;  %v542_v58 = vshll.u32 %v8846_v35, 16 }
  0x57   : > { %10669 = vst [vmem:[#allocation41_spill] sm:$0xff] %v8822_v31  ;;  %v524_v5 = vor.u32 %v522_v60, %v520_v62  ;;  %v534_v63 = vshll.u32 %v8838_v57, 16  ;;  %v532_v60 = vor.u32 %v530_v52, %v528_v44 }
  0x59   : > { %v8854_v29 = vsel %vm357_vm0, %v524_v5, %v528_v44  ;;  %v536_v14 = vrot.slane %v534_v63, 1  ;;  %v8311_v5 = vld [vmem:[%s8419_s27 + $0xc0] ss:$0 sps:$4 sm:$0x11]   ;;  %v8319_v63 = vld [vmem:[%s10459_s1 + $0x70] sm:$0xff]  }
  0x5a   : > { %v550_v49 = vshll.u32 %v8311_v5, 16  ;;  %v10685_v5 = vld [vmem:[#allocation24_spill] sm:$0xff] }
  0x5d   : > { %6898 = vmatmul.mubr.msk.bf16.gmra.mrb[32].mxu0 %vm566_vm1, %v8812_v39  ;;  %7106 = vmatmul.mubr.msk.bf16.gmra.mrb[32].mxu1 %vm566_vm1, %v8812_v39  ;;  %v8850_v39 = vsel %vm357_vm0, %v516_v0, %v520_v62  ;;  %v544_v62 = vrot.slane %v542_v58, 1  ;;  %v8868_v0 = vsel %vm357_vm0, %v532_v60, %v536_v14  ;;  %v8333_v58 = vld [vmem:[%s10459_s1 + $0x78] sm:$0xff]  }
  0x5e   : > { %6901 = vmatprep.mubr.msk.bf16.mxu0 %vm566_vm1, %v8822_v31  ;;  %7109 = vmatprep.mubr.msk.bf16.mxu1 %vm566_vm1, %v8822_v31  ;;  %v538_v31 = vshrl.u32 %v8838_v57, 16 }
  0x5f   : > { %v548_v52 = vor.u32 %v546_v32, %v544_v62  ;;  %v8314_v32 = vld [vmem:[%s10459_s1 + $0x28] sm:$0xff]  }
  0x60   : > { %v540_v42 = vor.u32 %v538_v31, %v536_v14  ;;  %v552_v31 = vrot.slane %v550_v49, 1  ;;  %v8315_v49 = vld [vmem:[%s10459_s1 + $0x68] sm:$0xff]  }
  0x61   : > { %v10684_v14 = vld [vmem:[#allocation15_spill] sm:$0xff] }
  0x62   : > { %v8872_v41 = vsel %vm357_vm0, %v540_v42, %v544_v62  ;;  %v8883_v44 = vsel %vm357_vm0, %v548_v52, %v552_v31  ;;  %v10686_v42 = vld [vmem:[#allocation21_spill] sm:$0xff]  ;;  %v10687_v52 = vld [vmem:[#allocation27_spill] sm:$0xff] }
  0x63   : > { %v9139_v62 = vcombine.low %v10686_v42, %v10685_v5  ;;  %v10688_v31 = vld [vmem:[#allocation25_spill] sm:$0xff]  ;;  %v10697_v42 = vld [vmem:[#allocation42_spill] sm:$0xff] }
  0x65   : > { %6902 = vmatmul.mubr.msk.bf16.gmra.mrb[36].mxu0 %vm566_vm1, %v8850_v39  ;;  %7110 = vmatmul.mubr.msk.bf16.gmra.mrb[36].mxu1 %vm566_vm1, %v8850_v39 }
  0x66   : > { %6905 = vmatprep.mubr.msk.bf16.mxu0 %vm566_vm1, %v8854_v29  ;;  %7113 = vmatprep.mubr.msk.bf16.mxu1 %vm566_vm1, %v8854_v29 }
  0x6d   : > { %6906 = vmatmul.mubr.msk.bf16.gmra.mrb[40].mxu0 %vm566_vm1, %v8868_v0  ;;  %7114 = vmatmul.mubr.msk.bf16.gmra.mrb[40].mxu1 %vm566_vm1, %v8868_v0 }
  0x6e   : > { %6909 = vmatprep.mubr.msk.bf16.mxu0 %vm566_vm1, %v8872_v41  ;;  %7117 = vmatprep.mubr.msk.bf16.mxu1 %vm566_vm1, %v8872_v41 }
  0x75   : > { %6910 = vmatmul.mubr.msk.bf16.gmra.mrb[44].mxu0 %vm566_vm1, %v8883_v44  ;;  %7118 = vmatmul.mubr.msk.bf16.gmra.mrb[44].mxu1 %vm566_vm1, %v8883_v44 }
  0x76   : > { %6917 = vmatprep.mubr.msk.bf16.mxu0 %vm566_vm1, %v8429_v8  ;;  %7125 = vmatprep.mubr.msk.bf16.mxu1 %vm566_vm1, %v8429_v8  ;;  %v8317_v8 = vld [vmem:[%s10459_s1 + $0x30] sm:$0xff]  }
  0x7d   : > { %6918 = vmatmul.mubr.msk.bf16.vlgmr.msra.gmra.mrb[0].mxu0 %vm566_vm1, %v8435_v10  ;;  %7126 = vmatmul.mubr.msk.bf16.vlgmr.msra.gmra.mrb[0].mxu1 %vm566_vm1, %v8435_v10 }
  0x7e   : > { %6966 = vmatpush3.bf16.msra.mxu0 %v8535_v55  ;;  %7174 = vmatpush3.bf16.msra.mxu1 %v8540_v56  ;;  %v8997_v55 = vcombine.low %v8426_v7, %v8432_v9  ;;  %v9009_v56 = vcombine.low %v8438_v11, %v8441_v12  ;;  %v9013_v7 = vcombine.low %v8444_v13, %v8457_v18  ;;  %v8331_v9 = vld [vmem:[%s10459_s1 + $0x38] sm:$0xff]   ;;  %v9032_v11 = vld [vmem:[%s10459_s1 + $0x90] sm:$0xff]  }
  0x7f   : > { %6921 = vmatprep.mubr.msk.bf16.mxu0 %vm566_vm1, %v8450_v16  ;;  %7129 = vmatprep.mubr.msk.bf16.mxu1 %vm566_vm1, %v8450_v16  ;;  %v9037_v12 = vld [vmem:[%s10459_s1 + $0xd0] sm:$0xff]   ;;  %v9041_v13 = vcombine.low %v8460_v19, %v8469_v23  ;;  %v9045_v18 = vcombine.low %v8472_v24, %v8484_v37  ;;  %v9059_v19 = vcombine.low %v8487_v38, %v8505_v45 }
  0x80   : > { %6967 = vmatprep.subr.bf16.mxu0 %v8314_v32  ;;  %7175 = vmatprep.subr.bf16.mxu1 %v8315_v49  ;;  %10673 = vst [vmem:[#allocation45_spill] sm:$0xff] %v8997_v55  ;;  %10674 = vst [vmem:[#allocation46_spill] sm:$0xff] %v9009_v56  ;;  %v9063_v23 = vcombine.low %v8508_v46, %v8545_v59  ;;  %v9075_v24 = vcombine.low %v8551_v61, %v8559_v1  ;;  %v10677_v46 = vld [vmem:[#allocation10_spill] sm:$0xff]  ;;  %v10678_v59 = vld [vmem:[#allocation9_spill] sm:$0xff]  ;;  %v1551_v5 = vshll.u32 %v8997_v55, 16 }
  0x81   : > { %10675 = vst [vmem:[#allocation47_spill] sm:$0xff] %v9013_v7  ;;  %v9079_v37 = vcombine.low %v8562_v2, %v8583_v20  ;;  %v9091_v38 = vcombine.low %v8586_v21, %v8590_v26  ;;  %v9095_v45 = vcombine.low %v8593_v27, %v8605_v34  ;;  %v9107_v61 = vcombine.low %v10678_v59, %v10677_v46  ;;  %v10679_v1 = vld [vmem:[#allocation12_spill] sm:$0xff]  ;;  %v10680_v2 = vld [vmem:[#allocation11_spill] sm:$0xff]  ;;  %v10681_v21 = vld [vmem:[#allocation14_spill] sm:$0xff] }
  0x82   : > { %6968 = vmatpush3.bf16.msra.mxu0 %v8314_v32  ;;  %7176 = vmatpush3.bf16.msra.mxu1 %v8315_v49  ;;  %10676 = vst [vmem:[#allocation48_spill] sm:$0xff] %v9063_v23  ;;  %v9111_v20 = vcombine.low %v10680_v2, %v10679_v1  ;;  %v10682_v26 = vld [vmem:[#allocation13_spill] sm:$0xff]  ;;  %v10683_v34 = vld [vmem:[#allocation20_spill] sm:$0xff]  ;;  %v9143_v32 = vcombine.low %v10688_v31, %v10687_v52  ;;  %v10689_v49 = vld [vmem:[#allocation30_spill] sm:$0xff] }
  0x83   : > { %7017 = vmatprep.subr.bf16.mxu0 %v8317_v8  ;;  %7225 = vmatprep.subr.bf16.mxu1 %v8319_v63  ;;  %v9123_v27 = vcombine.low %v10682_v26, %v10681_v21  ;;  %v9127_v60 = vcombine.low %v10684_v14, %v10683_v34  ;;  %v10693_v59 = vld [vmem:[#allocation36_spill] sm:$0xff]  ;;  %v10694_v1 = vld [vmem:[#allocation34_spill] sm:$0xff]  ;;  %v10695_v21 = vld [vmem:[#allocation39_spill] sm:$0xff] }
  0x84   : > { %v9171_v2 = vcombine.low %v10694_v1, %v10693_v59  ;;  %v10696_v26 = vld [vmem:[#allocation37_spill] sm:$0xff]  ;;  %v221_v14 = vld [vmem:[%s8419_s27 + $0xc0] sm:$0xf]  ;;  %v10698_v52 = vld [vmem:[#allocation40_spill] sm:$0xff]  ;;  %v1555_v59 = vshll.u32 %v9009_v56, 16 }
  0x85   : > { %6922 = vmatmul.mubr.msk.bf16.gmra.mrb[4].mxu0 %vm566_vm1, %v8454_v17  ;;  %7130 = vmatmul.mubr.msk.bf16.gmra.mrb[4].mxu1 %vm566_vm1, %v8454_v17  ;;  %v9175_v34 = vcombine.low %v10696_v26, %v10695_v21  ;;  %v9189_v31 = vcombine.low %v10698_v52, %v10697_v42  ;;  %v9205_v26 = vld [vmem:[%s8419_s27 + $0xc4] sm:$0xff]   ;;  %v1566_v52 = vshrl.u32 %v9013_v7, 16 }
  0x86   : > { %6925 = vmatprep.mubr.msk.bf16.mxu0 %vm566_vm1, %v8466_v22  ;;  %7133 = vmatprep.mubr.msk.bf16.mxu1 %vm566_vm1, %v8466_v22  ;;  %v1557_v21 = vrot.slane %v1555_v59, 1 }
  0x8d   : > { %6926 = vmatmul.mubr.msk.bf16.gmra.mrb[8].mxu0 %vm566_vm1, %v8479_v30  ;;  %7134 = vmatmul.mubr.msk.bf16.gmra.mrb[8].mxu1 %vm566_vm1, %v8479_v30 }
  0x8e   : > { %6929 = vmatprep.mubr.msk.bf16.mxu0 %vm566_vm1, %v8522_v50  ;;  %7137 = vmatprep.mubr.msk.bf16.mxu1 %vm566_vm1, %v8522_v50 }
  0x95   : > { %6930 = vmatmul.mubr.msk.bf16.gmra.mrb[12].mxu0 %vm566_vm1, %v8530_v54  ;;  %7138 = vmatmul.mubr.msk.bf16.gmra.mrb[12].mxu1 %vm566_vm1, %v8530_v54 }
  0x96   : > { %6933 = vmatprep.mubr.msk.bf16.mxu0 %vm566_vm1, %v8572_v4  ;;  %7141 = vmatprep.mubr.msk.bf16.mxu1 %vm566_vm1, %v8572_v4 }
  0x9d   : > { %6934 = vmatmul.mubr.msk.bf16.gmra.mrb[16].mxu0 %vm566_vm1, %v8580_v6  ;;  %7142 = vmatmul.mubr.msk.bf16.gmra.mrb[16].mxu1 %vm566_vm1, %v8580_v6 }
  0x9e   : > { %6937 = vmatprep.mubr.msk.bf16.mxu0 %vm566_vm1, %v8612_v36  ;;  %7145 = vmatprep.mubr.msk.bf16.mxu1 %vm566_vm1, %v8612_v36 }
  0xa5   : > { %6938 = vmatmul.mubr.msk.bf16.gmra.mrb[20].mxu0 %vm566_vm1, %v8616_v40  ;;  %7146 = vmatmul.mubr.msk.bf16.gmra.mrb[20].mxu1 %vm566_vm1, %v8616_v40 }
  0xa6   : > { %6941 = vmatprep.mubr.msk.bf16.mxu0 %vm566_vm1, %v8634_v51  ;;  %7149 = vmatprep.mubr.msk.bf16.mxu1 %vm566_vm1, %v8634_v51 }
  0xad   : > { %6942 = vmatmul.mubr.msk.bf16.gmra.mrb[24].mxu0 %vm566_vm1, %v8649_v3  ;;  %7150 = vmatmul.mubr.msk.bf16.gmra.mrb[24].mxu1 %vm566_vm1, %v8649_v3 }
  0xae   : > { %6945 = vmatprep.mubr.msk.bf16.mxu0 %vm566_vm1, %v8665_v33  ;;  %7153 = vmatprep.mubr.msk.bf16.mxu1 %vm566_vm1, %v8665_v33 }
  0xb5   : > { %6946 = vmatmul.mubr.msk.bf16.gmra.mrb[28].mxu0 %vm566_vm1, %v8670_v28  ;;  %7154 = vmatmul.mubr.msk.bf16.gmra.mrb[28].mxu1 %vm566_vm1, %v8670_v28 }
  0xb6   : > { %6949 = vmatprep.mubr.msk.bf16.mxu0 %vm566_vm1, %v8724_v48  ;;  %7157 = vmatprep.mubr.msk.bf16.mxu1 %vm566_vm1, %v8724_v48 }
  0xbd   : > { %6950 = vmatmul.mubr.msk.bf16.gmra.mrb[32].mxu0 %vm566_vm1, %v8732_v15  ;;  %7158 = vmatmul.mubr.msk.bf16.gmra.mrb[32].mxu1 %vm566_vm1, %v8732_v15 }
  0xbe   : > { %6953 = vmatprep.mubr.msk.bf16.mxu0 %vm566_vm1, %v8762_v47  ;;  %7161 = vmatprep.mubr.msk.bf16.mxu1 %vm566_vm1, %v8762_v47 }
  0xc5   : > { %6954 = vmatmul.mubr.msk.bf16.gmra.mrb[36].mxu0 %vm566_vm1, %v8770_v25  ;;  %7162 = vmatmul.mubr.msk.bf16.gmra.mrb[36].mxu1 %vm566_vm1, %v8770_v25 }
  0xc6   : > { %6957 = vmatprep.mubr.msk.bf16.mxu0 %vm566_vm1, %v8800_v53  ;;  %7165 = vmatprep.mubr.msk.bf16.mxu1 %vm566_vm1, %v8800_v53 }
  0xcd   : > { %6958 = vmatmul.mubr.msk.bf16.gmra.mrb[40].mxu0 %vm566_vm1, %v8808_v43  ;;  %7166 = vmatmul.mubr.msk.bf16.gmra.mrb[40].mxu1 %vm566_vm1, %v8808_v43 }
  0xce   : > { %6961 = vmatprep.mubr.msk.bf16.mxu0 %vm566_vm1, %v8838_v57  ;;  %7169 = vmatprep.mubr.msk.bf16.mxu1 %vm566_vm1, %v8838_v57 }
  0xd5   : > { %6962 = vmatmul.mubr.msk.bf16.gmra.mrb[44].mxu0 %vm566_vm1, %v8846_v35  ;;  %7170 = vmatmul.mubr.msk.bf16.gmra.mrb[44].mxu1 %vm566_vm1, %v8846_v35  ;;  %v1580_v35 = vshrl.u32 %v9045_v18, 16 }
  0xd6   : > { %6969 = vmatprep.mubr.msk.bf16.mxu0 %vm566_vm1, %v8997_v55  ;;  %7177 = vmatprep.mubr.msk.bf16.mxu1 %vm566_vm1, %v8997_v55 }
  0xdd   : > { %6970 = vmatmul.mubr.msk.bf16.vlgmr.msra.gmra.mrb[0].mxu0 %vm566_vm1, %v9009_v56  ;;  %7178 = vmatmul.mubr.msk.bf16.vlgmr.msra.gmra.mrb[0].mxu1 %vm566_vm1, %v9009_v56 }
  0xde   : > { %7018 = vmatpush3.bf16.msra.mxu0 %v8317_v8  ;;  %7226 = vmatpush3.bf16.msra.mxu1 %v8319_v63  ;;  %v10690_v8 = vld [vmem:[#allocation28_spill] sm:$0xff] }
  0xdf   : > { %6973 = vmatprep.mubr.msk.bf16.mxu0 %vm566_vm1, %v9013_v7  ;;  %7181 = vmatprep.mubr.msk.bf16.mxu1 %vm566_vm1, %v9013_v7  ;;  %v9155_v63 = vcombine.low %v10690_v8, %v10689_v49  ;;  %v10699_v49 = vld [vmem:[#allocation43_spill] sm:$0xff] }
  0xe0   : > { %7019 = vmatprep.subr.bf16.mxu0 %v8331_v9  ;;  %7227 = vmatprep.subr.bf16.mxu1 %v8333_v58  ;;  %v9192_v8 = vcombine.low %v10699_v49, %v221_v14  ;;  %v1559_v14 = vshrl.u32 %v9009_v56, 16  ;;  %v1569_v49 = vshll.u32 %v9041_v13, 16 }
  0xe2   : > { %7020 = vmatpush3.bf16.msra.mxu0 %v8331_v9  ;;  %7228 = vmatpush3.bf16.msra.mxu1 %v8333_v58  ;;  %v10691_v9 = vld [vmem:[#allocation33_spill] sm:$0xff]  ;;  %v10692_v58 = vld [vmem:[#allocation31_spill] sm:$0xff]  ;;  %10700 = vst [vmem:[#allocation10_spill] sm:$0xff] %v9192_v8 }
  0xe3   : > { %7277 = vmatprep.subr.bf16.mxu0 %v9032_v11  ;;  %7485 = vmatprep.subr.bf16.mxu1 %v9037_v12  ;;  %v9159_v46 = vcombine.low %v10692_v58, %v10691_v9  ;;  %v1549_v9 = vshrl.u32 %v8997_v55, 16  ;;  %v1553_v58 = vrot.slane %v1551_v5, 1  ;;  %v1562_v5 = vshll.u32 %v9013_v7, 16 }
  0xe4   : > { %v1576_v7 = vshll.u32 %v9045_v18, 16  ;;  %v1573_v55 = vshrl.u32 %v9041_v13, 16 }
  0xe5   : > { %6974 = vmatmul.mubr.msk.bf16.gmra.mrb[4].mxu0 %vm566_vm1, %v9041_v13  ;;  %7182 = vmatmul.mubr.msk.bf16.gmra.mrb[4].mxu1 %vm566_vm1, %v9041_v13  ;;  %v1554_v1 = vor.u32 %v1553_v58, %v1549_v9  ;;  %v1561_v9 = vor.u32 %v1559_v14, %v1557_v21  ;;  %v1564_v58 = vrot.slane %v1562_v5, 1  ;;  %v8346_v5 = vld [vmem:[%s10459_s1 + $0x98] sm:$0xff]  }
  0xe6   : > { %6977 = vmatprep.mubr.msk.bf16.mxu0 %vm566_vm1, %v9045_v18  ;;  %7185 = vmatprep.mubr.msk.bf16.mxu1 %vm566_vm1, %v9045_v18 }
  0xe7   : > { %v9210_v42 = vsel %vm357_vm0, %v1554_v1, %v1557_v21  ;;  %v1568_v59 = vor.u32 %v1566_v52, %v1564_v58  ;;  %v1571_v1 = vrot.slane %v1569_v49, 1  ;;  %v9224_v56 = vsel %vm357_vm0, %v1561_v9, %v1564_v58  ;;  %v8347_v52 = vld [vmem:[%s10459_s1 + $0xd8] sm:$0xff]  }
  0xe8   : > { %10701 = vst [vmem:[#allocation9_spill] sm:$0xff] %v9210_v42  ;;  %10702 = vst [vmem:[#allocation12_spill] sm:$0xff] %v9224_v56  ;;  %v1583_v21 = vshll.u32 %v9059_v19, 16  ;;  %v1578_v49 = vrot.slane %v1576_v7, 1  ;;  %v9256_v7 = vld [vmem:[%s10459_s1 + $0xc0] sm:$0xff]  }
  0xe9   : > { %v9230_v14 = vsel %vm357_vm0, %v1568_v59, %v1571_v1  ;;  %v1575_v9 = vor.u32 %v1573_v55, %v1571_v1  ;;  %v1590_v55 = vshll.u32 %v9063_v23, 16  ;;  %v1594_v1 = vshrl.u32 %v9063_v23, 16 }
  0xea   : > { %10703 = vst [vmem:[#allocation11_spill] sm:$0xff] %v9230_v14  ;;  %v1582_v58 = vor.u32 %v1580_v35, %v1578_v49  ;;  %v1585_v59 = vrot.slane %v1583_v21, 1  ;;  %v1587_v35 = vshrl.u32 %v9059_v19, 16  ;;  %v1597_v21 = vshll.u32 %v9075_v24, 16 }
  0xed   : > { %6978 = vmatmul.mubr.msk.bf16.gmra.mrb[8].mxu0 %vm566_vm1, %v9059_v19  ;;  %7186 = vmatmul.mubr.msk.bf16.gmra.mrb[8].mxu1 %vm566_vm1, %v9059_v19 }
  0xee   : > { %6981 = vmatprep.mubr.msk.bf16.mxu0 %vm566_vm1, %v9063_v23  ;;  %7189 = vmatprep.mubr.msk.bf16.mxu1 %vm566_vm1, %v9063_v23 }
  0xf5   : > { %6982 = vmatmul.mubr.msk.bf16.gmra.mrb[12].mxu0 %vm566_vm1, %v9075_v24  ;;  %7190 = vmatmul.mubr.msk.bf16.gmra.mrb[12].mxu1 %vm566_vm1, %v9075_v24 }
  0xf6   : > { %6985 = vmatprep.mubr.msk.bf16.mxu0 %vm566_vm1, %v9079_v37  ;;  %7193 = vmatprep.mubr.msk.bf16.mxu1 %vm566_vm1, %v9079_v37 }
  0xfd   : > { %6986 = vmatmul.mubr.msk.bf16.gmra.mrb[16].mxu0 %vm566_vm1, %v9091_v38  ;;  %7194 = vmatmul.mubr.msk.bf16.gmra.mrb[16].mxu1 %vm566_vm1, %v9091_v38 }
  0xfe   : > { %6989 = vmatprep.mubr.msk.bf16.mxu0 %vm566_vm1, %v9095_v45  ;;  %7197 = vmatprep.mubr.msk.bf16.mxu1 %vm566_vm1, %v9095_v45 }
 0x105   : > { %6990 = vmatmul.mubr.msk.bf16.gmra.mrb[20].mxu0 %vm566_vm1, %v9107_v61  ;;  %7198 = vmatmul.mubr.msk.bf16.gmra.mrb[20].mxu1 %vm566_vm1, %v9107_v61 }
 0x106   : > { %6993 = vmatprep.mubr.msk.bf16.mxu0 %vm566_vm1, %v9111_v20  ;;  %7201 = vmatprep.mubr.msk.bf16.mxu1 %vm566_vm1, %v9111_v20 }
 0x10d   : > { %6994 = vmatmul.mubr.msk.bf16.gmra.mrb[24].mxu0 %vm566_vm1, %v9123_v27  ;;  %7202 = vmatmul.mubr.msk.bf16.gmra.mrb[24].mxu1 %vm566_vm1, %v9123_v27 }
 0x10e   : > { %6997 = vmatprep.mubr.msk.bf16.mxu0 %vm566_vm1, %v9127_v60  ;;  %7205 = vmatprep.mubr.msk.bf16.mxu1 %vm566_vm1, %v9127_v60 }
 0x115   : > { %6998 = vmatmul.mubr.msk.bf16.gmra.mrb[28].mxu0 %vm566_vm1, %v9139_v62  ;;  %7206 = vmatmul.mubr.msk.bf16.gmra.mrb[28].mxu1 %vm566_vm1, %v9139_v62 }
 0x116   : > { %7001 = vmatprep.mubr.msk.bf16.mxu0 %vm566_vm1, %v9143_v32  ;;  %7209 = vmatprep.mubr.msk.bf16.mxu1 %vm566_vm1, %v9143_v32 }
 0x11d   : > { %7002 = vmatmul.mubr.msk.bf16.gmra.mrb[32].mxu0 %vm566_vm1, %v9155_v63  ;;  %7210 = vmatmul.mubr.msk.bf16.gmra.mrb[32].mxu1 %vm566_vm1, %v9155_v63 }
 0x11e   : > { %7005 = vmatprep.mubr.msk.bf16.mxu0 %vm566_vm1, %v9159_v46  ;;  %7213 = vmatprep.mubr.msk.bf16.mxu1 %vm566_vm1, %v9159_v46 }
 0x125   : > { %7006 = vmatmul.mubr.msk.bf16.gmra.mrb[36].mxu0 %vm566_vm1, %v9171_v2  ;;  %7214 = vmatmul.mubr.msk.bf16.gmra.mrb[36].mxu1 %vm566_vm1, %v9171_v2 }
 0x126   : > { %7009 = vmatprep.mubr.msk.bf16.mxu0 %vm566_vm1, %v9175_v34  ;;  %7217 = vmatprep.mubr.msk.bf16.mxu1 %vm566_vm1, %v9175_v34 }
 0x12d   : > { %7010 = vmatmul.mubr.msk.bf16.gmra.mrb[40].mxu0 %vm566_vm1, %v9189_v31  ;;  %7218 = vmatmul.mubr.msk.bf16.gmra.mrb[40].mxu1 %vm566_vm1, %v9189_v31 }
 0x12e   : > { %7013 = vmatprep.mubr.msk.bf16.mxu0 %vm566_vm1, %v9192_v8  ;;  %7221 = vmatprep.mubr.msk.bf16.mxu1 %vm566_vm1, %v9192_v8 }
 0x135   : > { %7014 = vmatmul.mubr.msk.bf16.gmra.mrb[44].mxu0 %vm566_vm1, %v9205_v26  ;;  %7222 = vmatmul.mubr.msk.bf16.gmra.mrb[44].mxu1 %vm566_vm1, %v9205_v26 }
 0x136   : > { %7021 = vmatprep.mubr.msk.bf16.mxu0 %vm566_vm1, %v9210_v42  ;;  %7229 = vmatprep.mubr.msk.bf16.mxu1 %vm566_vm1, %v9210_v42  ;;  %v9251_v42 = vld [vmem:[%s10459_s1 + $0x80] sm:$0xff]  }
 0x13d   : > { %7022 = vmatmul.mubr.msk.bf16.vlgmr.msra.gmra.mrb[0].mxu0 %vm566_vm1, %v9224_v56  ;;  %7230 = vmatmul.mubr.msk.bf16.vlgmr.msra.gmra.mrb[0].mxu1 %vm566_vm1, %v9224_v56  ;;  %v1601_v56 = vshrl.u32 %v9075_v24, 16 }
 0x13e   : > { %7278 = vmatpush3.bf16.msra.mxu0 %v9032_v11  ;;  %7486 = vmatpush3.bf16.msra.mxu1 %v9037_v12  ;;  %v9260_v11 = vsel %vm357_vm0, %v1575_v9, %v1578_v49  ;;  %v9264_v12 = vsel %vm357_vm0, %v1582_v58, %v1585_v59  ;;  %v1592_v49 = vrot.slane %v1590_v55, 1  ;;  %v1599_v9 = vrot.slane %v1597_v21, 1 }
 0x13f   : > { %7025 = vmatprep.mubr.msk.bf16.mxu0 %vm566_vm1, %v9230_v14  ;;  %7233 = vmatprep.mubr.msk.bf16.mxu1 %vm566_vm1, %v9230_v14  ;;  %10704 = vst [vmem:[#allocation14_spill] sm:$0xff] %v9260_v11  ;;  %10705 = vst [vmem:[#allocation13_spill] sm:$0xff] %v9264_v12  ;;  %v1604_v58 = vshll.u32 %v9079_v37, 16  ;;  %v1608_v55 = vshrl.u32 %v9079_v37, 16 }
 0x140   : > { %7279 = vmatprep.subr.bf16.mxu0 %v8346_v5  ;;  %7487 = vmatprep.subr.bf16.mxu1 %v8347_v52 }
 0x142   : > { %7280 = vmatpush3.bf16.msra.mxu0 %v8346_v5  ;;  %7488 = vmatpush3.bf16.msra.mxu1 %v8347_v52  ;;  %v1589_v5 = vor.u32 %v1587_v35, %v1585_v59  ;;  %v1596_v52 = vor.u32 %v1594_v1, %v1592_v49  ;;  %v1606_v59 = vrot.slane %v1604_v58, 1  ;;  %v1603_v35 = vor.u32 %v1601_v56, %v1599_v9 }
 0x143   : > { %7329 = vmatprep.subr.bf16.mxu0 %v9251_v42  ;;  %7537 = vmatprep.subr.bf16.mxu1 %v9256_v7  ;;  %v1622_v58 = vshrl.u32 %v9095_v45, 16 }
 0x144   : > { %v9280_v14 = vsel %vm357_vm0, %v1589_v5, %v1592_v49  ;;  %v9284_v23 = vsel %vm357_vm0, %v1596_v52, %v1599_v9  ;;  %v1610_v1 = vor.u32 %v1608_v55, %v1606_v59  ;;  %v1618_v49 = vshll.u32 %v9095_v45, 16 }
 0x145   : > { %7026 = vmatmul.mubr.msk.bf16.gmra.mrb[4].mxu0 %vm566_vm1, %v9260_v11  ;;  %7234 = vmatmul.mubr.msk.bf16.gmra.mrb[4].mxu1 %vm566_vm1, %v9260_v11  ;;  %10706 = vst [vmem:[#allocation20_spill] sm:$0xff] %v9280_v14  ;;  %10707 = vst [vmem:[#allocation15_spill] sm:$0xff] %v9284_v23  ;;  %v1611_v11 = vshll.u32 %v9091_v38, 16  ;;  %v9298_v5 = vsel %vm357_vm0, %v1603_v35, %v1606_v59  ;;  %v1615_v52 = vshrl.u32 %v9091_v38, 16  ;;  %v1632_v59 = vshll.u32 %v9111_v20, 16 }
 0x146   : > { %7029 = vmatprep.mubr.msk.bf16.mxu0 %vm566_vm1, %v9264_v12  ;;  %7237 = vmatprep.mubr.msk.bf16.mxu1 %vm566_vm1, %v9264_v12  ;;  %10708 = vst [vmem:[#allocation24_spill] sm:$0xff] %v9298_v5  ;;  %v1620_v56 = vrot.slane %v1618_v49, 1  ;;  %v1636_v49 = vshrl.u32 %v9111_v20, 16 }
 0x147   : > { %v1613_v21 = vrot.slane %v1611_v11, 1 }
 0x148   : > { %v1624_v9 = vor.u32 %v1622_v58, %v1620_v56 }
 0x149   : > { %v9302_v12 = vsel %vm357_vm0, %v1610_v1, %v1613_v21  ;;  %v1617_v11 = vor.u32 %v1615_v52, %v1613_v21  ;;  %v1629_v1 = vshrl.u32 %v9107_v61, 16 }
 0x14a   : > { %10709 = vst [vmem:[#allocation21_spill] sm:$0xff] %v9302_v12 }
 0x14b   : > { %v9316_v35 = vsel %vm357_vm0, %v1617_v11, %v1620_v56  ;;  %v1646_v56 = vshll.u32 %v9127_v60, 16 }
 0x14c   : > { %10710 = vst [vmem:[#allocation27_spill] sm:$0xff] %v9316_v35 }
 0x14d   : > { %7030 = vmatmul.mubr.msk.bf16.gmra.mrb[8].mxu0 %vm566_vm1, %v9280_v14  ;;  %7238 = vmatmul.mubr.msk.bf16.gmra.mrb[8].mxu1 %vm566_vm1, %v9280_v14  ;;  %v1625_v14 = vshll.u32 %v9107_v61, 16 }
 0x14e   : > { %7033 = vmatprep.mubr.msk.bf16.mxu0 %vm566_vm1, %v9284_v23  ;;  %7241 = vmatprep.mubr.msk.bf16.mxu1 %vm566_vm1, %v9284_v23 }
 0x14f   : > { %v1627_v55 = vrot.slane %v1625_v14, 1  ;;  %v1634_v14 = vrot.slane %v1632_v59, 1  ;;  %v1650_v59 = vshrl.u32 %v9127_v60, 16 }
 0x151   : > { %v9320_v23 = vsel %vm357_vm0, %v1624_v9, %v1627_v55  ;;  %v1631_v21 = vor.u32 %v1629_v1, %v1627_v55  ;;  %v1638_v52 = vor.u32 %v1636_v49, %v1634_v14  ;;  %v1643_v9 = vshrl.u32 %v9123_v27, 16 }
 0x152   : > { %10711 = vst [vmem:[#allocation25_spill] sm:$0xff] %v9320_v23 }
 0x153   : > { %v9334_v11 = vsel %vm357_vm0, %v1631_v21, %v1634_v14  ;;  %v1660_v14 = vshll.u32 %v9143_v32, 16 }
 0x154   : > { %10712 = vst [vmem:[#allocation30_spill] sm:$0xff] %v9334_v11 }
 0x155   : > { %7034 = vmatmul.mubr.msk.bf16.gmra.mrb[12].mxu0 %vm566_vm1, %v9298_v5  ;;  %7242 = vmatmul.mubr.msk.bf16.gmra.mrb[12].mxu1 %vm566_vm1, %v9298_v5  ;;  %v1639_v5 = vshll.u32 %v9123_v27, 16 }
 0x156   : > { %7037 = vmatprep.mubr.msk.bf16.mxu0 %vm566_vm1, %v9302_v12  ;;  %7245 = vmatprep.mubr.msk.bf16.mxu1 %vm566_vm1, %v9302_v12 }
 0x157   : > { %v1641_v58 = vrot.slane %v1639_v5, 1  ;;  %v1648_v5 = vrot.slane %v1646_v56, 1  ;;  %v1664_v56 = vshrl.u32 %v9143_v32, 16 }
 0x159   : > { %v9338_v12 = vsel %vm357_vm0, %v1638_v52, %v1641_v58  ;;  %v1645_v55 = vor.u32 %v1643_v9, %v1641_v58  ;;  %v1652_v1 = vor.u32 %v1650_v59, %v1648_v5  ;;  %v1657_v52 = vshrl.u32 %v9139_v62, 16 }
 0x15a   : > { %10713 = vst [vmem:[#allocation28_spill] sm:$0xff] %v9338_v12 }
 0x15b   : > { %v9352_v21 = vsel %vm357_vm0, %v1645_v55, %v1648_v5  ;;  %v1674_v5 = vshll.u32 %v9159_v46, 16 }
 0x15c   : > { %10714 = vst [vmem:[#allocation33_spill] sm:$0xff] %v9352_v21 }
 0x15d   : > { %7038 = vmatmul.mubr.msk.bf16.gmra.mrb[16].mxu0 %vm566_vm1, %v9316_v35  ;;  %7246 = vmatmul.mubr.msk.bf16.gmra.mrb[16].mxu1 %vm566_vm1, %v9316_v35  ;;  %v1653_v35 = vshll.u32 %v9139_v62, 16 }
 0x15e   : > { %7041 = vmatprep.mubr.msk.bf16.mxu0 %vm566_vm1, %v9320_v23  ;;  %7249 = vmatprep.mubr.msk.bf16.mxu1 %vm566_vm1, %v9320_v23 }
 0x15f   : > { %v1655_v49 = vrot.slane %v1653_v35, 1  ;;  %v1662_v35 = vrot.slane %v1660_v14, 1  ;;  %v1678_v14 = vshrl.u32 %v9159_v46, 16 }
 0x161   : > { %v9356_v23 = vsel %vm357_vm0, %v1652_v1, %v1655_v49  ;;  %v1659_v58 = vor.u32 %v1657_v52, %v1655_v49  ;;  %v1666_v9 = vor.u32 %v1664_v56, %v1662_v35  ;;  %v1671_v1 = vshrl.u32 %v9155_v63, 16 }
 0x162   : > { %10715 = vst [vmem:[#allocation31_spill] sm:$0xff] %v9356_v23 }
 0x163   : > { %v9370_v55 = vsel %vm357_vm0, %v1659_v58, %v1662_v35  ;;  %v1688_v35 = vshll.u32 %v9175_v34, 16 }
 0x164   : > { %10716 = vst [vmem:[#allocation36_spill] sm:$0xff] %v9370_v55 }
 0x165   : > { %7042 = vmatmul.mubr.msk.bf16.gmra.mrb[20].mxu0 %vm566_vm1, %v9334_v11  ;;  %7250 = vmatmul.mubr.msk.bf16.gmra.mrb[20].mxu1 %vm566_vm1, %v9334_v11  ;;  %v1667_v11 = vshll.u32 %v9155_v63, 16 }
 0x166   : > { %7045 = vmatprep.mubr.msk.bf16.mxu0 %vm566_vm1, %v9338_v12  ;;  %7253 = vmatprep.mubr.msk.bf16.mxu1 %vm566_vm1, %v9338_v12 }
 0x167   : > { %v1669_v59 = vrot.slane %v1667_v11, 1  ;;  %v1676_v11 = vrot.slane %v1674_v5, 1  ;;  %v1692_v5 = vshrl.u32 %v9175_v34, 16 }
 0x169   : > { %v9374_v12 = vsel %vm357_vm0, %v1666_v9, %v1669_v59  ;;  %v1673_v49 = vor.u32 %v1671_v1, %v1669_v59  ;;  %v1680_v52 = vor.u32 %v1678_v14, %v1676_v11  ;;  %v1685_v9 = vshrl.u32 %v9171_v2, 16 }
 0x16a   : > { %10717 = vst [vmem:[#allocation34_spill] sm:$0xff] %v9374_v12 }
 0x16b   : > { %v9388_v58 = vsel %vm357_vm0, %v1673_v49, %v1676_v11  ;;  %v1702_v11 = vshll.u32 %v9192_v8, 16 }
 0x16c   : > { %10718 = vst [vmem:[#allocation39_spill] sm:$0xff] %v9388_v58 }
 0x16d   : > { %7046 = vmatmul.mubr.msk.bf16.gmra.mrb[24].mxu0 %vm566_vm1, %v9352_v21  ;;  %7254 = vmatmul.mubr.msk.bf16.gmra.mrb[24].mxu1 %vm566_vm1, %v9352_v21  ;;  %v1681_v21 = vshll.u32 %v9171_v2, 16 }
 0x16e   : > { %7049 = vmatprep.mubr.msk.bf16.mxu0 %vm566_vm1, %v9356_v23  ;;  %7257 = vmatprep.mubr.msk.bf16.mxu1 %vm566_vm1, %v9356_v23 }
 0x16f   : > { %v1683_v56 = vrot.slane %v1681_v21, 1  ;;  %v1690_v21 = vrot.slane %v1688_v35, 1  ;;  %v1706_v35 = vshrl.u32 %v9192_v8, 16 }
 0x171   : > { %v9392_v23 = vsel %vm357_vm0, %v1680_v52, %v1683_v56  ;;  %v1687_v59 = vor.u32 %v1685_v9, %v1683_v56  ;;  %v1694_v1 = vor.u32 %v1692_v5, %v1690_v21  ;;  %v1699_v52 = vshrl.u32 %v9189_v31, 16  ;;  %v8348_v9 = vld [vmem:[%s8419_s27 + $0xcc] ss:$0 sps:$4 sm:$0x11]  }
 0x172   : > { %10719 = vst [vmem:[#allocation37_spill] sm:$0xff] %v9392_v23 }
 0x173   : > { %v9406_v49 = vsel %vm357_vm0, %v1687_v59, %v1690_v21 }
 0x175   : > { %7050 = vmatmul.mubr.msk.bf16.gmra.mrb[28].mxu0 %vm566_vm1, %v9370_v55  ;;  %7258 = vmatmul.mubr.msk.bf16.gmra.mrb[28].mxu1 %vm566_vm1, %v9370_v55  ;;  %v1695_v55 = vshll.u32 %v9189_v31, 16 }
 0x176   : > { %7053 = vmatprep.mubr.msk.bf16.mxu0 %vm566_vm1, %v9374_v12  ;;  %7261 = vmatprep.mubr.msk.bf16.mxu1 %vm566_vm1, %v9374_v12  ;;  %v1709_v12 = vshll.u32 %v9205_v26, 16 }
 0x177   : > { %v1697_v14 = vrot.slane %v1695_v55, 1  ;;  %v1704_v55 = vrot.slane %v1702_v11, 1 }
 0x178   : > { %v1711_v21 = vrot.slane %v1709_v12, 1 }
 0x179   : > { %v1701_v56 = vor.u32 %v1699_v52, %v1697_v14  ;;  %v1708_v5 = vor.u32 %v1706_v35, %v1704_v55  ;;  %v10720_v52 = vld [vmem:[#allocation2_spill] sm:$0xff]  ;;  %v8351_v35 = vld [vmem:[%s10459_s1 + $0x88] sm:$0xff]  }
 0x17b   : > { %v9424_v59 = vsel %vm357_vm0, %v1701_v56, %v1704_v55  ;;  %v9428_v8 = vsel %vm357_vm0, %v1708_v5, %v1711_v21  ;;  %v10721_v55 = vld [vmem:[#allocation3_spill] sm:$0xff]  ;;  %v10722_v56 = vld [vmem:[#allocation4_spill] sm:$0xff]  ;;  %v8354_v5 = vld [vmem:[%s10459_s1 + $0xe0] sm:$0xff]  }
 0x17d   : > { %7054 = vmatmul.mubr.msk.bf16.gmra.mrb[32].mxu0 %vm566_vm1, %v9388_v58  ;;  %7262 = vmatmul.mubr.msk.bf16.gmra.mrb[32].mxu1 %vm566_vm1, %v9388_v58  ;;  %v9410_v58 = vsel %vm357_vm0, %v1694_v1, %v1697_v14  ;;  %v1713_v1 = vshrl.u32 %v9205_v26, 16 }
 0x17e   : > { %7057 = vmatprep.mubr.msk.bf16.mxu0 %vm566_vm1, %v9392_v23  ;;  %7265 = vmatprep.mubr.msk.bf16.mxu1 %vm566_vm1, %v9392_v23  ;;  %v1717_v23 = vshll.u32 %v8348_v9, 16  ;;  %v8353_v9 = vld [vmem:[%s10459_s1 + $0xa0] sm:$0xff]  }
 0x17f   : > { %v1715_v12 = vor.u32 %v1713_v1, %v1711_v21  ;;  %v10725_v21 = vld [vmem:[#allocation7_spill] sm:$0xff]  ;;  %v10726_v1 = vld [vmem:[#allocation8_spill] sm:$0xff] }
 0x180   : > { %v1719_v14 = vrot.slane %v1717_v23, 1  ;;  %v8352_v23 = vld [vmem:[%s10459_s1 + $0xc8] sm:$0xff]  }
 0x182   : > { %v9439_v11 = vsel %vm357_vm0, %v1715_v12, %v1719_v14  ;;  %v10727_v12 = vld [vmem:[#allocation16_spill] sm:$0xff]  ;;  %v10728_v14 = vld [vmem:[#allocation17_spill] sm:$0xff] }
 0x185   : > { %7058 = vmatmul.mubr.msk.bf16.gmra.mrb[36].mxu0 %vm566_vm1, %v9406_v49  ;;  %7266 = vmatmul.mubr.msk.bf16.gmra.mrb[36].mxu1 %vm566_vm1, %v9406_v49 }
 0x186   : > { %7061 = vmatprep.mubr.msk.bf16.mxu0 %vm566_vm1, %v9410_v58  ;;  %7269 = vmatprep.mubr.msk.bf16.mxu1 %vm566_vm1, %v9410_v58 }
 0x18d   : > { %7062 = vmatmul.mubr.msk.bf16.gmra.mrb[40].mxu0 %vm566_vm1, %v9424_v59  ;;  %7270 = vmatmul.mubr.msk.bf16.gmra.mrb[40].mxu1 %vm566_vm1, %v9424_v59 }
 0x18e   : > { %7065 = vmatprep.mubr.msk.bf16.mxu0 %vm566_vm1, %v9428_v8  ;;  %7273 = vmatprep.mubr.msk.bf16.mxu1 %vm566_vm1, %v9428_v8 }
 0x195   : > { %7066 = vmatmul.mubr.msk.bf16.gmra.mrb[44].mxu0 %vm566_vm1, %v9439_v11  ;;  %7274 = vmatmul.mubr.msk.bf16.gmra.mrb[44].mxu1 %vm566_vm1, %v9439_v11 }
 0x196   : > { %7281 = vmatprep.mubr.msk.bf16.mxu0 %vm566_vm1, %v10720_v52  ;;  %7489 = vmatprep.mubr.msk.bf16.mxu1 %vm566_vm1, %v10720_v52  ;;  %v10729_v52 = vld [vmem:[#allocation18_spill] sm:$0xff] }
 0x19d   : > { %7282 = vmatmul.mubr.msk.bf16.vlgmr.msra.gmra.mrb[48].mxu0 %vm566_vm1, %v10721_v55  ;;  %7490 = vmatmul.mubr.msk.bf16.vlgmr.msra.gmra.mrb[48].mxu1 %vm566_vm1, %v10721_v55  ;;  %v10732_v55 = vld [vmem:[#allocation23_spill] sm:$0xff] }
 0x19e   : > { %7330 = vmatpush3.bf16.msra.mxu0 %v9251_v42  ;;  %7538 = vmatpush3.bf16.msra.mxu1 %v9256_v7  ;;  %v10723_v42 = vld [vmem:[#allocation5_spill] sm:$0xff]  ;;  %v10724_v7 = vld [vmem:[#allocation6_spill] sm:$0xff] }
 0x19f   : > { %7285 = vmatprep.mubr.msk.bf16.mxu0 %vm566_vm1, %v10722_v56  ;;  %7493 = vmatprep.mubr.msk.bf16.mxu1 %vm566_vm1, %v10722_v56  ;;  %v10733_v56 = vld [vmem:[#allocation26_spill] sm:$0xff] }
 0x1a0   : > { %7331 = vmatprep.subr.bf16.mxu0 %v8351_v35  ;;  %7539 = vmatprep.subr.bf16.mxu1 %v8352_v23 }
 0x1a2   : > { %7332 = vmatpush3.bf16.msra.mxu0 %v8351_v35  ;;  %7540 = vmatpush3.bf16.msra.mxu1 %v8352_v23  ;;  %v10730_v35 = vld [vmem:[#allocation19_spill] sm:$0xff]  ;;  %v10731_v23 = vld [vmem:[#allocation22_spill] sm:$0xff] }
 0x1a3   : > { %7381 = vmatprep.subr.bf16.mxu0 %v8353_v9  ;;  %7589 = vmatprep.subr.bf16.mxu1 %v8354_v5 }
 0x1a5   : > { %7286 = vmatmul.mubr.msk.bf16.gmra.mrb[52].mxu0 %vm566_vm1, %v10723_v42  ;;  %7494 = vmatmul.mubr.msk.bf16.gmra.mrb[52].mxu1 %vm566_vm1, %v10723_v42  ;;  %v10734_v42 = vld [vmem:[#allocation29_spill] sm:$0xff] }
 0x1a6   : > { %7289 = vmatprep.mubr.msk.bf16.mxu0 %vm566_vm1, %v10724_v7  ;;  %7497 = vmatprep.mubr.msk.bf16.mxu1 %vm566_vm1, %v10724_v7  ;;  %v10735_v7 = vld [vmem:[#allocation32_spill] sm:$0xff] }
 0x1ad   : > { %7290 = vmatmul.mubr.msk.bf16.gmra.mrb[56].mxu0 %vm566_vm1, %v10725_v21  ;;  %7498 = vmatmul.mubr.msk.bf16.gmra.mrb[56].mxu1 %vm566_vm1, %v10725_v21  ;;  %v10736_v21 = vld [vmem:[#allocation35_spill] sm:$0xff] }
 0x1ae   : > { %7293 = vmatprep.mubr.msk.bf16.mxu0 %vm566_vm1, %v10726_v1  ;;  %7501 = vmatprep.mubr.msk.bf16.mxu1 %vm566_vm1, %v10726_v1  ;;  %v10737_v1 = vld [vmem:[#allocation38_spill] sm:$0xff] }
 0x1b5   : > { %7294 = vmatmul.mubr.msk.bf16.gmra.mrb[60].mxu0 %vm566_vm1, %v10727_v12  ;;  %7502 = vmatmul.mubr.msk.bf16.gmra.mrb[60].mxu1 %vm566_vm1, %v10727_v12  ;;  %v10738_v12 = vld [vmem:[#allocation41_spill] sm:$0xff] }
 0x1b6   : > { %7297 = vmatprep.mubr.msk.bf16.mxu0 %vm566_vm1, %v10728_v14  ;;  %7505 = vmatprep.mubr.msk.bf16.mxu1 %vm566_vm1, %v10728_v14 }
 0x1bd   : > { %7298 = vmatmul.mubr.msk.bf16.gmra.mrb[64].mxu0 %vm566_vm1, %v10729_v52  ;;  %7506 = vmatmul.mubr.msk.bf16.gmra.mrb[64].mxu1 %vm566_vm1, %v10729_v52 }
 0x1be   : > { %7301 = vmatprep.mubr.msk.bf16.mxu0 %vm566_vm1, %v10730_v35  ;;  %7509 = vmatprep.mubr.msk.bf16.mxu1 %vm566_vm1, %v10730_v35 }
 0x1c5   : > { %7302 = vmatmul.mubr.msk.bf16.gmra.mrb[68].mxu0 %vm566_vm1, %v10731_v23  ;;  %7510 = vmatmul.mubr.msk.bf16.gmra.mrb[68].mxu1 %vm566_vm1, %v10731_v23 }
 0x1c6   : > { %7305 = vmatprep.mubr.msk.bf16.mxu0 %vm566_vm1, %v10732_v55  ;;  %7513 = vmatprep.mubr.msk.bf16.mxu1 %vm566_vm1, %v10732_v55 }
 0x1cd   : > { %7306 = vmatmul.mubr.msk.bf16.gmra.mrb[72].mxu0 %vm566_vm1, %v10733_v56  ;;  %7514 = vmatmul.mubr.msk.bf16.gmra.mrb[72].mxu1 %vm566_vm1, %v10733_v56 }
 0x1ce   : > { %7309 = vmatprep.mubr.msk.bf16.mxu0 %vm566_vm1, %v10734_v42  ;;  %7517 = vmatprep.mubr.msk.bf16.mxu1 %vm566_vm1, %v10734_v42 }
 0x1d5   : > { %7310 = vmatmul.mubr.msk.bf16.gmra.mrb[76].mxu0 %vm566_vm1, %v10735_v7  ;;  %7518 = vmatmul.mubr.msk.bf16.gmra.mrb[76].mxu1 %vm566_vm1, %v10735_v7 }
 0x1d6   : > { %7313 = vmatprep.mubr.msk.bf16.mxu0 %vm566_vm1, %v10736_v21  ;;  %7521 = vmatprep.mubr.msk.bf16.mxu1 %vm566_vm1, %v10736_v21 }
 0x1dd   : > { %7314 = vmatmul.mubr.msk.bf16.gmra.mrb[80].mxu0 %vm566_vm1, %v10737_v1  ;;  %7522 = vmatmul.mubr.msk.bf16.gmra.mrb[80].mxu1 %vm566_vm1, %v10737_v1 }
 0x1de   : > { %7317 = vmatprep.mubr.msk.bf16.mxu0 %vm566_vm1, %v10738_v12  ;;  %7525 = vmatprep.mubr.msk.bf16.mxu1 %vm566_vm1, %v10738_v12 }
 0x1e5   : > { %7318 = vmatmul.mubr.msk.bf16.gmra.mrb[84].mxu0 %vm566_vm1, %v8850_v39  ;;  %7526 = vmatmul.mubr.msk.bf16.gmra.mrb[84].mxu1 %vm566_vm1, %v8850_v39  ;;  %v8361_v39 = vld [vmem:[%s8419_s27] sm:$0xff]  }
 0x1e6   : > { %7321 = vmatprep.mubr.msk.bf16.mxu0 %vm566_vm1, %v8854_v29  ;;  %7529 = vmatprep.mubr.msk.bf16.mxu1 %vm566_vm1, %v8854_v29  ;;  %v8355_v29 = vld [vmem:[%s10459_s1 + $0xa8] sm:$0xff]  }
 0x1ed   : > { %7322 = vmatmul.mubr.msk.bf16.gmra.mrb[88].mxu0 %vm566_vm1, %v8868_v0  ;;  %7530 = vmatmul.mubr.msk.bf16.gmra.mrb[88].mxu1 %vm566_vm1, %v8868_v0  ;;  %v8356_v0 = vld [vmem:[%s10459_s1 + $0xe8] sm:$0xff]  }
 0x1ee   : > { %7325 = vmatprep.mubr.msk.bf16.mxu0 %vm566_vm1, %v8872_v41  ;;  %7533 = vmatprep.mubr.msk.bf16.mxu1 %vm566_vm1, %v8872_v41  ;;  %v9575_v41 = vld [vmem:[%s10459_s1 + $0xb0] sm:$0xff]  }
 0x1f5   : > { %7326 = vmatmul.mubr.msk.bf16.gmra.mrb[92].mxu0 %vm566_vm1, %v8883_v44  ;;  %7534 = vmatmul.mubr.msk.bf16.gmra.mrb[92].mxu1 %vm566_vm1, %v8883_v44  ;;  %v9580_v44 = vld [vmem:[%s10459_s1 + $0xf0] sm:$0xff]  }
 0x1f6   : > { %7333 = vmatprep.mubr.msk.bf16.mxu0 %vm566_vm1, %v8361_v39  ;;  %7541 = vmatprep.mubr.msk.bf16.mxu1 %vm566_vm1, %v8361_v39 }
 0x1fd   : > { %7334 = vmatmul.mubr.msk.bf16.vlgmr.msra.gmra.mrb[48].mxu0 %vm566_vm1, %v8435_v10  ;;  %7542 = vmatmul.mubr.msk.bf16.vlgmr.msra.gmra.mrb[48].mxu1 %vm566_vm1, %v8435_v10 }
 0x1fe   : > { %7382 = vmatpush3.bf16.msra.mxu0 %v8353_v9  ;;  %7590 = vmatpush3.bf16.msra.mxu1 %v8354_v5 }
 0x1ff   : > { %7337 = vmatprep.mubr.msk.bf16.mxu0 %vm566_vm1, %v8450_v16  ;;  %7545 = vmatprep.mubr.msk.bf16.mxu1 %vm566_vm1, %v8450_v16 }
 0x200   : > { %7383 = vmatprep.subr.bf16.mxu0 %v8355_v29  ;;  %7591 = vmatprep.subr.bf16.mxu1 %v8356_v0 }
 0x202   : > { %7384 = vmatpush3.bf16.msra.mxu0 %v8355_v29  ;;  %7592 = vmatpush3.bf16.msra.mxu1 %v8356_v0 }
 0x203   : > { %7433 = vmatprep.subr.bf16.mxu0 %v9575_v41  ;;  %7641 = vmatprep.subr.bf16.mxu1 %v9580_v44 }
 0x205   : > { %7338 = vmatmul.mubr.msk.bf16.gmra.mrb[52].mxu0 %vm566_vm1, %v8454_v17  ;;  %7546 = vmatmul.mubr.msk.bf16.gmra.mrb[52].mxu1 %vm566_vm1, %v8454_v17 }
 0x206   : > { %7341 = vmatprep.mubr.msk.bf16.mxu0 %vm566_vm1, %v8466_v22  ;;  %7549 = vmatprep.mubr.msk.bf16.mxu1 %vm566_vm1, %v8466_v22 }
 0x20d   : > { %7342 = vmatmul.mubr.msk.bf16.gmra.mrb[56].mxu0 %vm566_vm1, %v8479_v30  ;;  %7550 = vmatmul.mubr.msk.bf16.gmra.mrb[56].mxu1 %vm566_vm1, %v8479_v30 }
 0x20e   : > { %7345 = vmatprep.mubr.msk.bf16.mxu0 %vm566_vm1, %v8522_v50  ;;  %7553 = vmatprep.mubr.msk.bf16.mxu1 %vm566_vm1, %v8522_v50 }
 0x210   : > { %v9600_v10 = vpop.f32.mrb[0].mxu0  ;;  %v9602_v16 = vpop.f32.mrb[0].mxu1 }
 0x211   : > { %v9606_v22 = vpop.f32.mrb[1].mxu0  ;;  %v9608_v9 = vpop.f32.mrb[1].mxu1 }
 0x212   : > { %v9612_v5 = vpop.f32.mrb[2].mxu0  ;;  %v9614_v14 = vpop.f32.mrb[2].mxu1 }
 0x213   : > { %v9618_v52 = vpop.f32.mrb[3].mxu0  ;;  %v9620_v35 = vpop.f32.mrb[3].mxu1 }
 0x215   : > { %7346 = vmatmul.mubr.msk.bf16.gmra.mrb[60].mxu0 %vm566_vm1, %v8530_v54  ;;  %7554 = vmatmul.mubr.msk.bf16.gmra.mrb[60].mxu1 %vm566_vm1, %v8530_v54 }
 0x216   : > { %7349 = vmatprep.mubr.msk.bf16.mxu0 %vm566_vm1, %v8572_v4  ;;  %7557 = vmatprep.mubr.msk.bf16.mxu1 %vm566_vm1, %v8572_v4 }
 0x218   : > { %v9632_v55 = vpop.f32.mrb[4].mxu0  ;;  %v9634_v56 = vpop.f32.mrb[4].mxu1 }
 0x219   : > { %v9638_v7 = vpop.f32.mrb[5].mxu0  ;;  %v9640_v21 = vpop.f32.mrb[5].mxu1 }
 0x21a   : > { %v9644_v1 = vpop.f32.mrb[6].mxu0  ;;  %v9646_v12 = vpop.f32.mrb[6].mxu1 }
 0x21b   : > { %v9650_v39 = vpop.f32.mrb[7].mxu0  ;;  %v9652_v29 = vpop.f32.mrb[7].mxu1 }
 0x21c   : > { %10739 = vst [vmem:[#allocation42_spill] sm:$0xff] %v9652_v29 }
 0x21d   : > { %7350 = vmatmul.mubr.msk.bf16.gmra.mrb[64].mxu0 %vm566_vm1, %v8580_v6  ;;  %7558 = vmatmul.mubr.msk.bf16.gmra.mrb[64].mxu1 %vm566_vm1, %v8580_v6 }
 0x21e   : > { %7353 = vmatprep.mubr.msk.bf16.mxu0 %vm566_vm1, %v8612_v36  ;;  %7561 = vmatprep.mubr.msk.bf16.mxu1 %vm566_vm1, %v8612_v36 }
 0x220   : > { %v9664_v4 = vpop.f32.mrb[8].mxu0  ;;  %v9666_v54 = vpop.f32.mrb[8].mxu1 }
 0x221   : > { %v9670_v0 = vpop.f32.mrb[9].mxu0  ;;  %v9672_v23 = vpop.f32.mrb[9].mxu1 }
 0x222   : > { %10740 = vst [vmem:[#allocation40_spill] sm:$0xff] %v9670_v0  ;;  %10741 = vst [vmem:[#allocation43_spill] sm:$0xff] %v9672_v23  ;;  %v9676_v50 = vpop.f32.mrb[10].mxu0  ;;  %v9678_v30 = vpop.f32.mrb[10].mxu1 }
 0x223   : > { %10742 = vst [vmem:[#allocation2_spill] sm:$0xff] %v9676_v50  ;;  %10743 = vst [vmem:[#allocation3_spill] sm:$0xff] %v9678_v30  ;;  %v9682_v17 = vpop.f32.mrb[11].mxu0  ;;  %v9684_v29 = vpop.f32.mrb[11].mxu1 }
 0x224   : > { %10744 = vst [vmem:[#allocation4_spill] sm:$0xff] %v9682_v17  ;;  %10745 = vst [vmem:[#allocation5_spill] sm:$0xff] %v9684_v29 }
 0x225   : > { %7354 = vmatmul.mubr.msk.bf16.gmra.mrb[68].mxu0 %vm566_vm1, %v8616_v40  ;;  %7562 = vmatmul.mubr.msk.bf16.gmra.mrb[68].mxu1 %vm566_vm1, %v8616_v40 }
 0x226   : > { %7357 = vmatprep.mubr.msk.bf16.mxu0 %vm566_vm1, %v8634_v51  ;;  %7565 = vmatprep.mubr.msk.bf16.mxu1 %vm566_vm1, %v8634_v51 }
 0x228   : > { %v9696_v36 = vpop.f32.mrb[12].mxu0  ;;  %v9698_v6 = vpop.f32.mrb[12].mxu1 }
 0x229   : > { %v9702_v42 = vpop.f32.mrb[13].mxu0  ;;  %v9704_v29 = vpop.f32.mrb[13].mxu1 }
 0x22a   : > { %10746 = vst [vmem:[#allocation6_spill] sm:$0xff] %v9702_v42  ;;  %10747 = vst [vmem:[#allocation7_spill] sm:$0xff] %v9704_v29  ;;  %v9708_v17 = vpop.f32.mrb[14].mxu0  ;;  %v9710_v50 = vpop.f32.mrb[14].mxu1 }
 0x22b   : > { %10748 = vst [vmem:[#allocation8_spill] sm:$0xff] %v9708_v17  ;;  %10749 = vst [vmem:[#allocation16_spill] sm:$0xff] %v9710_v50  ;;  %v9714_v23 = vpop.f32.mrb[15].mxu0  ;;  %v9716_v0 = vpop.f32.mrb[15].mxu1 }
 0x22c   : > { %10750 = vst [vmem:[#allocation17_spill] sm:$0xff] %v9714_v23  ;;  %10751 = vst [vmem:[#allocation18_spill] sm:$0xff] %v9716_v0 }
 0x22d   : > { %7358 = vmatmul.mubr.msk.bf16.gmra.mrb[72].mxu0 %vm566_vm1, %v8649_v3  ;;  %7566 = vmatmul.mubr.msk.bf16.gmra.mrb[72].mxu1 %vm566_vm1, %v8649_v3 }
 0x22e   : > { %7361 = vmatprep.mubr.msk.bf16.mxu0 %vm566_vm1, %v8665_v33  ;;  %7569 = vmatprep.mubr.msk.bf16.mxu1 %vm566_vm1, %v8665_v33 }
 0x230   : > { %v9728_v51 = vpop.f32.mrb[16].mxu0  ;;  %v9730_v40 = vpop.f32.mrb[16].mxu1 }
 0x231   : > { %v9734_v30 = vpop.f32.mrb[17].mxu0  ;;  %v9736_v0 = vpop.f32.mrb[17].mxu1 }
 0x232   : > { %10752 = vst [vmem:[#allocation19_spill] sm:$0xff] %v9734_v30  ;;  %10753 = vst [vmem:[#allocation22_spill] sm:$0xff] %v9736_v0  ;;  %v9740_v23 = vpop.f32.mrb[18].mxu0  ;;  %v9742_v17 = vpop.f32.mrb[18].mxu1 }
 0x233   : > { %10754 = vst [vmem:[#allocation23_spill] sm:$0xff] %v9740_v23  ;;  %10755 = vst [vmem:[#allocation26_spill] sm:$0xff] %v9742_v17  ;;  %v9746_v29 = vpop.f32.mrb[19].mxu0  ;;  %v9748_v42 = vpop.f32.mrb[19].mxu1 }
 0x234   : > { %10756 = vst [vmem:[#allocation29_spill] sm:$0xff] %v9746_v29  ;;  %10757 = vst [vmem:[#allocation32_spill] sm:$0xff] %v9748_v42 }
 0x235   : > { %7362 = vmatmul.mubr.msk.bf16.gmra.mrb[76].mxu0 %vm566_vm1, %v8670_v28  ;;  %7570 = vmatmul.mubr.msk.bf16.gmra.mrb[76].mxu1 %vm566_vm1, %v8670_v28 }
 0x236   : > { %7365 = vmatprep.mubr.msk.bf16.mxu0 %vm566_vm1, %v8724_v48  ;;  %7573 = vmatprep.mubr.msk.bf16.mxu1 %vm566_vm1, %v8724_v48 }
 0x238   : > { %v9760_v33 = vpop.f32.mrb[20].mxu0  ;;  %v9762_v3 = vpop.f32.mrb[20].mxu1 }
 0x239   : > { %v9766_v50 = vpop.f32.mrb[21].mxu0  ;;  %v9768_v42 = vpop.f32.mrb[21].mxu1 }
 0x23a   : > { %10758 = vst [vmem:[#allocation35_spill] sm:$0xff] %v9766_v50  ;;  %10759 = vst [vmem:[#allocation38_spill] sm:$0xff] %v9768_v42  ;;  %v9772_v29 = vpop.f32.mrb[22].mxu0  ;;  %v9774_v23 = vpop.f32.mrb[22].mxu1 }
 0x23b   : > { %10760 = vst [vmem:[#allocation41_spill] sm:$0xff] %v9772_v29  ;;  %10761 = vst [vmem:[#allocation49_spill] sm:$0xff] %v9774_v23  ;;  %v9778_v0 = vpop.f32.mrb[23].mxu0  ;;  %v9780_v30 = vpop.f32.mrb[23].mxu1 }
 0x23c   : > { %10762 = vst [vmem:[#allocation50_spill] sm:$0xff] %v9778_v0  ;;  %10763 = vst [vmem:[#allocation51_spill] sm:$0xff] %v9780_v30 }
 0x23d   : > { %7366 = vmatmul.mubr.msk.bf16.gmra.mrb[80].mxu0 %vm566_vm1, %v8732_v15  ;;  %7574 = vmatmul.mubr.msk.bf16.gmra.mrb[80].mxu1 %vm566_vm1, %v8732_v15 }
 0x23e   : > { %7369 = vmatprep.mubr.msk.bf16.mxu0 %vm566_vm1, %v8762_v47  ;;  %7577 = vmatprep.mubr.msk.bf16.mxu1 %vm566_vm1, %v8762_v47 }
 0x240   : > { %v9792_v48 = vpop.f32.mrb[24].mxu0  ;;  %v9794_v28 = vpop.f32.mrb[24].mxu1 }
 0x241   : > { %v9798_v17 = vpop.f32.mrb[25].mxu0  ;;  %v9800_v30 = vpop.f32.mrb[25].mxu1 }
 0x242   : > { %10764 = vst [vmem:[#allocation52_spill] sm:$0xff] %v9798_v17  ;;  %10765 = vst [vmem:[#allocation53_spill] sm:$0xff] %v9800_v30  ;;  %v9804_v0 = vpop.f32.mrb[26].mxu0  ;;  %v9806_v29 = vpop.f32.mrb[26].mxu1 }
 0x243   : > { %10766 = vst [vmem:[#allocation54_spill] sm:$0xff] %v9804_v0  ;;  %10767 = vst [vmem:[#allocation55_spill] sm:$0xff] %v9806_v29  ;;  %v9810_v42 = vpop.f32.mrb[27].mxu0  ;;  %v9812_v50 = vpop.f32.mrb[27].mxu1 }
 0x244   : > { %10768 = vst [vmem:[#allocation56_spill] sm:$0xff] %v9810_v42  ;;  %10769 = vst [vmem:[#allocation57_spill] sm:$0xff] %v9812_v50 }
 0x245   : > { %7370 = vmatmul.mubr.msk.bf16.gmra.mrb[84].mxu0 %vm566_vm1, %v8770_v25  ;;  %7578 = vmatmul.mubr.msk.bf16.gmra.mrb[84].mxu1 %vm566_vm1, %v8770_v25 }
 0x246   : > { %7373 = vmatprep.mubr.msk.bf16.mxu0 %vm566_vm1, %v8800_v53  ;;  %7581 = vmatprep.mubr.msk.bf16.mxu1 %vm566_vm1, %v8800_v53 }
 0x248   : > { %v9824_v47 = vpop.f32.mrb[28].mxu0  ;;  %v9826_v15 = vpop.f32.mrb[28].mxu1 }
 0x249   : > { %v9830_v23 = vpop.f32.mrb[29].mxu0  ;;  %v9832_v50 = vpop.f32.mrb[29].mxu1 }
 0x24a   : > { %10770 = vst [vmem:[#allocation58_spill] sm:$0xff] %v9830_v23  ;;  %10771 = vst [vmem:[#allocation59_spill] sm:$0xff] %v9832_v50  ;;  %v9836_v42 = vpop.f32.mrb[30].mxu0  ;;  %v9838_v0 = vpop.f32.mrb[30].mxu1 }
 0x24b   : > { %10772 = vst [vmem:[#allocation60_spill] sm:$0xff] %v9836_v42  ;;  %10773 = vst [vmem:[#allocation61_spill] sm:$0xff] %v9838_v0  ;;  %v9842_v30 = vpop.f32.mrb[31].mxu0  ;;  %v9844_v17 = vpop.f32.mrb[31].mxu1 }
 0x24c   : > { %10774 = vst [vmem:[#allocation62_spill] sm:$0xff] %v9842_v30  ;;  %10775 = vst [vmem:[#allocation63_spill] sm:$0xff] %v9844_v17 }
 0x24d   : > { %7374 = vmatmul.mubr.msk.bf16.gmra.mrb[88].mxu0 %vm566_vm1, %v8808_v43  ;;  %7582 = vmatmul.mubr.msk.bf16.gmra.mrb[88].mxu1 %vm566_vm1, %v8808_v43  ;;  %v10785_v43 = vld [vmem:[#allocation45_spill] sm:$0xff] }
 0x24e   : > { %7377 = vmatprep.mubr.msk.bf16.mxu0 %vm566_vm1, %v8838_v57  ;;  %7585 = vmatprep.mubr.msk.bf16.mxu1 %vm566_vm1, %v8838_v57 }
 0x250   : > { %v9856_v53 = vpop.f32.mrb[32].mxu0  ;;  %v9858_v25 = vpop.f32.mrb[32].mxu1 }
 0x251   : > { %10776 = vst [vmem:[#allocation64_spill] sm:$0xff] %v9856_v53  ;;  %10777 = vst [vmem:[#allocation65_spill] sm:$0xff] %v9858_v25  ;;  %v9862_v29 = vpop.f32.mrb[33].mxu0  ;;  %v9864_v17 = vpop.f32.mrb[33].mxu1  ;;  %v10784_v25 = vld [vmem:[#allocation44_spill] sm:$0xff] }
 0x252   : > { %10778 = vst [vmem:[#allocation66_spill] sm:$0xff] %v9862_v29  ;;  %10779 = vst [vmem:[#allocation67_spill] sm:$0xff] %v9864_v17  ;;  %v9868_v30 = vpop.f32.mrb[34].mxu0  ;;  %v9870_v42 = vpop.f32.mrb[34].mxu1 }
 0x253   : > { %10780 = vst [vmem:[#allocation68_spill] sm:$0xff] %v9868_v30  ;;  %10781 = vst [vmem:[#allocation69_spill] sm:$0xff] %v9870_v42  ;;  %v9874_v50 = vpop.f32.mrb[35].mxu0  ;;  %v9876_v23 = vpop.f32.mrb[35].mxu1 }
 0x254   : > { %10782 = vst [vmem:[#allocation70_spill] sm:$0xff] %v9874_v50  ;;  %10783 = vst [vmem:[#allocation71_spill] sm:$0xff] %v9876_v23 }
 0x255   : > { %7378 = vmatmul.mubr.msk.bf16.gmra.mrb[92].mxu0 %vm566_vm1, %v10784_v25  ;;  %7586 = vmatmul.mubr.msk.bf16.gmra.mrb[92].mxu1 %vm566_vm1, %v10784_v25  ;;  %v8360_v25 = vld [vmem:[%s10459_s1 + $0xf8] sm:$0xff]  }
 0x256   : > { %7385 = vmatprep.mubr.msk.bf16.mxu0 %vm566_vm1, %v10785_v43  ;;  %7593 = vmatprep.mubr.msk.bf16.mxu1 %vm566_vm1, %v10785_v43  ;;  %v10795_v43 = vld [vmem:[#allocation47_spill] sm:$0xff] }
 0x258   : > { %v9888_v57 = vpop.f32.mrb[36].mxu0  ;;  %v9890_v42 = vpop.f32.mrb[36].mxu1 }
 0x259   : > { %10786 = vst [vmem:[#allocation44_spill] sm:$0xff] %v9888_v57  ;;  %10787 = vst [vmem:[#allocation45_spill] sm:$0xff] %v9890_v42  ;;  %v9894_v0 = vpop.f32.mrb[37].mxu0  ;;  %v9896_v23 = vpop.f32.mrb[37].mxu1  ;;  %v8359_v42 = vld [vmem:[%s10459_s1 + $0xb8] sm:$0xff]  }
 0x25a   : > { %10788 = vst [vmem:[#allocation72_spill] sm:$0xff] %v9894_v0  ;;  %10789 = vst [vmem:[#allocation73_spill] sm:$0xff] %v9896_v23  ;;  %v9900_v50 = vpop.f32.mrb[38].mxu0  ;;  %v9902_v17 = vpop.f32.mrb[38].mxu1  ;;  %v10794_v23 = vld [vmem:[#allocation46_spill] sm:$0xff] }
 0x25b   : > { %10790 = vst [vmem:[#allocation74_spill] sm:$0xff] %v9900_v50  ;;  %10791 = vst [vmem:[#allocation75_spill] sm:$0xff] %v9902_v17  ;;  %v9906_v29 = vpop.f32.mrb[39].mxu0  ;;  %v9908_v53 = vpop.f32.mrb[39].mxu1 }
 0x25c   : > { %10792 = vst [vmem:[#allocation76_spill] sm:$0xff] %v9906_v29  ;;  %10793 = vst [vmem:[#allocation77_spill] sm:$0xff] %v9908_v53 }
 0x25d   : > { %7386 = vmatmul.mubr.msk.bf16.vlgmr.msra.gmra.mrb[48].mxu0 %vm566_vm1, %v10794_v23  ;;  %7594 = vmatmul.mubr.msk.bf16.vlgmr.msra.gmra.mrb[48].mxu1 %vm566_vm1, %v10794_v23 }
 0x25e   : > { %7434 = vmatpush3.bf16.msra.mxu0 %v9575_v41  ;;  %7642 = vmatpush3.bf16.msra.mxu1 %v9580_v44 }
 0x25f   : > { %7389 = vmatprep.mubr.msk.bf16.mxu0 %vm566_vm1, %v10795_v43  ;;  %7597 = vmatprep.mubr.msk.bf16.mxu1 %vm566_vm1, %v10795_v43 }
 0x260   : > { %v9928_v30 = vpop.f32.mrb[40].mxu0  ;;  %v9930_v53 = vpop.f32.mrb[40].mxu1  ;;  %7435 = vmatprep.subr.bf16.mxu0 %v8359_v42  ;;  %7643 = vmatprep.subr.bf16.mxu1 %v8360_v25 }
 0x261   : > { %v9934_v23 = vpop.f32.mrb[41].mxu0  ;;  %v9936_v41 = vpop.f32.mrb[41].mxu1 }
 0x262   : > { %v9940_v17 = vpop.f32.mrb[42].mxu0  ;;  %v9942_v50 = vpop.f32.mrb[42].mxu1  ;;  %7436 = vmatpush3.bf16.msra.mxu0 %v8359_v42  ;;  %7644 = vmatpush3.bf16.msra.mxu1 %v8360_v25 }
 0x263   : > { %10796 = vst [vmem:[#allocation46_spill] sm:$0xff] %v9940_v17  ;;  %10797 = vst [vmem:[#allocation47_spill] sm:$0xff] %v9942_v50  ;;  %v9946_v0 = vpop.f32.mrb[43].mxu0  ;;  %v9948_v57 = vpop.f32.mrb[43].mxu1 }
 0x264   : > { %10798 = vst [vmem:[#allocation78_spill] sm:$0xff] %v9946_v0  ;;  %10799 = vst [vmem:[#allocation79_spill] sm:$0xff] %v9948_v57 }
 0x265   : > { %7390 = vmatmul.mubr.msk.bf16.gmra.mrb[52].mxu0 %vm566_vm1, %v9041_v13  ;;  %7598 = vmatmul.mubr.msk.bf16.gmra.mrb[52].mxu1 %vm566_vm1, %v9041_v13  ;;  %v10800_v13 = vld [vmem:[#allocation48_spill] sm:$0xff] }
 0x266   : > { %7393 = vmatprep.mubr.msk.bf16.mxu0 %vm566_vm1, %v9045_v18  ;;  %7601 = vmatprep.mubr.msk.bf16.mxu1 %vm566_vm1, %v9045_v18 }
 0x268   : > { %v9960_v42 = vpop.f32.mrb[44].mxu0  ;;  %v9962_v25 = vpop.f32.mrb[44].mxu1 }
 0x269   : > { %v9966_v29 = vpop.f32.mrb[45].mxu0  ;;  %v9968_v44 = vpop.f32.mrb[45].mxu1 }
 0x26a   : > { %v9972_v57 = vpop.f32.mrb[46].mxu0  ;;  %v9974_v0 = vpop.f32.mrb[46].mxu1 }
 0x26b   : > { %v3189_v18 = vmax.f32 %v9972_v57, %v9974_v0  ;;  %v9978_v50 = vpop.f32.mrb[47].mxu0  ;;  %v9980_v17 = vpop.f32.mrb[47].mxu1 }
 0x26c   : > { %v3187_v43 = vmax.f32 %v9978_v50, %v9980_v17 }
 0x26d   : > { %7394 = vmatmul.mubr.msk.bf16.gmra.mrb[56].mxu0 %vm566_vm1, %v9059_v19  ;;  %7602 = vmatmul.mubr.msk.bf16.gmra.mrb[56].mxu1 %vm566_vm1, %v9059_v19  ;;  %v10801_v19 = vld [vmem:[#allocation10_spill] sm:$0xff] }
 0x26e   : > { %7397 = vmatprep.mubr.msk.bf16.mxu0 %vm566_vm1, %v10800_v13  ;;  %7605 = vmatprep.mubr.msk.bf16.mxu1 %vm566_vm1, %v10800_v13  ;;  %v10818_v13 = vld [vmem:[#allocation34_spill] sm:$0xff] }
 0x275   : > { %7398 = vmatmul.mubr.msk.bf16.gmra.mrb[60].mxu0 %vm566_vm1, %v9075_v24  ;;  %7606 = vmatmul.mubr.msk.bf16.gmra.mrb[60].mxu1 %vm566_vm1, %v9075_v24  ;;  %v10802_v24 = vld [vmem:[#allocation9_spill] sm:$0xff] }
 0x276   : > { %7401 = vmatprep.mubr.msk.bf16.mxu0 %vm566_vm1, %v9079_v37  ;;  %7609 = vmatprep.mubr.msk.bf16.mxu1 %vm566_vm1, %v9079_v37  ;;  %v10803_v37 = vld [vmem:[#allocation12_spill] sm:$0xff] }
 0x27d   : > { %7402 = vmatmul.mubr.msk.bf16.gmra.mrb[64].mxu0 %vm566_vm1, %v9091_v38  ;;  %7610 = vmatmul.mubr.msk.bf16.gmra.mrb[64].mxu1 %vm566_vm1, %v9091_v38  ;;  %v10804_v38 = vld [vmem:[#allocation11_spill] sm:$0xff] }
 0x27e   : > { %7405 = vmatprep.mubr.msk.bf16.mxu0 %vm566_vm1, %v9095_v45  ;;  %7613 = vmatprep.mubr.msk.bf16.mxu1 %vm566_vm1, %v9095_v45  ;;  %v10805_v45 = vld [vmem:[#allocation14_spill] sm:$0xff] }
 0x285   : > { %7406 = vmatmul.mubr.msk.bf16.gmra.mrb[68].mxu0 %vm566_vm1, %v9107_v61  ;;  %7614 = vmatmul.mubr.msk.bf16.gmra.mrb[68].mxu1 %vm566_vm1, %v9107_v61  ;;  %v10806_v61 = vld [vmem:[#allocation13_spill] sm:$0xff] }
 0x286   : > { %7409 = vmatprep.mubr.msk.bf16.mxu0 %vm566_vm1, %v9111_v20  ;;  %7617 = vmatprep.mubr.msk.bf16.mxu1 %vm566_vm1, %v9111_v20  ;;  %v10807_v20 = vld [vmem:[#allocation20_spill] sm:$0xff] }
 0x28d   : > { %7410 = vmatmul.mubr.msk.bf16.gmra.mrb[72].mxu0 %vm566_vm1, %v9123_v27  ;;  %7618 = vmatmul.mubr.msk.bf16.gmra.mrb[72].mxu1 %vm566_vm1, %v9123_v27  ;;  %v10808_v27 = vld [vmem:[#allocation15_spill] sm:$0xff] }
 0x28e   : > { %7413 = vmatprep.mubr.msk.bf16.mxu0 %vm566_vm1, %v9127_v60  ;;  %7621 = vmatprep.mubr.msk.bf16.mxu1 %vm566_vm1, %v9127_v60  ;;  %v10809_v60 = vld [vmem:[#allocation24_spill] sm:$0xff] }
 0x295   : > { %7414 = vmatmul.mubr.msk.bf16.gmra.mrb[76].mxu0 %vm566_vm1, %v9139_v62  ;;  %7622 = vmatmul.mubr.msk.bf16.gmra.mrb[76].mxu1 %vm566_vm1, %v9139_v62  ;;  %v10810_v62 = vld [vmem:[#allocation21_spill] sm:$0xff] }
 0x296   : > { %7417 = vmatprep.mubr.msk.bf16.mxu0 %vm566_vm1, %v9143_v32  ;;  %7625 = vmatprep.mubr.msk.bf16.mxu1 %vm566_vm1, %v9143_v32  ;;  %v10811_v32 = vld [vmem:[#allocation27_spill] sm:$0xff] }
 0x29d   : > { %7418 = vmatmul.mubr.msk.bf16.gmra.mrb[80].mxu0 %vm566_vm1, %v9155_v63  ;;  %7626 = vmatmul.mubr.msk.bf16.gmra.mrb[80].mxu1 %vm566_vm1, %v9155_v63  ;;  %v10812_v63 = vld [vmem:[#allocation25_spill] sm:$0xff] }
 0x29e   : > { %7421 = vmatprep.mubr.msk.bf16.mxu0 %vm566_vm1, %v9159_v46  ;;  %7629 = vmatprep.mubr.msk.bf16.mxu1 %vm566_vm1, %v9159_v46  ;;  %v10813_v46 = vld [vmem:[#allocation30_spill] sm:$0xff] }
 0x2a5   : > { %7422 = vmatmul.mubr.msk.bf16.gmra.mrb[84].mxu0 %vm566_vm1, %v9171_v2  ;;  %7630 = vmatmul.mubr.msk.bf16.gmra.mrb[84].mxu1 %vm566_vm1, %v9171_v2  ;;  %v10814_v2 = vld [vmem:[#allocation28_spill] sm:$0xff] }
 0x2a6   : > { %7425 = vmatprep.mubr.msk.bf16.mxu0 %vm566_vm1, %v9175_v34  ;;  %7633 = vmatprep.mubr.msk.bf16.mxu1 %vm566_vm1, %v9175_v34  ;;  %v10815_v34 = vld [vmem:[#allocation33_spill] sm:$0xff] }
 0x2ad   : > { %7426 = vmatmul.mubr.msk.bf16.gmra.mrb[88].mxu0 %vm566_vm1, %v9189_v31  ;;  %7634 = vmatmul.mubr.msk.bf16.gmra.mrb[88].mxu1 %vm566_vm1, %v9189_v31  ;;  %v10816_v31 = vld [vmem:[#allocation31_spill] sm:$0xff] }
 0x2ae   : > { %7429 = vmatprep.mubr.msk.bf16.mxu0 %vm566_vm1, %v10801_v19  ;;  %7637 = vmatprep.mubr.msk.bf16.mxu1 %vm566_vm1, %v10801_v19  ;;  %v10819_v19 = vld [vmem:[#allocation39_spill] sm:$0xff] }
 0x2b5   : > { %7430 = vmatmul.mubr.msk.bf16.gmra.mrb[92].mxu0 %vm566_vm1, %v9205_v26  ;;  %7638 = vmatmul.mubr.msk.bf16.gmra.mrb[92].mxu1 %vm566_vm1, %v9205_v26  ;;  %v10817_v26 = vld [vmem:[#allocation36_spill] sm:$0xff] }
 0x2b6   : > { %7437 = vmatprep.mubr.msk.bf16.mxu0 %vm566_vm1, %v10802_v24  ;;  %7645 = vmatprep.mubr.msk.bf16.mxu1 %vm566_vm1, %v10802_v24  ;;  %v10820_v24 = vld [vmem:[#allocation37_spill] sm:$0xff] }
 0x2bd   : > { %7438 = vmatmul.mubr.msk.bf16.vlgmr.msra.gmra.mrb[48].mxu0 %vm566_vm1, %v10803_v37  ;;  %7646 = vmatmul.mubr.msk.bf16.vlgmr.msra.gmra.mrb[48].mxu1 %vm566_vm1, %v10803_v37  ;;  %v10821_v37 = vmax.f32 %v9600_v10, %v9602_v16 }
 0x2be   : > { %7441 = vmatprep.mubr.msk.bf16.mxu0 %vm566_vm1, %v10804_v38  ;;  %7649 = vmatprep.mubr.msk.bf16.mxu1 %vm566_vm1, %v10804_v38 }
 0x2c5   : > { %7442 = vmatmul.mubr.msk.bf16.gmra.mrb[52].mxu0 %vm566_vm1, %v10805_v45  ;;  %7650 = vmatmul.mubr.msk.bf16.gmra.mrb[52].mxu1 %vm566_vm1, %v10805_v45 }
 0x2c6   : > { %7445 = vmatprep.mubr.msk.bf16.mxu0 %vm566_vm1, %v10806_v61  ;;  %7653 = vmatprep.mubr.msk.bf16.mxu1 %vm566_vm1, %v10806_v61  ;;  %v10162_v61 = vld [vmem:[%s10460_s2] ss:$0 sm:$0xff] }
 0x2cd   : > { %7446 = vmatmul.mubr.msk.bf16.gmra.mrb[56].mxu0 %vm566_vm1, %v10807_v20  ;;  %7654 = vmatmul.mubr.msk.bf16.gmra.mrb[56].mxu1 %vm566_vm1, %v10807_v20 }
 0x2ce   : > { %7449 = vmatprep.mubr.msk.bf16.mxu0 %vm566_vm1, %v10808_v27  ;;  %7657 = vmatprep.mubr.msk.bf16.mxu1 %vm566_vm1, %v10808_v27 }
 0x2d5   : > { %7450 = vmatmul.mubr.msk.bf16.gmra.mrb[60].mxu0 %vm566_vm1, %v10809_v60  ;;  %7658 = vmatmul.mubr.msk.bf16.gmra.mrb[60].mxu1 %vm566_vm1, %v10809_v60 }
 0x2d6   : > { %7453 = vmatprep.mubr.msk.bf16.mxu0 %vm566_vm1, %v10810_v62  ;;  %7661 = vmatprep.mubr.msk.bf16.mxu1 %vm566_vm1, %v10810_v62  ;;  %v10823_v62 = vmax.f32 %v9612_v5, %v9614_v14 }
 0x2dd   : > { %7454 = vmatmul.mubr.msk.bf16.gmra.mrb[64].mxu0 %vm566_vm1, %v10811_v32  ;;  %7662 = vmatmul.mubr.msk.bf16.gmra.mrb[64].mxu1 %vm566_vm1, %v10811_v32 }
 0x2de   : > { %7457 = vmatprep.mubr.msk.bf16.mxu0 %vm566_vm1, %v10812_v63  ;;  %7665 = vmatprep.mubr.msk.bf16.mxu1 %vm566_vm1, %v10812_v63 }
 0x2e5   : > { %7458 = vmatmul.mubr.msk.bf16.gmra.mrb[68].mxu0 %vm566_vm1, %v10813_v46  ;;  %7666 = vmatmul.mubr.msk.bf16.gmra.mrb[68].mxu1 %vm566_vm1, %v10813_v46  ;;  %v10824_v46 = vmax.f32 %v9618_v52, %v9620_v35 }
 0x2e6   : > { %7461 = vmatprep.mubr.msk.bf16.mxu0 %vm566_vm1, %v10814_v2  ;;  %7669 = vmatprep.mubr.msk.bf16.mxu1 %vm566_vm1, %v10814_v2 }
 0x2ed   : > { %7462 = vmatmul.mubr.msk.bf16.gmra.mrb[72].mxu0 %vm566_vm1, %v10815_v34  ;;  %7670 = vmatmul.mubr.msk.bf16.gmra.mrb[72].mxu1 %vm566_vm1, %v10815_v34 }
 0x2ee   : > { %7465 = vmatprep.mubr.msk.bf16.mxu0 %vm566_vm1, %v10816_v31  ;;  %7673 = vmatprep.mubr.msk.bf16.mxu1 %vm566_vm1, %v10816_v31 }
 0x2f5   : > { %7466 = vmatmul.mubr.msk.bf16.gmra.mrb[76].mxu0 %vm566_vm1, %v10817_v26  ;;  %7674 = vmatmul.mubr.msk.bf16.gmra.mrb[76].mxu1 %vm566_vm1, %v10817_v26 }
 0x2f6   : > { %7469 = vmatprep.mubr.msk.bf16.mxu0 %vm566_vm1, %v10818_v13  ;;  %7677 = vmatprep.mubr.msk.bf16.mxu1 %vm566_vm1, %v10818_v13 }
 0x2fd   : > { %7470 = vmatmul.mubr.msk.bf16.gmra.mrb[80].mxu0 %vm566_vm1, %v10819_v19  ;;  %7678 = vmatmul.mubr.msk.bf16.gmra.mrb[80].mxu1 %vm566_vm1, %v10819_v19 }
 0x2fe   : > { %7473 = vmatprep.mubr.msk.bf16.mxu0 %vm566_vm1, %v10820_v24  ;;  %7681 = vmatprep.mubr.msk.bf16.mxu1 %vm566_vm1, %v10820_v24 }
 0x305   : > { %7474 = vmatmul.mubr.msk.bf16.gmra.mrb[84].mxu0 %vm566_vm1, %v9406_v49  ;;  %7682 = vmatmul.mubr.msk.bf16.gmra.mrb[84].mxu1 %vm566_vm1, %v9406_v49 }
 0x306   : > { %7477 = vmatprep.mubr.msk.bf16.mxu0 %vm566_vm1, %v9410_v58  ;;  %7685 = vmatprep.mubr.msk.bf16.mxu1 %vm566_vm1, %v9410_v58 }
 0x30d   : > { %7478 = vmatmul.mubr.msk.bf16.gmra.mrb[88].mxu0 %vm566_vm1, %v9424_v59  ;;  %7686 = vmatmul.mubr.msk.bf16.gmra.mrb[88].mxu1 %vm566_vm1, %v9424_v59 }
 0x30e   : > { %7481 = vmatprep.mubr.msk.bf16.mxu0 %vm566_vm1, %v9428_v8  ;;  %7689 = vmatprep.mubr.msk.bf16.mxu1 %vm566_vm1, %v9428_v8  ;;  %v10822_v8 = vmax.f32 %v9606_v22, %v9608_v9 }
 0x315   : > { %7482 = vmatmul.mubr.msk.bf16.gmra.mrb[92].mxu0 %vm566_vm1, %v9439_v11  ;;  %7690 = vmatmul.mubr.msk.bf16.gmra.mrb[92].mxu1 %vm566_vm1, %v9439_v11 }
 0x390   : > { %v7439_v58 = vpop.f32.mrb[48].mxu0  ;;  %v7647_v49 = vpop.f32.mrb[48].mxu1 }
 0x391   : > { %v4256_v38 = vmax.f32 %v10821_v37, %v7439_v58  ;;  %v4015_v59 = vpop.f32.mrb[49].mxu0  ;;  %v5127_v45 = vpop.f32.mrb[49].mxu1  ;;  %v10825_v58 = vmax.f32 %v9632_v55, %v9634_v56  ;;  %v10827_v55 = vmax.f32 %v9644_v1, %v9646_v12 }
 0x392   : > { %v4254_v20 = vmax.f32 %v10822_v8, %v4015_v59  ;;  %v7440_v27 = vpop.f32.mrb[50].mxu0  ;;  %v7648_v60 = vpop.f32.mrb[50].mxu1  ;;  %v10826_v8 = vmax.f32 %v9638_v7, %v9640_v21  ;;  %v10828_v7 = vld [vmem:[#allocation42_spill] sm:$0xff] }
 0x393   : > { %v5368_v11 = vmax.f32 %v4256_v38, %v7647_v49  ;;  %v4257_v32 = vmax.f32 %v10823_v62, %v7440_v27  ;;  %v4018_v10 = vpop.f32.mrb[51].mxu0  ;;  %v5130_v16 = vpop.f32.mrb[51].mxu1  ;;  %v10829_v21 = vmax.f32 %v9650_v39, %v10828_v7 }
 0x394   : > { %v5366_v63 = vmax.f32 %v4254_v20, %v5127_v45  ;;  %v4255_v2 = vmax.f32 %v10824_v46, %v4018_v10 }
 0x395   : > { %v5423_v34 = vadd.f32 %v10162_v61, %v5368_v11  ;;  %v5369_v31 = vmax.f32 %v4257_v32, %v7648_v60 }
 0x396   : > { %v5421_v22 = vadd.f32 %v10162_v61, %v5366_v63  ;;  %v5367_v9 = vmax.f32 %v4255_v2, %v5130_v16 }
 0x397   : > { %v5471_v26 = vmax.f32 %v5423_v34, 0.0  ;;  %v5424_v13 = vadd.f32 %v10162_v61, %v5369_v31 }
 0x398   : > { %v5469_v5 = vmax.f32 %v5421_v22, 0.0  ;;  %v5422_v14 = vadd.f32 %v10162_v61, %v5367_v9  ;;  %v7443_v52 = vpop.f32.mrb[52].mxu0  ;;  %v7651_v35 = vpop.f32.mrb[52].mxu1 }
 0x399   : > { %v6399_v19 = vpack.c.bf16 %v5471_v26, %v5471_v26  ;;  %v5472_v24 = vmax.f32 %v5424_v13, 0.0  ;;  %v4260_v49 = vmax.f32 %v10825_v58, %v7443_v52  ;;  %v4031_v37 = vpop.f32.mrb[53].mxu0  ;;  %v5143_v38 = vpop.f32.mrb[53].mxu1  ;;  %v10830_v52 = vmax.f32 %v9664_v4, %v9666_v54 }
 0x39a   : > { %v6397_v59 = vpack.c.bf16 %v5469_v5, %v5469_v5  ;;  %v5470_v45 = vmax.f32 %v5422_v14, 0.0  ;;  %v4258_v20 = vmax.f32 %v10826_v8, %v4031_v37  ;;  %v7444_v27 = vpop.f32.mrb[54].mxu0  ;;  %v7652_v60 = vpop.f32.mrb[54].mxu1  ;;  %v10831_v37 = vld [vmem:[#allocation40_spill] sm:$0xff] }
 0x39b   : > { %5712 = vst.msk [vmem:[%s10180_s11 + $0x8] sm:$0xf] %vm5709_vm2, %v6399_v19  ;;  %v6400_v11 = vpack.c.bf16 %v5472_v24, %v5472_v24  ;;  %v5372_v62 = vmax.f32 %v4260_v49, %v7651_v35  ;;  %v4261_v56 = vmax.f32 %v10827_v55, %v7444_v27  ;;  %v4034_v32 = vpop.f32.mrb[55].mxu0  ;;  %v5146_v10 = vpop.f32.mrb[55].mxu1 }
 0x39c   : > { %5710 = vst.msk [vmem:[%s10180_s11] sm:$0xf] %vm5709_vm2, %v6397_v59  ;;  %v6398_v16 = vpack.c.bf16 %v5470_v45, %v5470_v45  ;;  %v5370_v63 = vmax.f32 %v4258_v20, %v5143_v38  ;;  %v4259_v46 = vmax.f32 %v10829_v21, %v4034_v32  ;;  %v10832_v38 = vld [vmem:[#allocation43_spill] sm:$0xff] }
 0x39d   : > { %5713 = vst.msk [vmem:[%s10180_s11 + $0xc] sm:$0xf] %vm5709_vm2, %v6400_v11  ;;  %v5427_v2 = vadd.f32 %v10162_v61, %v5372_v62  ;;  %v5373_v34 = vmax.f32 %v4261_v56, %v7652_v60  ;;  %v10833_v59 = vmax.f32 %v10831_v37, %v10832_v38  ;;  %v10834_v11 = vld [vmem:[#allocation2_spill] sm:$0xff]  ;;  %v10835_v62 = vld [vmem:[#allocation3_spill] sm:$0xff] }
 0x39e   : > { %5711 = vst.msk [vmem:[%s10180_s11 + $0x4] sm:$0xf] %vm5709_vm2, %v6398_v16  ;;  %v5425_v1 = vadd.f32 %v10162_v61, %v5370_v63  ;;  %v5371_v12 = vmax.f32 %v4259_v46, %v5146_v10  ;;  %v10836_v54 = vmax.f32 %v10834_v11, %v10835_v62  ;;  %v10837_v16 = vld [vmem:[#allocation4_spill] sm:$0xff]  ;;  %v10838_v63 = vld [vmem:[#allocation5_spill] sm:$0xff]  ;;  %v10842_v37 = vld [vmem:[#allocation7_spill] sm:$0xff] }
 0x39f   : > { %v5475_v31 = vmax.f32 %v5427_v2, 0.0  ;;  %v5428_v22 = vadd.f32 %v10162_v61, %v5373_v34  ;;  %v10839_v7 = vmax.f32 %v10837_v16, %v10838_v63  ;;  %v10845_v11 = vld [vmem:[#allocation16_spill] sm:$0xff] }
 0x3a0   : > { %v5473_v9 = vmax.f32 %v5425_v1, 0.0  ;;  %v5426_v26 = vadd.f32 %v10162_v61, %v5371_v12  ;;  %v7447_v13 = vpop.f32.mrb[56].mxu0  ;;  %v7655_v39 = vpop.f32.mrb[56].mxu1 }
 0x3a1   : > { %v6403_v5 = vpack.c.bf16 %v5475_v31, %v5475_v31  ;;  %v5476_v14 = vmax.f32 %v5428_v22, 0.0  ;;  %v4264_v35 = vmax.f32 %v10830_v52, %v7447_v13  ;;  %v4047_v19 = vpop.f32.mrb[57].mxu0  ;;  %v5159_v24 = vpop.f32.mrb[57].mxu1 }
 0x3a2   : > { %v6401_v58 = vpack.c.bf16 %v5473_v9, %v5473_v9  ;;  %v5474_v49 = vmax.f32 %v5426_v26, 0.0  ;;  %v4262_v45 = vmax.f32 %v10833_v59, %v4047_v19  ;;  %v7448_v8 = vpop.f32.mrb[58].mxu0  ;;  %v7656_v20 = vpop.f32.mrb[58].mxu1 }
 0x3a3   : > { %5716 = vst.msk [vmem:[%s10180_s11 + $0x18] sm:$0xf] %vm5709_vm2, %v6403_v5  ;;  %v6404_v27 = vpack.c.bf16 %v5476_v14, %v5476_v14  ;;  %v5376_v60 = vmax.f32 %v4264_v35, %v7655_v39  ;;  %v4265_v4 = vmax.f32 %v10836_v54, %v7448_v8  ;;  %v4050_v55 = vpop.f32.mrb[59].mxu0  ;;  %v5162_v56 = vpop.f32.mrb[59].mxu1  ;;  %v10840_v14 = vmax.f32 %v9696_v36, %v9698_v6 }
 0x3a4   : > { %5714 = vst.msk [vmem:[%s10180_s11 + $0x10] sm:$0xf] %vm5709_vm2, %v6401_v58  ;;  %v6402_v32 = vpack.c.bf16 %v5474_v49, %v5474_v49  ;;  %v5374_v10 = vmax.f32 %v4262_v45, %v5159_v24  ;;  %v4263_v21 = vmax.f32 %v10839_v7, %v4050_v55  ;;  %v10841_v49 = vld [vmem:[#allocation6_spill] sm:$0xff] }
 0x3a5   : > { %5717 = vst.msk [vmem:[%s10180_s11 + $0x1c] sm:$0xf] %vm5709_vm2, %v6404_v27  ;;  %v5431_v46 = vadd.f32 %v10162_v61, %v5376_v60  ;;  %v5377_v2 = vmax.f32 %v4265_v4, %v7656_v20  ;;  %v10843_v38 = vmax.f32 %v10841_v49, %v10842_v37  ;;  %v10844_v60 = vld [vmem:[#allocation8_spill] sm:$0xff] }
 0x3a6   : > { %5715 = vst.msk [vmem:[%s10180_s11 + $0x14] sm:$0xf] %vm5709_vm2, %v6402_v32  ;;  %v5429_v34 = vadd.f32 %v10162_v61, %v5374_v10  ;;  %v5375_v1 = vmax.f32 %v4263_v21, %v5162_v56  ;;  %v10846_v6 = vmax.f32 %v10844_v60, %v10845_v11  ;;  %v10847_v56 = vld [vmem:[#allocation17_spill] sm:$0xff]  ;;  %v10848_v32 = vld [vmem:[#allocation18_spill] sm:$0xff] }
 0x3a7   : > { %v5479_v12 = vmax.f32 %v5431_v46, 0.0  ;;  %v5432_v31 = vadd.f32 %v10162_v61, %v5377_v2  ;;  %v10849_v10 = vmax.f32 %v10847_v56, %v10848_v32 }
 0x3a8   : > { %v5477_v22 = vmax.f32 %v5429_v34, 0.0  ;;  %v5430_v9 = vadd.f32 %v10162_v61, %v5375_v1  ;;  %v7451_v26 = vpop.f32.mrb[60].mxu0  ;;  %v7659_v13 = vpop.f32.mrb[60].mxu1 }
 0x3a9   : > { %v6407_v39 = vpack.c.bf16 %v5479_v12, %v5479_v12  ;;  %v5480_v5 = vmax.f32 %v5432_v31, 0.0  ;;  %v4268_v52 = vmax.f32 %v10840_v14, %v7451_v26  ;;  %v4063_v35 = vpop.f32.mrb[61].mxu0  ;;  %v5175_v19 = vpop.f32.mrb[61].mxu1 }
 0x3aa   : > { %v6405_v24 = vpack.c.bf16 %v5477_v22, %v5477_v22  ;;  %v5478_v58 = vmax.f32 %v5430_v9, 0.0  ;;  %v4266_v59 = vmax.f32 %v10843_v38, %v4063_v35  ;;  %v7452_v45 = vpop.f32.mrb[62].mxu0  ;;  %v7660_v8 = vpop.f32.mrb[62].mxu1 }
 0x3ab   : > { %5720 = vst.msk [vmem:[%s10180_s11 + $0x28] sm:$0xf] %vm5709_vm2, %v6407_v39  ;;  %v6408_v20 = vpack.c.bf16 %v5480_v5, %v5480_v5  ;;  %v5380_v27 = vmax.f32 %v4268_v52, %v7659_v13  ;;  %v4269_v36 = vmax.f32 %v10846_v6, %v7452_v45  ;;  %v4066_v62 = vpop.f32.mrb[63].mxu0  ;;  %v5178_v54 = vpop.f32.mrb[63].mxu1  ;;  %v10850_v13 = vmax.f32 %v9728_v51, %v9730_v40 }
 0x3ac   : > { %5718 = vst.msk [vmem:[%s10180_s11 + $0x20] sm:$0xf] %vm5709_vm2, %v6405_v24  ;;  %v6406_v4 = vpack.c.bf16 %v5478_v58, %v5478_v58  ;;  %v5378_v55 = vmax.f32 %v4266_v59, %v5175_v19  ;;  %v4267_v16 = vmax.f32 %v10849_v10, %v4066_v62  ;;  %v10851_v19 = vld [vmem:[#allocation19_spill] sm:$0xff]  ;;  %v10852_v24 = vld [vmem:[#allocation22_spill] sm:$0xff]  ;;  %v10858_v62 = vld [vmem:[#allocation32_spill] sm:$0xff] }
 0x3ad   : > { %5721 = vst.msk [vmem:[%s10180_s11 + $0x2c] sm:$0xf] %vm5709_vm2, %v6408_v20  ;;  %v5435_v63 = vadd.f32 %v10162_v61, %v5380_v27  ;;  %v5381_v7 = vmax.f32 %v4269_v36, %v7660_v8  ;;  %v10853_v58 = vmax.f32 %v10851_v19, %v10852_v24  ;;  %v10854_v8 = vld [vmem:[#allocation23_spill] sm:$0xff]  ;;  %v10855_v20 = vld [vmem:[#allocation26_spill] sm:$0xff]  ;;  %v10857_v36 = vld [vmem:[#allocation29_spill] sm:$0xff] }
 0x3ae   : > { %5719 = vst.msk [vmem:[%s10180_s11 + $0x24] sm:$0xf] %vm5709_vm2, %v6406_v4  ;;  %v5433_v21 = vadd.f32 %v10162_v61, %v5378_v55  ;;  %v5379_v46 = vmax.f32 %v4267_v16, %v5178_v54  ;;  %v10856_v40 = vmax.f32 %v10854_v8, %v10855_v20  ;;  %v10859_v54 = vmax.f32 %v10857_v36, %v10858_v62  ;;  %v10867_v20 = vld [vmem:[#allocation50_spill] sm:$0xff] }
 0x3af   : > { %v5483_v2 = vmax.f32 %v5435_v63, 0.0  ;;  %v5436_v34 = vadd.f32 %v10162_v61, %v5381_v7 }
 0x3b0   : > { %v5481_v1 = vmax.f32 %v5433_v21, 0.0  ;;  %v5434_v12 = vadd.f32 %v10162_v61, %v5379_v46  ;;  %v7455_v31 = vpop.f32.mrb[64].mxu0  ;;  %v7663_v22 = vpop.f32.mrb[64].mxu1 }
 0x3b1   : > { %v6411_v9 = vpack.c.bf16 %v5483_v2, %v5483_v2  ;;  %v5484_v26 = vmax.f32 %v5436_v34, 0.0  ;;  %v4272_v39 = vmax.f32 %v10850_v13, %v7455_v31  ;;  %v4079_v5 = vpop.f32.mrb[65].mxu0  ;;  %v5191_v14 = vpop.f32.mrb[65].mxu1 }
 0x3b2   : > { %v6409_v52 = vpack.c.bf16 %v5481_v1, %v5481_v1  ;;  %v5482_v35 = vmax.f32 %v5434_v12, 0.0  ;;  %v4270_v49 = vmax.f32 %v10853_v58, %v4079_v5  ;;  %v7456_v37 = vpop.f32.mrb[66].mxu0  ;;  %v7664_v38 = vpop.f32.mrb[66].mxu1  ;;  %v10860_v12 = vmax.f32 %v9760_v33, %v9762_v3  ;;  %v10862_v5 = vld [vmem:[#allocation38_spill] sm:$0xff] }
 0x3b3   : > { %5724 = vst.msk [vmem:[%s10180_s11 + $0x38] sm:$0xf] %vm5709_vm2, %v6411_v9  ;;  %v6412_v59 = vpack.c.bf16 %v5484_v26, %v5484_v26  ;;  %v5384_v45 = vmax.f32 %v4272_v39, %v7663_v22  ;;  %v4273_v51 = vmax.f32 %v10856_v40, %v7456_v37  ;;  %v4082_v27 = vpop.f32.mrb[67].mxu0  ;;  %v5194_v60 = vpop.f32.mrb[67].mxu1  ;;  %v10861_v39 = vld [vmem:[#allocation35_spill] sm:$0xff]  ;;  %v10865_v37 = vld [vmem:[#allocation49_spill] sm:$0xff] }
 0x3b4   : > { %5722 = vst.msk [vmem:[%s10180_s11 + $0x30] sm:$0xf] %vm5709_vm2, %v6409_v52  ;;  %v6410_v11 = vpack.c.bf16 %v5482_v35, %v5482_v35  ;;  %v5382_v6 = vmax.f32 %v4270_v49, %v5191_v14  ;;  %v4271_v4 = vmax.f32 %v10859_v54, %v4082_v27  ;;  %v10863_v14 = vmax.f32 %v10861_v39, %v10862_v5  ;;  %v10864_v49 = vld [vmem:[#allocation41_spill] sm:$0xff]  ;;  %v10868_v40 = vld [vmem:[#allocation51_spill] sm:$0xff]  ;;  %v10874_v5 = vld [vmem:[#allocation54_spill] sm:$0xff] }
 0x3b5   : > { %5725 = vst.msk [vmem:[%s10180_s11 + $0x3c] sm:$0xf] %vm5709_vm2, %v6412_v59  ;;  %v5439_v55 = vadd.f32 %v10162_v61, %v5384_v45  ;;  %v5385_v56 = vmax.f32 %v4273_v51, %v7664_v38  ;;  %v10866_v3 = vmax.f32 %v10864_v49, %v10865_v37  ;;  %v10869_v51 = vmax.f32 %v10867_v20, %v10868_v40  ;;  %v10878_v49 = vld [vmem:[#allocation57_spill] sm:$0xff] }
 0x3b6   : > { %5723 = vst.msk [vmem:[%s10180_s11 + $0x34] sm:$0xf] %vm5709_vm2, %v6410_v11  ;;  %v5437_v32 = vadd.f32 %v10162_v61, %v5382_v6  ;;  %v5383_v10 = vmax.f32 %v4271_v4, %v5194_v60 }
 0x3b7   : > { %v5487_v16 = vmax.f32 %v5439_v55, 0.0  ;;  %v5440_v63 = vadd.f32 %v10162_v61, %v5385_v56 }
 0x3b8   : > { %v5485_v7 = vmax.f32 %v5437_v32, 0.0  ;;  %v5438_v21 = vadd.f32 %v10162_v61, %v5383_v10  ;;  %v7459_v46 = vpop.f32.mrb[68].mxu0  ;;  %v7667_v2 = vpop.f32.mrb[68].mxu1 }
 0x3b9   : > { %v6415_v34 = vpack.c.bf16 %v5487_v16, %v5487_v16  ;;  %v5488_v1 = vmax.f32 %v5440_v63, 0.0  ;;  %v4276_v31 = vmax.f32 %v10860_v12, %v7459_v46  ;;  %v4095_v22 = vpop.f32.mrb[69].mxu0  ;;  %v5207_v9 = vpop.f32.mrb[69].mxu1  ;;  %v10870_v63 = vmax.f32 %v9792_v48, %v9794_v28  ;;  %v10872_v12 = vld [vmem:[#allocation53_spill] sm:$0xff] }
 0x3ba   : > { %v6413_v26 = vpack.c.bf16 %v5485_v7, %v5485_v7  ;;  %v5486_v13 = vmax.f32 %v5438_v21, 0.0  ;;  %v4274_v52 = vmax.f32 %v10863_v14, %v4095_v22  ;;  %v7460_v35 = vpop.f32.mrb[70].mxu0  ;;  %v7668_v19 = vpop.f32.mrb[70].mxu1  ;;  %v10875_v14 = vld [vmem:[#allocation55_spill] sm:$0xff] }
 0x3bb   : > { %5728 = vst.msk [vmem:[%s10180_s11 + $0x48] sm:$0xf] %vm5709_vm2, %v6415_v34  ;;  %v6416_v24 = vpack.c.bf16 %v5488_v1, %v5488_v1  ;;  %v5388_v58 = vmax.f32 %v4276_v31, %v7667_v2  ;;  %v4277_v33 = vmax.f32 %v10866_v3, %v7460_v35  ;;  %v4098_v38 = vpop.f32.mrb[71].mxu0  ;;  %v5210_v59 = vpop.f32.mrb[71].mxu1  ;;  %v10871_v1 = vld [vmem:[#allocation52_spill] sm:$0xff]  ;;  %v10876_v28 = vmax.f32 %v10874_v5, %v10875_v14 }
 0x3bc   : > { %5726 = vst.msk [vmem:[%s10180_s11 + $0x40] sm:$0xf] %vm5709_vm2, %v6413_v26  ;;  %v6414_v45 = vpack.c.bf16 %v5486_v13, %v5486_v13  ;;  %v5386_v8 = vmax.f32 %v4274_v52, %v5207_v9  ;;  %v4275_v27 = vmax.f32 %v10869_v51, %v4098_v38  ;;  %v10873_v31 = vmax.f32 %v10871_v1, %v10872_v12  ;;  %v10885_v1 = vld [vmem:[#allocation61_spill] sm:$0xff] }
 0x3bd   : > { %5729 = vst.msk [vmem:[%s10180_s11 + $0x4c] sm:$0xf] %vm5709_vm2, %v6416_v24  ;;  %v5443_v60 = vadd.f32 %v10162_v61, %v5388_v58  ;;  %v5389_v11 = vmax.f32 %v4277_v33, %v7668_v19  ;;  %v10877_v58 = vld [vmem:[#allocation56_spill] sm:$0xff] }
 0x3be   : > { %5727 = vst.msk [vmem:[%s10180_s11 + $0x44] sm:$0xf] %vm5709_vm2, %v6414_v45  ;;  %v5441_v6 = vadd.f32 %v10162_v61, %v5386_v8  ;;  %v5387_v36 = vmax.f32 %v4275_v27, %v5210_v59  ;;  %v10879_v37 = vmax.f32 %v10877_v58, %v10878_v49 }
 0x3bf   : > { %v5491_v62 = vmax.f32 %v5443_v60, 0.0  ;;  %v5444_v54 = vadd.f32 %v10162_v61, %v5389_v11 }
 0x3c0   : > { %v5489_v4 = vmax.f32 %v5441_v6, 0.0  ;;  %v5442_v55 = vadd.f32 %v10162_v61, %v5387_v36  ;;  %v7463_v56 = vpop.f32.mrb[72].mxu0  ;;  %v7671_v32 = vpop.f32.mrb[72].mxu1  ;;  %v10880_v36 = vmax.f32 %v9824_v47, %v9826_v15 }
 0x3c1   : > { %v6419_v10 = vpack.c.bf16 %v5491_v62, %v5491_v62  ;;  %v5492_v16 = vmax.f32 %v5444_v54, 0.0  ;;  %v4280_v7 = vmax.f32 %v10870_v63, %v7463_v56  ;;  %v4111_v21 = vpop.f32.mrb[73].mxu0  ;;  %v5223_v46 = vpop.f32.mrb[73].mxu1 }
 0x3c2   : > { %v6417_v2 = vpack.c.bf16 %v5489_v4, %v5489_v4  ;;  %v5490_v34 = vmax.f32 %v5442_v55, 0.0  ;;  %v4278_v22 = vmax.f32 %v10873_v31, %v4111_v21  ;;  %v7464_v9 = vpop.f32.mrb[74].mxu0  ;;  %v7672_v26 = vpop.f32.mrb[74].mxu1 }
 0x3c3   : > { %5732 = vst.msk [vmem:[%s10180_s11 + $0x58] sm:$0xf] %vm5709_vm2, %v6419_v10  ;;  %v6420_v13 = vpack.c.bf16 %v5492_v16, %v5492_v16  ;;  %v5392_v39 = vmax.f32 %v4280_v7, %v7671_v32  ;;  %v4281_v48 = vmax.f32 %v10876_v28, %v7464_v9  ;;  %v4114_v52 = vpop.f32.mrb[75].mxu0  ;;  %v5226_v35 = vpop.f32.mrb[75].mxu1  ;;  %v10881_v32 = vld [vmem:[#allocation58_spill] sm:$0xff]  ;;  %v10882_v10 = vld [vmem:[#allocation59_spill] sm:$0xff] }
 0x3c4   : > { %5730 = vst.msk [vmem:[%s10180_s11 + $0x50] sm:$0xf] %vm5709_vm2, %v6417_v2  ;;  %v6418_v19 = vpack.c.bf16 %v5490_v34, %v5490_v34  ;;  %v5390_v24 = vmax.f32 %v4278_v22, %v5223_v46  ;;  %v4279_v3 = vmax.f32 %v10879_v37, %v4114_v52  ;;  %v10883_v16 = vmax.f32 %v10881_v32, %v10882_v10  ;;  %v10884_v34 = vld [vmem:[#allocation60_spill] sm:$0xff]  ;;  %v10897_v32 = vld [vmem:[#allocation69_spill] sm:$0xff] }
 0x3c5   : > { %5733 = vst.msk [vmem:[%s10180_s11 + $0x5c] sm:$0xf] %vm5709_vm2, %v6420_v13  ;;  %v5447_v33 = vadd.f32 %v10162_v61, %v5392_v39  ;;  %v5393_v38 = vmax.f32 %v4281_v48, %v7672_v26  ;;  %v10886_v15 = vmax.f32 %v10884_v34, %v10885_v1  ;;  %v10887_v26 = vld [vmem:[#allocation62_spill] sm:$0xff]  ;;  %v10888_v13 = vld [vmem:[#allocation63_spill] sm:$0xff] }
 0x3c6   : > { %5731 = vst.msk [vmem:[%s10180_s11 + $0x54] sm:$0xf] %vm5709_vm2, %v6418_v19  ;;  %v5445_v59 = vadd.f32 %v10162_v61, %v5390_v24  ;;  %v5391_v45 = vmax.f32 %v4279_v3, %v5226_v35  ;;  %v10889_v39 = vmax.f32 %v10887_v26, %v10888_v13  ;;  %v10900_v34 = vld [vmem:[#allocation71_spill] sm:$0xff] }
 0x3c7   : > { %v5495_v8 = vmax.f32 %v5447_v33, 0.0  ;;  %v5448_v20 = vadd.f32 %v10162_v61, %v5393_v38  ;;  %v10890_v38 = vld [vmem:[#allocation64_spill] sm:$0xff] }
 0x3c8   : > { %v5493_v40 = vmax.f32 %v5445_v59, 0.0  ;;  %v5446_v51 = vadd.f32 %v10162_v61, %v5391_v45  ;;  %v7467_v27 = vpop.f32.mrb[76].mxu0  ;;  %v7675_v60 = vpop.f32.mrb[76].mxu1  ;;  %v10891_v59 = vld [vmem:[#allocation65_spill] sm:$0xff] }
 0x3c9   : > { %v6423_v11 = vpack.c.bf16 %v5495_v8, %v5495_v8  ;;  %v5496_v6 = vmax.f32 %v5448_v20, 0.0  ;;  %v4284_v62 = vmax.f32 %v10880_v36, %v7467_v27  ;;  %v4127_v54 = vpop.f32.mrb[77].mxu0  ;;  %v5239_v4 = vpop.f32.mrb[77].mxu1  ;;  %v10892_v45 = vmax.f32 %v10890_v38, %v10891_v59  ;;  %v10906_v38 = vld [vmem:[#allocation73_spill] sm:$0xff] }
 0x3ca   : > { %v6421_v55 = vpack.c.bf16 %v5493_v40, %v5493_v40  ;;  %v5494_v56 = vmax.f32 %v5446_v51, 0.0  ;;  %v4282_v63 = vmax.f32 %v10883_v16, %v4127_v54  ;;  %v7468_v7 = vpop.f32.mrb[78].mxu0  ;;  %v7676_v21 = vpop.f32.mrb[78].mxu1 }
 0x3cb   : > { %5736 = vst.msk [vmem:[%s10180_s11 + $0x68] sm:$0xf] %vm5709_vm2, %v6423_v11  ;;  %v6424_v46 = vpack.c.bf16 %v5496_v6, %v5496_v6  ;;  %v5396_v2 = vmax.f32 %v4284_v62, %v7675_v60  ;;  %v4285_v47 = vmax.f32 %v10886_v15, %v7468_v7  ;;  %v4130_v12 = vpop.f32.mrb[79].mxu0  ;;  %v5242_v31 = vpop.f32.mrb[79].mxu1  ;;  %v10893_v60 = vld [vmem:[#allocation66_spill] sm:$0xff]  ;;  %v10894_v11 = vld [vmem:[#allocation67_spill] sm:$0xff] }
 0x3cc   : > { %5734 = vst.msk [vmem:[%s10180_s11 + $0x60] sm:$0xf] %vm5709_vm2, %v6421_v55  ;;  %v6422_v22 = vpack.c.bf16 %v5494_v56, %v5494_v56  ;;  %v5394_v9 = vmax.f32 %v4282_v63, %v5239_v4  ;;  %v4283_v5 = vmax.f32 %v10889_v39, %v4130_v12  ;;  %v10895_v6 = vmax.f32 %v10893_v60, %v10894_v11  ;;  %v10896_v56 = vld [vmem:[#allocation68_spill] sm:$0xff]  ;;  %v10909_v60 = vld [vmem:[#allocation75_spill] sm:$0xff] }
 0x3cd   : > { %5737 = vst.msk [vmem:[%s10180_s11 + $0x6c] sm:$0xf] %vm5709_vm2, %v6424_v46  ;;  %v5451_v14 = vadd.f32 %v10162_v61, %v5396_v2  ;;  %v5397_v28 = vmax.f32 %v4285_v47, %v7676_v21  ;;  %v10898_v10 = vmax.f32 %v10896_v56, %v10897_v32  ;;  %v10899_v2 = vld [vmem:[#allocation70_spill] sm:$0xff]  ;;  %v10912_v56 = vld [vmem:[#allocation77_spill] sm:$0xff] }
 0x3ce   : > { %5735 = vst.msk [vmem:[%s10180_s11 + $0x64] sm:$0xf] %vm5709_vm2, %v6422_v22  ;;  %v5449_v48 = vadd.f32 %v10162_v61, %v5394_v9  ;;  %v5395_v52 = vmax.f32 %v4283_v5, %v5242_v31  ;;  %v10901_v1 = vmax.f32 %v10899_v2, %v10900_v34 }
 0x3cf   : > { %v5499_v35 = vmax.f32 %v5451_v14, 0.0  ;;  %v5452_v19 = vadd.f32 %v10162_v61, %v5397_v28 }
 0x3d0   : > { %v5497_v24 = vmax.f32 %v5449_v48, 0.0  ;;  %v5450_v58 = vadd.f32 %v10162_v61, %v5395_v52  ;;  %v7471_v49 = vpop.f32.mrb[80].mxu0  ;;  %v7679_v37 = vpop.f32.mrb[80].mxu1  ;;  %v10902_v52 = vld [vmem:[#allocation44_spill] sm:$0xff] }
 0x3d1   : > { %v6427_v3 = vpack.c.bf16 %v5499_v35, %v5499_v35  ;;  %v5500_v33 = vmax.f32 %v5452_v19, 0.0  ;;  %v4288_v8 = vmax.f32 %v10892_v45, %v7471_v49  ;;  %v4143_v20 = vpop.f32.mrb[81].mxu0  ;;  %v5255_v40 = vpop.f32.mrb[81].mxu1  ;;  %v10903_v35 = vld [vmem:[#allocation45_spill] sm:$0xff] }
 0x3d2   : > { %v6425_v51 = vpack.c.bf16 %v5497_v24, %v5497_v24  ;;  %v5498_v27 = vmax.f32 %v5450_v58, 0.0  ;;  %v4286_v36 = vmax.f32 %v10895_v6, %v4143_v20  ;;  %v7472_v62 = vpop.f32.mrb[82].mxu0  ;;  %v7680_v54 = vpop.f32.mrb[82].mxu1  ;;  %v10904_v19 = vmax.f32 %v10902_v52, %v10903_v35 }
 0x3d3   : > { %5740 = vst.msk [vmem:[%s10180_s11 + $0x78] sm:$0xf] %vm5709_vm2, %v6427_v3  ;;  %v6428_v4 = vpack.c.bf16 %v5500_v33, %v5500_v33  ;;  %v5400_v55 = vmax.f32 %v4288_v8, %v7679_v37  ;;  %v4289_v16 = vmax.f32 %v10898_v10, %v7472_v62  ;;  %v4146_v63 = vpop.f32.mrb[83].mxu0  ;;  %v5258_v7 = vpop.f32.mrb[83].mxu1  ;;  %v10905_v33 = vld [vmem:[#allocation72_spill] sm:$0xff] }
 0x3d4   : > { %5738 = vst.msk [vmem:[%s10180_s11 + $0x70] sm:$0xf] %vm5709_vm2, %v6425_v51  ;;  %v6426_v21 = vpack.c.bf16 %v5498_v27, %v5498_v27  ;;  %v5398_v46 = vmax.f32 %v4286_v36, %v5255_v40  ;;  %v4287_v15 = vmax.f32 %v10901_v1, %v4146_v63  ;;  %v10907_v59 = vmax.f32 %v10905_v33, %v10906_v38  ;;  %v10908_v27 = vld [vmem:[#allocation74_spill] sm:$0xff] }
 0x3d5   : > { %5741 = vst.msk [vmem:[%s10180_s11 + $0x7c] sm:$0xf] %vm5709_vm2, %v6428_v4  ;;  %v5455_v47 = vadd.f32 %v10162_v61, %v5400_v55  ;;  %v5401_v12 = vmax.f32 %v4289_v16, %v7680_v54  ;;  %v10910_v11 = vmax.f32 %v10908_v27, %v10909_v60  ;;  %v10911_v55 = vld [vmem:[#allocation76_spill] sm:$0xff]  ;;  %v10919_v38 = vld [vmem:[#allocation78_spill] sm:$0xff] }
 0x3d6   : > { %5739 = vst.msk [vmem:[%s10180_s11 + $0x74] sm:$0xf] %vm5709_vm2, %v6426_v21  ;;  %v5453_v31 = vadd.f32 %v10162_v61, %v5398_v46  ;;  %v5399_v22 = vmax.f32 %v4287_v15, %v5258_v7  ;;  %v10913_v32 = vmax.f32 %v10911_v55, %v10912_v56 }
 0x3d7   : > { %v5503_v9 = vmax.f32 %v5455_v47, 0.0  ;;  %v5456_v26 = vadd.f32 %v10162_v61, %v5401_v12 }
 0x3d8   : > { %v5501_v13 = vmax.f32 %v5453_v31, 0.0  ;;  %v5454_v39 = vadd.f32 %v10162_v61, %v5399_v22  ;;  %v7475_v5 = vpop.f32.mrb[84].mxu0  ;;  %v7683_v14 = vpop.f32.mrb[84].mxu1  ;;  %v10914_v22 = vmax.f32 %v9928_v30, %v9930_v53 }
 0x3d9   : > { %v6431_v28 = vpack.c.bf16 %v5503_v9, %v5503_v9  ;;  %v5504_v48 = vmax.f32 %v5456_v26, 0.0  ;;  %v4292_v24 = vmax.f32 %v10904_v19, %v7475_v5  ;;  %v4159_v58 = vpop.f32.mrb[85].mxu0  ;;  %v5271_v49 = vpop.f32.mrb[85].mxu1 }
 0x3da   : > { %v6429_v37 = vpack.c.bf16 %v5501_v13, %v5501_v13  ;;  %v5502_v3 = vmax.f32 %v5454_v39, 0.0  ;;  %v4290_v45 = vmax.f32 %v10907_v59, %v4159_v58  ;;  %v7476_v8 = vpop.f32.mrb[86].mxu0  ;;  %v7684_v20 = vpop.f32.mrb[86].mxu1  ;;  %v10917_v58 = vld [vmem:[#allocation47_spill] sm:$0xff] }
 0x3db   : > { %5744 = vst.msk [vmem:[%s10180_s11 + $0x88] sm:$0xf] %vm5709_vm2, %v6431_v28  ;;  %v6432_v40 = vpack.c.bf16 %v5504_v48, %v5504_v48  ;;  %v5404_v51 = vmax.f32 %v4292_v24, %v7683_v14  ;;  %v4293_v6 = vmax.f32 %v10910_v11, %v7476_v8  ;;  %v4162_v36 = vpop.f32.mrb[87].mxu0  ;;  %v5274_v62 = vpop.f32.mrb[87].mxu1  ;;  %v10915_v14 = vmax.f32 %v9934_v23, %v9936_v41  ;;  %v10916_v24 = vld [vmem:[#allocation46_spill] sm:$0xff]  ;;  %v10920_v23 = vld [vmem:[#allocation79_spill] sm:$0xff] }
 0x3dc   : > { %5742 = vst.msk [vmem:[%s10180_s11 + $0x80] sm:$0xf] %vm5709_vm2, %v6429_v37  ;;  %v6430_v54 = vpack.c.bf16 %v5502_v3, %v5502_v3  ;;  %v5402_v4 = vmax.f32 %v4290_v45, %v5271_v49  ;;  %v4291_v10 = vmax.f32 %v10913_v32, %v4162_v36  ;;  %v10918_v30 = vmax.f32 %v10916_v24, %v10917_v58 }
 0x3dd   : > { %5745 = vst.msk [vmem:[%s10180_s11 + $0x8c] sm:$0xf] %vm5709_vm2, %v6432_v40  ;;  %v5459_v16 = vadd.f32 %v10162_v61, %v5404_v51  ;;  %v5405_v63 = vmax.f32 %v4293_v6, %v7684_v20  ;;  %v10921_v41 = vmax.f32 %v10919_v38, %v10920_v23 }
 0x3de   : > { %5743 = vst.msk [vmem:[%s10180_s11 + $0x84] sm:$0xf] %vm5709_vm2, %v6430_v54  ;;  %v5457_v7 = vadd.f32 %v10162_v61, %v5402_v4  ;;  %v5403_v21 = vmax.f32 %v4291_v10, %v5274_v62  ;;  %v10922_v4 = vmax.f32 %v9960_v42, %v9962_v25 }
 0x3df   : > { %v5507_v46 = vmax.f32 %v5459_v16, 0.0  ;;  %v5460_v2 = vadd.f32 %v10162_v61, %v5405_v63  ;;  %v10923_v63 = vmax.f32 %v9966_v29, %v9968_v44 }
 0x3e0   : > { %v5505_v34 = vmax.f32 %v5457_v7, 0.0  ;;  %v5458_v1 = vadd.f32 %v10162_v61, %v5403_v21  ;;  %v7479_v15 = vpop.f32.mrb[88].mxu0  ;;  %v7687_v47 = vpop.f32.mrb[88].mxu1 }
 0x3e1   : > { %v6435_v12 = vpack.c.bf16 %v5507_v46, %v5507_v46  ;;  %v5508_v31 = vmax.f32 %v5460_v2, 0.0  ;;  %v4296_v9 = vmax.f32 %v10914_v22, %v7479_v15  ;;  %v4175_v26 = vpop.f32.mrb[89].mxu0  ;;  %v5287_v13 = vpop.f32.mrb[89].mxu1 }
 0x3e2   : > { %v6433_v39 = vpack.c.bf16 %v5505_v34, %v5505_v34  ;;  %v5506_v5 = vmax.f32 %v5458_v1, 0.0  ;;  %v4294_v28 = vmax.f32 %v10915_v14, %v4175_v26  ;;  %v7480_v48 = vpop.f32.mrb[90].mxu0  ;;  %v7688_v52 = vpop.f32.mrb[90].mxu1 }
 0x3e3   : > { %5748 = vst.msk [vmem:[%s10180_s11 + $0x98] sm:$0xf] %vm5709_vm2, %v6435_v12  ;;  %v6436_v35 = vpack.c.bf16 %v5508_v31, %v5508_v31  ;;  %v5408_v19 = vmax.f32 %v4296_v9, %v7687_v47  ;;  %v4297_v53 = vmax.f32 %v10918_v30, %v7480_v48  ;;  %v4178_v49 = vpop.f32.mrb[91].mxu0  ;;  %v5290_v37 = vpop.f32.mrb[91].mxu1 }
 0x3e4   : > { %5746 = vst.msk [vmem:[%s10180_s11 + $0x90] sm:$0xf] %vm5709_vm2, %v6433_v39  ;;  %v6434_v3 = vpack.c.bf16 %v5506_v5, %v5506_v5  ;;  %v5406_v33 = vmax.f32 %v4294_v28, %v5287_v13  ;;  %v4295_v59 = vmax.f32 %v10921_v41, %v4178_v49 }
 0x3e5   : > { %5749 = vst.msk [vmem:[%s10180_s11 + $0x9c] sm:$0xf] %vm5709_vm2, %v6436_v35  ;;  %v5463_v45 = vadd.f32 %v10162_v61, %v5408_v19  ;;  %v5409_v8 = vmax.f32 %v4297_v53, %v7688_v52 }
 0x3e6   : > { %5747 = vst.msk [vmem:[%s10180_s11 + $0x94] sm:$0xf] %vm5709_vm2, %v6434_v3  ;;  %v5461_v20 = vadd.f32 %v10162_v61, %v5406_v33  ;;  %v5407_v40 = vmax.f32 %v4295_v59, %v5290_v37 }
 0x3e7   : > { %v5511_v51 = vmax.f32 %v5463_v45, 0.0  ;;  %v5464_v27 = vadd.f32 %v10162_v61, %v5409_v8 }
 0x3e8   : > { %v5509_v60 = vmax.f32 %v5461_v20, 0.0  ;;  %v5462_v11 = vadd.f32 %v10162_v61, %v5407_v40  ;;  %v7483_v6 = vpop.f32.mrb[92].mxu0  ;;  %v7691_v36 = vpop.f32.mrb[92].mxu1 }
 0x3e9   : > { %v6439_v62 = vpack.c.bf16 %v5511_v51, %v5511_v51  ;;  %v5512_v54 = vmax.f32 %v5464_v27, 0.0  ;;  %v4300_v55 = vmax.f32 %v10922_v4, %v7483_v6  ;;  %v4191_v56 = vpop.f32.mrb[93].mxu0  ;;  %v5303_v32 = vpop.f32.mrb[93].mxu1 }
 0x3ea   : > { %v6437_v10 = vpack.c.bf16 %v5509_v60, %v5509_v60  ;;  %v5510_v16 = vmax.f32 %v5462_v11, 0.0  ;;  %v4298_v7 = vmax.f32 %v10923_v63, %v4191_v56  ;;  %v7484_v21 = vpop.f32.mrb[94].mxu0  ;;  %v7692_v46 = vpop.f32.mrb[94].mxu1 }
 0x3eb   : > { %5752 = vst.msk [vmem:[%s10180_s11 + $0xa8] sm:$0xf] %vm5709_vm2, %v6439_v62  ;;  %v6440_v2 = vpack.c.bf16 %v5512_v54, %v5512_v54  ;;  %v5412_v34 = vmax.f32 %v4300_v55, %v7691_v36  ;;  %v4301_v42 = vmax.f32 %v3189_v18, %v7484_v21  ;;  %v4194_v25 = vpop.f32.mrb[95].mxu0  ;;  %v5306_v1 = vpop.f32.mrb[95].mxu1 }
 0x3ec   : > { %5750 = vst.msk [vmem:[%s10180_s11 + $0xa0] sm:$0xf] %vm5709_vm2, %v6437_v10  ;;  %v6438_v15 = vpack.c.bf16 %v5510_v16, %v5510_v16  ;;  %v5410_v47 = vmax.f32 %v4298_v7, %v5303_v32  ;;  %v4299_v29 = vmax.f32 %v3187_v43, %v4194_v25 }
 0x3ed   : > { %5753 = vst.msk [vmem:[%s10180_s11 + $0xac] sm:$0xf] %vm5709_vm2, %v6440_v2  ;;  %v5467_v44 = vadd.f32 %v10162_v61, %v5412_v34  ;;  %v5413_v12 = vmax.f32 %v4301_v42, %v7692_v46 }
 0x3ee   : > { %5751 = vst.msk [vmem:[%s10180_s11 + $0xa4] sm:$0xf] %vm5709_vm2, %v6438_v15  ;;  %v5465_v0 = vadd.f32 %v10162_v61, %v5410_v47  ;;  %v5411_v57 = vmax.f32 %v4299_v29, %v5306_v1 }
 0x3ef   : > { %v5515_v18 = vmax.f32 %v5467_v44, 0.0  ;;  %v5468_v31 = vadd.f32 %v10162_v61, %v5413_v12 }
 0x3f0   : > { %v5513_v22 = vmax.f32 %v5465_v0, 0.0  ;;  %v5466_v17 = vadd.f32 %v10162_v61, %v5411_v57 }
 0x3f1   : > { %v6443_v50 = vpack.c.bf16 %v5515_v18, %v5515_v18  ;;  %v5516_v43 = vmax.f32 %v5468_v31, 0.0 }
 0x3f2   : > { %v6441_v9 = vpack.c.bf16 %v5513_v22, %v5513_v22  ;;  %v5514_v26 = vmax.f32 %v5466_v17, 0.0 }
 0x3f3   : > { %5756 = vst.msk [vmem:[%s10180_s11 + $0xb8] sm:$0xf] %vm5709_vm2, %v6443_v50  ;;  %v6444_v13 = vpack.c.bf16 %v5516_v43, %v5516_v43 }
 0x3f4   : > { %5754 = vst.msk [vmem:[%s10180_s11 + $0xb0] sm:$0xf] %vm5709_vm2, %v6441_v9  ;;  %v6442_v39 = vpack.c.bf16 %v5514_v26, %v5514_v26 }
 0x3f5   : > { %5757 = vst.msk [vmem:[%s10180_s11 + $0xbc] sm:$0xf] %vm5709_vm2, %v6444_v13 }
 0x3f6   : > { %5755 = vst.msk [vmem:[%s10180_s11 + $0xb4] sm:$0xf] %vm5709_vm2, %v6442_v39 }
 0x3f7 PF: > { %s13_s12 = sadd.s32 1, %s8368_s12  }
 0x3f8   : > { %p10_p4 = scmp.ge.s32.totalorder %s13_s12, 4  }
 0x3fa   :  { %12 = sbr.rel (!%p10_p4) target bundleno = 1 (0x1), region = 77 }

// kernel: custom_gesture_cnn_forward.5
= control target key start
LH: loop header
LB: loop body
LE: loop exit
PB: predicated region body
PF: predicated region fallthrough
CT: control target
= control target key end

     0   :  { %s4853_s12 = smov 0   ;;  %s5619_s0 = inlined_call_operand.vmem [shape: bf16[2,160,128], index: 0, kind: input, shape index: {}]   ;;  %s5620_s1 = inlined_call_operand.vmem [shape: bf16[16,128,64], index: 1, kind: input, shape index: {}]   ;;  %s5621_s2 = inlined_call_operand.vmem [shape: f32[1,64], index: 2, kind: input, shape index: {}]   ;;  %s5622_s3 = inlined_call_operand.vmem [shape: bf16[2,128,64], index: 3, kind: output, shape index: {}]  }
   0x1 LB: > { %s3286_s13 = sadd.s32 4294967295, %s4831_s12   ;;  %p3290_p0 = scmp.ge.s32.totalorder %s4831_s12, 1  ;;  %s4831_s12 = sphi %s4853_s12, %s13_s12  }
   0x2   : > { %p137_p1 = scmp.lt.s32.totalorder %s4831_s12, 3 }
   0x4   : > { %p138_p2 = pnand %p3290_p0, %p137_p1 }
   0x5   : > { %v4678_v0 = vld [vmem:[%s5620_s1 + $0x40] sm:$0xff] (!%p138_p2)   ;;  %v4680_v2 = vld [vmem:[%s5620_s1 + $0x48] sm:$0xff] (!%p138_p2)   ;;  %p161_p3 = scmp.lt.s32.totalorder (!%p138_p2), %s3286_s13, 1  ;;  %v4682_v4 = vld [vmem:[%s5620_s1 + $0x50] sm:$0xff] (!%p138_p2)   ;;  %vm268_vm0 = vsmask.f32 (!%p138_p2), 7424 }
   0x6   : > { %141 = sbr.rel (%p138_p2) target bundleno = 512 (0x200), region = 32  ;;  %v4679_v1 = vld [vmem:[%s5620_s1 + $0x140] sm:$0xff] (!%p138_p2)   ;;  %3965 = vmatprep.subr.bf16.mxu0 (!%p138_p2), %v4678_v0  ;;  %v4681_v3 = vld [vmem:[%s5620_s1 + $0x148] sm:$0xff] (!%p138_p2)   ;;  %v4683_v5 = vld [vmem:[%s5620_s1 + $0x150] sm:$0xff] (!%p138_p2)   ;;  %vm3214_vm1 = vcmask (!%p138_p2), 519168  }
   0x7   : > { %4093 = vmatprep.subr.bf16.mxu1 (!%p138_p2), %v4679_v1  ;;  %3966 = vmatpush3.bf16.msra.mxu0 (!%p138_p2), %v4678_v0  ;;  %v4684_v6 = vld [vmem:[%s5620_s1 + $0x58] sm:$0xff] (!%p138_p2)   ;;  %v4686_v8 = vld [vmem:[%s5620_s1 + $0x60] sm:$0xff] (!%p138_p2)   ;;  %v4688_v10 = vld [vmem:[%s5620_s1 + $0x68] sm:$0xff] (!%p138_p2)  }
   0x8   : > { %4094 = vmatpush3.bf16.msra.mxu1 (!%p138_p2), %v4679_v1  ;;  %3967 = vmatprep.subr.bf16.mxu0 (!%p138_p2), %v4680_v2  ;;  %v4685_v7 = vld [vmem:[%s5620_s1 + $0x158] sm:$0xff] (!%p138_p2)   ;;  %v4687_v9 = vld [vmem:[%s5620_s1 + $0x160] sm:$0xff] (!%p138_p2)   ;;  %v4689_v11 = vld [vmem:[%s5620_s1 + $0x168] sm:$0xff] (!%p138_p2)  }
   0x9   : > { %4095 = vmatprep.subr.bf16.mxu1 (!%p138_p2), %v4681_v3  ;;  %v4690_v12 = vld [vmem:[%s5620_s1 + $0x70] sm:$0xff] (!%p138_p2)   ;;  %v4692_v25 = vld [vmem:[%s5620_s1 + $0x78] sm:$0xff] (!%p138_p2)   ;;  %v4697_v34 = vld [vmem:[%s5620_s1] sm:$0xff] (!%p138_p2)  }
   0xa   : > { %v4691_v16 = vld [vmem:[%s5620_s1 + $0x170] sm:$0xff] (!%p138_p2)   ;;  %v4693_v27 = vld [vmem:[%s5620_s1 + $0x178] sm:$0xff] (!%p138_p2)   ;;  %v4698_v35 = vld [vmem:[%s5620_s1 + $0x100] sm:$0xff] (!%p138_p2)  }
   0xb   : > { %3968 = vmatpush3.bf16.msra.mxu0 (!%p138_p2), %v4680_v2  ;;  %v4699_v42 = vld [vmem:[%s5620_s1 + $0x8] sm:$0xff] (!%p138_p2)   ;;  %v4703_v50 = vld [vmem:[%s5620_s1 + $0x10] sm:$0xff] (!%p138_p2)   ;;  %v4705_v53 = vld [vmem:[%s5620_s1 + $0x18] sm:$0xff] (!%p138_p2)  }
   0xc   : > { %4096 = vmatpush3.bf16.msra.mxu1 (!%p138_p2), %v4681_v3  ;;  %3969 = vmatprep.subr.bf16.mxu0 (!%p138_p2), %v4682_v4  ;;  %v4700_v43 = vld [vmem:[%s5620_s1 + $0x108] sm:$0xff] (!%p138_p2)   ;;  %v4704_v51 = vld [vmem:[%s5620_s1 + $0x110] sm:$0xff] (!%p138_p2)   ;;  %v4706_v57 = vld [vmem:[%s5620_s1 + $0x118] sm:$0xff] (!%p138_p2)  }
   0xd   : > { %s5624_s13 = smov (!%p161_p3, %s3286_s13), 1  ;;  %4097 = vmatprep.subr.bf16.mxu1 %v4683_v5  ;;  %v4709_v2 = vld [vmem:[%s5620_s1 + $0x20] sm:$0xff]  }
   0xe   : > { %s4669_s30 = smul.u32 80, %s5624_s13  ;;  %v4710_v3 = vld [vmem:[%s5620_s1 + $0x120] sm:$0xff]   ;;  %s3692_s6 = sshll.u32 %s5624_s13, 6 }
   0xf   : > { %3970 = vmatpush3.bf16.msra.mxu0 %v4682_v4  ;;  %s5536_s9 = scalar_lea.vmem %s5622_s3, %s3692_s6 }
  0x10   : > { %4098 = vmatpush3.bf16.msra.mxu1 %v4683_v5  ;;  %3971 = vmatprep.subr.bf16.mxu0 %v4684_v6  ;;  %s4903_s16 = scalar_lea.vmem %s5619_s0, %s4669_s30 }
  0x11   : > { %4099 = vmatprep.subr.bf16.mxu1 %v4685_v7  ;;  %v4909_v13 = vld [vmem:[%s4903_s16] sm:$0xff]   ;;  %v4912_v14 = vld [vmem:[%s4903_s16 + $0x8] sm:$0xff]   ;;  %v4915_v15 = vld [vmem:[%s4903_s16 + $0x10] sm:$0xff]  }
  0x12   : > { %v270_v17 = vshrl.u32 %v4909_v13, 16  ;;  %v272_v18 = vshll.u32 %v4909_v13, 16  ;;  %v277_v19 = vshll.u32 %v4912_v14, 16  ;;  %v281_v22 = vshrl.u32 %v4912_v14, 16  ;;  %v4926_v24 = vld [vmem:[%s4903_s16 + $0x18] sm:$0xff]   ;;  %v4941_v33 = vld [vmem:[%s4903_s16 + $0x20] sm:$0xff]  }
  0x13   : > { %3972 = vmatpush3.bf16.msra.mxu0 %v4684_v6  ;;  %v285_v23 = vshll.u32 %v4915_v15, 16  ;;  %v289_v29 = vshrl.u32 %v4915_v15, 16  ;;  %v293_v30 = vshll.u32 %v4926_v24, 16  ;;  %v4951_v38 = vld [vmem:[%s4903_s16 + $0x28] sm:$0xff]   ;;  %v297_v40 = vshrl.u32 %v4926_v24, 16  ;;  %v4972_v49 = vld [vmem:[%s4903_s16 + $0x30] sm:$0xff]  }
  0x14   : > { %4100 = vmatpush3.bf16.msra.mxu1 %v4685_v7  ;;  %3973 = vmatprep.subr.bf16.mxu0 %v4686_v8  ;;  %v274_v20 = vrot.slane %v272_v18, 1  ;;  %v279_v21 = vrot.slane %v277_v19, 1  ;;  %v301_v41 = vshll.u32 %v4941_v33, 16  ;;  %v305_v45 = vshrl.u32 %v4941_v33, 16  ;;  %v4982_v52 = vld [vmem:[%s4903_s16 + $0x38] sm:$0xff]   ;;  %v4716_v18 = vld [vmem:[%s5620_s1 + $0x130] sm:$0xff]  }
  0x15   : > { %4101 = vmatprep.subr.bf16.mxu1 %v4687_v9  ;;  %v287_v32 = vrot.slane %v285_v23, 1  ;;  %v295_v37 = vrot.slane %v293_v30, 1  ;;  %v309_v46 = vshll.u32 %v4951_v38, 16  ;;  %v313_v58 = vshrl.u32 %v4951_v38, 16  ;;  %v4720_v23 = vld [vmem:[%s5620_s1 + $0x180] sm:$0xff]   ;;  %v4726_v30 = vld [vmem:[%s5620_s1 + $0x198] sm:$0xff]  }
  0x16   : > { %v275_v26 = vor.u32 %v274_v20, %v270_v17  ;;  %v283_v31 = vor.u32 %v281_v22, %v279_v21  ;;  %v303_v48 = vrot.slane %v301_v41, 1  ;;  %v317_v59 = vshll.u32 %v4972_v49, 16  ;;  %v4714_v62 = vld [vmem:[%s4903_s16 + $0x40] ss:$0 sps:$4 sm:$0x11]   ;;  %v4715_v17 = vld [vmem:[%s5620_s1 + $0x30] sm:$0xff]  }
  0x17   : > { %3974 = vmatpush3.bf16.msra.mxu0 %v4686_v8  ;;  %v291_v36 = vor.u32 %v289_v29, %v287_v32  ;;  %v299_v47 = vor.u32 %v297_v40, %v295_v37  ;;  %v311_v55 = vrot.slane %v309_v46, 1  ;;  %v321_v60 = vshrl.u32 %v4972_v49, 16  ;;  %v4717_v20 = vld [vmem:[%s5620_s1 + $0x38] sm:$0xff]   ;;  %v4719_v22 = vld [vmem:[%s5620_s1 + $0x80] sm:$0xff]   ;;  %v4738_v46 = vld [vmem:[%s5620_s1 + $0x1c8] sm:$0xff]  }
  0x18   : > { %4102 = vmatpush3.bf16.msra.mxu1 %v4687_v9  ;;  %3975 = vmatprep.subr.bf16.mxu0 %v4688_v10  ;;  %v4935_v28 = vsel %vm268_vm0, %v275_v26, %v279_v21  ;;  %v4954_v39 = vsel %vm268_vm0, %v283_v31, %v287_v32  ;;  %v307_v54 = vor.u32 %v305_v45, %v303_v48  ;;  %v325_v61 = vshll.u32 %v4982_v52, 16  ;;  %v4711_v9 = vld [vmem:[%s5620_s1 + $0x28] sm:$0xff]   ;;  %v4718_v21 = vld [vmem:[%s5620_s1 + $0x138] sm:$0xff]   ;;  %v4727_v31 = vld [vmem:[%s5620_s1 + $0xa0] sm:$0xff]  }
  0x19   : > { %4103 = vmatprep.subr.bf16.mxu1 %v4689_v11  ;;  %3981 = vmatprep.mubr.bf16.mxu0 %v4935_v28  ;;  %v4966_v44 = vsel %vm268_vm0, %v291_v36, %v295_v37  ;;  %v4989_v56 = vsel %vm268_vm0, %v299_v47, %v303_v48  ;;  %v315_v0 = vor.u32 %v313_v58, %v311_v55  ;;  %v319_v1 = vrot.slane %v317_v59, 1  ;;  %v4722_v26 = vld [vmem:[%s5620_s1 + $0x188] sm:$0xff]   ;;  %v4725_v29 = vld [vmem:[%s5620_s1 + $0x98] sm:$0xff]   ;;  %v4728_v32 = vld [vmem:[%s5620_s1 + $0x1a0] sm:$0xff]  }
  0x1a   : > { %4109 = vmatprep.mubr.bf16.mxu1 %v4935_v28  ;;  %v5001_v63 = vsel %vm268_vm0, %v307_v54, %v311_v55  ;;  %v327_v5 = vrot.slane %v325_v61, 1  ;;  %v329_v7 = vshrl.u32 %v4982_v52, 16  ;;  %v333_v8 = vshll.u32 %v4714_v62, 16  ;;  %v4731_v36 = vld [vmem:[%s5620_s1 + $0xb0] sm:$0xff]   ;;  %v4733_v40 = vld [vmem:[%s5620_s1 + $0xb8] sm:$0xff]   ;;  %v4737_v45 = vld [vmem:[%s5620_s1 + $0xc8] sm:$0xff]  }
  0x1b   : > { %3976 = vmatpush3.bf16.msra.mxu0 %v4688_v10  ;;  %v323_v4 = vor.u32 %v321_v60, %v319_v1  ;;  %v5013_v6 = vsel %vm268_vm0, %v315_v0, %v319_v1  ;;  %v4712_v10 = vld [vmem:[%s5620_s1 + $0x128] sm:$0xff]   ;;  %v4732_v37 = vld [vmem:[%s5620_s1 + $0x1b0] sm:$0xff]   ;;  %v4734_v41 = vld [vmem:[%s5620_s1 + $0x1b8] sm:$0xff]  }
  0x1c   : > { %4104 = vmatpush3.bf16.msra.mxu1 %v4689_v11  ;;  %3977 = vmatprep.subr.bf16.mxu0 %v4690_v12  ;;  %v4740_v47 = vld [vmem:[%s5620_s1 + $0x1d0] sm:$0xff]   ;;  %v4742_v48 = vld [vmem:[%s5620_s1 + $0x1d8] sm:$0xff]   ;;  %v5170_v54 = vld [vmem:[%s4903_s16 + $0x40] sm:$0xff]  }
  0x1d   : > { %4105 = vmatprep.subr.bf16.mxu1 %v4691_v16  ;;  %v5024_v11 = vsel %vm268_vm0, %v323_v4, %v327_v5  ;;  %v4751_v55 = vld [vmem:[%s5620_s1 + $0x1f8] sm:$0xff]   ;;  %v4754_v58 = vld [vmem:[%s5620_s1 + $0x248] sm:$0xff]   ;;  %v4756_v60 = vld [vmem:[%s5620_s1 + $0x250] sm:$0xff]  }
  0x1e   : > { %v4755_v59 = vld [vmem:[%s5620_s1 + $0x348] sm:$0xff]   ;;  %v4757_v61 = vld [vmem:[%s5620_s1 + $0x350] sm:$0xff]   ;;  %v4758_v62 = vld [vmem:[%s5620_s1 + $0x258] sm:$0xff]  }
  0x1f   : > { %3978 = vmatpush3.bf16.msra.mxu0 %v4690_v12  ;;  %v5027_v12 = vor.u32 %v329_v7, %v327_v5  ;;  %v4759_v0 = vld [vmem:[%s5620_s1 + $0x358] sm:$0xff]   ;;  %v4764_v1 = vld [vmem:[%s4903_s16 + $0x48] ss:$0 sps:$4 sm:$0x11]   ;;  %v4761_v4 = vld [vmem:[%s5620_s1 + $0x360] sm:$0xff]   ;;  %v852_v7 = vshrl.u32 %v5170_v54, 16 }
  0x20   : > { %4106 = vmatpush3.bf16.msra.mxu1 %v4691_v16  ;;  %3979 = vmatprep.subr.bf16.mxu0 %v4692_v25  ;;  %v335_v16 = vrot.slane %v333_v8, 1  ;;  %v856_v8 = vshll.u32 %v4764_v1, 16  ;;  %v4801_v1 = vld [vmem:[%s5620_s1 + $0x2c0] sm:$0xff]  }
  0x21   : > { %4107 = vmatprep.subr.bf16.mxu1 %v4693_v27 }
  0x22   : > { %v5039_v19 = vsel %vm268_vm0, %v5027_v12, %v335_v16 }
  0x23   : > { %3980 = vmatpush3.bf16.msra.mxu0 %v4692_v25  ;;  %v4721_v25 = vld [vmem:[%s5620_s1 + $0x88] sm:$0xff]  }
  0x24   : > { %4108 = vmatpush3.bf16.msra.mxu1 %v4693_v27  ;;  %3997 = vmatprep.subr.bf16.mxu0 %v4697_v34  ;;  %v4724_v27 = vld [vmem:[%s5620_s1 + $0x190] sm:$0xff]  }
  0x25   : > { %4125 = vmatprep.subr.bf16.mxu1 %v4698_v35 }
  0x26   : > { %3982 = vmatmul.mubr.bf16.vlgmr.msra.gmra.mrb[0].mxu0 %v4954_v39 }
  0x27   : > { %4110 = vmatmul.mubr.bf16.vlgmr.msra.gmra.mrb[0].mxu1 %v4954_v39  ;;  %3998 = vmatpush3.bf16.msra.mxu0 %v4697_v34  ;;  %v4729_v34 = vld [vmem:[%s5620_s1 + $0xa8] sm:$0xff]  }
  0x28   : > { %4126 = vmatpush3.bf16.msra.mxu1 %v4698_v35  ;;  %3999 = vmatprep.subr.bf16.mxu0 %v4699_v42  ;;  %v4730_v35 = vld [vmem:[%s5620_s1 + $0x1a8] sm:$0xff]  }
  0x29   : > { %4127 = vmatprep.subr.bf16.mxu1 %v4700_v43  ;;  %3985 = vmatprep.mubr.bf16.mxu0 %v4966_v44 }
  0x2a   : > { %4113 = vmatprep.mubr.bf16.mxu1 %v4966_v44 }
  0x2b   : > { %4000 = vmatpush3.bf16.msra.mxu0 %v4699_v42  ;;  %v4735_v42 = vld [vmem:[%s5620_s1 + $0xc0] sm:$0xff]  }
  0x2c   : > { %4128 = vmatpush3.bf16.msra.mxu1 %v4700_v43  ;;  %4001 = vmatprep.subr.bf16.mxu0 %v4703_v50  ;;  %v4736_v43 = vld [vmem:[%s5620_s1 + $0x1c0] sm:$0xff]  }
  0x2d   : > { %4129 = vmatprep.subr.bf16.mxu1 %v4704_v51 }
  0x2e   : > { %3986 = vmatmul.mubr.bf16.gmra.mrb[4].mxu0 %v4989_v56 }
  0x2f   : > { %4114 = vmatmul.mubr.bf16.gmra.mrb[4].mxu1 %v4989_v56  ;;  %4002 = vmatpush3.bf16.msra.mxu0 %v4703_v50  ;;  %v4744_v50 = vld [vmem:[%s5620_s1 + $0x1e0] sm:$0xff]  }
  0x30   : > { %4130 = vmatpush3.bf16.msra.mxu1 %v4704_v51  ;;  %4003 = vmatprep.subr.bf16.mxu0 %v4705_v53  ;;  %v4746_v51 = vld [vmem:[%s5620_s1 + $0x1e8] sm:$0xff]  }
  0x31   : > { %4131 = vmatprep.subr.bf16.mxu1 %v4706_v57  ;;  %3989 = vmatprep.mubr.bf16.mxu0 %v5001_v63 }
  0x32   : > { %4117 = vmatprep.mubr.bf16.mxu1 %v5001_v63 }
  0x33   : > { %4004 = vmatpush3.bf16.msra.mxu0 %v4705_v53  ;;  %v4749_v53 = vld [vmem:[%s5620_s1 + $0x1f0] sm:$0xff]  }
  0x34   : > { %4132 = vmatpush3.bf16.msra.mxu1 %v4706_v57  ;;  %4005 = vmatprep.subr.bf16.mxu0 %v4709_v2  ;;  %v4753_v57 = vld [vmem:[%s5620_s1 + $0x340] sm:$0xff]  }
  0x35   : > { %4133 = vmatprep.subr.bf16.mxu1 %v4710_v3 }
  0x36   : > { %3990 = vmatmul.mubr.bf16.gmra.mrb[8].mxu0 %v5013_v6 }
  0x37   : > { %4118 = vmatmul.mubr.bf16.gmra.mrb[8].mxu1 %v5013_v6  ;;  %4006 = vmatpush3.bf16.msra.mxu0 %v4709_v2  ;;  %v848_v2 = vshll.u32 %v5170_v54, 16 }
  0x38   : > { %4134 = vmatpush3.bf16.msra.mxu1 %v4710_v3  ;;  %4007 = vmatprep.subr.bf16.mxu0 %v4711_v9  ;;  %v4760_v3 = vld [vmem:[%s5620_s1 + $0x260] sm:$0xff]  }
  0x39   : > { %4135 = vmatprep.subr.bf16.mxu1 %v4712_v10  ;;  %3993 = vmatprep.mubr.bf16.mxu0 %v5024_v11  ;;  %v850_v5 = vrot.slane %v848_v2, 1  ;;  %v4802_v2 = vld [vmem:[%s5620_s1 + $0x3c0] sm:$0xff]  }
  0x3a   : > { %4121 = vmatprep.mubr.bf16.mxu1 %v5024_v11 }
  0x3b   : > { %4008 = vmatpush3.bf16.msra.mxu0 %v4711_v9  ;;  %v4762_v9 = vld [vmem:[%s5620_s1 + $0x268] sm:$0xff]   ;;  %v5232_v16 = vsel %vm268_vm0, %v5027_v12, %v850_v5 }
  0x3c   : > { %4136 = vmatpush3.bf16.msra.mxu1 %v4712_v10  ;;  %4009 = vmatprep.subr.bf16.mxu0 %v4715_v17  ;;  %v4763_v10 = vld [vmem:[%s5620_s1 + $0x368] sm:$0xff]  }
  0x3d   : > { %4137 = vmatprep.subr.bf16.mxu1 %v4716_v18 }
  0x3e   : > { %3994 = vmatmul.mubr.bf16.gmra.mrb[12].mxu0 %v5039_v19 }
  0x3f   : > { %4122 = vmatmul.mubr.bf16.gmra.mrb[12].mxu1 %v5039_v19  ;;  %4010 = vmatpush3.bf16.msra.mxu0 %v4715_v17  ;;  %v854_v17 = vor.u32 %v852_v7, %v850_v5  ;;  %v4805_v5 = vld [vmem:[%s5620_s1 + $0x2d0] sm:$0xff]  }
  0x40   : > { %4138 = vmatpush3.bf16.msra.mxu1 %v4716_v18  ;;  %4011 = vmatprep.subr.bf16.mxu0 %v4717_v20  ;;  %v858_v18 = vrot.slane %v856_v8, 1  ;;  %v4806_v7 = vld [vmem:[%s5620_s1 + $0x3d0] sm:$0xff]   ;;  %v4807_v8 = vld [vmem:[%s5620_s1 + $0x2d8] sm:$0xff]  }
  0x41   : > { %4139 = vmatprep.subr.bf16.mxu1 %v4718_v21  ;;  %4013 = vmatprep.mubr.bf16.mxu0 %v4909_v13 }
  0x42   : > { %4141 = vmatprep.mubr.bf16.mxu1 %v4909_v13  ;;  %v4723_v13 = vld [vmem:[%s5620_s1 + $0x90] sm:$0xff]   ;;  %v5244_v12 = vsel %vm268_vm0, %v854_v17, %v858_v18  ;;  %v4810_v17 = vld [vmem:[%s5620_s1 + $0x3e0] sm:$0xff]   ;;  %v4811_v18 = vld [vmem:[%s5620_s1 + $0x2e8] sm:$0xff]  }
  0x43   : > { %4012 = vmatpush3.bf16.msra.mxu0 %v4717_v20  ;;  %v4765_v20 = vld [vmem:[%s5620_s1 + $0x270] sm:$0xff]  }
  0x44   : > { %4140 = vmatpush3.bf16.msra.mxu1 %v4718_v21  ;;  %4029 = vmatprep.subr.bf16.mxu0 %v4719_v22  ;;  %v4766_v21 = vld [vmem:[%s5620_s1 + $0x370] sm:$0xff]  }
  0x45   : > { %4157 = vmatprep.subr.bf16.mxu1 %v4720_v23 }
  0x46   : > { %4014 = vmatmul.mubr.bf16.vlgmr.msra.gmra.mrb[0].mxu0 %v4912_v14 }
  0x47   : > { %4142 = vmatmul.mubr.bf16.vlgmr.msra.gmra.mrb[0].mxu1 %v4912_v14  ;;  %4030 = vmatpush3.bf16.msra.mxu0 %v4719_v22  ;;  %v4767_v22 = vld [vmem:[%s5620_s1 + $0x278] sm:$0xff]  }
  0x48   : > { %4158 = vmatpush3.bf16.msra.mxu1 %v4720_v23  ;;  %4031 = vmatprep.subr.bf16.mxu0 %v4721_v25  ;;  %v4768_v23 = vld [vmem:[%s5620_s1 + $0x378] sm:$0xff]  }
  0x49   : > { %4159 = vmatprep.subr.bf16.mxu1 %v4722_v26  ;;  %4017 = vmatprep.mubr.bf16.mxu0 %v4915_v15 }
  0x4a   : > { %4145 = vmatprep.mubr.bf16.mxu1 %v4915_v15 }
  0x4b   : > { %4032 = vmatpush3.bf16.msra.mxu0 %v4721_v25  ;;  %v4769_v25 = vld [vmem:[%s5620_s1 + $0x200] sm:$0xff]  }
  0x4c   : > { %4160 = vmatpush3.bf16.msra.mxu1 %v4722_v26  ;;  %4033 = vmatprep.subr.bf16.mxu0 %v4723_v13  ;;  %v4770_v26 = vld [vmem:[%s5620_s1 + $0x300] sm:$0xff]  }
  0x4d   : > { %4161 = vmatprep.subr.bf16.mxu1 %v4724_v27 }
  0x4e   : > { %4018 = vmatmul.mubr.bf16.gmra.mrb[4].mxu0 %v4926_v24 }
  0x4f   : > { %4146 = vmatmul.mubr.bf16.gmra.mrb[4].mxu1 %v4926_v24  ;;  %4034 = vmatpush3.bf16.msra.mxu0 %v4723_v13  ;;  %v4771_v13 = vld [vmem:[%s5620_s1 + $0x208] sm:$0xff]  }
  0x50   : > { %4162 = vmatpush3.bf16.msra.mxu1 %v4724_v27  ;;  %4035 = vmatprep.subr.bf16.mxu0 %v4725_v29  ;;  %v4772_v27 = vld [vmem:[%s5620_s1 + $0x308] sm:$0xff]  }
  0x51   : > { %4163 = vmatprep.subr.bf16.mxu1 %v4726_v30  ;;  %4021 = vmatprep.mubr.bf16.mxu0 %v4941_v33 }
  0x52   : > { %4149 = vmatprep.mubr.bf16.mxu1 %v4941_v33 }
  0x53   : > { %4036 = vmatpush3.bf16.msra.mxu0 %v4725_v29  ;;  %v4774_v29 = vld [vmem:[%s5620_s1 + $0x310] sm:$0xff]  }
  0x54   : > { %4164 = vmatpush3.bf16.msra.mxu1 %v4726_v30  ;;  %4037 = vmatprep.subr.bf16.mxu0 %v4727_v31  ;;  %v4775_v30 = vld [vmem:[%s5620_s1 + $0x218] sm:$0xff]  }
  0x55   : > { %4165 = vmatprep.subr.bf16.mxu1 %v4728_v32 }
  0x56   : > { %4022 = vmatmul.mubr.bf16.gmra.mrb[8].mxu0 %v4951_v38 }
  0x57   : > { %4150 = vmatmul.mubr.bf16.gmra.mrb[8].mxu1 %v4951_v38  ;;  %4038 = vmatpush3.bf16.msra.mxu0 %v4727_v31  ;;  %v4776_v31 = vld [vmem:[%s5620_s1 + $0x318] sm:$0xff]  }
  0x58   : > { %4166 = vmatpush3.bf16.msra.mxu1 %v4728_v32  ;;  %4039 = vmatprep.subr.bf16.mxu0 %v4729_v34  ;;  %v4777_v32 = vld [vmem:[%s5620_s1 + $0x220] sm:$0xff]  }
  0x59   : > { %4167 = vmatprep.subr.bf16.mxu1 %v4730_v35  ;;  %4025 = vmatprep.mubr.bf16.mxu0 %v4972_v49 }
  0x5a   : > { %4153 = vmatprep.mubr.bf16.mxu1 %v4972_v49 }
  0x5b   : > { %4040 = vmatpush3.bf16.msra.mxu0 %v4729_v34  ;;  %v4778_v34 = vld [vmem:[%s5620_s1 + $0x320] sm:$0xff]  }
  0x5c   : > { %4168 = vmatpush3.bf16.msra.mxu1 %v4730_v35  ;;  %4041 = vmatprep.subr.bf16.mxu0 %v4731_v36  ;;  %v4779_v35 = vld [vmem:[%s5620_s1 + $0x228] sm:$0xff]  }
  0x5d   : > { %4169 = vmatprep.subr.bf16.mxu1 %v4732_v37 }
  0x5e   : > { %4026 = vmatmul.mubr.bf16.gmra.mrb[12].mxu0 %v4982_v52 }
  0x5f   : > { %4154 = vmatmul.mubr.bf16.gmra.mrb[12].mxu1 %v4982_v52  ;;  %4042 = vmatpush3.bf16.msra.mxu0 %v4731_v36  ;;  %v4780_v36 = vld [vmem:[%s5620_s1 + $0x328] sm:$0xff]  }
  0x60   : > { %4170 = vmatpush3.bf16.msra.mxu1 %v4732_v37  ;;  %4043 = vmatprep.subr.bf16.mxu0 %v4733_v40  ;;  %v4781_v37 = vld [vmem:[%s5620_s1 + $0x230] sm:$0xff]  }
  0x61   : > { %4171 = vmatprep.subr.bf16.mxu1 %v4734_v41  ;;  %4045 = vmatprep.mubr.bf16.mxu0 %v4912_v14 }
  0x62   : > { %4173 = vmatprep.mubr.bf16.mxu1 %v4912_v14  ;;  %v4739_v14 = vld [vmem:[%s5620_s1 + $0xd0] sm:$0xff]  }
  0x63   : > { %4044 = vmatpush3.bf16.msra.mxu0 %v4733_v40  ;;  %v4782_v40 = vld [vmem:[%s5620_s1 + $0x330] sm:$0xff]  }
  0x64   : > { %4172 = vmatpush3.bf16.msra.mxu1 %v4734_v41  ;;  %4061 = vmatprep.subr.bf16.mxu0 %v4735_v42  ;;  %v4783_v41 = vld [vmem:[%s5620_s1 + $0x238] sm:$0xff]  }
  0x65   : > { %4189 = vmatprep.subr.bf16.mxu1 %v4736_v43 }
  0x66   : > { %4046 = vmatmul.mubr.bf16.vlgmr.msra.gmra.mrb[0].mxu0 %v4915_v15 }
  0x67   : > { %4174 = vmatmul.mubr.bf16.vlgmr.msra.gmra.mrb[0].mxu1 %v4915_v15  ;;  %4062 = vmatpush3.bf16.msra.mxu0 %v4735_v42  ;;  %v4741_v15 = vld [vmem:[%s5620_s1 + $0xd8] sm:$0xff]  }
  0x68   : > { %4190 = vmatpush3.bf16.msra.mxu1 %v4736_v43  ;;  %4063 = vmatprep.subr.bf16.mxu0 %v4737_v45  ;;  %v4784_v42 = vld [vmem:[%s5620_s1 + $0x338] sm:$0xff]   ;;  %v4785_v43 = vld [vmem:[%s5620_s1 + $0x280] sm:$0xff]  }
  0x69   : > { %4191 = vmatprep.subr.bf16.mxu1 %v4738_v46  ;;  %4049 = vmatprep.mubr.bf16.mxu0 %v4926_v24 }
  0x6a   : > { %4177 = vmatprep.mubr.bf16.mxu1 %v4926_v24  ;;  %v4743_v24 = vld [vmem:[%s5620_s1 + $0xe0] sm:$0xff]  }
  0x6b   : > { %4064 = vmatpush3.bf16.msra.mxu0 %v4737_v45  ;;  %v4817_v45 = vld [vmem:[%s4903_s16] sm:$0xff]  }
  0x6c   : > { %4192 = vmatpush3.bf16.msra.mxu1 %v4738_v46  ;;  %4065 = vmatprep.subr.bf16.mxu0 %v4739_v14  ;;  %v4786_v46 = vld [vmem:[%s5620_s1 + $0x380] sm:$0xff]  }
  0x6d   : > { %4193 = vmatprep.subr.bf16.mxu1 %v4740_v47 }
  0x6e   : > { %4050 = vmatmul.mubr.bf16.gmra.mrb[4].mxu0 %v4941_v33 }
  0x6f   : > { %4178 = vmatmul.mubr.bf16.gmra.mrb[4].mxu1 %v4941_v33  ;;  %4066 = vmatpush3.bf16.msra.mxu0 %v4739_v14  ;;  %v4745_v33 = vld [vmem:[%s5620_s1 + $0xe8] sm:$0xff]  }
  0x70   : > { %4194 = vmatpush3.bf16.msra.mxu1 %v4740_v47  ;;  %4067 = vmatprep.subr.bf16.mxu0 %v4741_v15  ;;  %v4788_v14 = vld [vmem:[%s5620_s1 + $0x388] sm:$0xff]  }
  0x71   : > { %4195 = vmatprep.subr.bf16.mxu1 %v4742_v48  ;;  %4053 = vmatprep.mubr.bf16.mxu0 %v4951_v38  ;;  %v5332_v47 = vld [vmem:[%s4903_s16 + $0x8] sm:$0xff]  }
  0x72   : > { %4181 = vmatprep.mubr.bf16.mxu1 %v4951_v38  ;;  %v4748_v38 = vld [vmem:[%s5620_s1 + $0xf0] sm:$0xff]  }
  0x73   : > { %4068 = vmatpush3.bf16.msra.mxu0 %v4741_v15  ;;  %v4789_v15 = vld [vmem:[%s5620_s1 + $0x290] sm:$0xff]  }
  0x74   : > { %4196 = vmatpush3.bf16.msra.mxu1 %v4742_v48  ;;  %4069 = vmatprep.subr.bf16.mxu0 %v4743_v24  ;;  %v5340_v48 = vld [vmem:[%s4903_s16 + $0x10] sm:$0xff]  }
  0x75   : > { %4197 = vmatprep.subr.bf16.mxu1 %v4744_v50 }
  0x76   : > { %4054 = vmatmul.mubr.bf16.gmra.mrb[8].mxu0 %v4972_v49 }
  0x77   : > { %4182 = vmatmul.mubr.bf16.gmra.mrb[8].mxu1 %v4972_v49  ;;  %4070 = vmatpush3.bf16.msra.mxu0 %v4743_v24  ;;  %v4750_v49 = vld [vmem:[%s5620_s1 + $0xf8] sm:$0xff]   ;;  %v4790_v24 = vld [vmem:[%s5620_s1 + $0x390] sm:$0xff]  }
  0x78   : > { %4198 = vmatpush3.bf16.msra.mxu1 %v4744_v50  ;;  %4071 = vmatprep.subr.bf16.mxu0 %v4745_v33  ;;  %v4791_v50 = vld [vmem:[%s5620_s1 + $0x298] sm:$0xff]  }
  0x79   : > { %4199 = vmatprep.subr.bf16.mxu1 %v4746_v51  ;;  %4057 = vmatprep.mubr.bf16.mxu0 %v4982_v52 }
  0x7a   : > { %4185 = vmatprep.mubr.bf16.mxu1 %v4982_v52  ;;  %v4752_v52 = vld [vmem:[%s5620_s1 + $0x240] sm:$0xff]  }
  0x7b   : > { %4072 = vmatpush3.bf16.msra.mxu0 %v4745_v33  ;;  %v4792_v33 = vld [vmem:[%s5620_s1 + $0x398] sm:$0xff]  }
  0x7c   : > { %4200 = vmatpush3.bf16.msra.mxu1 %v4746_v51  ;;  %4073 = vmatprep.subr.bf16.mxu0 %v4748_v38  ;;  %v4820_v51 = vld [vmem:[%s4903_s16 + $0x18] sm:$0xff]  }
  0x7d   : > { %4201 = vmatprep.subr.bf16.mxu1 %v4749_v53 }
  0x7e   : > { %4058 = vmatmul.mubr.bf16.gmra.mrb[12].mxu0 %v5170_v54 }
  0x7f   : > { %4186 = vmatmul.mubr.bf16.gmra.mrb[12].mxu1 %v5170_v54  ;;  %4074 = vmatpush3.bf16.msra.mxu0 %v4748_v38  ;;  %v4793_v38 = vld [vmem:[%s5620_s1 + $0x2a0] sm:$0xff]  }
  0x80   : > { %4202 = vmatpush3.bf16.msra.mxu1 %v4749_v53  ;;  %4075 = vmatprep.subr.bf16.mxu0 %v4750_v49  ;;  %v4821_v53 = vld [vmem:[%s4903_s16 + $0x20] sm:$0xff]  }
  0x81   : > { %4203 = vmatprep.subr.bf16.mxu1 %v4751_v55  ;;  %4077 = vmatprep.mubr.bf16.mxu0 %v4954_v39 }
  0x82   : > { %4205 = vmatprep.mubr.bf16.mxu1 %v4954_v39 }
  0x83   : > { %4076 = vmatpush3.bf16.msra.mxu0 %v4750_v49  ;;  %v4794_v49 = vld [vmem:[%s5620_s1 + $0x3a0] sm:$0xff]  }
  0x84   : > { %4204 = vmatpush3.bf16.msra.mxu1 %v4751_v55  ;;  %4221 = vmatprep.subr.bf16.mxu0 %v4752_v52  ;;  %v4795_v55 = vld [vmem:[%s5620_s1 + $0x2a8] sm:$0xff]  }
  0x85   : > { %4349 = vmatprep.subr.bf16.mxu1 %v4753_v57 }
  0x86   : > { %4078 = vmatmul.mubr.bf16.vlgmr.msra.gmra.mrb[0].mxu0 %v4966_v44 }
  0x87   : > { %4206 = vmatmul.mubr.bf16.vlgmr.msra.gmra.mrb[0].mxu1 %v4966_v44  ;;  %4222 = vmatpush3.bf16.msra.mxu0 %v4752_v52  ;;  %v4796_v52 = vld [vmem:[%s5620_s1 + $0x3a8] sm:$0xff]  }
  0x88   : > { %4350 = vmatpush3.bf16.msra.mxu1 %v4753_v57  ;;  %4223 = vmatprep.subr.bf16.mxu0 %v4754_v58  ;;  %v4822_v57 = vld [vmem:[%s4903_s16 + $0x28] sm:$0xff]  }
  0x89   : > { %4351 = vmatprep.subr.bf16.mxu1 %v4755_v59  ;;  %4081 = vmatprep.mubr.bf16.mxu0 %v4989_v56 }
  0x8a   : > { %4209 = vmatprep.mubr.bf16.mxu1 %v4989_v56 }
  0x8b   : > { %4224 = vmatpush3.bf16.msra.mxu0 %v4754_v58  ;;  %v4797_v58 = vld [vmem:[%s5620_s1 + $0x2b0] sm:$0xff]  }
  0x8c   : > { %4352 = vmatpush3.bf16.msra.mxu1 %v4755_v59  ;;  %4225 = vmatprep.subr.bf16.mxu0 %v4756_v60  ;;  %v4823_v59 = vld [vmem:[%s4903_s16 + $0x30] sm:$0xff]  }
  0x8d   : > { %4353 = vmatprep.subr.bf16.mxu1 %v4757_v61 }
  0x8e   : > { %4082 = vmatmul.mubr.bf16.gmra.mrb[4].mxu0 %v5001_v63 }
  0x8f   : > { %4210 = vmatmul.mubr.bf16.gmra.mrb[4].mxu1 %v5001_v63  ;;  %4226 = vmatpush3.bf16.msra.mxu0 %v4756_v60  ;;  %v4798_v60 = vld [vmem:[%s5620_s1 + $0x3b0] sm:$0xff]  }
  0x90   : > { %4354 = vmatpush3.bf16.msra.mxu1 %v4757_v61  ;;  %4227 = vmatprep.subr.bf16.mxu0 %v4758_v62  ;;  %v4799_v61 = vld [vmem:[%s5620_s1 + $0x2b8] sm:$0xff]  }
  0x91   : > { %4355 = vmatprep.subr.bf16.mxu1 %v4759_v0  ;;  %4085 = vmatprep.mubr.bf16.mxu0 %v5013_v6 }
  0x92   : > { %4213 = vmatprep.mubr.bf16.mxu1 %v5013_v6 }
  0x93   : > { %4228 = vmatpush3.bf16.msra.mxu0 %v4758_v62  ;;  %v4800_v62 = vld [vmem:[%s5620_s1 + $0x3b8] sm:$0xff]  }
  0x94   : > { %4356 = vmatpush3.bf16.msra.mxu1 %v4759_v0  ;;  %4229 = vmatprep.subr.bf16.mxu0 %v4760_v3  ;;  %v4824_v0 = vld [vmem:[%s4903_s16 + $0x38] sm:$0xff]  }
  0x95   : > { %4357 = vmatprep.subr.bf16.mxu1 %v4761_v4 }
  0x96   : > { %4086 = vmatmul.mubr.bf16.gmra.mrb[8].mxu0 %v5024_v11 }
  0x97   : > { %4214 = vmatmul.mubr.bf16.gmra.mrb[8].mxu1 %v5024_v11  ;;  %4230 = vmatpush3.bf16.msra.mxu0 %v4760_v3  ;;  %v4803_v3 = vld [vmem:[%s5620_s1 + $0x2c8] sm:$0xff]  }
  0x98   : > { %4358 = vmatpush3.bf16.msra.mxu1 %v4761_v4  ;;  %4231 = vmatprep.subr.bf16.mxu0 %v4762_v9  ;;  %v4804_v4 = vld [vmem:[%s5620_s1 + $0x3c8] sm:$0xff]  }
  0x99   : > { %4359 = vmatprep.subr.bf16.mxu1 %v4763_v10  ;;  %4089 = vmatprep.mubr.bf16.mxu0 %v5232_v16 }
  0x9a   : > { %4217 = vmatprep.mubr.bf16.mxu1 %v5232_v16 }
  0x9b   : > { %4232 = vmatpush3.bf16.msra.mxu0 %v4762_v9  ;;  %v4808_v9 = vld [vmem:[%s5620_s1 + $0x3d8] sm:$0xff]  }
  0x9c   : > { %4360 = vmatpush3.bf16.msra.mxu1 %v4763_v10  ;;  %4233 = vmatprep.subr.bf16.mxu0 %v4765_v20  ;;  %v4809_v10 = vld [vmem:[%s5620_s1 + $0x2e0] sm:$0xff]  }
  0x9d   : > { %4361 = vmatprep.subr.bf16.mxu1 %v4766_v21 }
  0x9e   : > { %4090 = vmatmul.mubr.bf16.gmra.mrb[12].mxu0 %v5244_v12 }
  0x9f   : > { %4218 = vmatmul.mubr.bf16.gmra.mrb[12].mxu1 %v5244_v12  ;;  %4234 = vmatpush3.bf16.msra.mxu0 %v4765_v20  ;;  %v4812_v20 = vld [vmem:[%s5620_s1 + $0x3e8] sm:$0xff]  }
  0xa0   : > { %4362 = vmatpush3.bf16.msra.mxu1 %v4766_v21  ;;  %4235 = vmatprep.subr.bf16.mxu0 %v4767_v22  ;;  %v4813_v21 = vld [vmem:[%s5620_s1 + $0x2f0] sm:$0xff]  }
  0xa1   : > { %4363 = vmatprep.subr.bf16.mxu1 %v4768_v23  ;;  %4237 = vmatprep.mubr.bf16.mxu0 %v4935_v28 }
  0xa2   : > { %4365 = vmatprep.mubr.bf16.mxu1 %v4935_v28  ;;  %v4773_v28 = vld [vmem:[%s5620_s1 + $0x210] sm:$0xff]  }
  0xa3   : > { %4236 = vmatpush3.bf16.msra.mxu0 %v4767_v22  ;;  %v4814_v22 = vld [vmem:[%s5620_s1 + $0x3f0] sm:$0xff]  }
  0xa4   : > { %4364 = vmatpush3.bf16.msra.mxu1 %v4768_v23  ;;  %4253 = vmatprep.subr.bf16.mxu0 %v4769_v25  ;;  %v4815_v23 = vld [vmem:[%s5620_s1 + $0x2f8] sm:$0xff]  }
  0xa5   : > { %4381 = vmatprep.subr.bf16.mxu1 %v4770_v26 }
  0xa6   : > { %4238 = vmatmul.mubr.bf16.vlgmr.msra.gmra.mrb[16].mxu0 %v4954_v39 }
  0xa7   : > { %4366 = vmatmul.mubr.bf16.vlgmr.msra.gmra.mrb[16].mxu1 %v4954_v39  ;;  %4254 = vmatpush3.bf16.msra.mxu0 %v4769_v25  ;;  %v4816_v25 = vld [vmem:[%s5620_s1 + $0x3f8] sm:$0xff]  }
  0xa8   : > { %4382 = vmatpush3.bf16.msra.mxu1 %v4770_v26  ;;  %4255 = vmatprep.subr.bf16.mxu0 %v4771_v13 }
  0xa9   : > { %4383 = vmatprep.subr.bf16.mxu1 %v4772_v27  ;;  %4241 = vmatprep.mubr.bf16.mxu0 %v4966_v44 }
  0xaa   : > { %4369 = vmatprep.mubr.bf16.mxu1 %v4966_v44 }
  0xab   : > { %4256 = vmatpush3.bf16.msra.mxu0 %v4771_v13 }
  0xac   : > { %4384 = vmatpush3.bf16.msra.mxu1 %v4772_v27  ;;  %4257 = vmatprep.subr.bf16.mxu0 %v4773_v28 }
  0xad   : > { %4385 = vmatprep.subr.bf16.mxu1 %v4774_v29 }
  0xae   : > { %4242 = vmatmul.mubr.bf16.gmra.mrb[20].mxu0 %v4989_v56 }
  0xaf   : > { %4370 = vmatmul.mubr.bf16.gmra.mrb[20].mxu1 %v4989_v56  ;;  %4258 = vmatpush3.bf16.msra.mxu0 %v4773_v28 }
  0xb0   : > { %4386 = vmatpush3.bf16.msra.mxu1 %v4774_v29  ;;  %4259 = vmatprep.subr.bf16.mxu0 %v4775_v30 }
  0xb1   : > { %4387 = vmatprep.subr.bf16.mxu1 %v4776_v31  ;;  %4245 = vmatprep.mubr.bf16.mxu0 %v5001_v63 }
  0xb2   : > { %4373 = vmatprep.mubr.bf16.mxu1 %v5001_v63 }
  0xb3   : > { %4260 = vmatpush3.bf16.msra.mxu0 %v4775_v30 }
  0xb4   : > { %4388 = vmatpush3.bf16.msra.mxu1 %v4776_v31  ;;  %4261 = vmatprep.subr.bf16.mxu0 %v4777_v32 }
  0xb5   : > { %4389 = vmatprep.subr.bf16.mxu1 %v4778_v34 }
  0xb6   : > { %4246 = vmatmul.mubr.bf16.gmra.mrb[24].mxu0 %v5013_v6 }
  0xb7   : > { %4374 = vmatmul.mubr.bf16.gmra.mrb[24].mxu1 %v5013_v6  ;;  %4262 = vmatpush3.bf16.msra.mxu0 %v4777_v32 }
  0xb8   : > { %4390 = vmatpush3.bf16.msra.mxu1 %v4778_v34  ;;  %4263 = vmatprep.subr.bf16.mxu0 %v4779_v35 }
  0xb9   : > { %4391 = vmatprep.subr.bf16.mxu1 %v4780_v36  ;;  %4249 = vmatprep.mubr.bf16.mxu0 %v5024_v11 }
  0xba   : > { %4377 = vmatprep.mubr.bf16.mxu1 %v5024_v11 }
  0xbb   : > { %4264 = vmatpush3.bf16.msra.mxu0 %v4779_v35 }
  0xbc   : > { %4392 = vmatpush3.bf16.msra.mxu1 %v4780_v36  ;;  %4265 = vmatprep.subr.bf16.mxu0 %v4781_v37 }
  0xbd   : > { %4393 = vmatprep.subr.bf16.mxu1 %v4782_v40 }
  0xbe   : > { %4250 = vmatmul.mubr.bf16.gmra.mrb[28].mxu0 %v5039_v19 }
  0xbf   : > { %4378 = vmatmul.mubr.bf16.gmra.mrb[28].mxu1 %v5039_v19  ;;  %4266 = vmatpush3.bf16.msra.mxu0 %v4781_v37  ;;  %v4787_v19 = vld [vmem:[%s5620_s1 + $0x288] sm:$0xff]  }
  0xc0   : > { %4394 = vmatpush3.bf16.msra.mxu1 %v4782_v40  ;;  %4267 = vmatprep.subr.bf16.mxu0 %v4783_v41 }
  0xc1   : > { %4395 = vmatprep.subr.bf16.mxu1 %v4784_v42  ;;  %4269 = vmatprep.mubr.bf16.mxu0 %v4817_v45 }
  0xc2   : > { %4397 = vmatprep.mubr.bf16.mxu1 %v4817_v45 }
  0xc3   : > { %4268 = vmatpush3.bf16.msra.mxu0 %v4783_v41 }
  0xc4   : > { %4396 = vmatpush3.bf16.msra.mxu1 %v4784_v42  ;;  %4285 = vmatprep.subr.bf16.mxu0 %v4785_v43 }
  0xc5   : > { %4413 = vmatprep.subr.bf16.mxu1 %v4786_v46 }
  0xc6   : > { %4270 = vmatmul.mubr.bf16.vlgmr.msra.gmra.mrb[16].mxu0 %v5332_v47 }
  0xc7   : > { %4398 = vmatmul.mubr.bf16.vlgmr.msra.gmra.mrb[16].mxu1 %v5332_v47  ;;  %4286 = vmatpush3.bf16.msra.mxu0 %v4785_v43 }
  0xc8   : > { %4414 = vmatpush3.bf16.msra.mxu1 %v4786_v46  ;;  %4287 = vmatprep.subr.bf16.mxu0 %v4787_v19 }
  0xc9   : > { %4415 = vmatprep.subr.bf16.mxu1 %v4788_v14  ;;  %4273 = vmatprep.mubr.bf16.mxu0 %v5340_v48 }
  0xca   : > { %4401 = vmatprep.mubr.bf16.mxu1 %v5340_v48 }
  0xcb   : > { %4288 = vmatpush3.bf16.msra.mxu0 %v4787_v19 }
  0xcc   : > { %4416 = vmatpush3.bf16.msra.mxu1 %v4788_v14  ;;  %4289 = vmatprep.subr.bf16.mxu0 %v4789_v15 }
  0xcd   : > { %4417 = vmatprep.subr.bf16.mxu1 %v4790_v24 }
  0xce   : > { %4274 = vmatmul.mubr.bf16.gmra.mrb[20].mxu0 %v4820_v51 }
  0xcf   : > { %4402 = vmatmul.mubr.bf16.gmra.mrb[20].mxu1 %v4820_v51  ;;  %4290 = vmatpush3.bf16.msra.mxu0 %v4789_v15 }
  0xd0   : > { %4418 = vmatpush3.bf16.msra.mxu1 %v4790_v24  ;;  %4291 = vmatprep.subr.bf16.mxu0 %v4791_v50 }
  0xd1   : > { %4419 = vmatprep.subr.bf16.mxu1 %v4792_v33  ;;  %4277 = vmatprep.mubr.bf16.mxu0 %v4821_v53 }
  0xd2   : > { %4405 = vmatprep.mubr.bf16.mxu1 %v4821_v53 }
  0xd3   : > { %4292 = vmatpush3.bf16.msra.mxu0 %v4791_v50 }
  0xd4   : > { %4420 = vmatpush3.bf16.msra.mxu1 %v4792_v33  ;;  %4293 = vmatprep.subr.bf16.mxu0 %v4793_v38 }
  0xd5   : > { %4421 = vmatprep.subr.bf16.mxu1 %v4794_v49 }
  0xd6   : > { %4278 = vmatmul.mubr.bf16.gmra.mrb[24].mxu0 %v4822_v57 }
  0xd7   : > { %4406 = vmatmul.mubr.bf16.gmra.mrb[24].mxu1 %v4822_v57  ;;  %4294 = vmatpush3.bf16.msra.mxu0 %v4793_v38 }
  0xd8   : > { %4422 = vmatpush3.bf16.msra.mxu1 %v4794_v49  ;;  %4295 = vmatprep.subr.bf16.mxu0 %v4795_v55 }
  0xd9   : > { %4423 = vmatprep.subr.bf16.mxu1 %v4796_v52  ;;  %4281 = vmatprep.mubr.bf16.mxu0 %v4823_v59 }
  0xda   : > { %4409 = vmatprep.mubr.bf16.mxu1 %v4823_v59 }
  0xdb   : > { %4296 = vmatpush3.bf16.msra.mxu0 %v4795_v55 }
  0xdc   : > { %4424 = vmatpush3.bf16.msra.mxu1 %v4796_v52  ;;  %4297 = vmatprep.subr.bf16.mxu0 %v4797_v58 }
  0xdd   : > { %4425 = vmatprep.subr.bf16.mxu1 %v4798_v60 }
  0xde   : > { %4282 = vmatmul.mubr.bf16.gmra.mrb[28].mxu0 %v4824_v0 }
  0xdf   : > { %4410 = vmatmul.mubr.bf16.gmra.mrb[28].mxu1 %v4824_v0  ;;  %4298 = vmatpush3.bf16.msra.mxu0 %v4797_v58 }
  0xe0   : > { %4426 = vmatpush3.bf16.msra.mxu1 %v4798_v60  ;;  %4299 = vmatprep.subr.bf16.mxu0 %v4799_v61 }
  0xe1   : > { %4427 = vmatprep.subr.bf16.mxu1 %v4800_v62  ;;  %4301 = vmatprep.mubr.bf16.mxu0 %v5332_v47 }
  0xe2   : > { %4429 = vmatprep.mubr.bf16.mxu1 %v5332_v47 }
  0xe3   : > { %4300 = vmatpush3.bf16.msra.mxu0 %v4799_v61 }
  0xe4   : > { %4428 = vmatpush3.bf16.msra.mxu1 %v4800_v62  ;;  %4317 = vmatprep.subr.bf16.mxu0 %v4801_v1 }
  0xe5   : > { %4445 = vmatprep.subr.bf16.mxu1 %v4802_v2 }
  0xe6   : > { %4302 = vmatmul.mubr.bf16.vlgmr.msra.gmra.mrb[16].mxu0 %v5340_v48 }
  0xe7   : > { %4430 = vmatmul.mubr.bf16.vlgmr.msra.gmra.mrb[16].mxu1 %v5340_v48  ;;  %4318 = vmatpush3.bf16.msra.mxu0 %v4801_v1 }
  0xe8   : > { %4446 = vmatpush3.bf16.msra.mxu1 %v4802_v2  ;;  %4319 = vmatprep.subr.bf16.mxu0 %v4803_v3 }
  0xe9   : > { %4447 = vmatprep.subr.bf16.mxu1 %v4804_v4  ;;  %4305 = vmatprep.mubr.bf16.mxu0 %v4820_v51 }
  0xea   : > { %4433 = vmatprep.mubr.bf16.mxu1 %v4820_v51 }
  0xeb   : > { %4320 = vmatpush3.bf16.msra.mxu0 %v4803_v3 }
  0xec   : > { %4448 = vmatpush3.bf16.msra.mxu1 %v4804_v4  ;;  %4321 = vmatprep.subr.bf16.mxu0 %v4805_v5 }
  0xed   : > { %4449 = vmatprep.subr.bf16.mxu1 %v4806_v7 }
  0xee   : > { %4306 = vmatmul.mubr.bf16.gmra.mrb[20].mxu0 %v4821_v53 }
  0xef   : > { %4434 = vmatmul.mubr.bf16.gmra.mrb[20].mxu1 %v4821_v53  ;;  %4322 = vmatpush3.bf16.msra.mxu0 %v4805_v5  ;;  %v5527_v5 = vld [vmem:[%s5621_s2] ss:$0 sm:$0xff] }
  0xf0   : > { %4450 = vmatpush3.bf16.msra.mxu1 %v4806_v7  ;;  %4323 = vmatprep.subr.bf16.mxu0 %v4807_v8 }
  0xf1   : > { %4451 = vmatprep.subr.bf16.mxu1 %v4808_v9  ;;  %4309 = vmatprep.mubr.bf16.mxu0 %v4822_v57 }
  0xf2   : > { %4437 = vmatprep.mubr.bf16.mxu1 %v4822_v57 }
  0xf3   : > { %4324 = vmatpush3.bf16.msra.mxu0 %v4807_v8 }
  0xf4   : > { %4452 = vmatpush3.bf16.msra.mxu1 %v4808_v9  ;;  %4325 = vmatprep.subr.bf16.mxu0 %v4809_v10 }
  0xf5   : > { %4453 = vmatprep.subr.bf16.mxu1 %v4810_v17 }
  0xf6   : > { %4310 = vmatmul.mubr.bf16.gmra.mrb[24].mxu0 %v4823_v59 }
  0xf7   : > { %4438 = vmatmul.mubr.bf16.gmra.mrb[24].mxu1 %v4823_v59  ;;  %4326 = vmatpush3.bf16.msra.mxu0 %v4809_v10 }
  0xf8   : > { %4454 = vmatpush3.bf16.msra.mxu1 %v4810_v17  ;;  %4327 = vmatprep.subr.bf16.mxu0 %v4811_v18 }
  0xf9   : > { %4455 = vmatprep.subr.bf16.mxu1 %v4812_v20  ;;  %4313 = vmatprep.mubr.bf16.mxu0 %v4824_v0 }
  0xfa   : > { %4441 = vmatprep.mubr.bf16.mxu1 %v4824_v0 }
  0xfb   : > { %4328 = vmatpush3.bf16.msra.mxu0 %v4811_v18 }
  0xfc   : > { %4456 = vmatpush3.bf16.msra.mxu1 %v4812_v20  ;;  %4329 = vmatprep.subr.bf16.mxu0 %v4813_v21 }
  0xfd   : > { %4457 = vmatprep.subr.bf16.mxu1 %v4814_v22 }
  0xfe   : > { %4314 = vmatmul.mubr.bf16.gmra.mrb[28].mxu0 %v5170_v54 }
  0xff   : > { %4442 = vmatmul.mubr.bf16.gmra.mrb[28].mxu1 %v5170_v54  ;;  %4330 = vmatpush3.bf16.msra.mxu0 %v4813_v21 }
 0x100   : > { %4458 = vmatpush3.bf16.msra.mxu1 %v4814_v22  ;;  %4331 = vmatprep.subr.bf16.mxu0 %v4815_v23 }
 0x101   : > { %4459 = vmatprep.subr.bf16.mxu1 %v4816_v25  ;;  %4333 = vmatprep.mubr.bf16.mxu0 %v4954_v39 }
 0x102   : > { %4461 = vmatprep.mubr.bf16.mxu1 %v4954_v39 }
 0x103   : > { %4332 = vmatpush3.bf16.msra.mxu0 %v4815_v23 }
 0x104   : > { %4460 = vmatpush3.bf16.msra.mxu1 %v4816_v25 }
 0x106   : > { %4334 = vmatmul.mubr.bf16.vlgmr.msra.gmra.mrb[16].mxu0 %v4966_v44 }
 0x107   : > { %4462 = vmatmul.mubr.bf16.vlgmr.msra.gmra.mrb[16].mxu1 %v4966_v44  ;;  %4337 = vmatprep.mubr.bf16.mxu0 %v4989_v56 }
 0x108   : > { %4465 = vmatprep.mubr.bf16.mxu1 %v4989_v56 }
 0x10e   : > { %4338 = vmatmul.mubr.bf16.gmra.mrb[20].mxu0 %v5001_v63 }
 0x10f   : > { %4466 = vmatmul.mubr.bf16.gmra.mrb[20].mxu1 %v5001_v63  ;;  %4341 = vmatprep.mubr.bf16.mxu0 %v5013_v6 }
 0x110   : > { %4469 = vmatprep.mubr.bf16.mxu1 %v5013_v6 }
 0x116   : > { %4342 = vmatmul.mubr.bf16.gmra.mrb[24].mxu0 %v5024_v11 }
 0x117   : > { %4470 = vmatmul.mubr.bf16.gmra.mrb[24].mxu1 %v5024_v11  ;;  %4345 = vmatprep.mubr.bf16.mxu0 %v5232_v16 }
 0x118   : > { %4473 = vmatprep.mubr.bf16.mxu1 %v5232_v16 }
 0x11e   : > { %4346 = vmatmul.mubr.bf16.gmra.mrb[28].mxu0 %v5244_v12 }
 0x11f   : > { %4474 = vmatmul.mubr.bf16.gmra.mrb[28].mxu1 %v5244_v12 }
 0x159   : > { %v4079_v39 = vpop.f32.mrb[0].mxu0 }
 0x15a   : > { %v4207_v44 = vpop.f32.mrb[0].mxu1  ;;  %v944_v56 = vpop.f32.mrb[1].mxu0 }
 0x15b   : > { %v1705_v63 = vmax.f32 %v4079_v39, %v4207_v44  ;;  %v1624_v54 = vpop.f32.mrb[1].mxu1  ;;  %v4080_v26 = vpop.f32.mrb[2].mxu0 }
 0x15c   : > { %v1703_v13 = vmax.f32 %v944_v56, %v1624_v54  ;;  %v4208_v6 = vpop.f32.mrb[2].mxu1  ;;  %v947_v27 = vpop.f32.mrb[3].mxu0 }
 0x15d   : > { %v1706_v28 = vmax.f32 %v4080_v26, %v4208_v6  ;;  %v1627_v29 = vpop.f32.mrb[3].mxu1 }
 0x15e   : > { %v1704_v11 = vmax.f32 %v947_v27, %v1627_v29 }
 0x161   : > { %v5452_v30 = vpop.f32.mrb[4].mxu0 }
 0x162   : > { %v5454_v31 = vpop.f32.mrb[4].mxu1  ;;  %v5456_v16 = vpop.f32.mrb[5].mxu0 }
 0x163   : > { %v1709_v12 = vmax.f32 %v5452_v30, %v5454_v31  ;;  %v5460_v32 = vpop.f32.mrb[5].mxu1  ;;  %v5462_v34 = vpop.f32.mrb[6].mxu0 }
 0x164   : > { %v1707_v35 = vmax.f32 %v5456_v16, %v5460_v32  ;;  %v5466_v36 = vpop.f32.mrb[6].mxu1  ;;  %v5468_v37 = vpop.f32.mrb[7].mxu0 }
 0x165   : > { %v1710_v40 = vmax.f32 %v5462_v34, %v5466_v36  ;;  %v5472_v41 = vpop.f32.mrb[7].mxu1 }
 0x166   : > { %v1708_v42 = vmax.f32 %v5468_v37, %v5472_v41 }
 0x169   : > { %v5476_v43 = vpop.f32.mrb[8].mxu0 }
 0x16a   : > { %v5478_v45 = vpop.f32.mrb[8].mxu1  ;;  %v5480_v46 = vpop.f32.mrb[9].mxu0 }
 0x16b   : > { %v1713_v19 = vmax.f32 %v5476_v43, %v5478_v45  ;;  %v5484_v14 = vpop.f32.mrb[9].mxu1  ;;  %v5486_v47 = vpop.f32.mrb[10].mxu0 }
 0x16c   : > { %v1711_v15 = vmax.f32 %v5480_v46, %v5484_v14  ;;  %v5490_v48 = vpop.f32.mrb[10].mxu1  ;;  %v5492_v24 = vpop.f32.mrb[11].mxu0 }
 0x16d   : > { %v1714_v50 = vmax.f32 %v5486_v47, %v5490_v48  ;;  %v5496_v33 = vpop.f32.mrb[11].mxu1 }
 0x16e   : > { %v1712_v51 = vmax.f32 %v5492_v24, %v5496_v33 }
 0x171   : > { %v5500_v38 = vpop.f32.mrb[12].mxu0 }
 0x172   : > { %v5502_v53 = vpop.f32.mrb[12].mxu1  ;;  %v5504_v49 = vpop.f32.mrb[13].mxu0 }
 0x173   : > { %v1717_v55 = vmax.f32 %v5500_v38, %v5502_v53  ;;  %v5508_v52 = vpop.f32.mrb[13].mxu1  ;;  %v5510_v57 = vpop.f32.mrb[14].mxu0 }
 0x174   : > { %v1715_v58 = vmax.f32 %v5504_v49, %v5508_v52  ;;  %v5514_v59 = vpop.f32.mrb[14].mxu1  ;;  %v5516_v60 = vpop.f32.mrb[15].mxu0 }
 0x175   : > { %v1718_v61 = vmax.f32 %v5510_v57, %v5514_v59  ;;  %v5520_v62 = vpop.f32.mrb[15].mxu1 }
 0x176   : > { %v1716_v0 = vmax.f32 %v5516_v60, %v5520_v62 }
 0x1d9   : > { %v4335_v1 = vpop.f32.mrb[16].mxu0 }
 0x1da   : > { %v2401_v2 = vmax.f32 %v1705_v63, %v4335_v1  ;;  %v4463_v3 = vpop.f32.mrb[16].mxu1  ;;  %v2320_v4 = vpop.f32.mrb[17].mxu0 }
 0x1db   : > { %v2399_v7 = vmax.f32 %v1703_v13, %v2320_v4  ;;  %v3016_v8 = vpop.f32.mrb[17].mxu1  ;;  %v4336_v9 = vpop.f32.mrb[18].mxu0 }
 0x1dc   : > { %v3097_v10 = vmax.f32 %v2401_v2, %v4463_v3  ;;  %v2402_v17 = vmax.f32 %v1706_v28, %v4336_v9  ;;  %v4464_v18 = vpop.f32.mrb[18].mxu1  ;;  %v2323_v20 = vpop.f32.mrb[19].mxu0 }
 0x1dd   : > { %v3095_v21 = vmax.f32 %v2399_v7, %v3016_v8  ;;  %v2400_v22 = vmax.f32 %v1704_v11, %v2323_v20  ;;  %v3019_v23 = vpop.f32.mrb[19].mxu1 }
 0x1de   : > { %v3120_v25 = vadd.f32 %v5527_v5, %v3097_v10  ;;  %v3098_v39 = vmax.f32 %v2402_v17, %v4464_v18 }
 0x1df   : > { %v3118_v44 = vadd.f32 %v5527_v5, %v3095_v21  ;;  %v3096_v56 = vmax.f32 %v2400_v22, %v3019_v23 }
 0x1e0   : > { %v3136_v63 = vmax.f32 %v3120_v25, 0.0  ;;  %v3121_v54 = vadd.f32 %v5527_v5, %v3098_v39 }
 0x1e1   : > { %v3134_v26 = vmax.f32 %v3118_v44, 0.0  ;;  %v3119_v13 = vadd.f32 %v5527_v5, %v3096_v56  ;;  %v4339_v6 = vpop.f32.mrb[20].mxu0 }
 0x1e2   : > { %v3695_v27 = vpack.c.bf16 %v3136_v63, %v3136_v63  ;;  %v3137_v28 = vmax.f32 %v3121_v54, 0.0  ;;  %v2405_v29 = vmax.f32 %v1709_v12, %v4339_v6  ;;  %v4467_v11 = vpop.f32.mrb[20].mxu1  ;;  %v2336_v30 = vpop.f32.mrb[21].mxu0 }
 0x1e3   : > { %v3693_v31 = vpack.c.bf16 %v3134_v26, %v3134_v26  ;;  %v3135_v1 = vmax.f32 %v3119_v13, 0.0  ;;  %v2403_v2 = vmax.f32 %v1707_v35, %v2336_v30  ;;  %v3032_v3 = vpop.f32.mrb[21].mxu1  ;;  %v4340_v4 = vpop.f32.mrb[22].mxu0 }
 0x1e4   : > { %3217 = vst.msk [vmem:[%s5536_s9 + $0x8] sm:$0xf] %vm3214_vm1, %v3695_v27  ;;  %v3696_v7 = vpack.c.bf16 %v3137_v28, %v3137_v28  ;;  %v3101_v8 = vmax.f32 %v2405_v29, %v4467_v11  ;;  %v2406_v12 = vmax.f32 %v1710_v40, %v4340_v4  ;;  %v4468_v9 = vpop.f32.mrb[22].mxu1  ;;  %v2339_v10 = vpop.f32.mrb[23].mxu0 }
 0x1e5   : > { %3215 = vst.msk [vmem:[%s5536_s9] sm:$0xf] %vm3214_vm1, %v3693_v31  ;;  %v3694_v17 = vpack.c.bf16 %v3135_v1, %v3135_v1  ;;  %v3099_v18 = vmax.f32 %v2403_v2, %v3032_v3  ;;  %v2404_v16 = vmax.f32 %v1708_v42, %v2339_v10  ;;  %v3035_v32 = vpop.f32.mrb[23].mxu1 }
 0x1e6   : > { %3218 = vst.msk [vmem:[%s5536_s9 + $0xc] sm:$0xf] %vm3214_vm1, %v3696_v7  ;;  %v3124_v35 = vadd.f32 %v5527_v5, %v3101_v8  ;;  %v3102_v20 = vmax.f32 %v2406_v12, %v4468_v9 }
 0x1e7   : > { %3216 = vst.msk [vmem:[%s5536_s9 + $0x4] sm:$0xf] %vm3214_vm1, %v3694_v17  ;;  %v3122_v34 = vadd.f32 %v5527_v5, %v3099_v18  ;;  %v3100_v36 = vmax.f32 %v2404_v16, %v3035_v32 }
 0x1e8   : > { %v3140_v40 = vmax.f32 %v3124_v35, 0.0  ;;  %v3125_v21 = vadd.f32 %v5527_v5, %v3102_v20 }
 0x1e9   : > { %v3138_v22 = vmax.f32 %v3122_v34, 0.0  ;;  %v3123_v23 = vadd.f32 %v5527_v5, %v3100_v36  ;;  %v4343_v37 = vpop.f32.mrb[24].mxu0 }
 0x1ea   : > { %v3699_v41 = vpack.c.bf16 %v3140_v40, %v3140_v40  ;;  %v3141_v42 = vmax.f32 %v3125_v21, 0.0  ;;  %v2409_v25 = vmax.f32 %v1713_v19, %v4343_v37  ;;  %v4471_v39 = vpop.f32.mrb[24].mxu1  ;;  %v2352_v44 = vpop.f32.mrb[25].mxu0 }
 0x1eb   : > { %v3697_v56 = vpack.c.bf16 %v3138_v22, %v3138_v22  ;;  %v3139_v63 = vmax.f32 %v3123_v23, 0.0  ;;  %v2407_v54 = vmax.f32 %v1711_v15, %v2352_v44  ;;  %v3048_v26 = vpop.f32.mrb[25].mxu1  ;;  %v4344_v13 = vpop.f32.mrb[26].mxu0 }
 0x1ec   : > { %3221 = vst.msk [vmem:[%s5536_s9 + $0x18] sm:$0xf] %vm3214_vm1, %v3699_v41  ;;  %v3700_v6 = vpack.c.bf16 %v3141_v42, %v3141_v42  ;;  %v3105_v27 = vmax.f32 %v2409_v25, %v4471_v39  ;;  %v2410_v43 = vmax.f32 %v1714_v50, %v4344_v13  ;;  %v4472_v45 = vpop.f32.mrb[26].mxu1  ;;  %v2355_v19 = vpop.f32.mrb[27].mxu0 }
 0x1ed   : > { %3219 = vst.msk [vmem:[%s5536_s9 + $0x10] sm:$0xf] %vm3214_vm1, %v3697_v56  ;;  %v3698_v28 = vpack.c.bf16 %v3139_v63, %v3139_v63  ;;  %v3103_v29 = vmax.f32 %v2407_v54, %v3048_v26  ;;  %v2408_v46 = vmax.f32 %v1712_v51, %v2355_v19  ;;  %v3051_v14 = vpop.f32.mrb[27].mxu1 }
 0x1ee   : > { %3222 = vst.msk [vmem:[%s5536_s9 + $0x1c] sm:$0xf] %vm3214_vm1, %v3700_v6  ;;  %v3128_v15 = vadd.f32 %v5527_v5, %v3105_v27  ;;  %v3106_v11 = vmax.f32 %v2410_v43, %v4472_v45 }
 0x1ef   : > { %3220 = vst.msk [vmem:[%s5536_s9 + $0x14] sm:$0xf] %vm3214_vm1, %v3698_v28  ;;  %v3126_v47 = vadd.f32 %v5527_v5, %v3103_v29  ;;  %v3104_v48 = vmax.f32 %v2408_v46, %v3051_v14 }
 0x1f0   : > { %v3144_v50 = vmax.f32 %v3128_v15, 0.0  ;;  %v3129_v30 = vadd.f32 %v5527_v5, %v3106_v11 }
 0x1f1   : > { %v3142_v31 = vmax.f32 %v3126_v47, 0.0  ;;  %v3127_v1 = vadd.f32 %v5527_v5, %v3104_v48  ;;  %v4347_v24 = vpop.f32.mrb[28].mxu0 }
 0x1f2   : > { %v3703_v33 = vpack.c.bf16 %v3144_v50, %v3144_v50  ;;  %v3145_v51 = vmax.f32 %v3129_v30, 0.0  ;;  %v2413_v2 = vmax.f32 %v1717_v55, %v4347_v24  ;;  %v4475_v3 = vpop.f32.mrb[28].mxu1  ;;  %v2368_v4 = vpop.f32.mrb[29].mxu0 }
 0x1f3   : > { %v3701_v7 = vpack.c.bf16 %v3142_v31, %v3142_v31  ;;  %v3143_v8 = vmax.f32 %v3127_v1, 0.0  ;;  %v2411_v12 = vmax.f32 %v1715_v58, %v2368_v4  ;;  %v3064_v9 = vpop.f32.mrb[29].mxu1  ;;  %v4348_v10 = vpop.f32.mrb[30].mxu0 }
 0x1f4   : > { %3225 = vst.msk [vmem:[%s5536_s9 + $0x28] sm:$0xf] %vm3214_vm1, %v3703_v33  ;;  %v3704_v17 = vpack.c.bf16 %v3145_v51, %v3145_v51  ;;  %v3109_v18 = vmax.f32 %v2413_v2, %v4475_v3  ;;  %v2414_v38 = vmax.f32 %v1718_v61, %v4348_v10  ;;  %v4476_v53 = vpop.f32.mrb[30].mxu1  ;;  %v2371_v55 = vpop.f32.mrb[31].mxu0 }
 0x1f5   : > { %3223 = vst.msk [vmem:[%s5536_s9 + $0x20] sm:$0xf] %vm3214_vm1, %v3701_v7  ;;  %v3702_v16 = vpack.c.bf16 %v3143_v8, %v3143_v8  ;;  %v3107_v32 = vmax.f32 %v2411_v12, %v3064_v9  ;;  %v2412_v49 = vmax.f32 %v1716_v0, %v2371_v55  ;;  %v3067_v52 = vpop.f32.mrb[31].mxu1 }
 0x1f6   : > { %3226 = vst.msk [vmem:[%s5536_s9 + $0x2c] sm:$0xf] %vm3214_vm1, %v3704_v17  ;;  %v3132_v58 = vadd.f32 %v5527_v5, %v3109_v18  ;;  %v3110_v35 = vmax.f32 %v2414_v38, %v4476_v53 }
 0x1f7   : > { %3224 = vst.msk [vmem:[%s5536_s9 + $0x24] sm:$0xf] %vm3214_vm1, %v3702_v16  ;;  %v3130_v57 = vadd.f32 %v5527_v5, %v3107_v32  ;;  %v3108_v59 = vmax.f32 %v2412_v49, %v3067_v52 }
 0x1f8   : > { %v3148_v61 = vmax.f32 %v3132_v58, 0.0  ;;  %v3133_v20 = vadd.f32 %v5527_v5, %v3110_v35 }
 0x1f9   : > { %v3146_v60 = vmax.f32 %v3130_v57, 0.0  ;;  %v3131_v62 = vadd.f32 %v5527_v5, %v3108_v59 }
 0x1fa   : > { %v3707_v0 = vpack.c.bf16 %v3148_v61, %v3148_v61  ;;  %v3149_v34 = vmax.f32 %v3133_v20, 0.0 }
 0x1fb   : > { %v3705_v36 = vpack.c.bf16 %v3146_v60, %v3146_v60  ;;  %v3147_v40 = vmax.f32 %v3131_v62, 0.0 }
 0x1fc   : > { %3229 = vst.msk [vmem:[%s5536_s9 + $0x38] sm:$0xf] %vm3214_vm1, %v3707_v0  ;;  %v3708_v21 = vpack.c.bf16 %v3149_v34, %v3149_v34 }
 0x1fd   : > { %3227 = vst.msk [vmem:[%s5536_s9 + $0x30] sm:$0xf] %vm3214_vm1, %v3705_v36  ;;  %v3706_v22 = vpack.c.bf16 %v3147_v40, %v3147_v40 }
 0x1fe   : > { %3230 = vst.msk [vmem:[%s5536_s9 + $0x3c] sm:$0xf] %vm3214_vm1, %v3708_v21 }
 0x1ff   : > { %3228 = vst.msk [vmem:[%s5536_s9 + $0x34] sm:$0xf] %vm3214_vm1, %v3706_v22 }
 0x200 PF: > { %s13_s12 = sadd.s32 1, %s4831_s12  }
 0x201   : > { %p10_p4 = scmp.ge.s32.totalorder %s13_s12, 4  }
 0x203   :  { %12 = sbr.rel (!%p10_p4) target bundleno = 1 (0x1), region = 77 }

// kernel: custom_gesture_cnn_forward.6
= control target key start
LH: loop header
LB: loop body
LE: loop exit
PB: predicated region body
PF: predicated region fallthrough
CT: control target
= control target key end

     0   :  { %s4846_s12 = smov 0   ;;  %s5837_s0 = inlined_call_operand.vmem [shape: bf16[2,48,256], index: 0, kind: input, shape index: {}]   ;;  %s5838_s1 = inlined_call_operand.vmem [shape: bf16[16,256,128], index: 1, kind: input, shape index: {}]   ;;  %s5839_s2 = inlined_call_operand.vmem [shape: f32[1,128], index: 2, kind: input, shape index: {}]   ;;  %s5840_s3 = inlined_call_operand.vmem [shape: bf16[2,32,128], index: 3, kind: output, shape index: {}]  }
   0x1 LB: > { %s3310_s13 = sadd.s32 4294967295, %s4824_s12   ;;  %p3314_p0 = scmp.ge.s32.totalorder %s4824_s12, 1  ;;  %s4824_s12 = sphi %s4846_s12, %s13_s12  }
   0x2   : > { %p137_p1 = scmp.lt.s32.totalorder %s4824_s12, 3 }
   0x4   : > { %p138_p2 = pnand %p3314_p0, %p137_p1 }
   0x5   : > { %v4550_v0 = vld [vmem:[%s5838_s1 + $0xc0] sm:$0xff] (!%p138_p2)   ;;  %v4554_v4 = vld [vmem:[%s5838_s1 + $0xc8] sm:$0xff] (!%p138_p2)   ;;  %v4558_v8 = vld [vmem:[%s5838_s1 + $0xd0] sm:$0xff] (!%p138_p2)   ;;  %p161_p3 = scmp.lt.s32.totalorder (!%p138_p2), %s3310_s13, 1  ;;  %vm269_vm0 = vsmask.f32 (!%p138_p2), 7424 }
   0x6   : > { %141 = sbr.rel (%p138_p2) target bundleno = 501 (0x1f5), region = 32  ;;  %v4551_v1 = vld [vmem:[%s5838_s1 + $0x40] sm:$0xff] (!%p138_p2)   ;;  %4093 = vmatprep.subr.bf16.mxu0 (!%p138_p2), %v4550_v0  ;;  %v4555_v5 = vld [vmem:[%s5838_s1 + $0x48] sm:$0xff] (!%p138_p2)   ;;  %v4559_v9 = vld [vmem:[%s5838_s1 + $0x50] sm:$0xff] (!%p138_p2)  }
   0x7   : > { %v4552_v2 = vld [vmem:[%s5838_s1 + $0x80] sm:$0xff] (!%p138_p2)   ;;  %4121 = vmatprep.subr.bf16.mxu1 (!%p138_p2), %v4551_v1  ;;  %v4556_v6 = vld [vmem:[%s5838_s1 + $0x88] sm:$0xff] (!%p138_p2)   ;;  %v4560_v10 = vld [vmem:[%s5838_s1 + $0x90] sm:$0xff] (!%p138_p2)  }
   0x8   : > { %v4553_v3 = vld [vmem:[%s5838_s1] sm:$0xff] (!%p138_p2)   ;;  %4094 = vmatpush3.bf16.msra.mxu0 (!%p138_p2), %v4552_v2  ;;  %v4557_v7 = vld [vmem:[%s5838_s1 + $0x8] sm:$0xff] (!%p138_p2)   ;;  %v4561_v11 = vld [vmem:[%s5838_s1 + $0x10] sm:$0xff] (!%p138_p2)  }
   0x9   : > { %4122 = vmatpush3.bf16.msra.mxu1 (!%p138_p2), %v4553_v3  ;;  %4095 = vmatprep.subr.bf16.mxu0 (!%p138_p2), %v4554_v4  ;;  %v4562_v12 = vld [vmem:[%s5838_s1 + $0xd8] sm:$0xff] (!%p138_p2)   ;;  %v4566_v16 = vld [vmem:[%s5838_s1 + $0xe0] sm:$0xff] (!%p138_p2)   ;;  %v4570_v20 = vld [vmem:[%s5838_s1 + $0xe8] sm:$0xff] (!%p138_p2)  }
   0xa   : > { %4123 = vmatprep.subr.bf16.mxu1 (!%p138_p2), %v4555_v5  ;;  %v4563_v13 = vld [vmem:[%s5838_s1 + $0x58] sm:$0xff] (!%p138_p2)   ;;  %v4567_v17 = vld [vmem:[%s5838_s1 + $0x60] sm:$0xff] (!%p138_p2)   ;;  %v4571_v21 = vld [vmem:[%s5838_s1 + $0x68] sm:$0xff] (!%p138_p2)  }
   0xb   : > { %v4564_v14 = vld [vmem:[%s5838_s1 + $0x98] sm:$0xff] (!%p138_p2)   ;;  %v4568_v18 = vld [vmem:[%s5838_s1 + $0xa0] sm:$0xff] (!%p138_p2)   ;;  %v4572_v22 = vld [vmem:[%s5838_s1 + $0xa8] sm:$0xff] (!%p138_p2)  }
   0xc   : > { %4096 = vmatpush3.bf16.msra.mxu0 (!%p138_p2), %v4556_v6  ;;  %v4565_v15 = vld [vmem:[%s5838_s1 + $0x18] sm:$0xff] (!%p138_p2)   ;;  %v4569_v19 = vld [vmem:[%s5838_s1 + $0x20] sm:$0xff] (!%p138_p2)   ;;  %v4573_v23 = vld [vmem:[%s5838_s1 + $0x28] sm:$0xff] (!%p138_p2)  }
   0xd   : > { %4124 = vmatpush3.bf16.msra.mxu1 %v4557_v7  ;;  %4097 = vmatprep.subr.bf16.mxu0 %v4558_v8  ;;  %s5842_s13 = smov (!%p161_p3, %s3310_s13), 1  ;;  %v4574_v24 = vld [vmem:[%s5838_s1 + $0xf0] sm:$0xff]   ;;  %v4578_v28 = vld [vmem:[%s5838_s1 + $0xf8] sm:$0xff]   ;;  %v4586_v40 = vld [vmem:[%s5838_s1 + $0x140] sm:$0xff]  }
   0xe   : > { %4125 = vmatprep.subr.bf16.mxu1 %v4559_v9  ;;  %v4575_v25 = vld [vmem:[%s5838_s1 + $0x70] sm:$0xff]   ;;  %s4541_s16 = smul.u32 48, %s5842_s13  ;;  %v4579_v29 = vld [vmem:[%s5838_s1 + $0x78] sm:$0xff]   ;;  %v4587_v45 = vld [vmem:[%s5838_s1 + $0x1c0] sm:$0xff]   ;;  %s4077_s8 = sshll.u32 %s5842_s13, 4 }
   0xf   : > { %v4576_v26 = vld [vmem:[%s5838_s1 + $0xb0] sm:$0xff]   ;;  %v4580_v30 = vld [vmem:[%s5838_s1 + $0xb8] sm:$0xff]   ;;  %v4588_v52 = vld [vmem:[%s5838_s1 + $0x100] sm:$0xff]   ;;  %s170_s11 = scalar_lea.vmem %s5840_s3, %s4077_s8 }
  0x10   : > { %4098 = vmatpush3.bf16.msra.mxu0 %v4560_v10  ;;  %v4577_v27 = vld [vmem:[%s5838_s1 + $0x30] sm:$0xff]   ;;  %s4954_s27 = scalar_lea.vmem %s5837_s0, %s4541_s16  ;;  %v4581_v31 = vld [vmem:[%s5838_s1 + $0x38] sm:$0xff]   ;;  %v4589_v53 = vld [vmem:[%s5838_s1 + $0x180] sm:$0xff]  }
  0x11   : > { %4126 = vmatpush3.bf16.msra.mxu1 %v4561_v11  ;;  %4099 = vmatprep.subr.bf16.mxu0 %v4562_v12  ;;  %v172_v32 = vld [vmem:[%s4954_s27] sm:$0xff]  ;;  %v4964_v33 = vld [vmem:[%s4954_s27 + $0x8] sm:$0xff]  ;;  %v4967_v34 = vld [vmem:[%s4954_s27 + $0x10] sm:$0xff] }
  0x12   : > { %4127 = vmatprep.subr.bf16.mxu1 %v4563_v13  ;;  %v4970_v35 = vld [vmem:[%s4954_s27 + $0x18] sm:$0xff]  ;;  %v4973_v36 = vcombine.high %v172_v32, %v4964_v33  ;;  %v4976_v37 = vcombine.low %v172_v32, %v4964_v33  ;;  %v4591_v56 = vld [vmem:[%s5838_s1 + $0x1c8] sm:$0xff]   ;;  %v4595_v62 = vld [vmem:[%s5838_s1 + $0x1d0] sm:$0xff]   ;;  %v5060_v8 = vcombine.high %v4964_v33, %v4967_v34  ;;  %v5068_v11 = vcombine.low %v4964_v33, %v4967_v34 }
  0x13   : > { %v4980_v38 = vcombine.high %v4967_v34, %v4970_v35  ;;  %v4984_v39 = vcombine.low %v4967_v34, %v4970_v35  ;;  %v4590_v59 = vld [vmem:[%s5838_s1 + $0x148] sm:$0xff]   ;;  %v4594_v63 = vld [vmem:[%s5838_s1 + $0x150] sm:$0xff]   ;;  %v4599_v2 = vld [vmem:[%s5838_s1 + $0x1d8] sm:$0xff]  }
  0x14   : > { %4100 = vmatpush3.bf16.msra.mxu0 %v4564_v14  ;;  %v283_v41 = vshrl.u32 %v4973_v36, 16  ;;  %v285_v42 = vshll.u32 %v4973_v36, 16  ;;  %591 = vmatprep.mubr.bf16.mxu1 %v4973_v36  ;;  %v271_v43 = vshrl.u32 %v4976_v37, 16  ;;  %v273_v44 = vshll.u32 %v4976_v37, 16  ;;  %v4593_v60 = vld [vmem:[%s5838_s1 + $0x188] sm:$0xff]   ;;  %v4597_v0 = vld [vmem:[%s5838_s1 + $0x190] sm:$0xff]  }
  0x15   : > { %4128 = vmatpush3.bf16.msra.mxu1 %v4565_v15  ;;  %4101 = vmatprep.subr.bf16.mxu0 %v4566_v16  ;;  %v290_v46 = vshll.u32 %v4980_v38, 16  ;;  %v278_v47 = vshll.u32 %v4984_v39, 16  ;;  %v4592_v61 = vld [vmem:[%s5838_s1 + $0x108] sm:$0xff]   ;;  %v4596_v1 = vld [vmem:[%s5838_s1 + $0x110] sm:$0xff]   ;;  %v4598_v3 = vld [vmem:[%s5838_s1 + $0x158] sm:$0xff]   ;;  %v302_v10 = vshrl.u32 %v4980_v38, 16 }
  0x16   : > { %4129 = vmatprep.subr.bf16.mxu1 %v4567_v17  ;;  %v287_v48 = vrot.slane %v285_v42, 1  ;;  %v275_v49 = vrot.slane %v273_v44, 1  ;;  %v4601_v4 = vld [vmem:[%s5838_s1 + $0x198] sm:$0xff]   ;;  %v4603_v6 = vld [vmem:[%s5838_s1 + $0x1e0] sm:$0xff]   ;;  %v294_v13 = vshrl.u32 %v4984_v39, 16  ;;  %v4607_v14 = vld [vmem:[%s5838_s1 + $0x1e8] sm:$0xff]  }
  0x17   : > { %v292_v50 = vrot.slane %v290_v46, 1  ;;  %v280_v51 = vrot.slane %v278_v47, 1  ;;  %v4600_v5 = vld [vmem:[%s5838_s1 + $0x118] sm:$0xff]   ;;  %v4602_v7 = vld [vmem:[%s5838_s1 + $0x160] sm:$0xff]   ;;  %v868_v16 = vshrl.u32 %v5060_v8, 16  ;;  %v4606_v17 = vld [vmem:[%s5838_s1 + $0x168] sm:$0xff]  }
  0x18   : > { %4102 = vmatpush3.bf16.msra.mxu0 %v4568_v18  ;;  %v288_v54 = vor.u32 %v287_v48, %v283_v41  ;;  %v276_v55 = vor.u32 %v275_v49, %v271_v43  ;;  %v4605_v9 = vld [vmem:[%s5838_s1 + $0x1a0] sm:$0xff]   ;;  %v4615_v32 = vld [vmem:[%s5838_s1 + $0x1b0] sm:$0xff]   ;;  %v856_v41 = vshrl.u32 %v5068_v11, 16  ;;  %v4617_v42 = vld [vmem:[%s5838_s1 + $0x1f8] sm:$0xff]  }
  0x19   : > { %4130 = vmatpush3.bf16.msra.mxu1 %v4569_v19  ;;  %4103 = vmatprep.subr.bf16.mxu0 %v4570_v20  ;;  %v4604_v12 = vld [vmem:[%s5838_s1 + $0x120] sm:$0xff]   ;;  %v870_v20 = vshll.u32 %v5060_v8, 16  ;;  %v4616_v44 = vld [vmem:[%s5838_s1 + $0x178] sm:$0xff]  }
  0x1a   : > { %4131 = vmatprep.subr.bf16.mxu1 %v4571_v21  ;;  %v5011_v57 = vsel %vm269_vm0, %v288_v54, %v292_v50  ;;  %v5014_v58 = vsel %vm269_vm0, %v276_v55, %v280_v51  ;;  %v176_v15 = vld [vmem:[%s4954_s27 + $0x20] sm:$0x11]  ;;  %v4610_v21 = vld [vmem:[%s5838_s1 + $0x1a8] sm:$0xff]   ;;  %v4618_v46 = vld [vmem:[%s5838_s1 + $0x138] sm:$0xff]  }
  0x1b   : > { %442 = vmatprep.mubr.bf16.mxu0 %v5011_v57  ;;  %v3355_v18 = vcombine.high %v176_v15, %v176_v15  ;;  %v3354_v19 = vcombine.low %v176_v15, %v176_v15  ;;  %v872_v43 = vrot.slane %v870_v20, 1  ;;  %v4619_v47 = vld [vmem:[%s5838_s1 + $0x1b8] sm:$0xff]   ;;  %v181_v48 = vld [vmem:[%s4954_s27 + $0x20] sm:$0xff] }
  0x1c   : > { %4104 = vmatpush3.bf16.msra.mxu0 %v4572_v22  ;;  %v858_v22 = vshll.u32 %v5068_v11, 16  ;;  %v5126_v49 = vcombine.low %v4970_v35, %v181_v48  ;;  %v4639_v20 = vld [vmem:[%s5838_s1 + $0x258] sm:$0xff]  }
  0x1d   : > { %4132 = vmatpush3.bf16.msra.mxu1 %v4573_v23  ;;  %4105 = vmatprep.subr.bf16.mxu0 %v4574_v24  ;;  %v304_v23 = vor.u32 %v302_v10, %v292_v50  ;;  %v306_v24 = vshll.u32 %v3355_v18, 16  ;;  %v5129_v50 = vcombine.high %v4970_v35, %v181_v48  ;;  %v4626_v35 = vld [vmem:[%s5838_s1 + $0x280] sm:$0xff]   ;;  %v4656_v48 = vld [vmem:[%s5838_s1 + $0x2b8] sm:$0xff]  }
  0x1e   : > { %4133 = vmatprep.subr.bf16.mxu1 %v4575_v25  ;;  %v4609_v25 = vld [vmem:[%s5838_s1 + $0x128] sm:$0xff]  }
  0x1f   : > { %v875_v54 = vshll.u32 %v5129_v50, 16 }
  0x20   : > { %4106 = vmatpush3.bf16.msra.mxu0 %v4576_v26  ;;  %v296_v26 = vor.u32 %v294_v13, %v280_v51  ;;  %v4624_v51 = vld [vmem:[%s5838_s1 + $0x2c0] sm:$0xff]  }
  0x21   : > { %4134 = vmatpush3.bf16.msra.mxu1 %v4577_v27  ;;  %4107 = vmatprep.subr.bf16.mxu0 %v4578_v28  ;;  %v298_v27 = vshll.u32 %v3354_v19, 16  ;;  %v4613_v28 = vld [vmem:[%s5838_s1 + $0x1f0] sm:$0xff]   ;;  %v4638_v19 = vld [vmem:[%s5838_s1 + $0x2d8] sm:$0xff]  }
  0x22   : > { %4135 = vmatprep.subr.bf16.mxu1 %v4579_v29  ;;  %v308_v29 = vrot.slane %v306_v24, 1  ;;  %v4641_v24 = vld [vmem:[%s5838_s1 + $0x218] sm:$0xff]  }
  0x24   : > { %4108 = vmatpush3.bf16.msra.mxu0 %v4580_v30  ;;  %v300_v30 = vrot.slane %v298_v27, 1  ;;  %v5100_v33 = vsel %vm269_vm0, %v304_v23, %v308_v29  ;;  %v4640_v23 = vld [vmem:[%s5838_s1 + $0x298] sm:$0xff]   ;;  %v4642_v27 = vld [vmem:[%s5838_s1 + $0x2e0] sm:$0xff]  }
  0x25   : > { %4136 = vmatpush3.bf16.msra.mxu1 %v4581_v31  ;;  %4149 = vmatprep.subr.bf16.mxu0 %v4586_v40  ;;  %v4612_v31 = vld [vmem:[%s5838_s1 + $0x170] sm:$0xff]   ;;  %v4644_v29 = vld [vmem:[%s5838_s1 + $0x2a0] sm:$0xff]  }
  0x26   : > { %4177 = vmatprep.subr.bf16.mxu1 %v4587_v45  ;;  %v5103_v34 = vsel %vm269_vm0, %v296_v26, %v300_v30  ;;  %v4614_v40 = vld [vmem:[%s5838_s1 + $0x130] sm:$0xff]   ;;  %v860_v45 = vrot.slane %v858_v22, 1  ;;  %v4645_v30 = vld [vmem:[%s5838_s1 + $0x220] sm:$0xff]  }
  0x27   : > { %443 = vmatmul.mubr.bf16.vlgmr.msra.gmra.mrb[0].mxu0 %v5014_v58 }
  0x28   : > { %592 = vmatmul.mubr.bf16.vlgmr.msra.gmra.mrb[0].mxu1 %v4976_v37  ;;  %4150 = vmatpush3.bf16.msra.mxu0 %v4588_v52  ;;  %v4625_v52 = vld [vmem:[%s5838_s1 + $0x240] sm:$0xff]   ;;  %v861_v55 = vor.u32 %v860_v45, %v856_v41  ;;  %v4649_v41 = vld [vmem:[%s5838_s1 + $0x228] sm:$0xff]   ;;  %v4653_v45 = vld [vmem:[%s5838_s1 + $0x230] sm:$0xff]  }
  0x29   : > { %599 = vmatprep.mubr.bf16.mxu1 %v4980_v38  ;;  %4178 = vmatpush3.bf16.msra.mxu1 %v4589_v53  ;;  %v873_v53 = vor.u32 %v872_v43, %v868_v16  ;;  %v4651_v43 = vld [vmem:[%s5838_s1 + $0x270] sm:$0xff]  }
  0x2a   : > { %4179 = vmatprep.subr.bf16.mxu1 %v4591_v56  ;;  %4151 = vmatprep.subr.bf16.mxu0 %v4590_v59  ;;  %v863_v56 = vshll.u32 %v5126_v49, 16  ;;  %v877_v59 = vrot.slane %v875_v54, 1  ;;  %v4660_v54 = vld [vmem:[%s5838_s1 + $0x300] sm:$0xff]  }
  0x2b   : > { %450 = vmatprep.mubr.bf16.mxu0 %v5100_v33 }
  0x2c   : > { %4152 = vmatpush3.bf16.msra.mxu0 %v4592_v61  ;;  %v4627_v61 = vld [vmem:[%s5838_s1 + $0x200] sm:$0xff]  }
  0x2d   : > { %4180 = vmatpush3.bf16.msra.mxu1 %v4593_v60  ;;  %4153 = vmatprep.subr.bf16.mxu0 %v4594_v63  ;;  %v865_v60 = vrot.slane %v863_v56, 1  ;;  %v5149_v63 = vsel %vm269_vm0, %v873_v53, %v877_v59  ;;  %v4659_v53 = vld [vmem:[%s5838_s1 + $0x3c0] sm:$0xff]   ;;  %v4662_v56 = vld [vmem:[%s5838_s1 + $0x348] sm:$0xff]  }
  0x2e   : > { %4181 = vmatprep.subr.bf16.mxu1 %v4595_v62  ;;  %v4628_v62 = vld [vmem:[%s5838_s1 + $0x2c8] sm:$0xff]  }
  0x2f   : > { %451 = vmatmul.mubr.bf16.gmra.mrb[4].mxu0 %v5103_v34 }
  0x30   : > { %600 = vmatmul.mubr.bf16.gmra.mrb[4].mxu1 %v4984_v39  ;;  %4154 = vmatpush3.bf16.msra.mxu0 %v4596_v1  ;;  %v4629_v1 = vld [vmem:[%s5838_s1 + $0x248] sm:$0xff]  }
  0x31   : > { %4182 = vmatpush3.bf16.msra.mxu1 %v4597_v0  ;;  %4155 = vmatprep.subr.bf16.mxu0 %v4598_v3  ;;  %v5152_v0 = vsel %vm269_vm0, %v861_v55, %v865_v60  ;;  %v4631_v3 = vld [vmem:[%s5838_s1 + $0x208] sm:$0xff]   ;;  %v4661_v55 = vld [vmem:[%s5838_s1 + $0x380] sm:$0xff]  }
  0x32   : > { %4183 = vmatprep.subr.bf16.mxu1 %v4599_v2  ;;  %780 = vmatprep.mubr.bf16.mxu0 %v5060_v8  ;;  %v4630_v2 = vld [vmem:[%s5838_s1 + $0x288] sm:$0xff]  }
  0x33   : > { %1027 = vmatprep.mubr.bf16.mxu1 %v5149_v63 }
  0x34   : > { %4156 = vmatpush3.bf16.msra.mxu0 %v4600_v5  ;;  %v4632_v5 = vld [vmem:[%s5838_s1 + $0x2d0] sm:$0xff]  }
  0x35   : > { %4184 = vmatpush3.bf16.msra.mxu1 %v4601_v4  ;;  %4157 = vmatprep.subr.bf16.mxu0 %v4602_v7  ;;  %v887_v4 = vshrl.u32 %v5129_v50, 16  ;;  %v4633_v7 = vld [vmem:[%s5838_s1 + $0x250] sm:$0xff]  }
  0x36   : > { %4185 = vmatprep.subr.bf16.mxu1 %v4603_v6  ;;  %v879_v6 = vshrl.u32 %v5126_v49, 16 }
  0x37   : > { %v889_v15 = vor.u32 %v887_v4, %v877_v59  ;;  %v4664_v59 = vld [vmem:[%s5838_s1 + $0x308] sm:$0xff]   ;;  %v4671_v4 = vld [vmem:[%s5838_s1 + $0x3d8] sm:$0xff]  }
  0x38   : > { %4158 = vmatpush3.bf16.msra.mxu0 %v4604_v12  ;;  %v4635_v12 = vld [vmem:[%s5838_s1 + $0x290] sm:$0xff]  }
  0x39   : > { %4186 = vmatpush3.bf16.msra.mxu1 %v4605_v9  ;;  %4159 = vmatprep.subr.bf16.mxu0 %v4606_v17  ;;  %v182_v9 = vld [vmem:[%s4954_s27 + $0x28] sm:$0x11]  ;;  %v881_v17 = vor.u32 %v879_v6, %v865_v60  ;;  %v4673_v6 = vld [vmem:[%s5838_s1 + $0x398] sm:$0xff]  }
  0x3a   : > { %4187 = vmatprep.subr.bf16.mxu1 %v4607_v14  ;;  %v3477_v10 = vcombine.high %v182_v9, %v182_v9  ;;  %v3476_v13 = vcombine.low %v182_v9, %v182_v9  ;;  %v4636_v14 = vld [vmem:[%s5838_s1 + $0x210] sm:$0xff]   ;;  %v4665_v60 = vld [vmem:[%s5838_s1 + $0x388] sm:$0xff]   ;;  %v4675_v9 = vld [vmem:[%s5838_s1 + $0x3e0] sm:$0xff]  }
  0x3c   : > { %4160 = vmatpush3.bf16.msra.mxu0 %v4609_v25  ;;  %v891_v16 = vshll.u32 %v3477_v10, 16  ;;  %v883_v18 = vshll.u32 %v3476_v13, 16  ;;  %v4676_v10 = vld [vmem:[%s5838_s1 + $0x320] sm:$0xff]   ;;  %v4678_v13 = vld [vmem:[%s5838_s1 + $0x368] sm:$0xff]  }
  0x3d   : > { %4188 = vmatpush3.bf16.msra.mxu1 %v4610_v21  ;;  %4161 = vmatprep.subr.bf16.mxu0 %v4612_v31  ;;  %v4646_v31 = vld [vmem:[%s5838_s1 + $0x2e8] sm:$0xff]  }
  0x3e   : > { %4189 = vmatprep.subr.bf16.mxu1 %v4613_v28  ;;  %v893_v21 = vrot.slane %v891_v16, 1  ;;  %v885_v22 = vrot.slane %v883_v18, 1  ;;  %v4643_v28 = vld [vmem:[%s5838_s1 + $0x260] sm:$0xff]   ;;  %v4681_v16 = vld [vmem:[%s5838_s1 + $0x3a8] sm:$0xff]   ;;  %v4683_v18 = vld [vmem:[%s5838_s1 + $0x3f0] sm:$0xff]  }
  0x40   : > { %4162 = vmatpush3.bf16.msra.mxu0 %v4614_v40  ;;  %v5196_v25 = vsel %vm269_vm0, %v889_v15, %v893_v21  ;;  %v5199_v26 = vsel %vm269_vm0, %v881_v17, %v885_v22  ;;  %v4648_v40 = vld [vmem:[%s5838_s1 + $0x2a8] sm:$0xff]   ;;  %v4682_v17 = vld [vmem:[%s5838_s1 + $0x370] sm:$0xff]   ;;  %v4686_v21 = vld [vmem:[%s5838_s1 + $0x378] sm:$0xff]  }
  0x41   : > { %4190 = vmatpush3.bf16.msra.mxu1 %v4615_v32  ;;  %4163 = vmatprep.subr.bf16.mxu0 %v4616_v44  ;;  %v4647_v32 = vld [vmem:[%s5838_s1 + $0x268] sm:$0xff]   ;;  %v4652_v44 = vld [vmem:[%s5838_s1 + $0x2b0] sm:$0xff]   ;;  %v4687_v22 = vld [vmem:[%s5838_s1 + $0x3f8] sm:$0xff]  }
  0x42   : > { %4191 = vmatprep.subr.bf16.mxu1 %v4617_v42  ;;  %v4650_v42 = vld [vmem:[%s5838_s1 + $0x2f0] sm:$0xff]   ;;  %v4680_v15 = vld [vmem:[%s5838_s1 + $0x328] sm:$0xff]  }
  0x44   : > { %4164 = vmatpush3.bf16.msra.mxu0 %v4618_v46  ;;  %v4654_v46 = vld [vmem:[%s5838_s1 + $0x2f8] sm:$0xff]  }
  0x45   : > { %4192 = vmatpush3.bf16.msra.mxu1 %v4619_v47  ;;  %4205 = vmatprep.subr.bf16.mxu0 %v4624_v51  ;;  %v4655_v47 = vld [vmem:[%s5838_s1 + $0x278] sm:$0xff]  }
  0x46   : > { %4233 = vmatprep.subr.bf16.mxu1 %v4625_v52  ;;  %v4657_v51 = vld [vmem:[%s5838_s1 + $0x238] sm:$0xff]   ;;  %v4658_v52 = vld [vmem:[%s5838_s1 + $0x340] sm:$0xff]  }
  0x47   : > { %781 = vmatmul.mubr.bf16.vlgmr.msra.gmra.mrb[8].mxu0 %v5068_v11 }
  0x48   : > { %1028 = vmatmul.mubr.bf16.vlgmr.msra.gmra.mrb[8].mxu1 %v5152_v0  ;;  %4206 = vmatpush3.bf16.msra.mxu0 %v4626_v35  ;;  %v4663_v35 = vld [vmem:[%s5838_s1 + $0x3c8] sm:$0xff]  }
  0x49   : > { %4234 = vmatpush3.bf16.msra.mxu1 %v4627_v61  ;;  %4207 = vmatprep.subr.bf16.mxu0 %v4628_v62  ;;  %v4666_v61 = vld [vmem:[%s5838_s1 + $0x350] sm:$0xff]  }
  0x4a   : > { %4235 = vmatprep.subr.bf16.mxu1 %v4629_v1  ;;  %788 = vmatprep.mubr.bf16.mxu0 %v5129_v50  ;;  %v4667_v62 = vld [vmem:[%s5838_s1 + $0x3d0] sm:$0xff]  }
  0x4b   : > { %1035 = vmatprep.mubr.bf16.mxu1 %v5196_v25  ;;  %v4668_v1 = vld [vmem:[%s5838_s1 + $0x310] sm:$0xff]  }
  0x4c   : > { %4208 = vmatpush3.bf16.msra.mxu0 %v4630_v2  ;;  %v4669_v2 = vld [vmem:[%s5838_s1 + $0x390] sm:$0xff]  }
  0x4d   : > { %4236 = vmatpush3.bf16.msra.mxu1 %v4631_v3  ;;  %4209 = vmatprep.subr.bf16.mxu0 %v4632_v5  ;;  %v4670_v3 = vld [vmem:[%s5838_s1 + $0x358] sm:$0xff]  }
  0x4e   : > { %4237 = vmatprep.subr.bf16.mxu1 %v4633_v7  ;;  %v4672_v5 = vld [vmem:[%s5838_s1 + $0x318] sm:$0xff]   ;;  %v4674_v7 = vld [vmem:[%s5838_s1 + $0x360] sm:$0xff]  }
  0x4f   : > { %789 = vmatmul.mubr.bf16.gmra.mrb[12].mxu0 %v5126_v49 }
  0x50   : > { %4210 = vmatpush3.bf16.msra.mxu0 %v4635_v12  ;;  %1036 = vmatmul.mubr.bf16.gmra.mrb[12].mxu1 %v5199_v26  ;;  %v4677_v12 = vld [vmem:[%s5838_s1 + $0x3a0] sm:$0xff]  }
  0x51   : > { %4238 = vmatpush3.bf16.msra.mxu1 %v4636_v14  ;;  %4211 = vmatprep.subr.bf16.mxu0 %v4638_v19  ;;  %v4679_v14 = vld [vmem:[%s5838_s1 + $0x3e8] sm:$0xff]   ;;  %v4684_v19 = vld [vmem:[%s5838_s1 + $0x330] sm:$0xff]  }
  0x52   : > { %4239 = vmatprep.subr.bf16.mxu1 %v4639_v20  ;;  %1242 = vmatprep.mubr.bf16.mxu0 %v5011_v57  ;;  %v4685_v20 = vld [vmem:[%s5838_s1 + $0x3b0] sm:$0xff]  }
  0x53   : > { %1387 = vmatprep.mubr.bf16.mxu1 %v4973_v36 }
  0x54   : > { %4212 = vmatpush3.bf16.msra.mxu0 %v4640_v23  ;;  %v4688_v23 = vld [vmem:[%s5838_s1 + $0x338] sm:$0xff]  }
  0x55   : > { %4240 = vmatpush3.bf16.msra.mxu1 %v4641_v24  ;;  %4213 = vmatprep.subr.bf16.mxu0 %v4642_v27  ;;  %v4689_v24 = vld [vmem:[%s5838_s1 + $0x3b8] sm:$0xff]   ;;  %v4690_v27 = vld [vmem:[%s5838_s1 + $0x4c0] sm:$0xff]  }
  0x56   : > { %4241 = vmatprep.subr.bf16.mxu1 %v4643_v28  ;;  %v4691_v28 = vld [vmem:[%s5838_s1 + $0x440] sm:$0xff]  }
  0x58   : > { %4214 = vmatpush3.bf16.msra.mxu0 %v4644_v29  ;;  %v4692_v29 = vld [vmem:[%s5838_s1 + $0x480] sm:$0xff]  }
  0x59   : > { %4242 = vmatpush3.bf16.msra.mxu1 %v4645_v30  ;;  %4215 = vmatprep.subr.bf16.mxu0 %v4646_v31  ;;  %v4693_v30 = vld [vmem:[%s5838_s1 + $0x400] sm:$0xff]   ;;  %v4694_v31 = vld [vmem:[%s5838_s1 + $0x4c8] sm:$0xff]  }
  0x5a   : > { %4243 = vmatprep.subr.bf16.mxu1 %v4647_v32  ;;  %v4695_v32 = vld [vmem:[%s5838_s1 + $0x448] sm:$0xff]  }
  0x5c   : > { %4216 = vmatpush3.bf16.msra.mxu0 %v4648_v40  ;;  %v4696_v40 = vld [vmem:[%s5838_s1 + $0x488] sm:$0xff]  }
  0x5d   : > { %4244 = vmatpush3.bf16.msra.mxu1 %v4649_v41  ;;  %4217 = vmatprep.subr.bf16.mxu0 %v4650_v42  ;;  %v4697_v41 = vld [vmem:[%s5838_s1 + $0x408] sm:$0xff]   ;;  %v4698_v42 = vld [vmem:[%s5838_s1 + $0x4d0] sm:$0xff]  }
  0x5e   : > { %4245 = vmatprep.subr.bf16.mxu1 %v4651_v43  ;;  %v4699_v43 = vld [vmem:[%s5838_s1 + $0x450] sm:$0xff]  }
  0x60   : > { %4218 = vmatpush3.bf16.msra.mxu0 %v4652_v44  ;;  %v4700_v44 = vld [vmem:[%s5838_s1 + $0x490] sm:$0xff]  }
  0x61   : > { %4246 = vmatpush3.bf16.msra.mxu1 %v4653_v45  ;;  %4219 = vmatprep.subr.bf16.mxu0 %v4654_v46  ;;  %v4701_v45 = vld [vmem:[%s5838_s1 + $0x410] sm:$0xff]   ;;  %v4702_v46 = vld [vmem:[%s5838_s1 + $0x4d8] sm:$0xff]  }
  0x62   : > { %4247 = vmatprep.subr.bf16.mxu1 %v4655_v47  ;;  %v4703_v47 = vld [vmem:[%s5838_s1 + $0x458] sm:$0xff]  }
  0x64   : > { %4220 = vmatpush3.bf16.msra.mxu0 %v4656_v48  ;;  %v4704_v48 = vld [vmem:[%s5838_s1 + $0x498] sm:$0xff]  }
  0x65   : > { %4248 = vmatpush3.bf16.msra.mxu1 %v4657_v51  ;;  %4261 = vmatprep.subr.bf16.mxu0 %v4658_v52  ;;  %v4705_v51 = vld [vmem:[%s5838_s1 + $0x418] sm:$0xff]   ;;  %v4706_v52 = vld [vmem:[%s5838_s1 + $0x4e0] sm:$0xff]  }
  0x66   : > { %4289 = vmatprep.subr.bf16.mxu1 %v4659_v53  ;;  %v4707_v53 = vld [vmem:[%s5838_s1 + $0x460] sm:$0xff]  }
  0x67   : > { %1243 = vmatmul.mubr.bf16.vlgmr.msra.gmra.mrb[16].mxu0 %v5014_v58 }
  0x68   : > { %1388 = vmatmul.mubr.bf16.vlgmr.msra.gmra.mrb[16].mxu1 %v4976_v37  ;;  %4262 = vmatpush3.bf16.msra.mxu0 %v4660_v54  ;;  %v4708_v54 = vld [vmem:[%s5838_s1 + $0x4a0] sm:$0xff]  }
  0x69   : > { %4290 = vmatpush3.bf16.msra.mxu1 %v4661_v55  ;;  %4263 = vmatprep.subr.bf16.mxu0 %v4662_v56  ;;  %v4709_v55 = vld [vmem:[%s5838_s1 + $0x420] sm:$0xff]   ;;  %v4710_v56 = vld [vmem:[%s5838_s1 + $0x4e8] sm:$0xff]  }
  0x6a   : > { %4291 = vmatprep.subr.bf16.mxu1 %v4663_v35  ;;  %1250 = vmatprep.mubr.bf16.mxu0 %v5100_v33  ;;  %v4711_v35 = vld [vmem:[%s5838_s1 + $0x468] sm:$0xff]  }
  0x6b   : > { %1395 = vmatprep.mubr.bf16.mxu1 %v4980_v38 }
  0x6c   : > { %4264 = vmatpush3.bf16.msra.mxu0 %v4664_v59  ;;  %v4712_v59 = vld [vmem:[%s5838_s1 + $0x4a8] sm:$0xff]  }
  0x6d   : > { %4292 = vmatpush3.bf16.msra.mxu1 %v4665_v60  ;;  %4265 = vmatprep.subr.bf16.mxu0 %v4666_v61  ;;  %v4713_v60 = vld [vmem:[%s5838_s1 + $0x428] sm:$0xff]   ;;  %v4714_v61 = vld [vmem:[%s5838_s1 + $0x4f0] sm:$0xff]  }
  0x6e   : > { %4293 = vmatprep.subr.bf16.mxu1 %v4667_v62  ;;  %v4715_v62 = vld [vmem:[%s5838_s1 + $0x470] sm:$0xff]  }
  0x6f   : > { %1251 = vmatmul.mubr.bf16.gmra.mrb[20].mxu0 %v5103_v34 }
  0x70   : > { %1396 = vmatmul.mubr.bf16.gmra.mrb[20].mxu1 %v4984_v39  ;;  %4266 = vmatpush3.bf16.msra.mxu0 %v4668_v1  ;;  %v4716_v1 = vld [vmem:[%s5838_s1 + $0x4b0] sm:$0xff]  }
  0x71   : > { %4294 = vmatpush3.bf16.msra.mxu1 %v4669_v2  ;;  %4267 = vmatprep.subr.bf16.mxu0 %v4670_v3  ;;  %v4717_v2 = vld [vmem:[%s5838_s1 + $0x430] sm:$0xff]   ;;  %v4718_v3 = vld [vmem:[%s5838_s1 + $0x4f8] sm:$0xff]  }
  0x72   : > { %4295 = vmatprep.subr.bf16.mxu1 %v4671_v4  ;;  %1565 = vmatprep.mubr.bf16.mxu0 %v5060_v8  ;;  %v4719_v4 = vld [vmem:[%s5838_s1 + $0x478] sm:$0xff]  }
  0x73   : > { %1747 = vmatprep.mubr.bf16.mxu1 %v5149_v63 }
  0x74   : > { %4268 = vmatpush3.bf16.msra.mxu0 %v4672_v5  ;;  %v4720_v5 = vld [vmem:[%s5838_s1 + $0x4b8] sm:$0xff]  }
  0x75   : > { %4296 = vmatpush3.bf16.msra.mxu1 %v4673_v6  ;;  %4269 = vmatprep.subr.bf16.mxu0 %v4674_v7  ;;  %v4721_v6 = vld [vmem:[%s5838_s1 + $0x438] sm:$0xff]   ;;  %v4722_v7 = vld [vmem:[%s5838_s1 + $0x540] sm:$0xff]  }
  0x76   : > { %4297 = vmatprep.subr.bf16.mxu1 %v4675_v9  ;;  %v4723_v9 = vld [vmem:[%s5838_s1 + $0x5c0] sm:$0xff]  }
  0x78   : > { %4270 = vmatpush3.bf16.msra.mxu0 %v4676_v10  ;;  %v4724_v10 = vld [vmem:[%s5838_s1 + $0x500] sm:$0xff]  }
  0x79   : > { %4298 = vmatpush3.bf16.msra.mxu1 %v4677_v12  ;;  %4271 = vmatprep.subr.bf16.mxu0 %v4678_v13  ;;  %v4725_v12 = vld [vmem:[%s5838_s1 + $0x580] sm:$0xff]   ;;  %v4726_v13 = vld [vmem:[%s5838_s1 + $0x548] sm:$0xff]  }
  0x7a   : > { %4299 = vmatprep.subr.bf16.mxu1 %v4679_v14  ;;  %v4727_v14 = vld [vmem:[%s5838_s1 + $0x5c8] sm:$0xff]  }
  0x7c   : > { %4272 = vmatpush3.bf16.msra.mxu0 %v4680_v15  ;;  %v4728_v15 = vld [vmem:[%s5838_s1 + $0x508] sm:$0xff]  }
  0x7d   : > { %4300 = vmatpush3.bf16.msra.mxu1 %v4681_v16  ;;  %4273 = vmatprep.subr.bf16.mxu0 %v4682_v17  ;;  %v4729_v16 = vld [vmem:[%s5838_s1 + $0x588] sm:$0xff]   ;;  %v4730_v17 = vld [vmem:[%s5838_s1 + $0x550] sm:$0xff]  }
  0x7e   : > { %4301 = vmatprep.subr.bf16.mxu1 %v4683_v18  ;;  %v4731_v18 = vld [vmem:[%s5838_s1 + $0x5d0] sm:$0xff]  }
  0x80   : > { %4274 = vmatpush3.bf16.msra.mxu0 %v4684_v19  ;;  %v4732_v19 = vld [vmem:[%s5838_s1 + $0x510] sm:$0xff]  }
  0x81   : > { %4302 = vmatpush3.bf16.msra.mxu1 %v4685_v20  ;;  %4275 = vmatprep.subr.bf16.mxu0 %v4686_v21  ;;  %v4733_v20 = vld [vmem:[%s5838_s1 + $0x590] sm:$0xff]   ;;  %v4734_v21 = vld [vmem:[%s5838_s1 + $0x558] sm:$0xff]  }
  0x82   : > { %4303 = vmatprep.subr.bf16.mxu1 %v4687_v22  ;;  %v4735_v22 = vld [vmem:[%s5838_s1 + $0x5d8] sm:$0xff]  }
  0x84   : > { %4276 = vmatpush3.bf16.msra.mxu0 %v4688_v23  ;;  %v4736_v23 = vld [vmem:[%s5838_s1 + $0x518] sm:$0xff]  }
  0x85   : > { %4304 = vmatpush3.bf16.msra.mxu1 %v4689_v24  ;;  %4317 = vmatprep.subr.bf16.mxu0 %v4690_v27  ;;  %v4737_v24 = vld [vmem:[%s5838_s1 + $0x598] sm:$0xff]   ;;  %v4738_v27 = vld [vmem:[%s5838_s1 + $0x560] sm:$0xff]  }
  0x86   : > { %4345 = vmatprep.subr.bf16.mxu1 %v4691_v28  ;;  %v4739_v28 = vld [vmem:[%s5838_s1 + $0x5e0] sm:$0xff]  }
  0x87   : > { %1566 = vmatmul.mubr.bf16.vlgmr.msra.gmra.mrb[24].mxu0 %v5068_v11 }
  0x88   : > { %1748 = vmatmul.mubr.bf16.vlgmr.msra.gmra.mrb[24].mxu1 %v5152_v0  ;;  %4318 = vmatpush3.bf16.msra.mxu0 %v4692_v29  ;;  %v4740_v29 = vld [vmem:[%s5838_s1 + $0x520] sm:$0xff]  }
  0x89   : > { %4346 = vmatpush3.bf16.msra.mxu1 %v4693_v30  ;;  %4319 = vmatprep.subr.bf16.mxu0 %v4694_v31  ;;  %v4741_v30 = vld [vmem:[%s5838_s1 + $0x5a0] sm:$0xff]   ;;  %v4742_v31 = vld [vmem:[%s5838_s1 + $0x568] sm:$0xff]  }
  0x8a   : > { %4347 = vmatprep.subr.bf16.mxu1 %v4695_v32  ;;  %1573 = vmatprep.mubr.bf16.mxu0 %v5129_v50  ;;  %v4743_v32 = vld [vmem:[%s5838_s1 + $0x5e8] sm:$0xff]  }
  0x8b   : > { %1755 = vmatprep.mubr.bf16.mxu1 %v5196_v25 }
  0x8c   : > { %4320 = vmatpush3.bf16.msra.mxu0 %v4696_v40  ;;  %v4744_v40 = vld [vmem:[%s5838_s1 + $0x528] sm:$0xff]  }
  0x8d   : > { %4348 = vmatpush3.bf16.msra.mxu1 %v4697_v41  ;;  %4321 = vmatprep.subr.bf16.mxu0 %v4698_v42  ;;  %v4745_v41 = vld [vmem:[%s5838_s1 + $0x5a8] sm:$0xff]   ;;  %v4746_v42 = vld [vmem:[%s5838_s1 + $0x570] sm:$0xff]  }
  0x8e   : > { %4349 = vmatprep.subr.bf16.mxu1 %v4699_v43  ;;  %v4747_v43 = vld [vmem:[%s5838_s1 + $0x5f0] sm:$0xff]  }
  0x8f   : > { %1574 = vmatmul.mubr.bf16.gmra.mrb[28].mxu0 %v5126_v49 }
  0x90   : > { %1756 = vmatmul.mubr.bf16.gmra.mrb[28].mxu1 %v5199_v26  ;;  %4322 = vmatpush3.bf16.msra.mxu0 %v4700_v44  ;;  %v4748_v44 = vld [vmem:[%s5838_s1 + $0x530] sm:$0xff]  }
  0x91   : > { %4350 = vmatpush3.bf16.msra.mxu1 %v4701_v45  ;;  %4323 = vmatprep.subr.bf16.mxu0 %v4702_v46  ;;  %v4749_v45 = vld [vmem:[%s5838_s1 + $0x5b0] sm:$0xff]   ;;  %v4750_v46 = vld [vmem:[%s5838_s1 + $0x578] sm:$0xff]  }
  0x92   : > { %4351 = vmatprep.subr.bf16.mxu1 %v4703_v47  ;;  %1966 = vmatprep.mubr.bf16.mxu0 %v5011_v57  ;;  %v4751_v47 = vld [vmem:[%s5838_s1 + $0x5f8] sm:$0xff]  }
  0x93   : > { %2111 = vmatprep.mubr.bf16.mxu1 %v4973_v36 }
  0x94   : > { %4324 = vmatpush3.bf16.msra.mxu0 %v4704_v48  ;;  %v4752_v48 = vld [vmem:[%s5838_s1 + $0x538] sm:$0xff]  }
  0x95   : > { %4352 = vmatpush3.bf16.msra.mxu1 %v4705_v51  ;;  %4325 = vmatprep.subr.bf16.mxu0 %v4706_v52  ;;  %v4753_v51 = vld [vmem:[%s5838_s1 + $0x5b8] sm:$0xff]   ;;  %v4754_v52 = vld [vmem:[%s5838_s1 + $0x6c0] sm:$0xff]  }
  0x96   : > { %4353 = vmatprep.subr.bf16.mxu1 %v4707_v53  ;;  %v4755_v53 = vld [vmem:[%s5838_s1 + $0x640] sm:$0xff]  }
  0x98   : > { %4326 = vmatpush3.bf16.msra.mxu0 %v4708_v54  ;;  %v4756_v54 = vld [vmem:[%s5838_s1 + $0x680] sm:$0xff]  }
  0x99   : > { %4354 = vmatpush3.bf16.msra.mxu1 %v4709_v55  ;;  %4327 = vmatprep.subr.bf16.mxu0 %v4710_v56  ;;  %v4757_v55 = vld [vmem:[%s5838_s1 + $0x600] sm:$0xff]   ;;  %v4758_v56 = vld [vmem:[%s5838_s1 + $0x6c8] sm:$0xff]  }
  0x9a   : > { %4355 = vmatprep.subr.bf16.mxu1 %v4711_v35  ;;  %v4759_v35 = vld [vmem:[%s5838_s1 + $0x648] sm:$0xff]  }
  0x9c   : > { %4328 = vmatpush3.bf16.msra.mxu0 %v4712_v59  ;;  %v4760_v59 = vld [vmem:[%s5838_s1 + $0x688] sm:$0xff]  }
  0x9d   : > { %4356 = vmatpush3.bf16.msra.mxu1 %v4713_v60  ;;  %4329 = vmatprep.subr.bf16.mxu0 %v4714_v61  ;;  %v4761_v60 = vld [vmem:[%s5838_s1 + $0x608] sm:$0xff]   ;;  %v4762_v61 = vld [vmem:[%s5838_s1 + $0x6d0] sm:$0xff]  }
  0x9e   : > { %4357 = vmatprep.subr.bf16.mxu1 %v4715_v62  ;;  %v4763_v62 = vld [vmem:[%s5838_s1 + $0x650] sm:$0xff]  }
  0xa0   : > { %4330 = vmatpush3.bf16.msra.mxu0 %v4716_v1  ;;  %v4764_v1 = vld [vmem:[%s5838_s1 + $0x690] sm:$0xff]  }
  0xa1   : > { %4358 = vmatpush3.bf16.msra.mxu1 %v4717_v2  ;;  %4331 = vmatprep.subr.bf16.mxu0 %v4718_v3  ;;  %v4765_v2 = vld [vmem:[%s5838_s1 + $0x610] sm:$0xff]   ;;  %v4766_v3 = vld [vmem:[%s5838_s1 + $0x6d8] sm:$0xff]  }
  0xa2   : > { %4359 = vmatprep.subr.bf16.mxu1 %v4719_v4  ;;  %v4767_v4 = vld [vmem:[%s5838_s1 + $0x658] sm:$0xff]  }
  0xa4   : > { %4332 = vmatpush3.bf16.msra.mxu0 %v4720_v5  ;;  %v4768_v5 = vld [vmem:[%s5838_s1 + $0x698] sm:$0xff]  }
  0xa5   : > { %4360 = vmatpush3.bf16.msra.mxu1 %v4721_v6  ;;  %4373 = vmatprep.subr.bf16.mxu0 %v4722_v7  ;;  %v4769_v6 = vld [vmem:[%s5838_s1 + $0x618] sm:$0xff]   ;;  %v4770_v7 = vld [vmem:[%s5838_s1 + $0x6e0] sm:$0xff]  }
  0xa6   : > { %4401 = vmatprep.subr.bf16.mxu1 %v4723_v9  ;;  %v4771_v9 = vld [vmem:[%s5838_s1 + $0x660] sm:$0xff]  }
  0xa7   : > { %1967 = vmatmul.mubr.bf16.vlgmr.msra.gmra.mrb[32].mxu0 %v5014_v58 }
  0xa8   : > { %2112 = vmatmul.mubr.bf16.vlgmr.msra.gmra.mrb[32].mxu1 %v4976_v37  ;;  %4374 = vmatpush3.bf16.msra.mxu0 %v4724_v10  ;;  %v4772_v10 = vld [vmem:[%s5838_s1 + $0x6a0] sm:$0xff]  }
  0xa9   : > { %4402 = vmatpush3.bf16.msra.mxu1 %v4725_v12  ;;  %4375 = vmatprep.subr.bf16.mxu0 %v4726_v13  ;;  %v4773_v12 = vld [vmem:[%s5838_s1 + $0x620] sm:$0xff]   ;;  %v4774_v13 = vld [vmem:[%s5838_s1 + $0x6e8] sm:$0xff]  }
  0xaa   : > { %4403 = vmatprep.subr.bf16.mxu1 %v4727_v14  ;;  %1974 = vmatprep.mubr.bf16.mxu0 %v5100_v33  ;;  %v4775_v14 = vld [vmem:[%s5838_s1 + $0x668] sm:$0xff]  }
  0xab   : > { %2119 = vmatprep.mubr.bf16.mxu1 %v4980_v38 }
  0xac   : > { %4376 = vmatpush3.bf16.msra.mxu0 %v4728_v15  ;;  %v4778_v15 = vld [vmem:[%s5838_s1 + $0x6f0] sm:$0xff]  }
  0xad   : > { %4404 = vmatpush3.bf16.msra.mxu1 %v4729_v16  ;;  %4377 = vmatprep.subr.bf16.mxu0 %v4730_v17  ;;  %v4779_v16 = vld [vmem:[%s5838_s1 + $0x670] sm:$0xff]  }
  0xae   : > { %4405 = vmatprep.subr.bf16.mxu1 %v4731_v18  ;;  %v4780_v17 = vld [vmem:[%s5838_s1 + $0x6b0] sm:$0xff]  }
  0xaf   : > { %1975 = vmatmul.mubr.bf16.gmra.mrb[36].mxu0 %v5103_v34  ;;  %v4781_v18 = vld [vmem:[%s5838_s1 + $0x630] sm:$0xff]  }
  0xb0   : > { %2120 = vmatmul.mubr.bf16.gmra.mrb[36].mxu1 %v4984_v39  ;;  %4378 = vmatpush3.bf16.msra.mxu0 %v4732_v19  ;;  %v4782_v19 = vld [vmem:[%s5838_s1 + $0x6f8] sm:$0xff]  }
  0xb1   : > { %4406 = vmatpush3.bf16.msra.mxu1 %v4733_v20  ;;  %4379 = vmatprep.subr.bf16.mxu0 %v4734_v21  ;;  %v4783_v20 = vld [vmem:[%s5838_s1 + $0x678] sm:$0xff]  }
  0xb2   : > { %4407 = vmatprep.subr.bf16.mxu1 %v4735_v22  ;;  %2289 = vmatprep.mubr.bf16.mxu0 %v5060_v8  ;;  %v4784_v21 = vld [vmem:[%s5838_s1 + $0x6b8] sm:$0xff]  }
  0xb3   : > { %2471 = vmatprep.mubr.bf16.mxu1 %v5149_v63  ;;  %v4785_v22 = vld [vmem:[%s5838_s1 + $0x638] sm:$0xff]  }
  0xb4   : > { %4380 = vmatpush3.bf16.msra.mxu0 %v4736_v23  ;;  %v4786_v23 = vld [vmem:[%s5838_s1 + $0x740] sm:$0xff]  }
  0xb5   : > { %4408 = vmatpush3.bf16.msra.mxu1 %v4737_v24  ;;  %4381 = vmatprep.subr.bf16.mxu0 %v4738_v27  ;;  %v4787_v24 = vld [vmem:[%s5838_s1 + $0x7c0] sm:$0xff]  }
  0xb6   : > { %4409 = vmatprep.subr.bf16.mxu1 %v4739_v28  ;;  %v4788_v27 = vld [vmem:[%s5838_s1 + $0x700] sm:$0xff]  }
  0xb7   : > { %v4789_v28 = vld [vmem:[%s5838_s1 + $0x780] sm:$0xff]  }
  0xb8   : > { %4382 = vmatpush3.bf16.msra.mxu0 %v4740_v29  ;;  %v4790_v29 = vld [vmem:[%s5838_s1 + $0x748] sm:$0xff]  }
  0xb9   : > { %4410 = vmatpush3.bf16.msra.mxu1 %v4741_v30  ;;  %4383 = vmatprep.subr.bf16.mxu0 %v4742_v31  ;;  %v4791_v30 = vld [vmem:[%s5838_s1 + $0x7c8] sm:$0xff]  }
  0xba   : > { %4411 = vmatprep.subr.bf16.mxu1 %v4743_v32  ;;  %v4792_v31 = vld [vmem:[%s5838_s1 + $0x708] sm:$0xff]  }
  0xbb   : > { %v4793_v32 = vld [vmem:[%s5838_s1 + $0x788] sm:$0xff]  }
  0xbc   : > { %4384 = vmatpush3.bf16.msra.mxu0 %v4744_v40  ;;  %v4794_v40 = vld [vmem:[%s5838_s1 + $0x750] sm:$0xff]  }
  0xbd   : > { %4412 = vmatpush3.bf16.msra.mxu1 %v4745_v41  ;;  %4385 = vmatprep.subr.bf16.mxu0 %v4746_v42  ;;  %v4795_v41 = vld [vmem:[%s5838_s1 + $0x7d0] sm:$0xff]   ;;  %v4798_v42 = vld [vmem:[%s5838_s1 + $0x758] sm:$0xff]  }
  0xbe   : > { %4413 = vmatprep.subr.bf16.mxu1 %v4747_v43  ;;  %v4799_v43 = vld [vmem:[%s5838_s1 + $0x7d8] sm:$0xff]  }
  0xc0   : > { %4386 = vmatpush3.bf16.msra.mxu0 %v4748_v44  ;;  %v4802_v44 = vld [vmem:[%s5838_s1 + $0x760] sm:$0xff]  }
  0xc1   : > { %4414 = vmatpush3.bf16.msra.mxu1 %v4749_v45  ;;  %4387 = vmatprep.subr.bf16.mxu0 %v4750_v46  ;;  %v4803_v45 = vld [vmem:[%s5838_s1 + $0x7e0] sm:$0xff]  }
  0xc2   : > { %4415 = vmatprep.subr.bf16.mxu1 %v4751_v47  ;;  %v4804_v46 = vld [vmem:[%s5838_s1 + $0x720] sm:$0xff]  }
  0xc4   : > { %4388 = vmatpush3.bf16.msra.mxu0 %v4752_v48  ;;  %v4806_v48 = vld [vmem:[%s5838_s1 + $0x768] sm:$0xff]  }
  0xc5   : > { %4416 = vmatpush3.bf16.msra.mxu1 %v4753_v51  ;;  %4429 = vmatprep.subr.bf16.mxu0 %v4754_v52  ;;  %v4808_v52 = vld [vmem:[%s5838_s1 + $0x728] sm:$0xff]  }
  0xc6   : > { %4457 = vmatprep.subr.bf16.mxu1 %v4755_v53 }
  0xc7   : > { %2290 = vmatmul.mubr.bf16.vlgmr.msra.gmra.mrb[40].mxu0 %v5068_v11 }
  0xc8   : > { %2472 = vmatmul.mubr.bf16.vlgmr.msra.gmra.mrb[40].mxu1 %v5152_v0  ;;  %4430 = vmatpush3.bf16.msra.mxu0 %v4756_v54  ;;  %v4809_v54 = vld [vmem:[%s5838_s1 + $0x7a8] sm:$0xff]  }
  0xc9   : > { %4458 = vmatpush3.bf16.msra.mxu1 %v4757_v55  ;;  %4431 = vmatprep.subr.bf16.mxu0 %v4758_v56  ;;  %v4810_v56 = vld [vmem:[%s5838_s1 + $0x770] sm:$0xff]  }
  0xca   : > { %4459 = vmatprep.subr.bf16.mxu1 %v4759_v35  ;;  %2297 = vmatprep.mubr.bf16.mxu0 %v5129_v50  ;;  %v4811_v35 = vld [vmem:[%s5838_s1 + $0x7f0] sm:$0xff]  }
  0xcb   : > { %2479 = vmatprep.mubr.bf16.mxu1 %v5196_v25 }
  0xcc   : > { %4432 = vmatpush3.bf16.msra.mxu0 %v4760_v59 }
  0xcd   : > { %4460 = vmatpush3.bf16.msra.mxu1 %v4761_v60  ;;  %4433 = vmatprep.subr.bf16.mxu0 %v4762_v61  ;;  %v4812_v60 = vld [vmem:[%s5838_s1 + $0x730] sm:$0xff]  }
  0xce   : > { %4461 = vmatprep.subr.bf16.mxu1 %v4763_v62  ;;  %v4813_v62 = vld [vmem:[%s5838_s1 + $0x7b0] sm:$0xff]  }
  0xcf   : > { %2298 = vmatmul.mubr.bf16.gmra.mrb[44].mxu0 %v5126_v49 }
  0xd0   : > { %2480 = vmatmul.mubr.bf16.gmra.mrb[44].mxu1 %v5199_v26  ;;  %4434 = vmatpush3.bf16.msra.mxu0 %v4764_v1 }
  0xd1   : > { %4462 = vmatpush3.bf16.msra.mxu1 %v4765_v2  ;;  %4435 = vmatprep.subr.bf16.mxu0 %v4766_v3  ;;  %v4814_v3 = vld [vmem:[%s5838_s1 + $0x778] sm:$0xff]  }
  0xd2   : > { %4463 = vmatprep.subr.bf16.mxu1 %v4767_v4  ;;  %2690 = vmatprep.mubr.bf16.mxu0 %v5011_v57  ;;  %v4777_v57 = vld [vmem:[%s5838_s1 + $0x628] sm:$0xff]  }
  0xd3   : > { %2835 = vmatprep.mubr.bf16.mxu1 %v4973_v36  ;;  %v4776_v36 = vld [vmem:[%s5838_s1 + $0x6a8] sm:$0xff]  }
  0xd4   : > { %4436 = vmatpush3.bf16.msra.mxu0 %v4768_v5  ;;  %v4815_v5 = vld [vmem:[%s5838_s1 + $0x7f8] sm:$0xff]  }
  0xd5   : > { %4464 = vmatpush3.bf16.msra.mxu1 %v4769_v6  ;;  %4437 = vmatprep.subr.bf16.mxu0 %v4770_v7 }
  0xd6   : > { %4465 = vmatprep.subr.bf16.mxu1 %v4771_v9 }
  0xd8   : > { %4438 = vmatpush3.bf16.msra.mxu0 %v4772_v10 }
  0xd9   : > { %4466 = vmatpush3.bf16.msra.mxu1 %v4773_v12  ;;  %4439 = vmatprep.subr.bf16.mxu0 %v4774_v13  ;;  %v4816_v13 = vld [vmem:[%s5838_s1 + $0x738] sm:$0xff]  }
  0xda   : > { %4467 = vmatprep.subr.bf16.mxu1 %v4775_v14  ;;  %v4817_v14 = vld [vmem:[%s5838_s1 + $0x7b8] sm:$0xff]  }
  0xdc   : > { %4440 = vmatpush3.bf16.msra.mxu0 %v4776_v36 }
  0xdd   : > { %4468 = vmatpush3.bf16.msra.mxu1 %v4777_v57  ;;  %4441 = vmatprep.subr.bf16.mxu0 %v4778_v15 }
  0xde   : > { %4469 = vmatprep.subr.bf16.mxu1 %v4779_v16 }
  0xe0   : > { %4442 = vmatpush3.bf16.msra.mxu0 %v4780_v17 }
  0xe1   : > { %4470 = vmatpush3.bf16.msra.mxu1 %v4781_v18  ;;  %4443 = vmatprep.subr.bf16.mxu0 %v4782_v19 }
  0xe2   : > { %4471 = vmatprep.subr.bf16.mxu1 %v4783_v20 }
  0xe4   : > { %4444 = vmatpush3.bf16.msra.mxu0 %v4784_v21 }
  0xe5   : > { %4472 = vmatpush3.bf16.msra.mxu1 %v4785_v22  ;;  %4485 = vmatprep.subr.bf16.mxu0 %v4786_v23 }
  0xe6   : > { %4513 = vmatprep.subr.bf16.mxu1 %v4787_v24 }
  0xe7   : > { %2691 = vmatmul.mubr.bf16.vlgmr.msra.gmra.mrb[48].mxu0 %v5014_v58  ;;  %v4797_v58 = vld [vmem:[%s5838_s1 + $0x790] sm:$0xff]  }
  0xe8   : > { %2836 = vmatmul.mubr.bf16.vlgmr.msra.gmra.mrb[48].mxu1 %v4976_v37  ;;  %4486 = vmatpush3.bf16.msra.mxu0 %v4788_v27  ;;  %v4796_v37 = vld [vmem:[%s5838_s1 + $0x710] sm:$0xff]  }
  0xe9   : > { %4514 = vmatpush3.bf16.msra.mxu1 %v4789_v28  ;;  %4487 = vmatprep.subr.bf16.mxu0 %v4790_v29 }
  0xea   : > { %4515 = vmatprep.subr.bf16.mxu1 %v4791_v30  ;;  %2698 = vmatprep.mubr.bf16.mxu0 %v5100_v33  ;;  %v4801_v33 = vld [vmem:[%s5838_s1 + $0x798] sm:$0xff]  }
  0xeb   : > { %2843 = vmatprep.mubr.bf16.mxu1 %v4980_v38  ;;  %v4800_v38 = vld [vmem:[%s5838_s1 + $0x718] sm:$0xff]  }
  0xec   : > { %4488 = vmatpush3.bf16.msra.mxu0 %v4792_v31 }
  0xed   : > { %4516 = vmatpush3.bf16.msra.mxu1 %v4793_v32  ;;  %4489 = vmatprep.subr.bf16.mxu0 %v4794_v40 }
  0xee   : > { %4517 = vmatprep.subr.bf16.mxu1 %v4795_v41 }
  0xef   : > { %2699 = vmatmul.mubr.bf16.gmra.mrb[52].mxu0 %v5103_v34 }
  0xf0   : > { %2844 = vmatmul.mubr.bf16.gmra.mrb[52].mxu1 %v4984_v39  ;;  %4490 = vmatpush3.bf16.msra.mxu0 %v4796_v37  ;;  %v4805_v39 = vld [vmem:[%s5838_s1 + $0x7a0] sm:$0xff]  }
  0xf1   : > { %4518 = vmatpush3.bf16.msra.mxu1 %v4797_v58  ;;  %4491 = vmatprep.subr.bf16.mxu0 %v4798_v42 }
  0xf2   : > { %4519 = vmatprep.subr.bf16.mxu1 %v4799_v43  ;;  %3013 = vmatprep.mubr.bf16.mxu0 %v5060_v8  ;;  %v4807_v8 = vld [vmem:[%s5838_s1 + $0x7e8] sm:$0xff]  }
  0xf3   : > { %3195 = vmatprep.mubr.bf16.mxu1 %v5149_v63 }
  0xf4   : > { %4492 = vmatpush3.bf16.msra.mxu0 %v4800_v38 }
  0xf5   : > { %4520 = vmatpush3.bf16.msra.mxu1 %v4801_v33  ;;  %4493 = vmatprep.subr.bf16.mxu0 %v4802_v44 }
  0xf6   : > { %4521 = vmatprep.subr.bf16.mxu1 %v4803_v45 }
  0xf8   : > { %4494 = vmatpush3.bf16.msra.mxu0 %v4804_v46 }
  0xf9   : > { %4522 = vmatpush3.bf16.msra.mxu1 %v4805_v39  ;;  %4495 = vmatprep.subr.bf16.mxu0 %v4806_v48 }
  0xfa   : > { %4523 = vmatprep.subr.bf16.mxu1 %v4807_v8  ;;  %v4109_v59 = vpop.f32.mrb[0].mxu0 }
  0xfb   : > { %v4137_v34 = vpop.f32.mrb[0].mxu1  ;;  %v4110_v61 = vpop.f32.mrb[1].mxu0 }
  0xfc   : > { %v4138_v47 = vpop.f32.mrb[1].mxu1  ;;  %v4111_v1 = vadd.f32 %v4110_v61, %v4109_v59  ;;  %v4112_v2 = vpop.f32.mrb[2].mxu0  ;;  %4496 = vmatpush3.bf16.msra.mxu0 %v4808_v52 }
  0xfd   : > { %v4139_v51 = vadd.f32 %v4138_v47, %v4137_v34  ;;  %v4140_v63 = vpop.f32.mrb[2].mxu1  ;;  %4524 = vmatpush3.bf16.msra.mxu1 %v4809_v54  ;;  %v4113_v4 = vpop.f32.mrb[3].mxu0  ;;  %4497 = vmatprep.subr.bf16.mxu0 %v4810_v56 }
  0xfe   : > { %v4141_v53 = vpop.f32.mrb[3].mxu1  ;;  %4525 = vmatprep.subr.bf16.mxu1 %v4811_v35  ;;  %v4114_v7 = vadd.f32 %v4113_v4, %v4112_v2 }
  0xff   : > { %v4142_v55 = vadd.f32 %v4141_v53, %v4140_v63  ;;  %v594_v6 = vadd.f32 %v4139_v51, %v4111_v1 }
 0x100   : > { %4498 = vmatpush3.bf16.msra.mxu0 %v4812_v60 }
 0x101   : > { %v597_v12 = vadd.f32 %v4142_v55, %v4114_v7  ;;  %4526 = vmatpush3.bf16.msra.mxu1 %v4813_v62  ;;  %4499 = vmatprep.subr.bf16.mxu0 %v4814_v3 }
 0x102   : > { %4527 = vmatprep.subr.bf16.mxu1 %v4815_v5  ;;  %v4115_v17 = vpop.f32.mrb[4].mxu0 }
 0x103   : > { %v4143_v9 = vpop.f32.mrb[4].mxu1  ;;  %v4116_v18 = vpop.f32.mrb[5].mxu0 }
 0x104   : > { %v4144_v10 = vpop.f32.mrb[5].mxu1  ;;  %4500 = vmatpush3.bf16.msra.mxu0 %v4816_v13  ;;  %v4117_v19 = vadd.f32 %v4116_v18, %v4115_v17  ;;  %v4118_v20 = vpop.f32.mrb[6].mxu0 }
 0x105   : > { %v4145_v36 = vadd.f32 %v4144_v10, %v4143_v9  ;;  %v4146_v57 = vpop.f32.mrb[6].mxu1  ;;  %4528 = vmatpush3.bf16.msra.mxu1 %v4817_v14  ;;  %v4119_v21 = vpop.f32.mrb[7].mxu0 }
 0x106   : > { %v4147_v15 = vpop.f32.mrb[7].mxu1  ;;  %v4120_v23 = vadd.f32 %v4119_v21, %v4118_v20 }
 0x107   : > { %v4148_v16 = vadd.f32 %v4147_v15, %v4146_v57  ;;  %3014 = vmatmul.mubr.bf16.vlgmr.msra.gmra.mrb[56].mxu0 %v5068_v11  ;;  %v602_v22 = vadd.f32 %v4145_v36, %v4117_v19 }
 0x108   : > { %3196 = vmatmul.mubr.bf16.vlgmr.msra.gmra.mrb[56].mxu1 %v5152_v0  ;;  %3021 = vmatprep.mubr.bf16.mxu0 %v5129_v50 }
 0x109   : > { %3203 = vmatprep.mubr.bf16.mxu1 %v5196_v25  ;;  %v605_v24 = vadd.f32 %v4148_v16, %v4120_v23 }
 0x10f   : > { %3022 = vmatmul.mubr.bf16.gmra.mrb[60].mxu0 %v5126_v49 }
 0x110   : > { %3204 = vmatmul.mubr.bf16.gmra.mrb[60].mxu1 %v5199_v26 }
 0x11a   : > { %v4165_v27 = vpop.f32.mrb[8].mxu0 }
 0x11b   : > { %v4193_v11 = vpop.f32.mrb[8].mxu1  ;;  %v4166_v28 = vpop.f32.mrb[9].mxu0 }
 0x11c   : > { %v4194_v0 = vpop.f32.mrb[9].mxu1  ;;  %v4167_v29 = vadd.f32 %v4166_v28, %v4165_v27  ;;  %v4168_v30 = vpop.f32.mrb[10].mxu0 }
 0x11d   : > { %v4195_v50 = vadd.f32 %v4194_v0, %v4193_v11  ;;  %v4196_v25 = vpop.f32.mrb[10].mxu1  ;;  %v4169_v31 = vpop.f32.mrb[11].mxu0 }
 0x11e   : > { %v4197_v49 = vpop.f32.mrb[11].mxu1  ;;  %v797_v32 = vadd.f32 %v4167_v29, %v594_v6  ;;  %v4170_v26 = vadd.f32 %v4169_v31, %v4168_v30 }
 0x11f   : > { %v4198_v40 = vadd.f32 %v4197_v49, %v4196_v25 }
 0x120   : > { %v5779_v41 = vadd.f32 %v4195_v50, %v797_v32  ;;  %v798_v37 = vadd.f32 %v4170_v26, %v597_v12 }
 0x122   : > { %v5781_v58 = vadd.f32 %v4198_v40, %v798_v37  ;;  %v4171_v42 = vpop.f32.mrb[12].mxu0 }
 0x123   : > { %v4172_v43 = vpop.f32.mrb[13].mxu0  ;;  %v4199_v44 = vpop.f32.mrb[12].mxu1 }
 0x124   : > { %v4173_v38 = vadd.f32 %v4172_v43, %v4171_v42  ;;  %v4174_v33 = vpop.f32.mrb[14].mxu0  ;;  %v4200_v34 = vpop.f32.mrb[13].mxu1 }
 0x125   : > { %v4175_v45 = vpop.f32.mrb[15].mxu0  ;;  %v4201_v47 = vadd.f32 %v4200_v34, %v4199_v44  ;;  %v4202_v48 = vpop.f32.mrb[14].mxu1 }
 0x126   : > { %v799_v46 = vadd.f32 %v4173_v38, %v602_v22  ;;  %v4176_v39 = vadd.f32 %v4175_v45, %v4174_v33  ;;  %v4203_v8 = vpop.f32.mrb[15].mxu1 }
 0x127   : > { %v4204_v52 = vadd.f32 %v4203_v8, %v4202_v48 }
 0x128   : > { %v800_v51 = vadd.f32 %v4176_v39, %v605_v24  ;;  %v5783_v63 = vadd.f32 %v4201_v47, %v799_v46 }
 0x12a   : > { %v5785_v53 = vadd.f32 %v4204_v52, %v800_v51 }
 0x13a   : > { %v4221_v54 = vpop.f32.mrb[16].mxu0 }
 0x13b   : > { %v4249_v55 = vpop.f32.mrb[16].mxu1  ;;  %v4222_v56 = vpop.f32.mrb[17].mxu0 }
 0x13c   : > { %v4250_v35 = vpop.f32.mrb[17].mxu1  ;;  %v4223_v59 = vadd.f32 %v4222_v56, %v4221_v54  ;;  %v4224_v61 = vpop.f32.mrb[18].mxu0 }
 0x13d   : > { %v4251_v60 = vadd.f32 %v4250_v35, %v4249_v55  ;;  %v4252_v62 = vpop.f32.mrb[18].mxu1  ;;  %v4225_v1 = vpop.f32.mrb[19].mxu0 }
 0x13e   : > { %v4253_v2 = vpop.f32.mrb[19].mxu1  ;;  %v4226_v4 = vadd.f32 %v4225_v1, %v4224_v61 }
 0x13f   : > { %v1390_v3 = vadd.f32 %v4251_v60, %v4223_v59  ;;  %v4254_v5 = vadd.f32 %v4253_v2, %v4252_v62 }
 0x141   : > { %v1393_v6 = vadd.f32 %v4254_v5, %v4226_v4 }
 0x142   : > { %v4227_v7 = vpop.f32.mrb[20].mxu0 }
 0x143   : > { %v4255_v9 = vpop.f32.mrb[20].mxu1  ;;  %v4228_v10 = vpop.f32.mrb[21].mxu0 }
 0x144   : > { %v4256_v12 = vpop.f32.mrb[21].mxu1  ;;  %v4229_v13 = vadd.f32 %v4228_v10, %v4227_v7  ;;  %v4230_v36 = vpop.f32.mrb[22].mxu0 }
 0x145   : > { %v4257_v14 = vadd.f32 %v4256_v12, %v4255_v9  ;;  %v4258_v57 = vpop.f32.mrb[22].mxu1  ;;  %v4231_v15 = vpop.f32.mrb[23].mxu0 }
 0x146   : > { %v4259_v16 = vpop.f32.mrb[23].mxu1  ;;  %v4232_v18 = vadd.f32 %v4231_v15, %v4230_v36 }
 0x147   : > { %v1398_v17 = vadd.f32 %v4257_v14, %v4229_v13  ;;  %v4260_v19 = vadd.f32 %v4259_v16, %v4258_v57 }
 0x149   : > { %v1401_v20 = vadd.f32 %v4260_v19, %v4232_v18 }
 0x15a   : > { %v4277_v21 = vpop.f32.mrb[24].mxu0 }
 0x15b   : > { %v4305_v22 = vpop.f32.mrb[24].mxu1  ;;  %v4278_v23 = vpop.f32.mrb[25].mxu0 }
 0x15c   : > { %v4306_v24 = vpop.f32.mrb[25].mxu1  ;;  %v4279_v27 = vadd.f32 %v4278_v23, %v4277_v21  ;;  %v4280_v28 = vpop.f32.mrb[26].mxu0 }
 0x15d   : > { %v4307_v11 = vadd.f32 %v4306_v24, %v4305_v22  ;;  %v4308_v0 = vpop.f32.mrb[26].mxu1  ;;  %v4281_v29 = vpop.f32.mrb[27].mxu0 }
 0x15e   : > { %v4309_v50 = vpop.f32.mrb[27].mxu1  ;;  %v1582_v30 = vadd.f32 %v4279_v27, %v1390_v3  ;;  %v4282_v25 = vadd.f32 %v4281_v29, %v4280_v28 }
 0x15f   : > { %v4310_v31 = vadd.f32 %v4309_v50, %v4308_v0 }
 0x160   : > { %v5787_v49 = vadd.f32 %v4307_v11, %v1582_v30  ;;  %v1583_v32 = vadd.f32 %v4282_v25, %v1393_v6 }
 0x162   : > { %v1768_v26 = vmax.f32 %v5779_v41, %v5787_v49  ;;  %v5791_v40 = vadd.f32 %v4310_v31, %v1583_v32  ;;  %v4283_v37 = vpop.f32.mrb[28].mxu0 }
 0x163   : > { %v4311_v42 = vpop.f32.mrb[28].mxu1  ;;  %v4284_v43 = vpop.f32.mrb[29].mxu0 }
 0x164   : > { %v4312_v38 = vpop.f32.mrb[29].mxu1  ;;  %v1769_v33 = vmax.f32 %v5781_v58, %v5791_v40  ;;  %v4285_v44 = vadd.f32 %v4284_v43, %v4283_v37  ;;  %v4286_v45 = vpop.f32.mrb[30].mxu0 }
 0x165   : > { %v4313_v46 = vadd.f32 %v4312_v38, %v4311_v42  ;;  %v4314_v39 = vpop.f32.mrb[30].mxu1  ;;  %v4287_v34 = vpop.f32.mrb[31].mxu0 }
 0x166   : > { %v4315_v47 = vpop.f32.mrb[31].mxu1  ;;  %v1584_v48 = vadd.f32 %v4285_v44, %v1398_v17  ;;  %v4288_v51 = vadd.f32 %v4287_v34, %v4286_v45 }
 0x167   : > { %v4316_v8 = vadd.f32 %v4315_v47, %v4314_v39 }
 0x168   : > { %v1585_v52 = vadd.f32 %v4288_v51, %v1401_v20  ;;  %v5795_v54 = vadd.f32 %v4313_v46, %v1584_v48 }
 0x16a   : > { %v1770_v55 = vmax.f32 %v5783_v63, %v5795_v54  ;;  %v5799_v56 = vadd.f32 %v4316_v8, %v1585_v52 }
 0x16c   : > { %v1771_v35 = vmax.f32 %v5785_v53, %v5799_v56 }
 0x17a   : > { %v4333_v59 = vpop.f32.mrb[32].mxu0 }
 0x17b   : > { %v4361_v60 = vpop.f32.mrb[32].mxu1  ;;  %v4334_v61 = vpop.f32.mrb[33].mxu0 }
 0x17c   : > { %v4362_v62 = vpop.f32.mrb[33].mxu1  ;;  %v4335_v1 = vadd.f32 %v4334_v61, %v4333_v59  ;;  %v4336_v3 = vpop.f32.mrb[34].mxu0 }
 0x17d   : > { %v4363_v2 = vadd.f32 %v4362_v62, %v4361_v60  ;;  %v4364_v4 = vpop.f32.mrb[34].mxu1  ;;  %v4337_v5 = vpop.f32.mrb[35].mxu0 }
 0x17e   : > { %v4365_v6 = vpop.f32.mrb[35].mxu1  ;;  %v4338_v9 = vadd.f32 %v4337_v5, %v4336_v3 }
 0x17f   : > { %v2114_v7 = vadd.f32 %v4363_v2, %v4335_v1  ;;  %v4366_v10 = vadd.f32 %v4365_v6, %v4364_v4 }
 0x181   : > { %v2117_v12 = vadd.f32 %v4366_v10, %v4338_v9 }
 0x182   : > { %v4339_v13 = vpop.f32.mrb[36].mxu0 }
 0x183   : > { %v4367_v14 = vpop.f32.mrb[36].mxu1  ;;  %v4340_v36 = vpop.f32.mrb[37].mxu0 }
 0x184   : > { %v4368_v57 = vpop.f32.mrb[37].mxu1  ;;  %v4341_v15 = vadd.f32 %v4340_v36, %v4339_v13  ;;  %v4342_v17 = vpop.f32.mrb[38].mxu0 }
 0x185   : > { %v4369_v16 = vadd.f32 %v4368_v57, %v4367_v14  ;;  %v4370_v18 = vpop.f32.mrb[38].mxu1  ;;  %v4343_v19 = vpop.f32.mrb[39].mxu0 }
 0x186   : > { %v4371_v20 = vpop.f32.mrb[39].mxu1  ;;  %v4344_v22 = vadd.f32 %v4343_v19, %v4342_v17 }
 0x187   : > { %v2122_v21 = vadd.f32 %v4369_v16, %v4341_v15  ;;  %v4372_v23 = vadd.f32 %v4371_v20, %v4370_v18 }
 0x189   : > { %v2125_v24 = vadd.f32 %v4372_v23, %v4344_v22 }
 0x19a   : > { %v4389_v27 = vpop.f32.mrb[40].mxu0 }
 0x19b   : > { %v4417_v11 = vpop.f32.mrb[40].mxu1  ;;  %v4390_v28 = vpop.f32.mrb[41].mxu0 }
 0x19c   : > { %v4418_v0 = vpop.f32.mrb[41].mxu1  ;;  %v4391_v29 = vadd.f32 %v4390_v28, %v4389_v27  ;;  %v4392_v30 = vpop.f32.mrb[42].mxu0 }
 0x19d   : > { %v4419_v50 = vadd.f32 %v4418_v0, %v4417_v11  ;;  %v4420_v25 = vpop.f32.mrb[42].mxu1  ;;  %v4393_v31 = vpop.f32.mrb[43].mxu0 }
 0x19e   : > { %v4421_v32 = vpop.f32.mrb[43].mxu1  ;;  %v2306_v37 = vadd.f32 %v4391_v29, %v2114_v7  ;;  %v4394_v42 = vadd.f32 %v4393_v31, %v4392_v30 }
 0x19f   : > { %v4422_v43 = vadd.f32 %v4421_v32, %v4420_v25 }
 0x1a0   : > { %v2488_v38 = vadd.f32 %v4419_v50, %v2306_v37  ;;  %v2307_v44 = vadd.f32 %v4394_v42, %v2117_v12 }
 0x1a2   : > { %v5806_v45 = vmax.f32 %v1768_v26, %v2488_v38  ;;  %v2489_v46 = vadd.f32 %v4422_v43, %v2307_v44  ;;  %v4395_v39 = vpop.f32.mrb[44].mxu0 }
 0x1a3   : > { %v4423_v34 = vpop.f32.mrb[44].mxu1  ;;  %v4396_v47 = vpop.f32.mrb[45].mxu0 }
 0x1a4   : > { %v4424_v48 = vpop.f32.mrb[45].mxu1  ;;  %v5811_v51 = vmax.f32 %v1769_v33, %v2489_v46  ;;  %v4397_v8 = vadd.f32 %v4396_v47, %v4395_v39  ;;  %v4398_v52 = vpop.f32.mrb[46].mxu0  ;;  %v4070_v46 = vld [vmem:[%s5839_s2] ss:$0 sm:$0xff] }
 0x1a5   : > { %v4425_v59 = vadd.f32 %v4424_v48, %v4423_v34  ;;  %v4426_v60 = vpop.f32.mrb[46].mxu1  ;;  %v4399_v61 = vpop.f32.mrb[47].mxu0 }
 0x1a6   : > { %v4427_v62 = vpop.f32.mrb[47].mxu1  ;;  %v2308_v1 = vadd.f32 %v4397_v8, %v2122_v21  ;;  %v4400_v41 = vadd.f32 %v4399_v61, %v4398_v52 }
 0x1a7   : > { %v4428_v49 = vadd.f32 %v4427_v62, %v4426_v60 }
 0x1a8   : > { %v2309_v26 = vadd.f32 %v4400_v41, %v2125_v24  ;;  %v2490_v2 = vadd.f32 %v4425_v59, %v2308_v1 }
 0x1aa   : > { %v5816_v3 = vmax.f32 %v1770_v55, %v2490_v2  ;;  %v2491_v4 = vadd.f32 %v4428_v49, %v2309_v26 }
 0x1ac   : > { %v5821_v58 = vmax.f32 %v1771_v35, %v2491_v4 }
 0x1ba   : > { %v4445_v40 = vpop.f32.mrb[48].mxu0 }
 0x1bb   : > { %v4473_v33 = vpop.f32.mrb[48].mxu1  ;;  %v4446_v5 = vpop.f32.mrb[49].mxu0 }
 0x1bc   : > { %v4474_v6 = vpop.f32.mrb[49].mxu1  ;;  %v4447_v7 = vadd.f32 %v4446_v5, %v4445_v40  ;;  %v4448_v10 = vpop.f32.mrb[50].mxu0 }
 0x1bd   : > { %v4475_v9 = vadd.f32 %v4474_v6, %v4473_v33  ;;  %v4476_v12 = vpop.f32.mrb[50].mxu1  ;;  %v4449_v13 = vpop.f32.mrb[51].mxu0 }
 0x1be   : > { %v4477_v14 = vpop.f32.mrb[51].mxu1  ;;  %v4450_v63 = vadd.f32 %v4449_v13, %v4448_v10 }
 0x1bf   : > { %v2838_v36 = vadd.f32 %v4475_v9, %v4447_v7  ;;  %v4478_v54 = vadd.f32 %v4477_v14, %v4476_v12 }
 0x1c1   : > { %v2841_v55 = vadd.f32 %v4478_v54, %v4450_v63 }
 0x1c2   : > { %v4451_v57 = vpop.f32.mrb[52].mxu0 }
 0x1c3   : > { %v4479_v15 = vpop.f32.mrb[52].mxu1  ;;  %v4452_v16 = vpop.f32.mrb[53].mxu0 }
 0x1c4   : > { %v4480_v53 = vpop.f32.mrb[53].mxu1  ;;  %v4453_v56 = vadd.f32 %v4452_v16, %v4451_v57  ;;  %v4454_v17 = vpop.f32.mrb[54].mxu0 }
 0x1c5   : > { %v4481_v35 = vadd.f32 %v4480_v53, %v4479_v15  ;;  %v4482_v18 = vpop.f32.mrb[54].mxu1  ;;  %v4455_v19 = vpop.f32.mrb[55].mxu0 }
 0x1c6   : > { %v4483_v20 = vpop.f32.mrb[55].mxu1  ;;  %v4456_v22 = vadd.f32 %v4455_v19, %v4454_v17 }
 0x1c7   : > { %v2846_v21 = vadd.f32 %v4481_v35, %v4453_v56  ;;  %v4484_v23 = vadd.f32 %v4483_v20, %v4482_v18 }
 0x1c9   : > { %v2849_v24 = vadd.f32 %v4484_v23, %v4456_v22 }
 0x1da   : > { %v4501_v27 = vpop.f32.mrb[56].mxu0 }
 0x1db   : > { %v4529_v11 = vpop.f32.mrb[56].mxu1  ;;  %v4502_v28 = vpop.f32.mrb[57].mxu0 }
 0x1dc   : > { %v4530_v0 = vpop.f32.mrb[57].mxu1  ;;  %v4503_v29 = vadd.f32 %v4502_v28, %v4501_v27  ;;  %v4504_v30 = vpop.f32.mrb[58].mxu0 }
 0x1dd   : > { %v4531_v50 = vadd.f32 %v4530_v0, %v4529_v11  ;;  %v4532_v25 = vpop.f32.mrb[58].mxu1  ;;  %v4505_v31 = vpop.f32.mrb[59].mxu0 }
 0x1de   : > { %v4533_v32 = vpop.f32.mrb[59].mxu1  ;;  %v3030_v37 = vadd.f32 %v4503_v29, %v2838_v36  ;;  %v4506_v42 = vadd.f32 %v4505_v31, %v4504_v30 }
 0x1df   : > { %v4534_v43 = vadd.f32 %v4533_v32, %v4532_v25 }
 0x1e0   : > { %v3212_v38 = vadd.f32 %v4531_v50, %v3030_v37  ;;  %v3031_v44 = vadd.f32 %v4506_v42, %v2841_v55 }
 0x1e2   : > { %v3216_v39 = vmax.f32 %v5806_v45, %v3212_v38  ;;  %v3213_v34 = vadd.f32 %v4534_v43, %v3031_v44  ;;  %v4507_v47 = vpop.f32.mrb[60].mxu0 }
 0x1e3   : > { %v4535_v48 = vpop.f32.mrb[60].mxu1  ;;  %v4508_v8 = vpop.f32.mrb[61].mxu0 }
 0x1e4   : > { %v4536_v52 = vpop.f32.mrb[61].mxu1  ;;  %v3227_v59 = vadd.f32 %v4070_v46, %v3216_v39  ;;  %v3217_v60 = vmax.f32 %v5811_v51, %v3213_v34  ;;  %v4509_v61 = vadd.f32 %v4508_v8, %v4507_v47  ;;  %v4510_v1 = vpop.f32.mrb[62].mxu0 }
 0x1e5   : > { %v4537_v62 = vadd.f32 %v4536_v52, %v4535_v48  ;;  %v4538_v41 = vpop.f32.mrb[62].mxu1  ;;  %v4511_v49 = vpop.f32.mrb[63].mxu0 }
 0x1e6   : > { %v4539_v26 = vpop.f32.mrb[63].mxu1  ;;  %v3228_v2 = vadd.f32 %v4070_v46, %v3217_v60  ;;  %v3032_v4 = vadd.f32 %v4509_v61, %v2846_v21  ;;  %v4512_v40 = vadd.f32 %v4511_v49, %v4510_v1  ;;  %v3231_v45 = vmax.f32 %v3227_v59, 0.0 }
 0x1e7   : > { %v4540_v33 = vadd.f32 %v4539_v26, %v4538_v41 }
 0x1e8   : > { %v3232_v5 = vmax.f32 %v3228_v2, 0.0  ;;  %v3214_v6 = vadd.f32 %v4537_v62, %v3032_v4  ;;  %v3033_v7 = vadd.f32 %v4512_v40, %v2849_v24 }
 0x1ea   : > { %v4085_v51 = vpack.c.bf16 %v3232_v5, %v3231_v45  ;;  %v3218_v9 = vmax.f32 %v5816_v3, %v3214_v6  ;;  %v3215_v10 = vadd.f32 %v4540_v33, %v3033_v7 }
 0x1ec   : > { %4086 = vst [vmem:[%s170_s11] sm:$0xff] %v4085_v51   ;;  %v3229_v12 = vadd.f32 %v4070_v46, %v3218_v9  ;;  %v3219_v13 = vmax.f32 %v5821_v58, %v3215_v10 }
 0x1ee   : > { %v3230_v14 = vadd.f32 %v4070_v46, %v3219_v13  ;;  %v3233_v36 = vmax.f32 %v3229_v12, 0.0 }
 0x1f0   : > { %v3234_v63 = vmax.f32 %v3230_v14, 0.0 }
 0x1f2   : > { %v4090_v54 = vpack.c.bf16 %v3234_v63, %v3233_v36 }
 0x1f4   : > { %4092 = vst [vmem:[%s170_s11 + $0x8] sm:$0xff] %v4090_v54  }
 0x1f5 PF: > { %s13_s12 = sadd.s32 1, %s4824_s12  }
 0x1f6   : > { %p10_p4 = scmp.ge.s32.totalorder %s13_s12, 4  }
 0x1f8   :  { %12 = sbr.rel (!%p10_p4) target bundleno = 1 (0x1), region = 77 }

// kernel: custom_gesture_cnn_forward.7
= control target key start
LH: loop header
LB: loop body
LE: loop exit
PB: predicated region body
PF: predicated region fallthrough
CT: control target
= control target key end

     0   :  { %v3003_v36 = vmov 1966171168   ;;  %v292_v38 = vlaneseq  ;;  %s3932_s0 = inlined_call_operand.vmem [shape: bf16[2,2048], index: 0, kind: input, shape index: {}]   ;;  %s3933_s1 = inlined_call_operand.vmem [shape: bf16[2048,256], index: 1, kind: input, shape index: {}]   ;;  %s3934_s2 = inlined_call_operand.vmem [shape: f32[1,256], index: 2, kind: input, shape index: {}]   ;;  %s3935_s3 = inlined_call_operand.vmem [shape: bf16[256,10], index: 3, kind: input, shape index: {}]   ;;  %s3936_s4 = inlined_call_operand.vmem [shape: f32[1,10], index: 4, kind: input, shape index: {}]   ;;  %s3937_s5 = inlined_call_operand.hbm [shape: f32[2,10], index: 5, kind: output, shape index: {}]  }
   0x1   :  { %v2577_v0 = vld [vmem:[%s3933_s1 + $0x4] ss:$8 sps:$4 sm:$0xff]   ;;  %v2581_v2 = vld [vmem:[%s3933_s1] ss:$8 sps:$4 sm:$0xff]   ;;  %v2583_v4 = vld [vmem:[%s3933_s1 + $0x14] ss:$8 sps:$4 sm:$0xff]   ;;  %v290_v37 = vunpack.c.l.s4 %v3003_v36 }
   0x2   :  { %v2579_v1 = vld [vmem:[%s3933_s1 + $0x404] ss:$8 sps:$4 sm:$0xff]   ;;  %1682 = vmatprep.subr.bf16.mxu1 %v2577_v0  ;;  %v2582_v3 = vld [vmem:[%s3933_s1 + $0x400] ss:$8 sps:$4 sm:$0xff]   ;;  %v2585_v5 = vld [vmem:[%s3933_s1 + $0x414] ss:$8 sps:$4 sm:$0xff]  }
   0x3   :  { %1846 = vmatprep.subr.bf16.mxu0 %v2579_v1  ;;  %1683 = vmatpush1.bf16.msra.mxu1 %v2581_v2  ;;  %v2587_v6 = vld [vmem:[%s3933_s1 + $0x10] ss:$8 sps:$4 sm:$0xff]   ;;  %v2589_v8 = vld [vmem:[%s3933_s1 + $0x24] ss:$8 sps:$4 sm:$0xff]   ;;  %v2593_v10 = vld [vmem:[%s3933_s1 + $0x20] ss:$8 sps:$4 sm:$0xff]   ;;  %v291_v42 = vunpack.c.0.s8 %v290_v37 }
   0x4   :  { %1847 = vmatpush1.bf16.msra.mxu0 %v2582_v3  ;;  %1684 = vmatprep.subr.bf16.mxu1 %v2583_v4  ;;  %v2588_v7 = vld [vmem:[%s3933_s1 + $0x410] ss:$8 sps:$4 sm:$0xff]   ;;  %v2591_v9 = vld [vmem:[%s3933_s1 + $0x424] ss:$8 sps:$4 sm:$0xff]   ;;  %v2594_v11 = vld [vmem:[%s3933_s1 + $0x420] ss:$8 sps:$4 sm:$0xff]  }
   0x5   :  { %1848 = vmatprep.subr.bf16.mxu0 %v2585_v5  ;;  %v2595_v12 = vld [vmem:[%s3933_s1 + $0x34] ss:$8 sps:$4 sm:$0xff]   ;;  %v2599_v14 = vld [vmem:[%s3933_s1 + $0x30] ss:$8 sps:$4 sm:$0xff]   ;;  %v2601_v16 = vld [vmem:[%s3933_s1 + $0x44] ss:$8 sps:$4 sm:$0xff]  }
   0x6   :  { %v2597_v13 = vld [vmem:[%s3933_s1 + $0x434] ss:$8 sps:$4 sm:$0xff]   ;;  %v2600_v15 = vld [vmem:[%s3933_s1 + $0x430] ss:$8 sps:$4 sm:$0xff]   ;;  %v2603_v17 = vld [vmem:[%s3933_s1 + $0x444] ss:$8 sps:$4 sm:$0xff]  }
   0x7   :  { %1685 = vmatpush1.bf16.msra.mxu1 %v2587_v6  ;;  %v2605_v18 = vld [vmem:[%s3933_s1 + $0x40] ss:$8 sps:$4 sm:$0xff]   ;;  %v2607_v20 = vld [vmem:[%s3933_s1 + $0x54] ss:$8 sps:$4 sm:$0xff]   ;;  %v2611_v22 = vld [vmem:[%s3933_s1 + $0x50] ss:$8 sps:$4 sm:$0xff]  }
   0x8   :  { %1849 = vmatpush1.bf16.msra.mxu0 %v2588_v7  ;;  %1686 = vmatprep.subr.bf16.mxu1 %v2589_v8  ;;  %v2606_v19 = vld [vmem:[%s3933_s1 + $0x440] ss:$8 sps:$4 sm:$0xff]   ;;  %v2609_v21 = vld [vmem:[%s3933_s1 + $0x454] ss:$8 sps:$4 sm:$0xff]   ;;  %v2612_v23 = vld [vmem:[%s3933_s1 + $0x450] ss:$8 sps:$4 sm:$0xff]  }
   0x9   :  { %1850 = vmatprep.subr.bf16.mxu0 %v2591_v9  ;;  %v2613_v24 = vld [vmem:[%s3933_s1 + $0x64] ss:$8 sps:$4 sm:$0xff]   ;;  %v2617_v26 = vld [vmem:[%s3933_s1 + $0x60] ss:$8 sps:$4 sm:$0xff]   ;;  %v2619_v28 = vld [vmem:[%s3933_s1 + $0x74] ss:$8 sps:$4 sm:$0xff]  }
   0xa   :  { %v2615_v25 = vld [vmem:[%s3933_s1 + $0x464] ss:$8 sps:$4 sm:$0xff]   ;;  %v2618_v27 = vld [vmem:[%s3933_s1 + $0x460] ss:$8 sps:$4 sm:$0xff]   ;;  %v2621_v29 = vld [vmem:[%s3933_s1 + $0x474] ss:$8 sps:$4 sm:$0xff]  }
   0xb   :  { %1687 = vmatpush1.bf16.msra.mxu1 %v2593_v10  ;;  %v2623_v30 = vld [vmem:[%s3933_s1 + $0x70] ss:$8 sps:$4 sm:$0xff]   ;;  %v2625_v32 = vld [vmem:[%s3933_s1 + $0x84] ss:$8 sps:$4 sm:$0xff]   ;;  %v2629_v34 = vld [vmem:[%s3933_s1 + $0x80] ss:$8 sps:$4 sm:$0xff]  }
   0xc   :  { %1851 = vmatpush1.bf16.msra.mxu0 %v2594_v11  ;;  %1688 = vmatprep.subr.bf16.mxu1 %v2595_v12  ;;  %v2624_v31 = vld [vmem:[%s3933_s1 + $0x470] ss:$8 sps:$4 sm:$0xff]   ;;  %v2627_v33 = vld [vmem:[%s3933_s1 + $0x484] ss:$8 sps:$4 sm:$0xff]   ;;  %v2630_v35 = vld [vmem:[%s3933_s1 + $0x480] ss:$8 sps:$4 sm:$0xff]  }
   0xd   :  { %1852 = vmatprep.subr.bf16.mxu0 %v2597_v13  ;;  %v2631_v39 = vld [vmem:[%s3933_s1 + $0x94] ss:$8 sps:$4 sm:$0xff]   ;;  %v2635_v41 = vld [vmem:[%s3933_s1 + $0x90] ss:$8 sps:$4 sm:$0xff]   ;;  %v3154_v43 = vshrl.u32 %v292_v38, 7  ;;  %v28_v52 = vld [vmem:[%s3932_s0] sm:$0xff] }
   0xe   :  { %v2633_v40 = vld [vmem:[%s3933_s1 + $0x494] ss:$8 sps:$4 sm:$0xff]   ;;  %v2636_v44 = vld [vmem:[%s3933_s1 + $0x490] ss:$8 sps:$4 sm:$0xff]   ;;  %v2637_v45 = vld [vmem:[%s3933_s1 + $0xa4] ss:$8 sps:$4 sm:$0xff]   ;;  %v288_v12 = vcombine.high %v28_v52, %v28_v52 }
   0xf   :  { %1689 = vmatpush1.bf16.msra.mxu1 %v2599_v14  ;;  %v2639_v46 = vld [vmem:[%s3933_s1 + $0x4a4] ss:$8 sps:$4 sm:$0xff]   ;;  %v2641_v47 = vld [vmem:[%s3933_s1 + $0xa0] ss:$8 sps:$4 sm:$0xff]   ;;  %v3172_v49 = vsub.s32 %v291_v42, %v3154_v43  ;;  %v2643_v50 = vld [vmem:[%s3933_s1 + $0xb4] ss:$8 sps:$4 sm:$0xff]  }
  0x10   :  { %1853 = vmatpush1.bf16.msra.mxu0 %v2600_v15  ;;  %1690 = vmatprep.subr.bf16.mxu1 %v2601_v16  ;;  %v2642_v48 = vld [vmem:[%s3933_s1 + $0x4a0] ss:$8 sps:$4 sm:$0xff]   ;;  %v2645_v51 = vld [vmem:[%s3933_s1 + $0x4b4] ss:$8 sps:$4 sm:$0xff]   ;;  %v2647_v53 = vld [vmem:[%s3933_s1 + $0xb0] ss:$8 sps:$4 sm:$0xff]  }
  0x11   :  { %1854 = vmatprep.subr.bf16.mxu0 %v2603_v17  ;;  %v295_v54 = vrot.slane %v28_v52, %v3172_v49  ;;  %v2648_v55 = vld [vmem:[%s3933_s1 + $0x4b0] ss:$8 sps:$4 sm:$0xff]   ;;  %v29_v56 = vld [vmem:[%s3932_s0 + $0x8] sm:$0xff]  ;;  %v2655_v1 = vld [vmem:[%s3933_s1 + $0xd4] ss:$8 sps:$4 sm:$0xff]  }
  0x12   :  { %v2649_v57 = vld [vmem:[%s3933_s1 + $0xc4] ss:$8 sps:$4 sm:$0xff]   ;;  %v344_v60 = vrot.slane %v29_v56, %v3172_v49  ;;  %v2653_v63 = vld [vmem:[%s3933_s1 + $0xc0] ss:$8 sps:$4 sm:$0xff]   ;;  %v2657_v2 = vld [vmem:[%s3933_s1 + $0x4d4] ss:$8 sps:$4 sm:$0xff]   ;;  %v337_v13 = vcombine.high %v29_v56, %v29_v56 }
  0x13   :  { %1691 = vmatpush1.bf16.msra.mxu1 %v2605_v18  ;;  %v2651_v58 = vld [vmem:[%s3933_s1 + $0x4c4] ss:$8 sps:$4 sm:$0xff]   ;;  %v303_v59 = vcombine.high %v295_v54, %v295_v54  ;;  %v2654_v0 = vld [vmem:[%s3933_s1 + $0x4c0] ss:$8 sps:$4 sm:$0xff]   ;;  %v2659_v4 = vld [vmem:[%s3933_s1 + $0xd0] ss:$8 sps:$4 sm:$0xff]   ;;  %v302_v18 = vrot.slane %v288_v12, %v3172_v49 }
  0x14   :  { %1855 = vmatpush1.bf16.msra.mxu0 %v2606_v19  ;;  %1692 = vmatprep.subr.bf16.mxu1 %v2607_v20  ;;  %v352_v62 = vcombine.high %v344_v60, %v344_v60  ;;  %v2660_v5 = vld [vmem:[%s3933_s1 + $0x4d0] ss:$8 sps:$4 sm:$0xff]   ;;  %v2661_v6 = vld [vmem:[%s3933_s1 + $0xe4] ss:$8 sps:$4 sm:$0xff]   ;;  %v2665_v8 = vld [vmem:[%s3933_s1 + $0xe0] ss:$8 sps:$4 sm:$0xff]   ;;  %v351_v19 = vrot.slane %v337_v13, %v3172_v49  ;;  %v3256_v20 = vrot.slane %v295_v54, %v3172_v49 }
  0x15   :  { %1856 = vmatprep.subr.bf16.mxu0 %v2609_v21  ;;  %v3201_v61 = vrot.slane %v303_v59, %v3172_v49  ;;  %v2663_v7 = vld [vmem:[%s3933_s1 + $0x4e4] ss:$8 sps:$4 sm:$0xff]   ;;  %v2666_v9 = vld [vmem:[%s3933_s1 + $0x4e0] ss:$8 sps:$4 sm:$0xff]   ;;  %v2667_v10 = vld [vmem:[%s3933_s1 + $0xf4] ss:$8 sps:$4 sm:$0xff]   ;;  %v3259_v21 = vrot.slane %v344_v60, %v3172_v49 }
  0x16   :  { %v374_v3 = vrot.slane %v352_v62, %v3172_v49  ;;  %v2669_v11 = vld [vmem:[%s3933_s1 + $0x4f4] ss:$8 sps:$4 sm:$0xff]   ;;  %v2671_v14 = vld [vmem:[%s3933_s1 + $0xf0] ss:$8 sps:$4 sm:$0xff]   ;;  %v2676_v16 = vld [vmem:[%s3933_s1 + $0x104] ss:$8 sps:$4 sm:$0xff]  }
  0x17   :  { %1693 = vmatpush1.bf16.msra.mxu1 %v2611_v22  ;;  %1714 = vmatprep.mubr.bf16.mxu1 %v3201_v61  ;;  %v2672_v15 = vld [vmem:[%s3933_s1 + $0x4f0] ss:$8 sps:$4 sm:$0xff]   ;;  %v2680_v17 = vld [vmem:[%s3933_s1 + $0x504] ss:$8 sps:$4 sm:$0xff]   ;;  %v304_v22 = vcombine.high %v302_v18, %v302_v18  ;;  %v2687_v38 = vld [vmem:[%s3933_s1 + $0x120] ss:$8 sps:$4 sm:$0xff]  }
  0x18   :  { %1857 = vmatpush1.bf16.msra.mxu0 %v2612_v23  ;;  %1694 = vmatprep.subr.bf16.mxu1 %v2613_v24  ;;  %v353_v23 = vcombine.high %v351_v19, %v351_v19  ;;  %v2674_v24 = vld [vmem:[%s3933_s1 + $0x100] ss:$8 sps:$4 sm:$0xff]   ;;  %v2689_v36 = vld [vmem:[%s3933_s1 + $0x124] ss:$8 sps:$4 sm:$0xff]   ;;  %v2693_v42 = vld [vmem:[%s3933_s1 + $0x130] ss:$8 sps:$4 sm:$0xff]  }
  0x19   :  { %1858 = vmatprep.subr.bf16.mxu0 %v2615_v25  ;;  %1878 = vmatprep.mubr.bf16.mxu0 %v374_v3  ;;  %v2678_v25 = vld [vmem:[%s3933_s1 + $0x500] ss:$8 sps:$4 sm:$0xff]   ;;  %v2692_v37 = vld [vmem:[%s3933_s1 + $0x524] ss:$8 sps:$4 sm:$0xff]   ;;  %v2708_v52 = vld [vmem:[%s3933_s1 + $0x550] ss:$8 sps:$4 sm:$0xff]  }
  0x1a   :  { %v2716_v54 = vld [vmem:[%s3933_s1 + $0x564] ss:$8 sps:$4 sm:$0xff]   ;;  %v2714_v56 = vld [vmem:[%s3933_s1 + $0x560] ss:$8 sps:$4 sm:$0xff]   ;;  %v2717_v59 = vld [vmem:[%s3933_s1 + $0x170] ss:$8 sps:$4 sm:$0xff]  }
  0x1b   :  { %1695 = vmatpush1.bf16.msra.mxu1 %v2617_v26  ;;  %v2683_v26 = vld [vmem:[%s3933_s1 + $0x114] ss:$8 sps:$4 sm:$0xff]   ;;  %v2720_v60 = vld [vmem:[%s3933_s1 + $0x570] ss:$8 sps:$4 sm:$0xff]   ;;  %v2728_v62 = vld [vmem:[%s3933_s1 + $0x584] ss:$8 sps:$4 sm:$0xff]  }
  0x1c   :  { %1859 = vmatpush1.bf16.msra.mxu0 %v2618_v27  ;;  %1696 = vmatprep.subr.bf16.mxu1 %v2619_v28  ;;  %v2686_v27 = vld [vmem:[%s3933_s1 + $0x514] ss:$8 sps:$4 sm:$0xff]   ;;  %v3274_v28 = vrot.slane %v304_v22, %v3172_v49  ;;  %v2744_v12 = vld [vmem:[%s3933_s1 + $0x5b0] ss:$8 sps:$4 sm:$0xff]   ;;  %v2749_v13 = vld [vmem:[%s3933_s1 + $0x1c4] ss:$8 sps:$4 sm:$0xff]  }
  0x1d   :  { %1860 = vmatprep.subr.bf16.mxu0 %v2621_v29  ;;  %v3277_v29 = vrot.slane %v353_v23, %v3172_v49  ;;  %v2756_v22 = vld [vmem:[%s3933_s1 + $0x5d0] ss:$8 sps:$4 sm:$0xff]   ;;  %v2761_v23 = vld [vmem:[%s3933_s1 + $0x1e4] ss:$8 sps:$4 sm:$0xff]  }
  0x1f   :  { %1697 = vmatpush1.bf16.msra.mxu1 %v2623_v30  ;;  %v3280_v30 = vrot.slane %v302_v18, %v3172_v49  ;;  %v2758_v18 = vld [vmem:[%s3933_s1 + $0x5d4] ss:$8 sps:$4 sm:$0xff]  }
  0x20   :  { %1861 = vmatpush1.bf16.msra.mxu0 %v2624_v31  ;;  %1698 = vmatprep.subr.bf16.mxu1 %v2625_v32  ;;  %v335_v31 = vcombine.high %v3201_v61, %v3201_v61  ;;  %v384_v32 = vcombine.high %v374_v3, %v374_v3  ;;  %v2725_v61 = vld [vmem:[%s3933_s1 + $0x184] ss:$8 sps:$4 sm:$0xff]   ;;  %v2729_v3 = vld [vmem:[%s3933_s1 + $0x190] ss:$8 sps:$4 sm:$0xff]  }
  0x21   :  { %1862 = vmatprep.subr.bf16.mxu0 %v2627_v33  ;;  %v3285_v33 = vrot.slane %v351_v19, %v3172_v49  ;;  %v2707_v49 = vld [vmem:[%s3933_s1 + $0x154] ss:$8 sps:$4 sm:$0xff]   ;;  %v2753_v19 = vld [vmem:[%s3933_s1 + $0x1d0] ss:$8 sps:$4 sm:$0xff]  }
  0x23   :  { %1699 = vmatpush1.bf16.msra.mxu1 %v2629_v34  ;;  %v2681_v34 = vld [vmem:[%s3933_s1 + $0x110] ss:$8 sps:$4 sm:$0xff]  }
  0x24   :  { %1863 = vmatpush1.bf16.msra.mxu0 %v2630_v35  ;;  %1700 = vmatprep.subr.bf16.mxu1 %v2631_v39  ;;  %v2684_v35 = vld [vmem:[%s3933_s1 + $0x510] ss:$8 sps:$4 sm:$0xff]   ;;  %v2690_v39 = vld [vmem:[%s3933_s1 + $0x520] ss:$8 sps:$4 sm:$0xff]  }
  0x25   :  { %1864 = vmatprep.subr.bf16.mxu0 %v2633_v40  ;;  %v2695_v40 = vld [vmem:[%s3933_s1 + $0x134] ss:$8 sps:$4 sm:$0xff]  }
  0x27   :  { %1701 = vmatpush1.bf16.msra.mxu1 %v2635_v41  ;;  %v2698_v41 = vld [vmem:[%s3933_s1 + $0x534] ss:$8 sps:$4 sm:$0xff]  }
  0x28   :  { %1865 = vmatpush1.bf16.msra.mxu0 %v2636_v44  ;;  %1702 = vmatprep.subr.bf16.mxu1 %v2637_v45  ;;  %v2696_v44 = vld [vmem:[%s3933_s1 + $0x530] ss:$8 sps:$4 sm:$0xff]   ;;  %v2701_v45 = vld [vmem:[%s3933_s1 + $0x144] ss:$8 sps:$4 sm:$0xff]  }
  0x29   :  { %1866 = vmatprep.subr.bf16.mxu0 %v2639_v46  ;;  %v2704_v46 = vld [vmem:[%s3933_s1 + $0x544] ss:$8 sps:$4 sm:$0xff]  }
  0x2b   :  { %1703 = vmatpush1.bf16.msra.mxu1 %v2641_v47  ;;  %v2699_v47 = vld [vmem:[%s3933_s1 + $0x140] ss:$8 sps:$4 sm:$0xff]  }
  0x2c   :  { %1867 = vmatpush1.bf16.msra.mxu0 %v2642_v48  ;;  %1704 = vmatprep.subr.bf16.mxu1 %v2643_v50  ;;  %v2702_v48 = vld [vmem:[%s3933_s1 + $0x540] ss:$8 sps:$4 sm:$0xff]   ;;  %v2710_v50 = vld [vmem:[%s3933_s1 + $0x554] ss:$8 sps:$4 sm:$0xff]  }
  0x2d   :  { %1868 = vmatprep.subr.bf16.mxu0 %v2645_v51  ;;  %v2705_v51 = vld [vmem:[%s3933_s1 + $0x150] ss:$8 sps:$4 sm:$0xff]  }
  0x2f   :  { %1705 = vmatpush1.bf16.msra.mxu1 %v2647_v53  ;;  %v2713_v53 = vld [vmem:[%s3933_s1 + $0x164] ss:$8 sps:$4 sm:$0xff]  }
  0x30   :  { %1869 = vmatpush1.bf16.msra.mxu0 %v2648_v55  ;;  %1706 = vmatprep.subr.bf16.mxu1 %v2649_v57  ;;  %v2711_v55 = vld [vmem:[%s3933_s1 + $0x160] ss:$8 sps:$4 sm:$0xff]   ;;  %v2719_v57 = vld [vmem:[%s3933_s1 + $0x174] ss:$8 sps:$4 sm:$0xff]  }
  0x31   :  { %1870 = vmatprep.subr.bf16.mxu0 %v2651_v58  ;;  %v2722_v58 = vld [vmem:[%s3933_s1 + $0x574] ss:$8 sps:$4 sm:$0xff]  }
  0x33   :  { %1707 = vmatpush1.bf16.msra.mxu1 %v2653_v63  ;;  %v2723_v63 = vld [vmem:[%s3933_s1 + $0x180] ss:$8 sps:$4 sm:$0xff]  }
  0x34   :  { %1871 = vmatpush1.bf16.msra.mxu0 %v2654_v0  ;;  %1708 = vmatprep.subr.bf16.mxu1 %v2655_v1  ;;  %v2726_v0 = vld [vmem:[%s3933_s1 + $0x580] ss:$8 sps:$4 sm:$0xff]   ;;  %v2731_v1 = vld [vmem:[%s3933_s1 + $0x194] ss:$8 sps:$4 sm:$0xff]  }
  0x35   :  { %1872 = vmatprep.subr.bf16.mxu0 %v2657_v2  ;;  %v2734_v2 = vld [vmem:[%s3933_s1 + $0x594] ss:$8 sps:$4 sm:$0xff]  }
  0x37   :  { %1709 = vmatpush1.bf16.msra.mxu1 %v2659_v4  ;;  %v2732_v4 = vld [vmem:[%s3933_s1 + $0x590] ss:$8 sps:$4 sm:$0xff]  }
  0x38   :  { %1873 = vmatpush1.bf16.msra.mxu0 %v2660_v5  ;;  %1710 = vmatprep.subr.bf16.mxu1 %v2661_v6  ;;  %v2737_v5 = vld [vmem:[%s3933_s1 + $0x1a4] ss:$8 sps:$4 sm:$0xff]  }
  0x39   :  { %1874 = vmatprep.subr.bf16.mxu0 %v2663_v7  ;;  %v2740_v6 = vld [vmem:[%s3933_s1 + $0x5a4] ss:$8 sps:$4 sm:$0xff]   ;;  %v2735_v7 = vld [vmem:[%s3933_s1 + $0x1a0] ss:$8 sps:$4 sm:$0xff]  }
  0x3b   :  { %1711 = vmatpush1.bf16.msra.mxu1 %v2665_v8  ;;  %v2738_v8 = vld [vmem:[%s3933_s1 + $0x5a0] ss:$8 sps:$4 sm:$0xff]  }
  0x3c   :  { %1875 = vmatpush1.bf16.msra.mxu0 %v2666_v9  ;;  %1712 = vmatprep.subr.bf16.mxu1 %v2667_v10  ;;  %v2743_v9 = vld [vmem:[%s3933_s1 + $0x1b4] ss:$8 sps:$4 sm:$0xff]  }
  0x3d   :  { %1876 = vmatprep.subr.bf16.mxu0 %v2669_v11  ;;  %v2746_v10 = vld [vmem:[%s3933_s1 + $0x5b4] ss:$8 sps:$4 sm:$0xff]   ;;  %v2741_v11 = vld [vmem:[%s3933_s1 + $0x1b0] ss:$8 sps:$4 sm:$0xff]  }
  0x3f   :  { %1713 = vmatpush1.bf16.msra.mxu1 %v2671_v14  ;;  %v2752_v14 = vld [vmem:[%s3933_s1 + $0x5c4] ss:$8 sps:$4 sm:$0xff]  }
  0x40   :  { %1877 = vmatpush1.bf16.msra.mxu0 %v2672_v15  ;;  %1723 = vmatprep.subr.bf16.mxu1 %v2676_v16  ;;  %v2747_v15 = vld [vmem:[%s3933_s1 + $0x1c0] ss:$8 sps:$4 sm:$0xff]  }
  0x41   :  { %1887 = vmatprep.subr.bf16.mxu0 %v2680_v17  ;;  %v2750_v16 = vld [vmem:[%s3933_s1 + $0x5c0] ss:$8 sps:$4 sm:$0xff]   ;;  %v2755_v17 = vld [vmem:[%s3933_s1 + $0x1d4] ss:$8 sps:$4 sm:$0xff]  }
  0x42   :  { %1715 = vmatmul.mubr.bf16.vlgmr.msra.gmra.mrb[0].mxu1 %v3256_v20 }
  0x43   :  { %1879 = vmatmul.mubr.bf16.vlgmr.msra.gmra.mrb[0].mxu0 %v3259_v21  ;;  %1724 = vmatpush1.bf16.msra.mxu1 %v2674_v24  ;;  %v2764_v24 = vld [vmem:[%s3933_s1 + $0x5e4] ss:$8 sps:$4 sm:$0xff]  }
  0x44   :  { %1888 = vmatpush1.bf16.msra.mxu0 %v2678_v25  ;;  %1725 = vmatprep.subr.bf16.mxu1 %v2683_v26  ;;  %v2759_v25 = vld [vmem:[%s3933_s1 + $0x1e0] ss:$8 sps:$4 sm:$0xff]  }
  0x45   :  { %1889 = vmatprep.subr.bf16.mxu0 %v2686_v27  ;;  %1755 = vmatprep.mubr.bf16.mxu1 %v335_v31  ;;  %v2762_v26 = vld [vmem:[%s3933_s1 + $0x5e0] ss:$8 sps:$4 sm:$0xff]   ;;  %v2767_v27 = vld [vmem:[%s3933_s1 + $0x1f4] ss:$8 sps:$4 sm:$0xff]  }
  0x46   :  { %1919 = vmatprep.mubr.bf16.mxu0 %v384_v32  ;;  %v2770_v31 = vld [vmem:[%s3933_s1 + $0x5f4] ss:$8 sps:$4 sm:$0xff]   ;;  %v2765_v32 = vld [vmem:[%s3933_s1 + $0x1f0] ss:$8 sps:$4 sm:$0xff]  }
  0x47   :  { %1726 = vmatpush1.bf16.msra.mxu1 %v2681_v34  ;;  %v2768_v34 = vld [vmem:[%s3933_s1 + $0x5f0] ss:$8 sps:$4 sm:$0xff]  }
  0x48   :  { %1890 = vmatpush1.bf16.msra.mxu0 %v2684_v35  ;;  %1727 = vmatprep.subr.bf16.mxu1 %v2689_v36  ;;  %v2773_v35 = vld [vmem:[%s3933_s1 + $0x204] ss:$8 sps:$4 sm:$0xff]  }
  0x49   :  { %1891 = vmatprep.subr.bf16.mxu0 %v2692_v37  ;;  %v2776_v36 = vld [vmem:[%s3933_s1 + $0x604] ss:$8 sps:$4 sm:$0xff]   ;;  %v333_v37 = vcombine.high %v3256_v20, %v3256_v20  ;;  %v2782_v20 = vld [vmem:[%s3933_s1 + $0x614] ss:$8 sps:$4 sm:$0xff]  }
  0x4b   :  { %1728 = vmatpush1.bf16.msra.mxu1 %v2687_v38  ;;  %v382_v38 = vcombine.high %v3259_v21, %v3259_v21  ;;  %v2777_v21 = vld [vmem:[%s3933_s1 + $0x210] ss:$8 sps:$4 sm:$0xff]  }
  0x4c   :  { %1892 = vmatpush1.bf16.msra.mxu0 %v2690_v39  ;;  %1729 = vmatprep.subr.bf16.mxu1 %v2695_v40  ;;  %v2771_v39 = vld [vmem:[%s3933_s1 + $0x200] ss:$8 sps:$4 sm:$0xff]  }
  0x4d   :  { %1893 = vmatprep.subr.bf16.mxu0 %v2698_v41  ;;  %v2774_v40 = vld [vmem:[%s3933_s1 + $0x600] ss:$8 sps:$4 sm:$0xff]   ;;  %v2779_v41 = vld [vmem:[%s3933_s1 + $0x214] ss:$8 sps:$4 sm:$0xff]  }
  0x4f   :  { %1730 = vmatpush1.bf16.msra.mxu1 %v2693_v42  ;;  %v2780_v42 = vld [vmem:[%s3933_s1 + $0x610] ss:$8 sps:$4 sm:$0xff]  }
  0x50   :  { %1894 = vmatpush1.bf16.msra.mxu0 %v2696_v44  ;;  %1731 = vmatprep.subr.bf16.mxu1 %v2701_v45  ;;  %v2785_v44 = vld [vmem:[%s3933_s1 + $0x224] ss:$8 sps:$4 sm:$0xff]  }
  0x51   :  { %1895 = vmatprep.subr.bf16.mxu0 %v2704_v46  ;;  %v2788_v45 = vld [vmem:[%s3933_s1 + $0x624] ss:$8 sps:$4 sm:$0xff]   ;;  %v2783_v46 = vld [vmem:[%s3933_s1 + $0x220] ss:$8 sps:$4 sm:$0xff]  }
  0x53   :  { %1732 = vmatpush1.bf16.msra.mxu1 %v2699_v47  ;;  %v2786_v47 = vld [vmem:[%s3933_s1 + $0x620] ss:$8 sps:$4 sm:$0xff]  }
  0x54   :  { %1896 = vmatpush1.bf16.msra.mxu0 %v2702_v48  ;;  %1733 = vmatprep.subr.bf16.mxu1 %v2707_v49  ;;  %v2791_v48 = vld [vmem:[%s3933_s1 + $0x234] ss:$8 sps:$4 sm:$0xff]  }
  0x55   :  { %1897 = vmatprep.subr.bf16.mxu0 %v2710_v50  ;;  %v2794_v49 = vld [vmem:[%s3933_s1 + $0x634] ss:$8 sps:$4 sm:$0xff]   ;;  %v2789_v50 = vld [vmem:[%s3933_s1 + $0x230] ss:$8 sps:$4 sm:$0xff]  }
  0x57   :  { %1734 = vmatpush1.bf16.msra.mxu1 %v2705_v51  ;;  %v2792_v51 = vld [vmem:[%s3933_s1 + $0x630] ss:$8 sps:$4 sm:$0xff]  }
  0x58   :  { %1898 = vmatpush1.bf16.msra.mxu0 %v2708_v52  ;;  %1735 = vmatprep.subr.bf16.mxu1 %v2713_v53  ;;  %v2797_v52 = vld [vmem:[%s3933_s1 + $0x244] ss:$8 sps:$4 sm:$0xff]  }
  0x59   :  { %1899 = vmatprep.subr.bf16.mxu0 %v2716_v54  ;;  %v2800_v53 = vld [vmem:[%s3933_s1 + $0x644] ss:$8 sps:$4 sm:$0xff]   ;;  %v2795_v54 = vld [vmem:[%s3933_s1 + $0x240] ss:$8 sps:$4 sm:$0xff]  }
  0x5b   :  { %1736 = vmatpush1.bf16.msra.mxu1 %v2711_v55  ;;  %v2798_v55 = vld [vmem:[%s3933_s1 + $0x640] ss:$8 sps:$4 sm:$0xff]  }
  0x5c   :  { %1900 = vmatpush1.bf16.msra.mxu0 %v2714_v56  ;;  %1737 = vmatprep.subr.bf16.mxu1 %v2719_v57  ;;  %v2803_v56 = vld [vmem:[%s3933_s1 + $0x254] ss:$8 sps:$4 sm:$0xff]  }
  0x5d   :  { %1901 = vmatprep.subr.bf16.mxu0 %v2722_v58  ;;  %v2806_v57 = vld [vmem:[%s3933_s1 + $0x654] ss:$8 sps:$4 sm:$0xff]   ;;  %v2801_v58 = vld [vmem:[%s3933_s1 + $0x250] ss:$8 sps:$4 sm:$0xff]  }
  0x5f   :  { %1738 = vmatpush1.bf16.msra.mxu1 %v2717_v59  ;;  %v2804_v59 = vld [vmem:[%s3933_s1 + $0x650] ss:$8 sps:$4 sm:$0xff]  }
  0x60   :  { %1902 = vmatpush1.bf16.msra.mxu0 %v2720_v60  ;;  %1739 = vmatprep.subr.bf16.mxu1 %v2725_v61  ;;  %v2809_v60 = vld [vmem:[%s3933_s1 + $0x264] ss:$8 sps:$4 sm:$0xff]  }
  0x61   :  { %1903 = vmatprep.subr.bf16.mxu0 %v2728_v62  ;;  %v2812_v61 = vld [vmem:[%s3933_s1 + $0x664] ss:$8 sps:$4 sm:$0xff]   ;;  %v2807_v62 = vld [vmem:[%s3933_s1 + $0x260] ss:$8 sps:$4 sm:$0xff]  }
  0x63   :  { %1740 = vmatpush1.bf16.msra.mxu1 %v2723_v63  ;;  %v2810_v63 = vld [vmem:[%s3933_s1 + $0x660] ss:$8 sps:$4 sm:$0xff]  }
  0x64   :  { %1904 = vmatpush1.bf16.msra.mxu0 %v2726_v0  ;;  %1741 = vmatprep.subr.bf16.mxu1 %v2731_v1  ;;  %v2815_v0 = vld [vmem:[%s3933_s1 + $0x274] ss:$8 sps:$4 sm:$0xff]  }
  0x65   :  { %1905 = vmatprep.subr.bf16.mxu0 %v2734_v2  ;;  %v2818_v1 = vld [vmem:[%s3933_s1 + $0x674] ss:$8 sps:$4 sm:$0xff]   ;;  %v2813_v2 = vld [vmem:[%s3933_s1 + $0x270] ss:$8 sps:$4 sm:$0xff]  }
  0x67   :  { %1742 = vmatpush1.bf16.msra.mxu1 %v2729_v3  ;;  %v2816_v3 = vld [vmem:[%s3933_s1 + $0x670] ss:$8 sps:$4 sm:$0xff]  }
  0x68   :  { %1906 = vmatpush1.bf16.msra.mxu0 %v2732_v4  ;;  %1743 = vmatprep.subr.bf16.mxu1 %v2737_v5  ;;  %v2821_v4 = vld [vmem:[%s3933_s1 + $0x284] ss:$8 sps:$4 sm:$0xff]  }
  0x69   :  { %1907 = vmatprep.subr.bf16.mxu0 %v2740_v6  ;;  %v2824_v5 = vld [vmem:[%s3933_s1 + $0x684] ss:$8 sps:$4 sm:$0xff]   ;;  %v2819_v6 = vld [vmem:[%s3933_s1 + $0x280] ss:$8 sps:$4 sm:$0xff]  }
  0x6b   :  { %1744 = vmatpush1.bf16.msra.mxu1 %v2735_v7  ;;  %v2822_v7 = vld [vmem:[%s3933_s1 + $0x680] ss:$8 sps:$4 sm:$0xff]  }
  0x6c   :  { %1908 = vmatpush1.bf16.msra.mxu0 %v2738_v8  ;;  %1745 = vmatprep.subr.bf16.mxu1 %v2743_v9  ;;  %v2827_v8 = vld [vmem:[%s3933_s1 + $0x294] ss:$8 sps:$4 sm:$0xff]  }
  0x6d   :  { %1909 = vmatprep.subr.bf16.mxu0 %v2746_v10  ;;  %v2830_v9 = vld [vmem:[%s3933_s1 + $0x694] ss:$8 sps:$4 sm:$0xff]   ;;  %v2825_v10 = vld [vmem:[%s3933_s1 + $0x290] ss:$8 sps:$4 sm:$0xff]  }
  0x6f   :  { %1746 = vmatpush1.bf16.msra.mxu1 %v2741_v11  ;;  %v2828_v11 = vld [vmem:[%s3933_s1 + $0x690] ss:$8 sps:$4 sm:$0xff]  }
  0x70   :  { %1910 = vmatpush1.bf16.msra.mxu0 %v2744_v12  ;;  %1747 = vmatprep.subr.bf16.mxu1 %v2749_v13  ;;  %v2833_v12 = vld [vmem:[%s3933_s1 + $0x2a4] ss:$8 sps:$4 sm:$0xff]  }
  0x71   :  { %1911 = vmatprep.subr.bf16.mxu0 %v2752_v14  ;;  %v2836_v13 = vld [vmem:[%s3933_s1 + $0x6a4] ss:$8 sps:$4 sm:$0xff]   ;;  %v2831_v14 = vld [vmem:[%s3933_s1 + $0x2a0] ss:$8 sps:$4 sm:$0xff]  }
  0x73   :  { %1748 = vmatpush1.bf16.msra.mxu1 %v2747_v15  ;;  %v2834_v15 = vld [vmem:[%s3933_s1 + $0x6a0] ss:$8 sps:$4 sm:$0xff]  }
  0x74   :  { %1912 = vmatpush1.bf16.msra.mxu0 %v2750_v16  ;;  %1749 = vmatprep.subr.bf16.mxu1 %v2755_v17  ;;  %v2839_v16 = vld [vmem:[%s3933_s1 + $0x2b4] ss:$8 sps:$4 sm:$0xff]  }
  0x75   :  { %1913 = vmatprep.subr.bf16.mxu0 %v2758_v18  ;;  %v2842_v17 = vld [vmem:[%s3933_s1 + $0x6b4] ss:$8 sps:$4 sm:$0xff]   ;;  %v2837_v18 = vld [vmem:[%s3933_s1 + $0x2b0] ss:$8 sps:$4 sm:$0xff]  }
  0x77   :  { %1750 = vmatpush1.bf16.msra.mxu1 %v2753_v19  ;;  %v2840_v19 = vld [vmem:[%s3933_s1 + $0x6b0] ss:$8 sps:$4 sm:$0xff]  }
  0x78   :  { %1914 = vmatpush1.bf16.msra.mxu0 %v2756_v22  ;;  %1751 = vmatprep.subr.bf16.mxu1 %v2761_v23  ;;  %v2845_v22 = vld [vmem:[%s3933_s1 + $0x2c4] ss:$8 sps:$4 sm:$0xff]  }
  0x79   :  { %1915 = vmatprep.subr.bf16.mxu0 %v2764_v24  ;;  %v2848_v23 = vld [vmem:[%s3933_s1 + $0x6c4] ss:$8 sps:$4 sm:$0xff]   ;;  %v2843_v24 = vld [vmem:[%s3933_s1 + $0x2c0] ss:$8 sps:$4 sm:$0xff]  }
  0x7b   :  { %1752 = vmatpush1.bf16.msra.mxu1 %v2759_v25  ;;  %v2846_v25 = vld [vmem:[%s3933_s1 + $0x6c0] ss:$8 sps:$4 sm:$0xff]  }
  0x7c   :  { %1916 = vmatpush1.bf16.msra.mxu0 %v2762_v26  ;;  %1753 = vmatprep.subr.bf16.mxu1 %v2767_v27  ;;  %v2851_v26 = vld [vmem:[%s3933_s1 + $0x2d4] ss:$8 sps:$4 sm:$0xff]  }
  0x7d   :  { %1917 = vmatprep.subr.bf16.mxu0 %v2770_v31  ;;  %v2854_v27 = vld [vmem:[%s3933_s1 + $0x6d4] ss:$8 sps:$4 sm:$0xff]   ;;  %v2849_v31 = vld [vmem:[%s3933_s1 + $0x2d0] ss:$8 sps:$4 sm:$0xff]  }
  0x7f   :  { %1754 = vmatpush1.bf16.msra.mxu1 %v2765_v32  ;;  %v2852_v32 = vld [vmem:[%s3933_s1 + $0x6d0] ss:$8 sps:$4 sm:$0xff]  }
  0x80   :  { %1918 = vmatpush1.bf16.msra.mxu0 %v2768_v34  ;;  %1764 = vmatprep.subr.bf16.mxu1 %v2773_v35  ;;  %v2857_v34 = vld [vmem:[%s3933_s1 + $0x2e4] ss:$8 sps:$4 sm:$0xff]  }
  0x81   :  { %1928 = vmatprep.subr.bf16.mxu0 %v2776_v36  ;;  %v2860_v35 = vld [vmem:[%s3933_s1 + $0x6e4] ss:$8 sps:$4 sm:$0xff]  }
  0x82   :  { %1756 = vmatmul.mubr.bf16.vlgmr.msra.gmra.mrb[0].mxu1 %v333_v37 }
  0x83   :  { %1920 = vmatmul.mubr.bf16.vlgmr.msra.gmra.mrb[0].mxu0 %v382_v38  ;;  %1765 = vmatpush1.bf16.msra.mxu1 %v2771_v39 }
  0x84   :  { %1929 = vmatpush1.bf16.msra.mxu0 %v2774_v40  ;;  %1766 = vmatprep.subr.bf16.mxu1 %v2779_v41 }
  0x85   :  { %1930 = vmatprep.subr.bf16.mxu0 %v2782_v20  ;;  %1796 = vmatprep.mubr.bf16.mxu1 %v3274_v28 }
  0x86   :  { %1960 = vmatprep.mubr.bf16.mxu0 %v3277_v29 }
  0x87   :  { %1767 = vmatpush1.bf16.msra.mxu1 %v2777_v21 }
  0x88   :  { %1931 = vmatpush1.bf16.msra.mxu0 %v2780_v42  ;;  %1768 = vmatprep.subr.bf16.mxu1 %v2785_v44 }
  0x89   :  { %1932 = vmatprep.subr.bf16.mxu0 %v2788_v45 }
  0x8b   :  { %1769 = vmatpush1.bf16.msra.mxu1 %v2783_v46 }
  0x8c   :  { %1933 = vmatpush1.bf16.msra.mxu0 %v2786_v47  ;;  %1770 = vmatprep.subr.bf16.mxu1 %v2791_v48 }
  0x8d   :  { %1934 = vmatprep.subr.bf16.mxu0 %v2794_v49 }
  0x8f   :  { %1771 = vmatpush1.bf16.msra.mxu1 %v2789_v50 }
  0x90   :  { %1935 = vmatpush1.bf16.msra.mxu0 %v2792_v51  ;;  %1772 = vmatprep.subr.bf16.mxu1 %v2797_v52 }
  0x91   :  { %1936 = vmatprep.subr.bf16.mxu0 %v2800_v53 }
  0x93   :  { %1773 = vmatpush1.bf16.msra.mxu1 %v2795_v54 }
  0x94   :  { %1937 = vmatpush1.bf16.msra.mxu0 %v2798_v55  ;;  %1774 = vmatprep.subr.bf16.mxu1 %v2803_v56 }
  0x95   :  { %1938 = vmatprep.subr.bf16.mxu0 %v2806_v57 }
  0x97   :  { %1775 = vmatpush1.bf16.msra.mxu1 %v2801_v58 }
  0x98   :  { %1939 = vmatpush1.bf16.msra.mxu0 %v2804_v59  ;;  %1776 = vmatprep.subr.bf16.mxu1 %v2809_v60 }
  0x99   :  { %1940 = vmatprep.subr.bf16.mxu0 %v2812_v61 }
  0x9b   :  { %1777 = vmatpush1.bf16.msra.mxu1 %v2807_v62 }
  0x9c   :  { %1941 = vmatpush1.bf16.msra.mxu0 %v2810_v63  ;;  %1778 = vmatprep.subr.bf16.mxu1 %v2815_v0 }
  0x9d   :  { %1942 = vmatprep.subr.bf16.mxu0 %v2818_v1 }
  0x9f   :  { %1779 = vmatpush1.bf16.msra.mxu1 %v2813_v2 }
  0xa0   :  { %1943 = vmatpush1.bf16.msra.mxu0 %v2816_v3  ;;  %1780 = vmatprep.subr.bf16.mxu1 %v2821_v4 }
  0xa1   :  { %1944 = vmatprep.subr.bf16.mxu0 %v2824_v5 }
  0xa3   :  { %1781 = vmatpush1.bf16.msra.mxu1 %v2819_v6 }
  0xa4   :  { %1945 = vmatpush1.bf16.msra.mxu0 %v2822_v7  ;;  %1782 = vmatprep.subr.bf16.mxu1 %v2827_v8 }
  0xa5   :  { %1946 = vmatprep.subr.bf16.mxu0 %v2830_v9 }
  0xa7   :  { %1783 = vmatpush1.bf16.msra.mxu1 %v2825_v10 }
  0xa8   :  { %1947 = vmatpush1.bf16.msra.mxu0 %v2828_v11  ;;  %1784 = vmatprep.subr.bf16.mxu1 %v2833_v12 }
  0xa9   :  { %1948 = vmatprep.subr.bf16.mxu0 %v2836_v13 }
  0xab   :  { %1785 = vmatpush1.bf16.msra.mxu1 %v2831_v14 }
  0xac   :  { %1949 = vmatpush1.bf16.msra.mxu0 %v2834_v15  ;;  %1786 = vmatprep.subr.bf16.mxu1 %v2839_v16 }
  0xad   :  { %1950 = vmatprep.subr.bf16.mxu0 %v2842_v17 }
  0xaf   :  { %1787 = vmatpush1.bf16.msra.mxu1 %v2837_v18 }
  0xb0   :  { %1951 = vmatpush1.bf16.msra.mxu0 %v2840_v19  ;;  %1788 = vmatprep.subr.bf16.mxu1 %v2845_v22 }
  0xb1   :  { %1952 = vmatprep.subr.bf16.mxu0 %v2848_v23 }
  0xb3   :  { %1789 = vmatpush1.bf16.msra.mxu1 %v2843_v24 }
  0xb4   :  { %1953 = vmatpush1.bf16.msra.mxu0 %v2846_v25  ;;  %1790 = vmatprep.subr.bf16.mxu1 %v2851_v26 }
  0xb5   :  { %1954 = vmatprep.subr.bf16.mxu0 %v2854_v27 }
  0xb6   :  { %10 = vsyncpa [#allocation4], 0  ;;  %v2855_v36 = vld [vmem:[%s3933_s1 + $0x2e0] ss:$8 sps:$4 sm:$0xff]   ;;  %v2863_v38 = vld [vmem:[%s3933_s1 + $0x2f4] ss:$8 sps:$4 sm:$0xff]   ;;  %v336_v47 = vcombine.high %v3274_v28, %v3274_v28  ;;  %v385_v48 = vcombine.high %v3277_v29, %v3277_v29 }
  0xb7   :  { %1791 = vmatpush1.bf16.msra.mxu1 %v2849_v31  ;;  %v2858_v37 = vld [vmem:[%s3933_s1 + $0x6e0] ss:$8 sps:$4 sm:$0xff]   ;;  %v2866_v39 = vld [vmem:[%s3933_s1 + $0x6f4] ss:$8 sps:$4 sm:$0xff]   ;;  %v2861_v40 = vld [vmem:[%s3933_s1 + $0x2f0] ss:$8 sps:$4 sm:$0xff]  }
  0xb8   :  { %1955 = vmatpush1.bf16.msra.mxu0 %v2852_v32  ;;  %1792 = vmatprep.subr.bf16.mxu1 %v2857_v34  ;;  %v2864_v41 = vld [vmem:[%s3933_s1 + $0x6f0] ss:$8 sps:$4 sm:$0xff]   ;;  %v2869_v20 = vld [vmem:[%s3933_s1 + $0x304] ss:$8 sps:$4 sm:$0xff]   ;;  %v2867_v42 = vld [vmem:[%s3933_s1 + $0x300] ss:$8 sps:$4 sm:$0xff]  }
  0xb9   :  { %1956 = vmatprep.subr.bf16.mxu0 %v2860_v35  ;;  %v2872_v21 = vld [vmem:[%s3933_s1 + $0x704] ss:$8 sps:$4 sm:$0xff]   ;;  %v2870_v44 = vld [vmem:[%s3933_s1 + $0x700] ss:$8 sps:$4 sm:$0xff]   ;;  %v2875_v45 = vld [vmem:[%s3933_s1 + $0x314] ss:$8 sps:$4 sm:$0xff]  }
  0xba   :  { %v2878_v46 = vld [vmem:[%s3933_s1 + $0x714] ss:$8 sps:$4 sm:$0xff]   ;;  %v2873_v49 = vld [vmem:[%s3933_s1 + $0x310] ss:$8 sps:$4 sm:$0xff]   ;;  %v2881_v28 = vld [vmem:[%s3933_s1 + $0x324] ss:$8 sps:$4 sm:$0xff]  }
  0xbb   :  { %1793 = vmatpush1.bf16.msra.mxu1 %v2855_v36  ;;  %v2876_v50 = vld [vmem:[%s3933_s1 + $0x710] ss:$8 sps:$4 sm:$0xff]   ;;  %v2884_v29 = vld [vmem:[%s3933_s1 + $0x724] ss:$8 sps:$4 sm:$0xff]   ;;  %v2879_v51 = vld [vmem:[%s3933_s1 + $0x320] ss:$8 sps:$4 sm:$0xff]  }
  0xbc   :  { %1957 = vmatpush1.bf16.msra.mxu0 %v2858_v37  ;;  %1794 = vmatprep.subr.bf16.mxu1 %v2863_v38  ;;  %v2882_v52 = vld [vmem:[%s3933_s1 + $0x720] ss:$8 sps:$4 sm:$0xff]   ;;  %v2887_v53 = vld [vmem:[%s3933_s1 + $0x334] ss:$8 sps:$4 sm:$0xff]   ;;  %v2885_v55 = vld [vmem:[%s3933_s1 + $0x330] ss:$8 sps:$4 sm:$0xff]  }
  0xbd   :  { %1958 = vmatprep.subr.bf16.mxu0 %v2866_v39  ;;  %v2890_v54 = vld [vmem:[%s3933_s1 + $0x734] ss:$8 sps:$4 sm:$0xff]   ;;  %v2888_v56 = vld [vmem:[%s3933_s1 + $0x730] ss:$8 sps:$4 sm:$0xff]   ;;  %v2893_v57 = vld [vmem:[%s3933_s1 + $0x344] ss:$8 sps:$4 sm:$0xff]  }
  0xbe   :  { %v2896_v58 = vld [vmem:[%s3933_s1 + $0x744] ss:$8 sps:$4 sm:$0xff]   ;;  %v2891_v59 = vld [vmem:[%s3933_s1 + $0x340] ss:$8 sps:$4 sm:$0xff]   ;;  %v2899_v61 = vld [vmem:[%s3933_s1 + $0x354] ss:$8 sps:$4 sm:$0xff]  }
  0xbf   :  { %1795 = vmatpush1.bf16.msra.mxu1 %v2861_v40  ;;  %v2894_v60 = vld [vmem:[%s3933_s1 + $0x740] ss:$8 sps:$4 sm:$0xff]   ;;  %v2902_v62 = vld [vmem:[%s3933_s1 + $0x754] ss:$8 sps:$4 sm:$0xff]   ;;  %v2897_v63 = vld [vmem:[%s3933_s1 + $0x350] ss:$8 sps:$4 sm:$0xff]  }
  0xc0   :  { %1959 = vmatpush1.bf16.msra.mxu0 %v2864_v41  ;;  %1805 = vmatprep.subr.bf16.mxu1 %v2869_v20  ;;  %v2900_v0 = vld [vmem:[%s3933_s1 + $0x750] ss:$8 sps:$4 sm:$0xff]   ;;  %v2905_v1 = vld [vmem:[%s3933_s1 + $0x364] ss:$8 sps:$4 sm:$0xff]   ;;  %v2903_v3 = vld [vmem:[%s3933_s1 + $0x360] ss:$8 sps:$4 sm:$0xff]  }
  0xc1   :  { %1969 = vmatprep.subr.bf16.mxu0 %v2872_v21  ;;  %v2908_v2 = vld [vmem:[%s3933_s1 + $0x764] ss:$8 sps:$4 sm:$0xff]   ;;  %v2906_v4 = vld [vmem:[%s3933_s1 + $0x760] ss:$8 sps:$4 sm:$0xff]   ;;  %v2911_v5 = vld [vmem:[%s3933_s1 + $0x374] ss:$8 sps:$4 sm:$0xff]  }
  0xc2   :  { %1797 = vmatmul.mubr.bf16.vlgmr.msra.gmra.mrb[0].mxu1 %v3280_v30  ;;  %v2914_v6 = vld [vmem:[%s3933_s1 + $0x774] ss:$8 sps:$4 sm:$0xff]   ;;  %v2909_v7 = vld [vmem:[%s3933_s1 + $0x370] ss:$8 sps:$4 sm:$0xff]   ;;  %v2917_v9 = vld [vmem:[%s3933_s1 + $0x384] ss:$8 sps:$4 sm:$0xff]  }
  0xc3   :  { %1961 = vmatmul.mubr.bf16.vlgmr.msra.gmra.mrb[0].mxu0 %v3285_v33  ;;  %1806 = vmatpush1.bf16.msra.mxu1 %v2867_v42  ;;  %v2912_v8 = vld [vmem:[%s3933_s1 + $0x770] ss:$8 sps:$4 sm:$0xff]   ;;  %v2920_v10 = vld [vmem:[%s3933_s1 + $0x784] ss:$8 sps:$4 sm:$0xff]   ;;  %v2915_v11 = vld [vmem:[%s3933_s1 + $0x380] ss:$8 sps:$4 sm:$0xff]  }
  0xc4   :  { %1970 = vmatpush1.bf16.msra.mxu0 %v2870_v44  ;;  %1807 = vmatprep.subr.bf16.mxu1 %v2875_v45  ;;  %v2918_v12 = vld [vmem:[%s3933_s1 + $0x780] ss:$8 sps:$4 sm:$0xff]   ;;  %v2923_v13 = vld [vmem:[%s3933_s1 + $0x394] ss:$8 sps:$4 sm:$0xff]   ;;  %v2921_v15 = vld [vmem:[%s3933_s1 + $0x390] ss:$8 sps:$4 sm:$0xff]  }
  0xc5   :  { %1971 = vmatprep.subr.bf16.mxu0 %v2878_v46  ;;  %1837 = vmatprep.mubr.bf16.mxu1 %v336_v47  ;;  %v2926_v14 = vld [vmem:[%s3933_s1 + $0x794] ss:$8 sps:$4 sm:$0xff]   ;;  %v2924_v16 = vld [vmem:[%s3933_s1 + $0x790] ss:$8 sps:$4 sm:$0xff]   ;;  %v2929_v17 = vld [vmem:[%s3933_s1 + $0x3a4] ss:$8 sps:$4 sm:$0xff]   ;;  %v334_v47 = vcombine.high %v3280_v30, %v3280_v30 }
  0xc6   :  { %2001 = vmatprep.mubr.bf16.mxu0 %v385_v48  ;;  %v2932_v18 = vld [vmem:[%s3933_s1 + $0x7a4] ss:$8 sps:$4 sm:$0xff]   ;;  %v2927_v19 = vld [vmem:[%s3933_s1 + $0x3a0] ss:$8 sps:$4 sm:$0xff]   ;;  %v2935_v23 = vld [vmem:[%s3933_s1 + $0x3b4] ss:$8 sps:$4 sm:$0xff]   ;;  %v383_v48 = vcombine.high %v3285_v33, %v3285_v33 }
  0xc7   :  { %1808 = vmatpush1.bf16.msra.mxu1 %v2873_v49  ;;  %v2930_v22 = vld [vmem:[%s3933_s1 + $0x7a0] ss:$8 sps:$4 sm:$0xff]   ;;  %v2938_v24 = vld [vmem:[%s3933_s1 + $0x7b4] ss:$8 sps:$4 sm:$0xff]   ;;  %v2933_v25 = vld [vmem:[%s3933_s1 + $0x3b0] ss:$8 sps:$4 sm:$0xff]  }
  0xc8   :  { %1972 = vmatpush1.bf16.msra.mxu0 %v2876_v50  ;;  %1809 = vmatprep.subr.bf16.mxu1 %v2881_v28  ;;  %v2936_v26 = vld [vmem:[%s3933_s1 + $0x7b0] ss:$8 sps:$4 sm:$0xff]   ;;  %v2941_v27 = vld [vmem:[%s3933_s1 + $0x3c4] ss:$8 sps:$4 sm:$0xff]   ;;  %v2939_v32 = vld [vmem:[%s3933_s1 + $0x3c0] ss:$8 sps:$4 sm:$0xff]  }
  0xc9   :  { %1973 = vmatprep.subr.bf16.mxu0 %v2884_v29  ;;  %v2944_v31 = vld [vmem:[%s3933_s1 + $0x7c4] ss:$8 sps:$4 sm:$0xff]   ;;  %v2942_v34 = vld [vmem:[%s3933_s1 + $0x7c0] ss:$8 sps:$4 sm:$0xff]   ;;  %v2947_v35 = vld [vmem:[%s3933_s1 + $0x3d4] ss:$8 sps:$4 sm:$0xff]  }
  0xca   :  { %v2950_v36 = vld [vmem:[%s3933_s1 + $0x7d4] ss:$8 sps:$4 sm:$0xff]   ;;  %v2945_v37 = vld [vmem:[%s3933_s1 + $0x3d0] ss:$8 sps:$4 sm:$0xff]   ;;  %v2953_v39 = vld [vmem:[%s3933_s1 + $0x3e4] ss:$8 sps:$4 sm:$0xff]  }
  0xcb   :  { %1810 = vmatpush1.bf16.msra.mxu1 %v2879_v51  ;;  %v2948_v38 = vld [vmem:[%s3933_s1 + $0x7d0] ss:$8 sps:$4 sm:$0xff]   ;;  %v2956_v40 = vld [vmem:[%s3933_s1 + $0x7e4] ss:$8 sps:$4 sm:$0xff]   ;;  %v2951_v41 = vld [vmem:[%s3933_s1 + $0x3e0] ss:$8 sps:$4 sm:$0xff]  }
  0xcc   :  { %1974 = vmatpush1.bf16.msra.mxu0 %v2882_v52  ;;  %1811 = vmatprep.subr.bf16.mxu1 %v2887_v53  ;;  %v2954_v20 = vld [vmem:[%s3933_s1 + $0x7e0] ss:$8 sps:$4 sm:$0xff]   ;;  %v2959_v21 = vld [vmem:[%s3933_s1 + $0x3f4] ss:$8 sps:$4 sm:$0xff]   ;;  %v2957_v44 = vld [vmem:[%s3933_s1 + $0x3f0] ss:$8 sps:$4 sm:$0xff]  }
  0xcd   :  { %1975 = vmatprep.subr.bf16.mxu0 %v2890_v54  ;;  %v2962_v42 = vld [vmem:[%s3933_s1 + $0x7f4] ss:$8 sps:$4 sm:$0xff]   ;;  %v2960_v45 = vld [vmem:[%s3933_s1 + $0x7f0] ss:$8 sps:$4 sm:$0xff]   ;;  %v2963_v46 = vld [vmem:[%s3935_s3 + $0x40] sm:$0xff]   ;;  %v3004_v28 = vmov 0.0  }
  0xce   :  { %v2964_v49 = vld [vmem:[%s3935_s3] sm:$0xff]   ;;  %v2965_v50 = vld [vmem:[%s3935_s3 + $0x48] sm:$0xff]   ;;  %26 = vst [vmem:[#allocation2] sm:$0xf] %v3004_v28  ;;  %v2967_v33 = vld [vmem:[%s3935_s3 + $0x50] sm:$0xff]   ;;  %s3006_s23 = smov [#allocation3]  }
  0xcf   :  { %1812 = vmatpush1.bf16.msra.mxu1 %v2885_v55  ;;  %v2966_v30 = vld [vmem:[%s3935_s3 + $0x8] sm:$0xff]   ;;  %v2968_v29 = vld [vmem:[%s3935_s3 + $0x10] sm:$0xff]   ;;  %v2969_v51 = vld [vmem:[%s3935_s3 + $0x58] sm:$0xff]   ;;  %s2244_s24 = sshll.u32 %s3006_s23, 4  ;;  %vm2236_vm0 = vcmask 74752   ;;  %s2245_s24 = int_to_ptr.vmem [resolvable:$true] %s2244_s24 }
  0xd0   :  { %1976 = vmatpush1.bf16.msra.mxu0 %v2888_v56  ;;  %1813 = vmatprep.subr.bf16.mxu1 %v2893_v57  ;;  %v2970_v52 = vld [vmem:[%s3935_s3 + $0x18] sm:$0xff]   ;;  %v2971_v53 = vld [vmem:[%s3935_s3 + $0x60] sm:$0xff]   ;;  %v2973_v55 = vld [vmem:[%s3935_s3 + $0x68] sm:$0xff]   ;;  %s2979_s25 = scalar_lea.vmem %s2245_s24, 32  ;;  %p2984_p1 = scmp.lt.s32.totalorder %s2245_s24, %s2245_s24 }
  0xd1   :  { %1977 = vmatprep.subr.bf16.mxu0 %v2896_v58  ;;  %v2972_v54 = vld [vmem:[%s3935_s3 + $0x20] sm:$0xff]   ;;  %v2974_v56 = vld [vmem:[%s3935_s3 + $0x28] sm:$0xff]   ;;  %v2975_v57 = vld [vmem:[%s3935_s3 + $0x70] sm:$0xff]   ;;  %p2980_p0 = scmp.ne.s32.totalorder %s2245_s24, %s2979_s25  ;;  %p2985_p2 = scmp.lt.s32.totalorder %s2979_s25, %s2979_s25 }
  0xd2   :  { %v2976_v58 = vld [vmem:[%s3935_s3 + $0x30] sm:$0xff]  }
  0xd3   :  { %1814 = vmatpush1.bf16.msra.mxu1 %v2891_v59  ;;  %v2977_v59 = vld [vmem:[%s3935_s3 + $0x78] sm:$0xff]   ;;  %p2986_p3 = por %p2985_p2, %p2984_p1 }
  0xd4   :  { %1978 = vmatpush1.bf16.msra.mxu0 %v2894_v60  ;;  %1815 = vmatprep.subr.bf16.mxu1 %v2899_v61  ;;  %v2978_v60 = vld [vmem:[%s3935_s3 + $0x38] sm:$0xff]   ;;  %v3005_v61 = vmov 1983009808  }
  0xd5   :  { %1979 = vmatprep.subr.bf16.mxu0 %v2902_v62  ;;  %v2014_v62 = vunpack.c.l.s4 %v3005_v61  ;;  %p2987_p4 = pnand %p2986_p3, %p2980_p0 }
  0xd7   :  { %1816 = vmatpush1.bf16.msra.mxu1 %v2897_v63  ;;  %v2015_v63 = vunpack.c.0.s8 %v2014_v62 }
  0xd8   :  { %1980 = vmatpush1.bf16.msra.mxu0 %v2900_v0  ;;  %1817 = vmatprep.subr.bf16.mxu1 %v2905_v1 }
  0xd9   :  { %1981 = vmatprep.subr.bf16.mxu0 %v2908_v2 }
  0xdb   :  { %1818 = vmatpush1.bf16.msra.mxu1 %v2903_v3 }
  0xdc   :  { %1982 = vmatpush1.bf16.msra.mxu0 %v2906_v4  ;;  %1819 = vmatprep.subr.bf16.mxu1 %v2911_v5 }
  0xdd   :  { %1983 = vmatprep.subr.bf16.mxu0 %v2914_v6  ;;  %v2018_v6 = vsub.s32 %v2015_v63, %v3154_v43 }
  0xdf   :  { %1820 = vmatpush1.bf16.msra.mxu1 %v2909_v7 }
  0xe0   :  { %1984 = vmatpush1.bf16.msra.mxu0 %v2912_v8  ;;  %1821 = vmatprep.subr.bf16.mxu1 %v2917_v9  ;;  %v2031_v9 = vsub.s32 0, %v3154_v43 }
  0xe1   :  { %1985 = vmatprep.subr.bf16.mxu0 %v2920_v10  ;;  %v2035_v10 = vsub.s32 1, %v3154_v43 }
  0xe3   :  { %1822 = vmatpush1.bf16.msra.mxu1 %v2915_v11 }
  0xe4   :  { %1986 = vmatpush1.bf16.msra.mxu0 %v2918_v12  ;;  %1823 = vmatprep.subr.bf16.mxu1 %v2923_v13  ;;  %v2027_v13 = vld [vmem:[%s3934_s2] sm:$0x3] }
  0xe5   :  { %1987 = vmatprep.subr.bf16.mxu0 %v2926_v14 }
  0xe7   :  { %1824 = vmatpush1.bf16.msra.mxu1 %v2921_v15  ;;  %v27_v15 = vld [vmem:[#allocation2] sm:$0xf] }
  0xe8   :  { %1988 = vmatpush1.bf16.msra.mxu0 %v2924_v16  ;;  %1825 = vmatprep.subr.bf16.mxu1 %v2929_v17  ;;  %v2032_v17 = vrot.slane %v2027_v13, %v2031_v9 }
  0xe9   :  { %1989 = vmatprep.subr.bf16.mxu0 %v2932_v18  ;;  %v2036_v18 = vrot.slane %v2027_v13, %v2035_v10 }
  0xeb   :  { %1826 = vmatpush1.bf16.msra.mxu1 %v2927_v19 }
  0xec   :  { %1990 = vmatpush1.bf16.msra.mxu0 %v2930_v22  ;;  %1827 = vmatprep.subr.bf16.mxu1 %v2935_v23  ;;  %v2037_v22 = vcombine.low %v2032_v17, %v2036_v18 }
  0xed   :  { %1991 = vmatprep.subr.bf16.mxu0 %v2938_v24 }
  0xee   :  { %v2044_v23 = vrot.slane %v2037_v22, %v2018_v6 }
  0xef   :  { %1828 = vmatpush1.bf16.msra.mxu1 %v2933_v25 }
  0xf0   :  { %1992 = vmatpush1.bf16.msra.mxu0 %v2936_v26  ;;  %1829 = vmatprep.subr.bf16.mxu1 %v2941_v27 }
  0xf1   :  { %1993 = vmatprep.subr.bf16.mxu0 %v2944_v31 }
  0xf3   :  { %1830 = vmatpush1.bf16.msra.mxu1 %v2939_v32 }
  0xf4   :  { %1994 = vmatpush1.bf16.msra.mxu0 %v2942_v34  ;;  %1831 = vmatprep.subr.bf16.mxu1 %v2947_v35  ;;  %v2508_v35 = vld [vmem:[%s3936_s4] ss:$0 sm:$0xff] }
  0xf5   :  { %1995 = vmatprep.subr.bf16.mxu0 %v2950_v36 }
  0xf7   :  { %1832 = vmatpush1.bf16.msra.mxu1 %v2945_v37 }
  0xf8   :  { %1996 = vmatpush1.bf16.msra.mxu0 %v2948_v38  ;;  %1833 = vmatprep.subr.bf16.mxu1 %v2953_v39 }
  0xf9   :  { %1997 = vmatprep.subr.bf16.mxu0 %v2956_v40 }
  0xfb   :  { %1834 = vmatpush1.bf16.msra.mxu1 %v2951_v41 }
  0xfc   :  { %1998 = vmatpush1.bf16.msra.mxu0 %v2954_v20  ;;  %1835 = vmatprep.subr.bf16.mxu1 %v2959_v21 }
  0xfd   :  { %1999 = vmatprep.subr.bf16.mxu0 %v2962_v42 }
  0xff   :  { %1836 = vmatpush1.bf16.msra.mxu1 %v2957_v44 }
 0x100   :  { %2000 = vmatpush1.bf16.msra.mxu0 %v2960_v45  ;;  %2525 = vmatprep.subr.bf16.mxu1 %v2963_v46 }
 0x102   :  { %1838 = vmatmul.mubr.bf16.vlgmr.msra.gmra.mrb[0].mxu1 %v334_v47 }
 0x103   :  { %2002 = vmatmul.mubr.bf16.vlgmr.msra.gmra.mrb[0].mxu0 %v383_v48  ;;  %2526 = vmatpush3.bf16.msra.mxu1 %v2964_v49 }
 0x104   :  { %2527 = vmatprep.subr.bf16.mxu1 %v2965_v50 }
 0x107   :  { %2528 = vmatpush3.bf16.msra.mxu1 %v2966_v30 }
 0x108   :  { %2529 = vmatprep.subr.bf16.mxu1 %v2967_v33 }
 0x10b   :  { %2530 = vmatpush3.bf16.msra.mxu1 %v2968_v29 }
 0x10c   :  { %2531 = vmatprep.subr.bf16.mxu1 %v2969_v51 }
 0x10f   :  { %2532 = vmatpush3.bf16.msra.mxu1 %v2970_v52 }
 0x110   :  { %2533 = vmatprep.subr.bf16.mxu1 %v2971_v53 }
 0x113   :  { %2534 = vmatpush3.bf16.msra.mxu1 %v2972_v54 }
 0x114   :  { %2535 = vmatprep.subr.bf16.mxu1 %v2973_v55 }
 0x117   :  { %2536 = vmatpush3.bf16.msra.mxu1 %v2974_v56 }
 0x118   :  { %2537 = vmatprep.subr.bf16.mxu1 %v2975_v57 }
 0x11b   :  { %2538 = vmatpush3.bf16.msra.mxu1 %v2976_v58 }
 0x11c   :  { %2539 = vmatprep.subr.bf16.mxu1 %v2977_v59 }
 0x11f   :  { %2540 = vmatpush3.bf16.msra.mxu1 %v2978_v60 }
 0x1d5   :  { %v1839_v0 = vpop.f32.mrb[0].mxu1 }
 0x1d6   :  { %v2003_v1 = vpop.f32.mrb[0].mxu0  ;;  %v1841_v3 = vpop.f32.mrb[1].mxu1 }
 0x1d7   :  { %v2547_v2 = vadd.f32 %v2003_v1, %v1839_v0  ;;  %v2005_v4 = vpop.f32.mrb[1].mxu0  ;;  %v1843_v7 = vpop.f32.mrb[2].mxu1 }
 0x1d8   :  { %v2548_v5 = vadd.f32 %v2005_v4, %v1841_v3  ;;  %v2007_v8 = vpop.f32.mrb[2].mxu0  ;;  %v1844_v11 = vpop.f32.mrb[3].mxu1 }
 0x1d9   :  { %v2008_v12 = vpop.f32.mrb[3].mxu0 }
 0x1da   :  { %v2012_v14 = vcombine.low %v2547_v2, %v2548_v5 }
 0x1dc   :  { %v2019_v16 = vrot.slane %v2012_v14, %v2018_v6 }
 0x1de   :  { %v2021_v19 = vadd.f32 %v2019_v16, %v27_v15 }
 0x1e0   :  { %2022 = vst [vmem:[#allocation2] sm:$0xf] %v2021_v19 }
 0x1e7   :  { %v2026_v24 = vld [vmem:[#allocation2] sm:$0xf] }
 0x1e8   :  { %v2046_v25 = vadd.f32 %v2044_v23, %v2026_v24 }
 0x1ea   :  { %v2047_v26 = vmax.f32 %v2046_v25, 0.0 }
 0x1ec   :  { %v2055_v27 = vrot.slane %v2047_v26, %v2018_v6 }
 0x1ee   :  { %v2056_v43 = vcombine.high %v2055_v27, %v2055_v27  ;;  %v2059_v32 = vpack.c.bf16 %v2055_v27, %v2055_v27 }
 0x1f0   :  { %v2060_v31 = vpack.c.bf16 %v2056_v43, %v2056_v43 }
 0x1f2   :  { %2228 = vmatprep.mubr.bf16.mxu1 %v2060_v31 }
 0x1f3   :  { %2229 = vmatmul.mubr.bf16.vlgmr.msra.gmra.mrb[4].mxu1 %v2059_v32 }
 0x2c6   :  { %v2541_v34 = vpop.f32.mrb[4].mxu1 }
 0x2c7   :  { %v2542_v36 = vpop.f32.mrb[5].mxu1 }
 0x2c8   :  { %v2543_v37 = vadd.f32 %v2542_v36, %v2541_v34  ;;  %v2544_v38 = vpop.f32.mrb[6].mxu1 }
 0x2c9   :  { %v2545_v39 = vpop.f32.mrb[7].mxu1 }
 0x2ca   :  { %v2231_v40 = vadd.f32 %v2543_v37, %v2508_v35 }
 0x2cc   :  { %2237 = vst.msk [vmem:[#allocation3] sm:$0x3] %vm2236_vm0, %v2231_v40 }
 0x2cd   :  { %2990 = shalt.err (!%p2987_p4)
}
 0x2ce   :  { %s2991_s4 = scalar_lea.hbm %s3937_s5, 32 }
 0x2cf   :  { %p2992_p5 = scmp.ne.s32.totalorder %s3937_s5, %s2991_s4  ;;  %p2995_p6 = scmp.lt.u32.totalorder %s2991_s4, %s3937_s5 }
 0x2d1   :  { %p2997_p7 = pnand %p2995_p6, %p2992_p5 }
 0x2d3   :  { %3000 = shalt.err (!%p2997_p7)
}
 0x2d4   :  { %2247 = dma.vmem_to_hbm [thread:$0]  %s2245_s24, 32, %s3937_s5, [#allocation4]  }
 0x2d5   :  { %3001 = dma.done.wait [#allocation4], 32  }
 0x2d6   :  { %3002 = vsyncadd [#allocation4], 4294967264 }
 0x2d7   :  { %2251 = vsyncpa [#allocation4], 1 }

</bundles_post_ra>
